<compile_context>
chip_gen: v7x
topology: tpu7x:2x2x1
jax: 0.10.0
libtpu: 0.0.40
codegen_flags: <defaults>
</compile_context>

<pallas_src>
import jax
import jax.numpy as jnp
from jax.experimental import pallas as pl
from jax.experimental.pallas import tpu as pltpu


# --------------------------------------------------------------------------
# Fused kernel: one grid step processes one batch block end-to-end.
# All activations are feature-major: [feat, Bb] with Bb on the lane axis.
# --------------------------------------------------------------------------
def _build_fused_kernel(n_fc, T, A):
    n_rest_fc = n_fc - 1

    def kernel(item_ref, hist_ref, attr_ref,
               aw1_ref, ab1_ref, aw2_ref, ab2_ref,
               gwx_ref, gwh_ref, gb_ref, wa_ref,
               uwx_ref, uwh_ref, ub_ref,
               f0a_ref, f0b_ref, f0c_ref, f0d_ref, f0bias_ref,
               *rest):
        fc_refs = rest[:2 * n_rest_fc]
        out_ref = rest[2 * n_rest_fc]
        g_scr = rest[2 * n_rest_fc + 1]          # VMEM [T, H, Bb]: GRU states
        wl_scr = rest[2 * n_rest_fc + 2]         # VMEM [T, 1, Bb]: L1 act. weights

        f32 = jnp.float32

        def mm(a, b):
            return jnp.dot(a, b, preferred_element_type=f32)

        item = item_ref[...].astype(f32)         # [D, Bb]
        hist = hist_ref[...].astype(f32)         # [T, D, Bb]
        attr = attr_ref[...]                     # [T, 1, Bb] int32
        D, Bb = item.shape
        H = g_scr.shape[1]

        # ------------------- DIEN: GRU over history -------------------
        gwx = gwx_ref[...]                       # [3, H, D]
        gwh = gwh_ref[...]                       # [3, H, H]
        gb = gb_ref[...]                         # [4, H, 1]
        wxr, wxz, wxn = gwx[0], gwx[1], gwx[2]
        whr, whz, whn = gwh[0], gwh[1], gwh[2]
        br, bz, bxn, bhn = gb[0], gb[1], gb[2], gb[3]

        h = jnp.zeros((H, Bb), f32)
        # TODO(synk): for long histories (T > ~32) switch to lax.fori_loop; the
        # static unroll is fine at T=8 and lets the scheduler hoist x-projections.
        for t in range(T):
            x_t = hist[t]                                        # [D, Bb]
            r = jax.nn.sigmoid(mm(wxr, x_t) + mm(whr, h) + br)
            z = jax.nn.sigmoid(mm(wxz, x_t) + mm(whz, h) + bz)
            n = jnp.tanh(mm(wxn, x_t) + bxn + r * (mm(whn, h) + bhn))
            h = (1.0 - z) * n + z * h
            g_scr[t] = h                                         # contiguous slab

        g = g_scr[...]                                           # [T, H, Bb]

        # ------------- attention of GRU states vs. target item -------------
        q = mm(wa_ref[...], item)                                # [H, Bb]
        scores = jnp.sum(g * q[None, :, :], axis=1, keepdims=True)   # [T,1,Bb]
        scores = scores - jnp.max(scores, axis=0, keepdims=True)
        es = jnp.exp(scores)
        alpha = es * pl.reciprocal(jnp.sum(es, axis=0, keepdims=True), approx=True)

        # ----------------------------- AUGRU -----------------------------
        uwx = uwx_ref[...]
        uwh = uwh_ref[...]
        ub = ub_ref[...]
        uxr, uxz, uxn = uwx[0], uwx[1], uwx[2]
        uhr, uhz, uhn = uwh[0], uwh[1], uwh[2]
        cr, cz, cxn, chn = ub[0], ub[1], ub[2], ub[3]

        h2 = jnp.zeros((H, Bb), f32)
        for t in range(T):
            x_t = g[t]                                           # [H, Bb]
            r = jax.nn.sigmoid(mm(uxr, x_t) + mm(uhr, h2) + cr)
            u = jax.nn.sigmoid(mm(uxz, x_t) + mm(uhz, h2) + cz)
            n = jnp.tanh(mm(uxn, x_t) + cxn + r * (mm(uhn, h2) + chn))
            u_hat = alpha[t] * u                                 # [1,Bb]*[H,Bb]
            h2 = (1.0 - u_hat) * h2 + u_hat * n
        interest_evo = h2                                        # [H, Bb]

        # ------------- activation unit (shared by L1 / L2 passes) -------------
        aw1 = aw1_ref[...]                                       # [3, Ha, D]
        w1h, w1p, w1i = aw1[0], aw1[1], aw1[2]
        ab1 = ab1_ref[...]                                       # [Ha, 1]
        aw2 = aw2_ref[...]                                       # [1, Ha]
        ab2 = ab2_ref[...]                                       # [1, 1]
        item_term = mm(w1i, item) + ab1                          # [Ha, Bb], hoisted

        def act_w(v):                                            # [D,Bb] -> [1,Bb]
            zz = mm(w1h, v) + mm(w1p, v * item) + item_term
            zz = jnp.maximum(zz, 0.0)
            return mm(aw2, zz) + ab2

        # L1: per-timestep weights + weighted-sum interest
        i1 = jnp.zeros((D, Bb), f32)
        for t in range(T):
            w_t = act_w(hist[t])                                 # [1, Bb]
            wl_scr[t] = w_t
            i1 = i1 + w_t * hist[t]
        wl = wl_scr[...]                                         # [T, 1, Bb]

        # ------------- attribute_group + L2 activation unit -------------
        i2 = jnp.zeros((D, Bb), f32)
        for a in range(A):
            m_a = attr == a                                      # [T, 1, Bb] bool
            logits = jnp.where(m_a, wl, -1e9)
            logits = logits - jnp.max(logits, axis=0, keepdims=True)
            ea = jnp.exp(logits)
            p = ea * pl.reciprocal(jnp.sum(ea, axis=0, keepdims=True), approx=True)
            p = jnp.where(m_a, p, 0.0)   # absent attrs contribute exactly zero
            cluster = jnp.sum(hist * p, axis=0)                  # [D, Bb]
            w_a = act_w(cluster)                                 # [1, Bb]
            i2 = i2 + w_a * cluster

        # ------------- MLP head (first layer split -> no lane concat) -------------
        x = (mm(f0a_ref[...], i1) + mm(f0b_ref[...], i2)
             + mm(f0c_ref[...], interest_evo) + mm(f0d_ref[...], item)
             + f0bias_ref[...])
        if n_fc > 1:
            x = jnp.maximum(x, 0.0)
        for i in range(n_rest_fc):
            w = fc_refs[2 * i][...]
            b = fc_refs[2 * i + 1][...]
            x = mm(w, x) + b
            if i < n_rest_fc - 1:
                x = jnp.maximum(x, 0.0)
        out_ref[...] = jax.nn.sigmoid(x)                         # [1, Bb]

    return kernel


# --------------------------------------------------------------------------
# Wrapper: batch-on-lane blocking, weights resident (full-block specs).
# --------------------------------------------------------------------------
def _dhan_fused(item_e, hist_e, attrs, params, num_attrs):
    B, T, D = hist_e.shape
    A = int(num_attrs)
    au, dp, fc = params["act"], params["dien"], params["fc"]
    Ha = au["w1"].shape[-1]
    H = dp["wa"].shape[-1]
    n_fc = len(fc)
    f32 = jnp.float32

    # ---- weight prep: feature-major (y = W_T @ x), per-gate stacks ----
    # activation-unit fold: h@(W0+W3) + (h*it)@W2 + it@(W1-W3) + b1
    w1 = au["w1"].astype(f32)
    aw1 = jnp.stack([(w1[0] + w1[3]).T, w1[2].T, (w1[1] - w1[3]).T])   # [3, Ha, D]
    ab1 = au["b1"].reshape(Ha, 1).astype(f32)
    aw2 = au["w2"].reshape(Ha, 1).T.astype(f32)                        # [1, Ha]
    ab2 = au["b2"].reshape(1, 1).astype(f32)

    def split_gates_T(w):        # [in, 3H] -> [3, H, in]
        return jnp.stack([w[:, 0:H].T, w[:, H:2 * H].T, w[:, 2 * H:3 * H].T]
                         ).astype(f32)

    def gate_bias(bx, bh):       # -> [4, H, 1]: (bxr+bhr), (bxz+bhz), bxn, bhn
        bx = bx.reshape(3 * H)
        bh = bh.reshape(3 * H)
        return jnp.stack([(bx[0:H] + bh[0:H]).reshape(H, 1),
                          (bx[H:2 * H] + bh[H:2 * H]).reshape(H, 1),
                          bx[2 * H:3 * H].reshape(H, 1),
                          bh[2 * H:3 * H].reshape(H, 1)]).astype(f32)

    gwx = split_gates_T(dp["wx"])            # [3, H, D]
    gwh = split_gates_T(dp["wh"])            # [3, H, H]
    gb = gate_bias(dp["bx"], dp["bh"])       # [4, H, 1]
    waT = dp["wa"].T.astype(f32)             # [H, D]
    uwx = split_gates_T(dp["ux"])
    uwh = split_gates_T(dp["uh"])
    ub = gate_bias(dp["cx"], dp["ch"])

    w0, b0 = fc[0]
    assert w0.shape[0] == 3 * D + H, "fc[0] input dim must be D+D+H+D"
    f0a = w0[0:D, :].T.astype(f32)                   # [M1, D]  (interest_l1)
    f0b = w0[D:2 * D, :].T.astype(f32)               # [M1, D]  (interest_l2)
    f0c = w0[2 * D:2 * D + H, :].T.astype(f32)       # [M1, H]  (interest_evo)
    f0d = w0[2 * D + H:, :].T.astype(f32)            # [M1, D]  (item)
    f0bias = b0.reshape(-1, 1).astype(f32)           # [M1, 1]
    fc_rest = []
    for w, b in fc[1:]:
        fc_rest.extend([w.T.astype(f32), b.reshape(-1, 1).astype(f32)])

    # ---- batch blocking: batch lives on the 128-lane axis ----
    if B <= 128:
        B_BLK, Bpad = B, B                 # single full block
    else:
        B_BLK = 256 if B >= 512 else 128   # >=2 parallel steps (v7x 2nd TC)
        Bpad = B_BLK * pl.cdiv(B, B_BLK)
    if Bpad != B:
        pad = Bpad - B
        item_e = jnp.pad(item_e, ((0, pad), (0, 0)))
        hist_e = jnp.pad(hist_e, ((0, pad), (0, 0), (0, 0)))
        attrs = jnp.pad(attrs, ((0, pad), (0, 0)))

    # bf16 for the DMA-dominant embeddings; upcast to f32 in-kernel.
    item_T = item_e.T.astype(jnp.bfloat16)                          # [D, Bpad]
    hist_T = jnp.transpose(hist_e, (1, 2, 0)).astype(jnp.bfloat16)  # [T, D, Bpad]
    attr_T = attrs.astype(jnp.int32).T[:, None, :]                  # [T, 1, Bpad]

    weights = [aw1, ab1, aw2, ab2, gwx, gwh, gb, waT, uwx, uwh, ub,
               f0a, f0b, f0c, f0d, f0bias] + fc_rest

    def full_spec(shape):
        nd = len(shape)
        return pl.BlockSpec(shape, lambda i, nd=nd: (0,) * nd)

    in_specs = ([pl.BlockSpec((D, B_BLK), lambda i: (0, i)),
                 pl.BlockSpec((T, D, B_BLK), lambda i: (0, 0, i)),
                 pl.BlockSpec((T, 1, B_BLK), lambda i: (0, 0, i))]
                + [full_spec(w.shape) for w in weights])

    out = pl.pallas_call(
        _build_fused_kernel(n_fc, T, A),
        out_shape=jax.ShapeDtypeStruct((1, Bpad), jnp.float32),
        grid=(Bpad // B_BLK,),
        in_specs=in_specs,
        out_specs=pl.BlockSpec((1, B_BLK), lambda i: (0, i)),
        scratch_shapes=[pltpu.VMEM((T, H, B_BLK), jnp.float32),
                        pltpu.VMEM((T, 1, B_BLK), jnp.float32)],
        compiler_params=pltpu.CompilerParams(
            dimension_semantics=("parallel",),
            vmem_limit_bytes=32 * 1024 * 1024),
    )(item_T, hist_T, attr_T, *weights)
    return out[0, :B]


def dhan_forward(params, item_id, hist_item_ids, hist_item_attributes, num_attrs):
    emb = params["emb"]
    item_e = jnp.take(emb, item_id, axis=0)          # [B, D]
    hist_e = jnp.take(emb, hist_item_ids, axis=0)    # [B, T, D]
    # TODO(synk): torch.unique() has a data-dependent group count; a fixed
    # attribute vocabulary [0, num_attrs) is used instead — absent attributes
    # produce all-zero cluster rows whose contribution is exactly zero.
    return _dhan_fused(item_e, hist_e, hist_item_attributes.astype(jnp.int32),
                       params, num_attrs)


# --------------------------------------------------------------------------
# Deterministic parameter construction + example run
# --------------------------------------------------------------------------
def make_params(key, item_size, D, Ha, H, fc_in, mid_layers):
    ks = list(jax.random.split(key, 24))
    n = lambda k, s: (0.1 * jax.random.normal(k, s)).astype(jnp.float32)
    params = {
        "emb": n(ks[0], (item_size, D)),
        "act": {
            "w1": n(ks[1], (4, D, Ha)),
            "b1": n(ks[2], (1, Ha)),
            "w2": n(ks[3], (Ha, 1)),
            "b2": n(ks[4], (1, 1)),
        },
        "dien": {
            "wx": n(ks[5], (D, 3 * H)),
            "wh": n(ks[6], (H, 3 * H)),
            "bx": n(ks[7], (1, 3 * H)),
            "bh": n(ks[8], (1, 3 * H)),
            "wa": n(ks[9], (D, H)),
            "ux": n(ks[10], (H, 3 * H)),
            "uh": n(ks[11], (H, 3 * H)),
            "cx": n(ks[12], (1, 3 * H)),
            "ch": n(ks[13], (1, 3 * H)),
        },
    }
    fc = []
    dims = [fc_in] + list(mid_layers) + [1]
    for i in range(len(dims) - 1):
        fc.append((n(ks[14 + 2 * i], (dims[i], dims[i + 1])),
                   n(ks[15 + 2 * i], (1, dims[i + 1]))))
    params["fc"] = fc
    return params


if __name__ == "__main__":
    B, T, D = 2, 8, 8
    Ha = 16          # activate_hidden_dim
    H = 16           # gru_hidden_unit (== Ha, matching fc_input_dim in DHAN.__init__)
    A = 3            # attribute vocabulary size
    ITEM_SIZE = 32
    MID = [32, 16]
    FC_IN = D + D + Ha + D     # = embd + embd + activate_hidden + embd

    key = jax.random.PRNGKey(0)
    kp, k1, k2, k3 = jax.random.split(key, 4)

    params = make_params(kp, ITEM_SIZE, D, Ha, H, FC_IN, MID)

    item_id = jax.random.randint(k1, (B,), 0, ITEM_SIZE, dtype=jnp.int32)
    hist_item_ids = jax.random.randint(k2, (B, T), 0, ITEM_SIZE, dtype=jnp.int32)
    hist_item_attributes = jax.random.randint(k3, (B, T), 0, A, dtype=jnp.int32)

    out = dhan_forward(params, item_id, hist_item_ids, hist_item_attributes, A)
    out = jax.block_until_ready(out)
    assert out.shape == (B,) and bool(jnp.all(jnp.isfinite(out)))
    print("KERNEL_OK")
</pallas_src>

<mosaic_0001>
module attributes {stable_mosaic.version = 11 : i64} {
  func.func @kernel(%arg0: i32, %arg1: memref<8x2xbf16, #tpu.memory_space<vmem>>, %arg2: memref<8x8x2xbf16, #tpu.memory_space<vmem>>, %arg3: memref<8x1x2xi32, #tpu.memory_space<vmem>>, %arg4: memref<3x16x8xf32, #tpu.memory_space<vmem>>, %arg5: memref<16x1xf32, #tpu.memory_space<vmem>>, %arg6: memref<1x16xf32, #tpu.memory_space<vmem>>, %arg7: memref<1x1xf32, #tpu.memory_space<vmem>>, %arg8: memref<3x16x8xf32, #tpu.memory_space<vmem>>, %arg9: memref<3x16x16xf32, #tpu.memory_space<vmem>>, %arg10: memref<4x16x1xf32, #tpu.memory_space<vmem>>, %arg11: memref<16x8xf32, #tpu.memory_space<vmem>>, %arg12: memref<3x16x16xf32, #tpu.memory_space<vmem>>, %arg13: memref<3x16x16xf32, #tpu.memory_space<vmem>>, %arg14: memref<4x16x1xf32, #tpu.memory_space<vmem>>, %arg15: memref<32x8xf32, #tpu.memory_space<vmem>>, %arg16: memref<32x8xf32, #tpu.memory_space<vmem>>, %arg17: memref<32x16xf32, #tpu.memory_space<vmem>>, %arg18: memref<32x8xf32, #tpu.memory_space<vmem>>, %arg19: memref<32x1xf32, #tpu.memory_space<vmem>>, %arg20: memref<16x32xf32, #tpu.memory_space<vmem>>, %arg21: memref<16x1xf32, #tpu.memory_space<vmem>>, %arg22: memref<1x16xf32, #tpu.memory_space<vmem>>, %arg23: memref<1x1xf32, #tpu.memory_space<vmem>>, %arg24: memref<1x2xf32, #tpu.memory_space<vmem>>, %arg25: memref<8x16x2xf32, #tpu.memory_space<vmem>>, %arg26: memref<8x1x2xf32, #tpu.memory_space<vmem>>) attributes {dimension_semantics = [#tpu.dimension_semantics<parallel>], iteration_bounds = array<i64: 1>, scalar_prefetch = 0 : i64, scratch_operands = 2 : i64, tpu.core_type = #tpu.core_type<tc>, window_params = [{transform_indices = @transform_0, window_bounds = array<i64: 8, 2>}, {transform_indices = @transform_1, window_bounds = array<i64: 8, 8, 2>}, {transform_indices = @transform_2, window_bounds = array<i64: 8, 1, 2>}, {pipeline_mode = #tpu.pipeline_mode<synchronous>, transform_indices = @transform_3, window_bounds = array<i64: 3, 16, 8>}, {pipeline_mode = #tpu.pipeline_mode<synchronous>, transform_indices = @transform_4, window_bounds = array<i64: 16, 1>}, {pipeline_mode = #tpu.pipeline_mode<synchronous>, transform_indices = @transform_5, window_bounds = array<i64: 1, 16>}, {pipeline_mode = #tpu.pipeline_mode<synchronous>, transform_indices = @transform_6, window_bounds = array<i64: 1, 1>}, {pipeline_mode = #tpu.pipeline_mode<synchronous>, transform_indices = @transform_7, window_bounds = array<i64: 3, 16, 8>}, {pipeline_mode = #tpu.pipeline_mode<synchronous>, transform_indices = @transform_8, window_bounds = array<i64: 3, 16, 16>}, {pipeline_mode = #tpu.pipeline_mode<synchronous>, transform_indices = @transform_9, window_bounds = array<i64: 4, 16, 1>}, {pipeline_mode = #tpu.pipeline_mode<synchronous>, transform_indices = @transform_10, window_bounds = array<i64: 16, 8>}, {pipeline_mode = #tpu.pipeline_mode<synchronous>, transform_indices = @transform_11, window_bounds = array<i64: 3, 16, 16>}, {pipeline_mode = #tpu.pipeline_mode<synchronous>, transform_indices = @transform_12, window_bounds = array<i64: 3, 16, 16>}, {pipeline_mode = #tpu.pipeline_mode<synchronous>, transform_indices = @transform_13, window_bounds = array<i64: 4, 16, 1>}, {pipeline_mode = #tpu.pipeline_mode<synchronous>, transform_indices = @transform_14, window_bounds = array<i64: 32, 8>}, {pipeline_mode = #tpu.pipeline_mode<synchronous>, transform_indices = @transform_15, window_bounds = array<i64: 32, 8>}, {pipeline_mode = #tpu.pipeline_mode<synchronous>, transform_indices = @transform_16, window_bounds = array<i64: 32, 16>}, {pipeline_mode = #tpu.pipeline_mode<synchronous>, transform_indices = @transform_17, window_bounds = array<i64: 32, 8>}, {pipeline_mode = #tpu.pipeline_mode<synchronous>, transform_indices = @transform_18, window_bounds = array<i64: 32, 1>}, {pipeline_mode = #tpu.pipeline_mode<synchronous>, transform_indices = @transform_19, window_bounds = array<i64: 16, 32>}, {pipeline_mode = #tpu.pipeline_mode<synchronous>, transform_indices = @transform_20, window_bounds = array<i64: 16, 1>}, {pipeline_mode = #tpu.pipeline_mode<synchronous>, transform_indices = @transform_21, window_bounds = array<i64: 1, 16>}, {pipeline_mode = #tpu.pipeline_mode<synchronous>, transform_indices = @transform_22, window_bounds = array<i64: 1, 1>}, {transform_indices = @transform_23, window_bounds = array<i64: 1, 2>}]} {
    %c0 = arith.constant 0 : index
    %c0_0 = arith.constant 0 : index
    %0 = vector.load %arg1[%c0, %c0_0] : memref<8x2xbf16, #tpu.memory_space<vmem>>, vector<8x2xbf16>
    %1 = arith.extf %0 : vector<8x2xbf16> to vector<8x2xf32>
    %c0_1 = arith.constant 0 : index
    %c0_2 = arith.constant 0 : index
    %c0_3 = arith.constant 0 : index
    %2 = vector.load %arg2[%c0_1, %c0_2, %c0_3] : memref<8x8x2xbf16, #tpu.memory_space<vmem>>, vector<8x8x2xbf16>
    %3 = arith.extf %2 : vector<8x8x2xbf16> to vector<8x8x2xf32>
    %c0_4 = arith.constant 0 : index
    %c0_5 = arith.constant 0 : index
    %c0_6 = arith.constant 0 : index
    %4 = vector.load %arg3[%c0_4, %c0_5, %c0_6] : memref<8x1x2xi32, #tpu.memory_space<vmem>>, vector<8x1x2xi32>
    %c0_7 = arith.constant 0 : index
    %c0_8 = arith.constant 0 : index
    %c0_9 = arith.constant 0 : index
    %5 = vector.load %arg8[%c0_7, %c0_8, %c0_9] : memref<3x16x8xf32, #tpu.memory_space<vmem>>, vector<3x16x8xf32>
    %c0_10 = arith.constant 0 : index
    %c0_11 = arith.constant 0 : index
    %c0_12 = arith.constant 0 : index
    %6 = vector.load %arg9[%c0_10, %c0_11, %c0_12] : memref<3x16x16xf32, #tpu.memory_space<vmem>>, vector<3x16x16xf32>
    %c0_13 = arith.constant 0 : index
    %c0_14 = arith.constant 0 : index
    %c0_15 = arith.constant 0 : index
    %7 = vector.load %arg10[%c0_13, %c0_14, %c0_15] : memref<4x16x1xf32, #tpu.memory_space<vmem>>, vector<4x16x1xf32>
    %8 = vector.extract_strided_slice %5 {offsets = [0, 0, 0], sizes = [1, 16, 8], strides = [1, 1, 1]} : vector<3x16x8xf32> to vector<1x16x8xf32>
    %9 = vector.shape_cast %8 : vector<1x16x8xf32> to vector<16x8xf32>
    %10 = vector.extract_strided_slice %5 {offsets = [1, 0, 0], sizes = [1, 16, 8], strides = [1, 1, 1]} : vector<3x16x8xf32> to vector<1x16x8xf32>
    %11 = vector.shape_cast %10 : vector<1x16x8xf32> to vector<16x8xf32>
    %12 = vector.extract_strided_slice %5 {offsets = [2, 0, 0], sizes = [1, 16, 8], strides = [1, 1, 1]} : vector<3x16x8xf32> to vector<1x16x8xf32>
    %13 = vector.shape_cast %12 : vector<1x16x8xf32> to vector<16x8xf32>
    %14 = vector.extract_strided_slice %6 {offsets = [0, 0, 0], sizes = [1, 16, 16], strides = [1, 1, 1]} : vector<3x16x16xf32> to vector<1x16x16xf32>
    %15 = vector.shape_cast %14 : vector<1x16x16xf32> to vector<16x16xf32>
    %16 = vector.extract_strided_slice %6 {offsets = [1, 0, 0], sizes = [1, 16, 16], strides = [1, 1, 1]} : vector<3x16x16xf32> to vector<1x16x16xf32>
    %17 = vector.shape_cast %16 : vector<1x16x16xf32> to vector<16x16xf32>
    %18 = vector.extract_strided_slice %6 {offsets = [2, 0, 0], sizes = [1, 16, 16], strides = [1, 1, 1]} : vector<3x16x16xf32> to vector<1x16x16xf32>
    %19 = vector.shape_cast %18 : vector<1x16x16xf32> to vector<16x16xf32>
    %20 = vector.extract_strided_slice %7 {offsets = [0, 0, 0], sizes = [1, 16, 1], strides = [1, 1, 1]} : vector<4x16x1xf32> to vector<1x16x1xf32>
    %21 = vector.shape_cast %20 : vector<1x16x1xf32> to vector<16x1xf32>
    %22 = vector.extract_strided_slice %7 {offsets = [1, 0, 0], sizes = [1, 16, 1], strides = [1, 1, 1]} : vector<4x16x1xf32> to vector<1x16x1xf32>
    %23 = vector.shape_cast %22 : vector<1x16x1xf32> to vector<16x1xf32>
    %24 = vector.extract_strided_slice %7 {offsets = [2, 0, 0], sizes = [1, 16, 1], strides = [1, 1, 1]} : vector<4x16x1xf32> to vector<1x16x1xf32>
    %25 = vector.shape_cast %24 : vector<1x16x1xf32> to vector<16x1xf32>
    %26 = vector.extract_strided_slice %7 {offsets = [3, 0, 0], sizes = [1, 16, 1], strides = [1, 1, 1]} : vector<4x16x1xf32> to vector<1x16x1xf32>
    %27 = vector.shape_cast %26 : vector<1x16x1xf32> to vector<16x1xf32>
    %cst = arith.constant 0.000000e+00 : f32
    %28 = vector.broadcast %cst : f32 to vector<16x2xf32>
    %29 = vector.extract_strided_slice %3 {offsets = [0, 0, 0], sizes = [1, 8, 2], strides = [1, 1, 1]} : vector<8x8x2xf32> to vector<1x8x2xf32>
    %30 = vector.shape_cast %29 : vector<1x8x2xf32> to vector<8x2xf32>
    %cst_16 = arith.constant dense<0.000000e+00> : vector<16x2xf32>
    %31 = tpu.matmul %9, %30, %cst_16 {dimension_numbers = #tpu.dot_dimension_numbers<[1], [0], [0], [1], [0, 0, 1, 1], [], []>} : vector<16x8xf32>, vector<8x2xf32>, vector<16x2xf32> -> vector<16x2xf32>
    %cst_17 = arith.constant dense<0.000000e+00> : vector<16x2xf32>
    %32 = tpu.matmul %15, %28, %cst_17 {dimension_numbers = #tpu.dot_dimension_numbers<[1], [0], [0], [1], [0, 0, 1, 1], [], []>} : vector<16x16xf32>, vector<16x2xf32>, vector<16x2xf32> -> vector<16x2xf32>
    %33 = arith.addf %31, %32 : vector<16x2xf32>
    %34 = vector.broadcast %21 : vector<16x1xf32> to vector<16x2xf32>
    %35 = arith.addf %33, %34 : vector<16x2xf32>
    %36 = arith.negf %35 : vector<16x2xf32>
    %37 = math.exp %36 : vector<16x2xf32>
    %cst_18 = arith.constant 1.000000e+00 : f32
    %38 = vector.broadcast %cst_18 : f32 to vector<16x2xf32>
    %39 = arith.addf %38, %37 : vector<16x2xf32>
    %40 = arith.divf %38, %39 : vector<16x2xf32>
    %cst_19 = arith.constant dense<0.000000e+00> : vector<16x2xf32>
    %41 = tpu.matmul %11, %30, %cst_19 {dimension_numbers = #tpu.dot_dimension_numbers<[1], [0], [0], [1], [0, 0, 1, 1], [], []>} : vector<16x8xf32>, vector<8x2xf32>, vector<16x2xf32> -> vector<16x2xf32>
    %cst_20 = arith.constant dense<0.000000e+00> : vector<16x2xf32>
    %42 = tpu.matmul %17, %28, %cst_20 {dimension_numbers = #tpu.dot_dimension_numbers<[1], [0], [0], [1], [0, 0, 1, 1], [], []>} : vector<16x16xf32>, vector<16x2xf32>, vector<16x2xf32> -> vector<16x2xf32>
    %43 = arith.addf %41, %42 : vector<16x2xf32>
    %44 = vector.broadcast %23 : vector<16x1xf32> to vector<16x2xf32>
    %45 = arith.addf %43, %44 : vector<16x2xf32>
    %46 = arith.negf %45 : vector<16x2xf32>
    %47 = math.exp %46 : vector<16x2xf32>
    %cst_21 = arith.constant 1.000000e+00 : f32
    %48 = vector.broadcast %cst_21 : f32 to vector<16x2xf32>
    %49 = arith.addf %48, %47 : vector<16x2xf32>
    %50 = arith.divf %48, %49 : vector<16x2xf32>
    %cst_22 = arith.constant dense<0.000000e+00> : vector<16x2xf32>
    %51 = tpu.matmul %13, %30, %cst_22 {dimension_numbers = #tpu.dot_dimension_numbers<[1], [0], [0], [1], [0, 0, 1, 1], [], []>} : vector<16x8xf32>, vector<8x2xf32>, vector<16x2xf32> -> vector<16x2xf32>
    %52 = vector.broadcast %25 : vector<16x1xf32> to vector<16x2xf32>
    %53 = arith.addf %51, %52 : vector<16x2xf32>
    %cst_23 = arith.constant dense<0.000000e+00> : vector<16x2xf32>
    %54 = tpu.matmul %19, %28, %cst_23 {dimension_numbers = #tpu.dot_dimension_numbers<[1], [0], [0], [1], [0, 0, 1, 1], [], []>} : vector<16x16xf32>, vector<16x2xf32>, vector<16x2xf32> -> vector<16x2xf32>
    %55 = vector.broadcast %27 : vector<16x1xf32> to vector<16x2xf32>
    %56 = arith.addf %54, %55 : vector<16x2xf32>
    %57 = arith.mulf %40, %56 : vector<16x2xf32>
    %58 = arith.addf %53, %57 : vector<16x2xf32>
    %59 = math.tanh %58 : vector<16x2xf32>
    %cst_24 = arith.constant 1.000000e+00 : f32
    %60 = vector.broadcast %cst_24 : f32 to vector<16x2xf32>
    %61 = arith.subf %60, %50 : vector<16x2xf32>
    %62 = arith.mulf %61, %59 : vector<16x2xf32>
    %63 = arith.mulf %50, %28 : vector<16x2xf32>
    %64 = arith.addf %62, %63 : vector<16x2xf32>
    %c0_25 = arith.constant 0 : index
    %c0_26 = arith.constant 0 : index
    %c0_27 = arith.constant 0 : index
    %65 = vector.load %arg25[%c0_25, %c0_26, %c0_27] : memref<8x16x2xf32, #tpu.memory_space<vmem>>, vector<1x16x2xf32>
    %66 = vector.shape_cast %65 : vector<1x16x2xf32> to vector<16x2xf32>
    %67 = vector.shape_cast %64 : vector<16x2xf32> to vector<1x16x2xf32>
    tpu.vector_store %arg25[%c0_25, %c0_26, %c0_27], %67 {strides = array<i32>} : memref<8x16x2xf32, #tpu.memory_space<vmem>>, vector<1x16x2xf32>,
    %68 = vector.extract_strided_slice %3 {offsets = [1, 0, 0], sizes = [1, 8, 2], strides = [1, 1, 1]} : vector<8x8x2xf32> to vector<1x8x2xf32>
    %69 = vector.shape_cast %68 : vector<1x8x2xf32> to vector<8x2xf32>
    %cst_28 = arith.constant dense<0.000000e+00> : vector<16x2xf32>
    %70 = tpu.matmul %9, %69, %cst_28 {dimension_numbers = #tpu.dot_dimension_numbers<[1], [0], [0], [1], [0, 0, 1, 1], [], []>} : vector<16x8xf32>, vector<8x2xf32>, vector<16x2xf32> -> vector<16x2xf32>
    %cst_29 = arith.constant dense<0.000000e+00> : vector<16x2xf32>
    %71 = tpu.matmul %15, %64, %cst_29 {dimension_numbers = #tpu.dot_dimension_numbers<[1], [0], [0], [1], [0, 0, 1, 1], [], []>} : vector<16x16xf32>, vector<16x2xf32>, vector<16x2xf32> -> vector<16x2xf32>
    %72 = arith.addf %70, %71 : vector<16x2xf32>
    %73 = vector.broadcast %21 : vector<16x1xf32> to vector<16x2xf32>
    %74 = arith.addf %72, %73 : vector<16x2xf32>
    %75 = arith.negf %74 : vector<16x2xf32>
    %76 = math.exp %75 : vector<16x2xf32>
    %cst_30 = arith.constant 1.000000e+00 : f32
    %77 = vector.broadcast %cst_30 : f32 to vector<16x2xf32>
    %78 = arith.addf %77, %76 : vector<16x2xf32>
    %79 = arith.divf %77, %78 : vector<16x2xf32>
    %cst_31 = arith.constant dense<0.000000e+00> : vector<16x2xf32>
    %80 = tpu.matmul %11, %69, %cst_31 {dimension_numbers = #tpu.dot_dimension_numbers<[1], [0], [0], [1], [0, 0, 1, 1], [], []>} : vector<16x8xf32>, vector<8x2xf32>, vector<16x2xf32> -> vector<16x2xf32>
    %cst_32 = arith.constant dense<0.000000e+00> : vector<16x2xf32>
    %81 = tpu.matmul %17, %64, %cst_32 {dimension_numbers = #tpu.dot_dimension_numbers<[1], [0], [0], [1], [0, 0, 1, 1], [], []>} : vector<16x16xf32>, vector<16x2xf32>, vector<16x2xf32> -> vector<16x2xf32>
    %82 = arith.addf %80, %81 : vector<16x2xf32>
    %83 = vector.broadcast %23 : vector<16x1xf32> to vector<16x2xf32>
    %84 = arith.addf %82, %83 : vector<16x2xf32>
    %85 = arith.negf %84 : vector<16x2xf32>
    %86 = math.exp %85 : vector<16x2xf32>
    %cst_33 = arith.constant 1.000000e+00 : f32
    %87 = vector.broadcast %cst_33 : f32 to vector<16x2xf32>
    %88 = arith.addf %87, %86 : vector<16x2xf32>
    %89 = arith.divf %87, %88 : vector<16x2xf32>
    %cst_34 = arith.constant dense<0.000000e+00> : vector<16x2xf32>
    %90 = tpu.matmul %13, %69, %cst_34 {dimension_numbers = #tpu.dot_dimension_numbers<[1], [0], [0], [1], [0, 0, 1, 1], [], []>} : vector<16x8xf32>, vector<8x2xf32>, vector<16x2xf32> -> vector<16x2xf32>
    %91 = vector.broadcast %25 : vector<16x1xf32> to vector<16x2xf32>
    %92 = arith.addf %90, %91 : vector<16x2xf32>
    %cst_35 = arith.constant dense<0.000000e+00> : vector<16x2xf32>
    %93 = tpu.matmul %19, %64, %cst_35 {dimension_numbers = #tpu.dot_dimension_numbers<[1], [0], [0], [1], [0, 0, 1, 1], [], []>} : vector<16x16xf32>, vector<16x2xf32>, vector<16x2xf32> -> vector<16x2xf32>
    %94 = vector.broadcast %27 : vector<16x1xf32> to vector<16x2xf32>
    %95 = arith.addf %93, %94 : vector<16x2xf32>
    %96 = arith.mulf %79, %95 : vector<16x2xf32>
    %97 = arith.addf %92, %96 : vector<16x2xf32>
    %98 = math.tanh %97 : vector<16x2xf32>
    %cst_36 = arith.constant 1.000000e+00 : f32
    %99 = vector.broadcast %cst_36 : f32 to vector<16x2xf32>
    %100 = arith.subf %99, %89 : vector<16x2xf32>
    %101 = arith.mulf %100, %98 : vector<16x2xf32>
    %102 = arith.mulf %89, %64 : vector<16x2xf32>
    %103 = arith.addf %101, %102 : vector<16x2xf32>
    %c1 = arith.constant 1 : index
    %c0_37 = arith.constant 0 : index
    %c0_38 = arith.constant 0 : index
    %104 = vector.load %arg25[%c1, %c0_37, %c0_38] : memref<8x16x2xf32, #tpu.memory_space<vmem>>, vector<1x16x2xf32>
    %105 = vector.shape_cast %104 : vector<1x16x2xf32> to vector<16x2xf32>
    %106 = vector.shape_cast %103 : vector<16x2xf32> to vector<1x16x2xf32>
    tpu.vector_store %arg25[%c1, %c0_37, %c0_38], %106 {strides = array<i32>} : memref<8x16x2xf32, #tpu.memory_space<vmem>>, vector<1x16x2xf32>,
    %107 = vector.extract_strided_slice %3 {offsets = [2, 0, 0], sizes = [1, 8, 2], strides = [1, 1, 1]} : vector<8x8x2xf32> to vector<1x8x2xf32>
    %108 = vector.shape_cast %107 : vector<1x8x2xf32> to vector<8x2xf32>
    %cst_39 = arith.constant dense<0.000000e+00> : vector<16x2xf32>
    %109 = tpu.matmul %9, %108, %cst_39 {dimension_numbers = #tpu.dot_dimension_numbers<[1], [0], [0], [1], [0, 0, 1, 1], [], []>} : vector<16x8xf32>, vector<8x2xf32>, vector<16x2xf32> -> vector<16x2xf32>
    %cst_40 = arith.constant dense<0.000000e+00> : vector<16x2xf32>
    %110 = tpu.matmul %15, %103, %cst_40 {dimension_numbers = #tpu.dot_dimension_numbers<[1], [0], [0], [1], [0, 0, 1, 1], [], []>} : vector<16x16xf32>, vector<16x2xf32>, vector<16x2xf32> -> vector<16x2xf32>
    %111 = arith.addf %109, %110 : vector<16x2xf32>
    %112 = vector.broadcast %21 : vector<16x1xf32> to vector<16x2xf32>
    %113 = arith.addf %111, %112 : vector<16x2xf32>
    %114 = arith.negf %113 : vector<16x2xf32>
    %115 = math.exp %114 : vector<16x2xf32>
    %cst_41 = arith.constant 1.000000e+00 : f32
    %116 = vector.broadcast %cst_41 : f32 to vector<16x2xf32>
    %117 = arith.addf %116, %115 : vector<16x2xf32>
    %118 = arith.divf %116, %117 : vector<16x2xf32>
    %cst_42 = arith.constant dense<0.000000e+00> : vector<16x2xf32>
    %119 = tpu.matmul %11, %108, %cst_42 {dimension_numbers = #tpu.dot_dimension_numbers<[1], [0], [0], [1], [0, 0, 1, 1], [], []>} : vector<16x8xf32>, vector<8x2xf32>, vector<16x2xf32> -> vector<16x2xf32>
    %cst_43 = arith.constant dense<0.000000e+00> : vector<16x2xf32>
    %120 = tpu.matmul %17, %103, %cst_43 {dimension_numbers = #tpu.dot_dimension_numbers<[1], [0], [0], [1], [0, 0, 1, 1], [], []>} : vector<16x16xf32>, vector<16x2xf32>, vector<16x2xf32> -> vector<16x2xf32>
    %121 = arith.addf %119, %120 : vector<16x2xf32>
    %122 = vector.broadcast %23 : vector<16x1xf32> to vector<16x2xf32>
    %123 = arith.addf %121, %122 : vector<16x2xf32>
    %124 = arith.negf %123 : vector<16x2xf32>
    %125 = math.exp %124 : vector<16x2xf32>
    %cst_44 = arith.constant 1.000000e+00 : f32
    %126 = vector.broadcast %cst_44 : f32 to vector<16x2xf32>
    %127 = arith.addf %126, %125 : vector<16x2xf32>
    %128 = arith.divf %126, %127 : vector<16x2xf32>
    %cst_45 = arith.constant dense<0.000000e+00> : vector<16x2xf32>
    %129 = tpu.matmul %13, %108, %cst_45 {dimension_numbers = #tpu.dot_dimension_numbers<[1], [0], [0], [1], [0, 0, 1, 1], [], []>} : vector<16x8xf32>, vector<8x2xf32>, vector<16x2xf32> -> vector<16x2xf32>
    %130 = vector.broadcast %25 : vector<16x1xf32> to vector<16x2xf32>
    %131 = arith.addf %129, %130 : vector<16x2xf32>
    %cst_46 = arith.constant dense<0.000000e+00> : vector<16x2xf32>
    %132 = tpu.matmul %19, %103, %cst_46 {dimension_numbers = #tpu.dot_dimension_numbers<[1], [0], [0], [1], [0, 0, 1, 1], [], []>} : vector<16x16xf32>, vector<16x2xf32>, vector<16x2xf32> -> vector<16x2xf32>
    %133 = vector.broadcast %27 : vector<16x1xf32> to vector<16x2xf32>
    %134 = arith.addf %132, %133 : vector<16x2xf32>
    %135 = arith.mulf %118, %134 : vector<16x2xf32>
    %136 = arith.addf %131, %135 : vector<16x2xf32>
    %137 = math.tanh %136 : vector<16x2xf32>
    %cst_47 = arith.constant 1.000000e+00 : f32
    %138 = vector.broadcast %cst_47 : f32 to vector<16x2xf32>
    %139 = arith.subf %138, %128 : vector<16x2xf32>
    %140 = arith.mulf %139, %137 : vector<16x2xf32>
    %141 = arith.mulf %128, %103 : vector<16x2xf32>
    %142 = arith.addf %140, %141 : vector<16x2xf32>
    %c2 = arith.constant 2 : index
    %c0_48 = arith.constant 0 : index
    %c0_49 = arith.constant 0 : index
    %143 = vector.load %arg25[%c2, %c0_48, %c0_49] : memref<8x16x2xf32, #tpu.memory_space<vmem>>, vector<1x16x2xf32>
    %144 = vector.shape_cast %143 : vector<1x16x2xf32> to vector<16x2xf32>
    %145 = vector.shape_cast %142 : vector<16x2xf32> to vector<1x16x2xf32>
    tpu.vector_store %arg25[%c2, %c0_48, %c0_49], %145 {strides = array<i32>} : memref<8x16x2xf32, #tpu.memory_space<vmem>>, vector<1x16x2xf32>,
    %146 = vector.extract_strided_slice %3 {offsets = [3, 0, 0], sizes = [1, 8, 2], strides = [1, 1, 1]} : vector<8x8x2xf32> to vector<1x8x2xf32>
    %147 = vector.shape_cast %146 : vector<1x8x2xf32> to vector<8x2xf32>
    %cst_50 = arith.constant dense<0.000000e+00> : vector<16x2xf32>
    %148 = tpu.matmul %9, %147, %cst_50 {dimension_numbers = #tpu.dot_dimension_numbers<[1], [0], [0], [1], [0, 0, 1, 1], [], []>} : vector<16x8xf32>, vector<8x2xf32>, vector<16x2xf32> -> vector<16x2xf32>
    %cst_51 = arith.constant dense<0.000000e+00> : vector<16x2xf32>
    %149 = tpu.matmul %15, %142, %cst_51 {dimension_numbers = #tpu.dot_dimension_numbers<[1], [0], [0], [1], [0, 0, 1, 1], [], []>} : vector<16x16xf32>, vector<16x2xf32>, vector<16x2xf32> -> vector<16x2xf32>
    %150 = arith.addf %148, %149 : vector<16x2xf32>
    %151 = vector.broadcast %21 : vector<16x1xf32> to vector<16x2xf32>
    %152 = arith.addf %150, %151 : vector<16x2xf32>
    %153 = arith.negf %152 : vector<16x2xf32>
    %154 = math.exp %153 : vector<16x2xf32>
    %cst_52 = arith.constant 1.000000e+00 : f32
    %155 = vector.broadcast %cst_52 : f32 to vector<16x2xf32>
    %156 = arith.addf %155, %154 : vector<16x2xf32>
    %157 = arith.divf %155, %156 : vector<16x2xf32>
    %cst_53 = arith.constant dense<0.000000e+00> : vector<16x2xf32>
    %158 = tpu.matmul %11, %147, %cst_53 {dimension_numbers = #tpu.dot_dimension_numbers<[1], [0], [0], [1], [0, 0, 1, 1], [], []>} : vector<16x8xf32>, vector<8x2xf32>, vector<16x2xf32> -> vector<16x2xf32>
    %cst_54 = arith.constant dense<0.000000e+00> : vector<16x2xf32>
    %159 = tpu.matmul %17, %142, %cst_54 {dimension_numbers = #tpu.dot_dimension_numbers<[1], [0], [0], [1], [0, 0, 1, 1], [], []>} : vector<16x16xf32>, vector<16x2xf32>, vector<16x2xf32> -> vector<16x2xf32>
    %160 = arith.addf %158, %159 : vector<16x2xf32>
    %161 = vector.broadcast %23 : vector<16x1xf32> to vector<16x2xf32>
    %162 = arith.addf %160, %161 : vector<16x2xf32>
    %163 = arith.negf %162 : vector<16x2xf32>
    %164 = math.exp %163 : vector<16x2xf32>
    %cst_55 = arith.constant 1.000000e+00 : f32
    %165 = vector.broadcast %cst_55 : f32 to vector<16x2xf32>
    %166 = arith.addf %165, %164 : vector<16x2xf32>
    %167 = arith.divf %165, %166 : vector<16x2xf32>
    %cst_56 = arith.constant dense<0.000000e+00> : vector<16x2xf32>
    %168 = tpu.matmul %13, %147, %cst_56 {dimension_numbers = #tpu.dot_dimension_numbers<[1], [0], [0], [1], [0, 0, 1, 1], [], []>} : vector<16x8xf32>, vector<8x2xf32>, vector<16x2xf32> -> vector<16x2xf32>
    %169 = vector.broadcast %25 : vector<16x1xf32> to vector<16x2xf32>
    %170 = arith.addf %168, %169 : vector<16x2xf32>
    %cst_57 = arith.constant dense<0.000000e+00> : vector<16x2xf32>
    %171 = tpu.matmul %19, %142, %cst_57 {dimension_numbers = #tpu.dot_dimension_numbers<[1], [0], [0], [1], [0, 0, 1, 1], [], []>} : vector<16x16xf32>, vector<16x2xf32>, vector<16x2xf32> -> vector<16x2xf32>
    %172 = vector.broadcast %27 : vector<16x1xf32> to vector<16x2xf32>
    %173 = arith.addf %171, %172 : vector<16x2xf32>
    %174 = arith.mulf %157, %173 : vector<16x2xf32>
    %175 = arith.addf %170, %174 : vector<16x2xf32>
    %176 = math.tanh %175 : vector<16x2xf32>
    %cst_58 = arith.constant 1.000000e+00 : f32
    %177 = vector.broadcast %cst_58 : f32 to vector<16x2xf32>
    %178 = arith.subf %177, %167 : vector<16x2xf32>
    %179 = arith.mulf %178, %176 : vector<16x2xf32>
    %180 = arith.mulf %167, %142 : vector<16x2xf32>
    %181 = arith.addf %179, %180 : vector<16x2xf32>
    %c3 = arith.constant 3 : index
    %c0_59 = arith.constant 0 : index
    %c0_60 = arith.constant 0 : index
    %182 = vector.load %arg25[%c3, %c0_59, %c0_60] : memref<8x16x2xf32, #tpu.memory_space<vmem>>, vector<1x16x2xf32>
    %183 = vector.shape_cast %182 : vector<1x16x2xf32> to vector<16x2xf32>
    %184 = vector.shape_cast %181 : vector<16x2xf32> to vector<1x16x2xf32>
    tpu.vector_store %arg25[%c3, %c0_59, %c0_60], %184 {strides = array<i32>} : memref<8x16x2xf32, #tpu.memory_space<vmem>>, vector<1x16x2xf32>,
    %185 = vector.extract_strided_slice %3 {offsets = [4, 0, 0], sizes = [1, 8, 2], strides = [1, 1, 1]} : vector<8x8x2xf32> to vector<1x8x2xf32>
    %186 = vector.shape_cast %185 : vector<1x8x2xf32> to vector<8x2xf32>
    %cst_61 = arith.constant dense<0.000000e+00> : vector<16x2xf32>
    %187 = tpu.matmul %9, %186, %cst_61 {dimension_numbers = #tpu.dot_dimension_numbers<[1], [0], [0], [1], [0, 0, 1, 1], [], []>} : vector<16x8xf32>, vector<8x2xf32>, vector<16x2xf32> -> vector<16x2xf32>
    %cst_62 = arith.constant dense<0.000000e+00> : vector<16x2xf32>
    %188 = tpu.matmul %15, %181, %cst_62 {dimension_numbers = #tpu.dot_dimension_numbers<[1], [0], [0], [1], [0, 0, 1, 1], [], []>} : vector<16x16xf32>, vector<16x2xf32>, vector<16x2xf32> -> vector<16x2xf32>
    %189 = arith.addf %187, %188 : vector<16x2xf32>
    %190 = vector.broadcast %21 : vector<16x1xf32> to vector<16x2xf32>
    %191 = arith.addf %189, %190 : vector<16x2xf32>
    %192 = arith.negf %191 : vector<16x2xf32>
    %193 = math.exp %192 : vector<16x2xf32>
    %cst_63 = arith.constant 1.000000e+00 : f32
    %194 = vector.broadcast %cst_63 : f32 to vector<16x2xf32>
    %195 = arith.addf %194, %193 : vector<16x2xf32>
    %196 = arith.divf %194, %195 : vector<16x2xf32>
    %cst_64 = arith.constant dense<0.000000e+00> : vector<16x2xf32>
    %197 = tpu.matmul %11, %186, %cst_64 {dimension_numbers = #tpu.dot_dimension_numbers<[1], [0], [0], [1], [0, 0, 1, 1], [], []>} : vector<16x8xf32>, vector<8x2xf32>, vector<16x2xf32> -> vector<16x2xf32>
    %cst_65 = arith.constant dense<0.000000e+00> : vector<16x2xf32>
    %198 = tpu.matmul %17, %181, %cst_65 {dimension_numbers = #tpu.dot_dimension_numbers<[1], [0], [0], [1], [0, 0, 1, 1], [], []>} : vector<16x16xf32>, vector<16x2xf32>, vector<16x2xf32> -> vector<16x2xf32>
    %199 = arith.addf %197, %198 : vector<16x2xf32>
    %200 = vector.broadcast %23 : vector<16x1xf32> to vector<16x2xf32>
    %201 = arith.addf %199, %200 : vector<16x2xf32>
    %202 = arith.negf %201 : vector<16x2xf32>
    %203 = math.exp %202 : vector<16x2xf32>
    %cst_66 = arith.constant 1.000000e+00 : f32
    %204 = vector.broadcast %cst_66 : f32 to vector<16x2xf32>
    %205 = arith.addf %204, %203 : vector<16x2xf32>
    %206 = arith.divf %204, %205 : vector<16x2xf32>
    %cst_67 = arith.constant dense<0.000000e+00> : vector<16x2xf32>
    %207 = tpu.matmul %13, %186, %cst_67 {dimension_numbers = #tpu.dot_dimension_numbers<[1], [0], [0], [1], [0, 0, 1, 1], [], []>} : vector<16x8xf32>, vector<8x2xf32>, vector<16x2xf32> -> vector<16x2xf32>
    %208 = vector.broadcast %25 : vector<16x1xf32> to vector<16x2xf32>
    %209 = arith.addf %207, %208 : vector<16x2xf32>
    %cst_68 = arith.constant dense<0.000000e+00> : vector<16x2xf32>
    %210 = tpu.matmul %19, %181, %cst_68 {dimension_numbers = #tpu.dot_dimension_numbers<[1], [0], [0], [1], [0, 0, 1, 1], [], []>} : vector<16x16xf32>, vector<16x2xf32>, vector<16x2xf32> -> vector<16x2xf32>
    %211 = vector.broadcast %27 : vector<16x1xf32> to vector<16x2xf32>
    %212 = arith.addf %210, %211 : vector<16x2xf32>
    %213 = arith.mulf %196, %212 : vector<16x2xf32>
    %214 = arith.addf %209, %213 : vector<16x2xf32>
    %215 = math.tanh %214 : vector<16x2xf32>
    %cst_69 = arith.constant 1.000000e+00 : f32
    %216 = vector.broadcast %cst_69 : f32 to vector<16x2xf32>
    %217 = arith.subf %216, %206 : vector<16x2xf32>
    %218 = arith.mulf %217, %215 : vector<16x2xf32>
    %219 = arith.mulf %206, %181 : vector<16x2xf32>
    %220 = arith.addf %218, %219 : vector<16x2xf32>
    %c4 = arith.constant 4 : index
    %c0_70 = arith.constant 0 : index
    %c0_71 = arith.constant 0 : index
    %221 = vector.load %arg25[%c4, %c0_70, %c0_71] : memref<8x16x2xf32, #tpu.memory_space<vmem>>, vector<1x16x2xf32>
    %222 = vector.shape_cast %221 : vector<1x16x2xf32> to vector<16x2xf32>
    %223 = vector.shape_cast %220 : vector<16x2xf32> to vector<1x16x2xf32>
    tpu.vector_store %arg25[%c4, %c0_70, %c0_71], %223 {strides = array<i32>} : memref<8x16x2xf32, #tpu.memory_space<vmem>>, vector<1x16x2xf32>,
    %224 = vector.extract_strided_slice %3 {offsets = [5, 0, 0], sizes = [1, 8, 2], strides = [1, 1, 1]} : vector<8x8x2xf32> to vector<1x8x2xf32>
    %225 = vector.shape_cast %224 : vector<1x8x2xf32> to vector<8x2xf32>
    %cst_72 = arith.constant dense<0.000000e+00> : vector<16x2xf32>
    %226 = tpu.matmul %9, %225, %cst_72 {dimension_numbers = #tpu.dot_dimension_numbers<[1], [0], [0], [1], [0, 0, 1, 1], [], []>} : vector<16x8xf32>, vector<8x2xf32>, vector<16x2xf32> -> vector<16x2xf32>
    %cst_73 = arith.constant dense<0.000000e+00> : vector<16x2xf32>
    %227 = tpu.matmul %15, %220, %cst_73 {dimension_numbers = #tpu.dot_dimension_numbers<[1], [0], [0], [1], [0, 0, 1, 1], [], []>} : vector<16x16xf32>, vector<16x2xf32>, vector<16x2xf32> -> vector<16x2xf32>
    %228 = arith.addf %226, %227 : vector<16x2xf32>
    %229 = vector.broadcast %21 : vector<16x1xf32> to vector<16x2xf32>
    %230 = arith.addf %228, %229 : vector<16x2xf32>
    %231 = arith.negf %230 : vector<16x2xf32>
    %232 = math.exp %231 : vector<16x2xf32>
    %cst_74 = arith.constant 1.000000e+00 : f32
    %233 = vector.broadcast %cst_74 : f32 to vector<16x2xf32>
    %234 = arith.addf %233, %232 : vector<16x2xf32>
    %235 = arith.divf %233, %234 : vector<16x2xf32>
    %cst_75 = arith.constant dense<0.000000e+00> : vector<16x2xf32>
    %236 = tpu.matmul %11, %225, %cst_75 {dimension_numbers = #tpu.dot_dimension_numbers<[1], [0], [0], [1], [0, 0, 1, 1], [], []>} : vector<16x8xf32>, vector<8x2xf32>, vector<16x2xf32> -> vector<16x2xf32>
    %cst_76 = arith.constant dense<0.000000e+00> : vector<16x2xf32>
    %237 = tpu.matmul %17, %220, %cst_76 {dimension_numbers = #tpu.dot_dimension_numbers<[1], [0], [0], [1], [0, 0, 1, 1], [], []>} : vector<16x16xf32>, vector<16x2xf32>, vector<16x2xf32> -> vector<16x2xf32>
    %238 = arith.addf %236, %237 : vector<16x2xf32>
    %239 = vector.broadcast %23 : vector<16x1xf32> to vector<16x2xf32>
    %240 = arith.addf %238, %239 : vector<16x2xf32>
    %241 = arith.negf %240 : vector<16x2xf32>
    %242 = math.exp %241 : vector<16x2xf32>
    %cst_77 = arith.constant 1.000000e+00 : f32
    %243 = vector.broadcast %cst_77 : f32 to vector<16x2xf32>
    %244 = arith.addf %243, %242 : vector<16x2xf32>
    %245 = arith.divf %243, %244 : vector<16x2xf32>
    %cst_78 = arith.constant dense<0.000000e+00> : vector<16x2xf32>
    %246 = tpu.matmul %13, %225, %cst_78 {dimension_numbers = #tpu.dot_dimension_numbers<[1], [0], [0], [1], [0, 0, 1, 1], [], []>} : vector<16x8xf32>, vector<8x2xf32>, vector<16x2xf32> -> vector<16x2xf32>
    %247 = vector.broadcast %25 : vector<16x1xf32> to vector<16x2xf32>
    %248 = arith.addf %246, %247 : vector<16x2xf32>
    %cst_79 = arith.constant dense<0.000000e+00> : vector<16x2xf32>
    %249 = tpu.matmul %19, %220, %cst_79 {dimension_numbers = #tpu.dot_dimension_numbers<[1], [0], [0], [1], [0, 0, 1, 1], [], []>} : vector<16x16xf32>, vector<16x2xf32>, vector<16x2xf32> -> vector<16x2xf32>
    %250 = vector.broadcast %27 : vector<16x1xf32> to vector<16x2xf32>
    %251 = arith.addf %249, %250 : vector<16x2xf32>
    %252 = arith.mulf %235, %251 : vector<16x2xf32>
    %253 = arith.addf %248, %252 : vector<16x2xf32>
    %254 = math.tanh %253 : vector<16x2xf32>
    %cst_80 = arith.constant 1.000000e+00 : f32
    %255 = vector.broadcast %cst_80 : f32 to vector<16x2xf32>
    %256 = arith.subf %255, %245 : vector<16x2xf32>
    %257 = arith.mulf %256, %254 : vector<16x2xf32>
    %258 = arith.mulf %245, %220 : vector<16x2xf32>
    %259 = arith.addf %257, %258 : vector<16x2xf32>
    %c5 = arith.constant 5 : index
    %c0_81 = arith.constant 0 : index
    %c0_82 = arith.constant 0 : index
    %260 = vector.load %arg25[%c5, %c0_81, %c0_82] : memref<8x16x2xf32, #tpu.memory_space<vmem>>, vector<1x16x2xf32>
    %261 = vector.shape_cast %260 : vector<1x16x2xf32> to vector<16x2xf32>
    %262 = vector.shape_cast %259 : vector<16x2xf32> to vector<1x16x2xf32>
    tpu.vector_store %arg25[%c5, %c0_81, %c0_82], %262 {strides = array<i32>} : memref<8x16x2xf32, #tpu.memory_space<vmem>>, vector<1x16x2xf32>,
    %263 = vector.extract_strided_slice %3 {offsets = [6, 0, 0], sizes = [1, 8, 2], strides = [1, 1, 1]} : vector<8x8x2xf32> to vector<1x8x2xf32>
    %264 = vector.shape_cast %263 : vector<1x8x2xf32> to vector<8x2xf32>
    %cst_83 = arith.constant dense<0.000000e+00> : vector<16x2xf32>
    %265 = tpu.matmul %9, %264, %cst_83 {dimension_numbers = #tpu.dot_dimension_numbers<[1], [0], [0], [1], [0, 0, 1, 1], [], []>} : vector<16x8xf32>, vector<8x2xf32>, vector<16x2xf32> -> vector<16x2xf32>
    %cst_84 = arith.constant dense<0.000000e+00> : vector<16x2xf32>
    %266 = tpu.matmul %15, %259, %cst_84 {dimension_numbers = #tpu.dot_dimension_numbers<[1], [0], [0], [1], [0, 0, 1, 1], [], []>} : vector<16x16xf32>, vector<16x2xf32>, vector<16x2xf32> -> vector<16x2xf32>
    %267 = arith.addf %265, %266 : vector<16x2xf32>
    %268 = vector.broadcast %21 : vector<16x1xf32> to vector<16x2xf32>
    %269 = arith.addf %267, %268 : vector<16x2xf32>
    %270 = arith.negf %269 : vector<16x2xf32>
    %271 = math.exp %270 : vector<16x2xf32>
    %cst_85 = arith.constant 1.000000e+00 : f32
    %272 = vector.broadcast %cst_85 : f32 to vector<16x2xf32>
    %273 = arith.addf %272, %271 : vector<16x2xf32>
    %274 = arith.divf %272, %273 : vector<16x2xf32>
    %cst_86 = arith.constant dense<0.000000e+00> : vector<16x2xf32>
    %275 = tpu.matmul %11, %264, %cst_86 {dimension_numbers = #tpu.dot_dimension_numbers<[1], [0], [0], [1], [0, 0, 1, 1], [], []>} : vector<16x8xf32>, vector<8x2xf32>, vector<16x2xf32> -> vector<16x2xf32>
    %cst_87 = arith.constant dense<0.000000e+00> : vector<16x2xf32>
    %276 = tpu.matmul %17, %259, %cst_87 {dimension_numbers = #tpu.dot_dimension_numbers<[1], [0], [0], [1], [0, 0, 1, 1], [], []>} : vector<16x16xf32>, vector<16x2xf32>, vector<16x2xf32> -> vector<16x2xf32>
    %277 = arith.addf %275, %276 : vector<16x2xf32>
    %278 = vector.broadcast %23 : vector<16x1xf32> to vector<16x2xf32>
    %279 = arith.addf %277, %278 : vector<16x2xf32>
    %280 = arith.negf %279 : vector<16x2xf32>
    %281 = math.exp %280 : vector<16x2xf32>
    %cst_88 = arith.constant 1.000000e+00 : f32
    %282 = vector.broadcast %cst_88 : f32 to vector<16x2xf32>
    %283 = arith.addf %282, %281 : vector<16x2xf32>
    %284 = arith.divf %282, %283 : vector<16x2xf32>
    %cst_89 = arith.constant dense<0.000000e+00> : vector<16x2xf32>
    %285 = tpu.matmul %13, %264, %cst_89 {dimension_numbers = #tpu.dot_dimension_numbers<[1], [0], [0], [1], [0, 0, 1, 1], [], []>} : vector<16x8xf32>, vector<8x2xf32>, vector<16x2xf32> -> vector<16x2xf32>
    %286 = vector.broadcast %25 : vector<16x1xf32> to vector<16x2xf32>
    %287 = arith.addf %285, %286 : vector<16x2xf32>
    %cst_90 = arith.constant dense<0.000000e+00> : vector<16x2xf32>
    %288 = tpu.matmul %19, %259, %cst_90 {dimension_numbers = #tpu.dot_dimension_numbers<[1], [0], [0], [1], [0, 0, 1, 1], [], []>} : vector<16x16xf32>, vector<16x2xf32>, vector<16x2xf32> -> vector<16x2xf32>
    %289 = vector.broadcast %27 : vector<16x1xf32> to vector<16x2xf32>
    %290 = arith.addf %288, %289 : vector<16x2xf32>
    %291 = arith.mulf %274, %290 : vector<16x2xf32>
    %292 = arith.addf %287, %291 : vector<16x2xf32>
    %293 = math.tanh %292 : vector<16x2xf32>
    %cst_91 = arith.constant 1.000000e+00 : f32
    %294 = vector.broadcast %cst_91 : f32 to vector<16x2xf32>
    %295 = arith.subf %294, %284 : vector<16x2xf32>
    %296 = arith.mulf %295, %293 : vector<16x2xf32>
    %297 = arith.mulf %284, %259 : vector<16x2xf32>
    %298 = arith.addf %296, %297 : vector<16x2xf32>
    %c6 = arith.constant 6 : index
    %c0_92 = arith.constant 0 : index
    %c0_93 = arith.constant 0 : index
    %299 = vector.load %arg25[%c6, %c0_92, %c0_93] : memref<8x16x2xf32, #tpu.memory_space<vmem>>, vector<1x16x2xf32>
    %300 = vector.shape_cast %299 : vector<1x16x2xf32> to vector<16x2xf32>
    %301 = vector.shape_cast %298 : vector<16x2xf32> to vector<1x16x2xf32>
    tpu.vector_store %arg25[%c6, %c0_92, %c0_93], %301 {strides = array<i32>} : memref<8x16x2xf32, #tpu.memory_space<vmem>>, vector<1x16x2xf32>,
    %302 = vector.extract_strided_slice %3 {offsets = [7, 0, 0], sizes = [1, 8, 2], strides = [1, 1, 1]} : vector<8x8x2xf32> to vector<1x8x2xf32>
    %303 = vector.shape_cast %302 : vector<1x8x2xf32> to vector<8x2xf32>
    %cst_94 = arith.constant dense<0.000000e+00> : vector<16x2xf32>
    %304 = tpu.matmul %9, %303, %cst_94 {dimension_numbers = #tpu.dot_dimension_numbers<[1], [0], [0], [1], [0, 0, 1, 1], [], []>} : vector<16x8xf32>, vector<8x2xf32>, vector<16x2xf32> -> vector<16x2xf32>
    %cst_95 = arith.constant dense<0.000000e+00> : vector<16x2xf32>
    %305 = tpu.matmul %15, %298, %cst_95 {dimension_numbers = #tpu.dot_dimension_numbers<[1], [0], [0], [1], [0, 0, 1, 1], [], []>} : vector<16x16xf32>, vector<16x2xf32>, vector<16x2xf32> -> vector<16x2xf32>
    %306 = arith.addf %304, %305 : vector<16x2xf32>
    %307 = vector.broadcast %21 : vector<16x1xf32> to vector<16x2xf32>
    %308 = arith.addf %306, %307 : vector<16x2xf32>
    %309 = arith.negf %308 : vector<16x2xf32>
    %310 = math.exp %309 : vector<16x2xf32>
    %cst_96 = arith.constant 1.000000e+00 : f32
    %311 = vector.broadcast %cst_96 : f32 to vector<16x2xf32>
    %312 = arith.addf %311, %310 : vector<16x2xf32>
    %313 = arith.divf %311, %312 : vector<16x2xf32>
    %cst_97 = arith.constant dense<0.000000e+00> : vector<16x2xf32>
    %314 = tpu.matmul %11, %303, %cst_97 {dimension_numbers = #tpu.dot_dimension_numbers<[1], [0], [0], [1], [0, 0, 1, 1], [], []>} : vector<16x8xf32>, vector<8x2xf32>, vector<16x2xf32> -> vector<16x2xf32>
    %cst_98 = arith.constant dense<0.000000e+00> : vector<16x2xf32>
    %315 = tpu.matmul %17, %298, %cst_98 {dimension_numbers = #tpu.dot_dimension_numbers<[1], [0], [0], [1], [0, 0, 1, 1], [], []>} : vector<16x16xf32>, vector<16x2xf32>, vector<16x2xf32> -> vector<16x2xf32>
    %316 = arith.addf %314, %315 : vector<16x2xf32>
    %317 = vector.broadcast %23 : vector<16x1xf32> to vector<16x2xf32>
    %318 = arith.addf %316, %317 : vector<16x2xf32>
    %319 = arith.negf %318 : vector<16x2xf32>
    %320 = math.exp %319 : vector<16x2xf32>
    %cst_99 = arith.constant 1.000000e+00 : f32
    %321 = vector.broadcast %cst_99 : f32 to vector<16x2xf32>
    %322 = arith.addf %321, %320 : vector<16x2xf32>
    %323 = arith.divf %321, %322 : vector<16x2xf32>
    %cst_100 = arith.constant dense<0.000000e+00> : vector<16x2xf32>
    %324 = tpu.matmul %13, %303, %cst_100 {dimension_numbers = #tpu.dot_dimension_numbers<[1], [0], [0], [1], [0, 0, 1, 1], [], []>} : vector<16x8xf32>, vector<8x2xf32>, vector<16x2xf32> -> vector<16x2xf32>
    %325 = vector.broadcast %25 : vector<16x1xf32> to vector<16x2xf32>
    %326 = arith.addf %324, %325 : vector<16x2xf32>
    %cst_101 = arith.constant dense<0.000000e+00> : vector<16x2xf32>
    %327 = tpu.matmul %19, %298, %cst_101 {dimension_numbers = #tpu.dot_dimension_numbers<[1], [0], [0], [1], [0, 0, 1, 1], [], []>} : vector<16x16xf32>, vector<16x2xf32>, vector<16x2xf32> -> vector<16x2xf32>
    %328 = vector.broadcast %27 : vector<16x1xf32> to vector<16x2xf32>
    %329 = arith.addf %327, %328 : vector<16x2xf32>
    %330 = arith.mulf %313, %329 : vector<16x2xf32>
    %331 = arith.addf %326, %330 : vector<16x2xf32>
    %332 = math.tanh %331 : vector<16x2xf32>
    %cst_102 = arith.constant 1.000000e+00 : f32
    %333 = vector.broadcast %cst_102 : f32 to vector<16x2xf32>
    %334 = arith.subf %333, %323 : vector<16x2xf32>
    %335 = arith.mulf %334, %332 : vector<16x2xf32>
    %336 = arith.mulf %323, %298 : vector<16x2xf32>
    %337 = arith.addf %335, %336 : vector<16x2xf32>
    %c7 = arith.constant 7 : index
    %c0_103 = arith.constant 0 : index
    %c0_104 = arith.constant 0 : index
    %338 = vector.load %arg25[%c7, %c0_103, %c0_104] : memref<8x16x2xf32, #tpu.memory_space<vmem>>, vector<1x16x2xf32>
    %339 = vector.shape_cast %338 : vector<1x16x2xf32> to vector<16x2xf32>
    %340 = vector.shape_cast %337 : vector<16x2xf32> to vector<1x16x2xf32>
    tpu.vector_store %arg25[%c7, %c0_103, %c0_104], %340 {strides = array<i32>} : memref<8x16x2xf32, #tpu.memory_space<vmem>>, vector<1x16x2xf32>,
    %c0_105 = arith.constant 0 : index
    %c0_106 = arith.constant 0 : index
    %c0_107 = arith.constant 0 : index
    %341 = vector.load %arg25[%c0_105, %c0_106, %c0_107] : memref<8x16x2xf32, #tpu.memory_space<vmem>>, vector<8x16x2xf32>
    %c0_108 = arith.constant 0 : index
    %c0_109 = arith.constant 0 : index
    %342 = vector.load %arg11[%c0_108, %c0_109] : memref<16x8xf32, #tpu.memory_space<vmem>>, vector<16x8xf32>
    %cst_110 = arith.constant dense<0.000000e+00> : vector<16x2xf32>
    %343 = tpu.matmul %342, %1, %cst_110 {dimension_numbers = #tpu.dot_dimension_numbers<[1], [0], [0], [1], [0, 0, 1, 1], [], []>} : vector<16x8xf32>, vector<8x2xf32>, vector<16x2xf32> -> vector<16x2xf32>
    %344 = vector.shape_cast %343 : vector<16x2xf32> to vector<1x16x2xf32>
    %345 = vector.broadcast %344 : vector<1x16x2xf32> to vector<8x16x2xf32>
    %346 = arith.mulf %341, %345 : vector<8x16x2xf32>
    %cst_111 = arith.constant dense<0.000000e+00> : vector<8x2xf32>
    %347 = vector.multi_reduction <add>, %346, %cst_111 [1] : vector<8x16x2xf32> to vector<8x2xf32>
    %348 = vector.shape_cast %347 : vector<8x2xf32> to vector<8x1x2xf32>
    %cst_112 = arith.constant dense<0xFF800000> : vector<1x2xf32>
    %349 = vector.multi_reduction <maximumf>, %348, %cst_112 [0] : vector<8x1x2xf32> to vector<1x2xf32>
    %350 = vector.shape_cast %349 : vector<1x2xf32> to vector<1x1x2xf32>
    %351 = vector.broadcast %350 : vector<1x1x2xf32> to vector<8x1x2xf32>
    %352 = arith.subf %348, %351 : vector<8x1x2xf32>
    %353 = math.exp %352 : vector<8x1x2xf32>
    %cst_113 = arith.constant dense<0.000000e+00> : vector<1x2xf32>
    %354 = vector.multi_reduction <add>, %353, %cst_113 [0] : vector<8x1x2xf32> to vector<1x2xf32>
    %355 = vector.shape_cast %354 : vector<1x2xf32> to vector<1x1x2xf32>
    %356 = tpu.reciprocal %355 {approx = true} : vector<1x1x2xf32> -> vector<1x1x2xf32>
    %357 = vector.broadcast %356 : vector<1x1x2xf32> to vector<8x1x2xf32>
    %358 = arith.mulf %353, %357 : vector<8x1x2xf32>
    %c0_114 = arith.constant 0 : index
    %c0_115 = arith.constant 0 : index
    %c0_116 = arith.constant 0 : index
    %359 = vector.load %arg12[%c0_114, %c0_115, %c0_116] : memref<3x16x16xf32, #tpu.memory_space<vmem>>, vector<3x16x16xf32>
    %c0_117 = arith.constant 0 : index
    %c0_118 = arith.constant 0 : index
    %c0_119 = arith.constant 0 : index
    %360 = vector.load %arg13[%c0_117, %c0_118, %c0_119] : memref<3x16x16xf32, #tpu.memory_space<vmem>>, vector<3x16x16xf32>
    %c0_120 = arith.constant 0 : index
    %c0_121 = arith.constant 0 : index
    %c0_122 = arith.constant 0 : index
    %361 = vector.load %arg14[%c0_120, %c0_121, %c0_122] : memref<4x16x1xf32, #tpu.memory_space<vmem>>, vector<4x16x1xf32>
    %362 = vector.extract_strided_slice %359 {offsets = [0, 0, 0], sizes = [1, 16, 16], strides = [1, 1, 1]} : vector<3x16x16xf32> to vector<1x16x16xf32>
    %363 = vector.shape_cast %362 : vector<1x16x16xf32> to vector<16x16xf32>
    %364 = vector.extract_strided_slice %359 {offsets = [1, 0, 0], sizes = [1, 16, 16], strides = [1, 1, 1]} : vector<3x16x16xf32> to vector<1x16x16xf32>
    %365 = vector.shape_cast %364 : vector<1x16x16xf32> to vector<16x16xf32>
    %366 = vector.extract_strided_slice %359 {offsets = [2, 0, 0], sizes = [1, 16, 16], strides = [1, 1, 1]} : vector<3x16x16xf32> to vector<1x16x16xf32>
    %367 = vector.shape_cast %366 : vector<1x16x16xf32> to vector<16x16xf32>
    %368 = vector.extract_strided_slice %360 {offsets = [0, 0, 0], sizes = [1, 16, 16], strides = [1, 1, 1]} : vector<3x16x16xf32> to vector<1x16x16xf32>
    %369 = vector.shape_cast %368 : vector<1x16x16xf32> to vector<16x16xf32>
    %370 = vector.extract_strided_slice %360 {offsets = [1, 0, 0], sizes = [1, 16, 16], strides = [1, 1, 1]} : vector<3x16x16xf32> to vector<1x16x16xf32>
    %371 = vector.shape_cast %370 : vector<1x16x16xf32> to vector<16x16xf32>
    %372 = vector.extract_strided_slice %360 {offsets = [2, 0, 0], sizes = [1, 16, 16], strides = [1, 1, 1]} : vector<3x16x16xf32> to vector<1x16x16xf32>
    %373 = vector.shape_cast %372 : vector<1x16x16xf32> to vector<16x16xf32>
    %374 = vector.extract_strided_slice %361 {offsets = [0, 0, 0], sizes = [1, 16, 1], strides = [1, 1, 1]} : vector<4x16x1xf32> to vector<1x16x1xf32>
    %375 = vector.shape_cast %374 : vector<1x16x1xf32> to vector<16x1xf32>
    %376 = vector.extract_strided_slice %361 {offsets = [1, 0, 0], sizes = [1, 16, 1], strides = [1, 1, 1]} : vector<4x16x1xf32> to vector<1x16x1xf32>
    %377 = vector.shape_cast %376 : vector<1x16x1xf32> to vector<16x1xf32>
    %378 = vector.extract_strided_slice %361 {offsets = [2, 0, 0], sizes = [1, 16, 1], strides = [1, 1, 1]} : vector<4x16x1xf32> to vector<1x16x1xf32>
    %379 = vector.shape_cast %378 : vector<1x16x1xf32> to vector<16x1xf32>
    %380 = vector.extract_strided_slice %361 {offsets = [3, 0, 0], sizes = [1, 16, 1], strides = [1, 1, 1]} : vector<4x16x1xf32> to vector<1x16x1xf32>
    %381 = vector.shape_cast %380 : vector<1x16x1xf32> to vector<16x1xf32>
    %cst_123 = arith.constant 0.000000e+00 : f32
    %382 = vector.broadcast %cst_123 : f32 to vector<16x2xf32>
    %383 = vector.extract_strided_slice %341 {offsets = [0, 0, 0], sizes = [1, 16, 2], strides = [1, 1, 1]} : vector<8x16x2xf32> to vector<1x16x2xf32>
    %384 = vector.shape_cast %383 : vector<1x16x2xf32> to vector<16x2xf32>
    %cst_124 = arith.constant dense<0.000000e+00> : vector<16x2xf32>
    %385 = tpu.matmul %363, %384, %cst_124 {dimension_numbers = #tpu.dot_dimension_numbers<[1], [0], [0], [1], [0, 0, 1, 1], [], []>} : vector<16x16xf32>, vector<16x2xf32>, vector<16x2xf32> -> vector<16x2xf32>
    %cst_125 = arith.constant dense<0.000000e+00> : vector<16x2xf32>
    %386 = tpu.matmul %369, %382, %cst_125 {dimension_numbers = #tpu.dot_dimension_numbers<[1], [0], [0], [1], [0, 0, 1, 1], [], []>} : vector<16x16xf32>, vector<16x2xf32>, vector<16x2xf32> -> vector<16x2xf32>
    %387 = arith.addf %385, %386 : vector<16x2xf32>
    %388 = vector.broadcast %375 : vector<16x1xf32> to vector<16x2xf32>
    %389 = arith.addf %387, %388 : vector<16x2xf32>
    %390 = arith.negf %389 : vector<16x2xf32>
    %391 = math.exp %390 : vector<16x2xf32>
    %cst_126 = arith.constant 1.000000e+00 : f32
    %392 = vector.broadcast %cst_126 : f32 to vector<16x2xf32>
    %393 = arith.addf %392, %391 : vector<16x2xf32>
    %394 = arith.divf %392, %393 : vector<16x2xf32>
    %cst_127 = arith.constant dense<0.000000e+00> : vector<16x2xf32>
    %395 = tpu.matmul %365, %384, %cst_127 {dimension_numbers = #tpu.dot_dimension_numbers<[1], [0], [0], [1], [0, 0, 1, 1], [], []>} : vector<16x16xf32>, vector<16x2xf32>, vector<16x2xf32> -> vector<16x2xf32>
    %cst_128 = arith.constant dense<0.000000e+00> : vector<16x2xf32>
    %396 = tpu.matmul %371, %382, %cst_128 {dimension_numbers = #tpu.dot_dimension_numbers<[1], [0], [0], [1], [0, 0, 1, 1], [], []>} : vector<16x16xf32>, vector<16x2xf32>, vector<16x2xf32> -> vector<16x2xf32>
    %397 = arith.addf %395, %396 : vector<16x2xf32>
    %398 = vector.broadcast %377 : vector<16x1xf32> to vector<16x2xf32>
    %399 = arith.addf %397, %398 : vector<16x2xf32>
    %400 = arith.negf %399 : vector<16x2xf32>
    %401 = math.exp %400 : vector<16x2xf32>
    %cst_129 = arith.constant 1.000000e+00 : f32
    %402 = vector.broadcast %cst_129 : f32 to vector<16x2xf32>
    %403 = arith.addf %402, %401 : vector<16x2xf32>
    %404 = arith.divf %402, %403 : vector<16x2xf32>
    %cst_130 = arith.constant dense<0.000000e+00> : vector<16x2xf32>
    %405 = tpu.matmul %367, %384, %cst_130 {dimension_numbers = #tpu.dot_dimension_numbers<[1], [0], [0], [1], [0, 0, 1, 1], [], []>} : vector<16x16xf32>, vector<16x2xf32>, vector<16x2xf32> -> vector<16x2xf32>
    %406 = vector.broadcast %379 : vector<16x1xf32> to vector<16x2xf32>
    %407 = arith.addf %405, %406 : vector<16x2xf32>
    %cst_131 = arith.constant dense<0.000000e+00> : vector<16x2xf32>
    %408 = tpu.matmul %373, %382, %cst_131 {dimension_numbers = #tpu.dot_dimension_numbers<[1], [0], [0], [1], [0, 0, 1, 1], [], []>} : vector<16x16xf32>, vector<16x2xf32>, vector<16x2xf32> -> vector<16x2xf32>
    %409 = vector.broadcast %381 : vector<16x1xf32> to vector<16x2xf32>
    %410 = arith.addf %408, %409 : vector<16x2xf32>
    %411 = arith.mulf %394, %410 : vector<16x2xf32>
    %412 = arith.addf %407, %411 : vector<16x2xf32>
    %413 = math.tanh %412 : vector<16x2xf32>
    %414 = vector.extract_strided_slice %358 {offsets = [0, 0, 0], sizes = [1, 1, 2], strides = [1, 1, 1]} : vector<8x1x2xf32> to vector<1x1x2xf32>
    %415 = vector.shape_cast %414 : vector<1x1x2xf32> to vector<1x2xf32>
    %416 = vector.broadcast %415 : vector<1x2xf32> to vector<16x2xf32>
    %417 = arith.mulf %416, %404 : vector<16x2xf32>
    %cst_132 = arith.constant 1.000000e+00 : f32
    %418 = vector.broadcast %cst_132 : f32 to vector<16x2xf32>
    %419 = arith.subf %418, %417 : vector<16x2xf32>
    %420 = arith.mulf %419, %382 : vector<16x2xf32>
    %421 = arith.mulf %417, %413 : vector<16x2xf32>
    %422 = arith.addf %420, %421 : vector<16x2xf32>
    %423 = vector.extract_strided_slice %341 {offsets = [1, 0, 0], sizes = [1, 16, 2], strides = [1, 1, 1]} : vector<8x16x2xf32> to vector<1x16x2xf32>
    %424 = vector.shape_cast %423 : vector<1x16x2xf32> to vector<16x2xf32>
    %cst_133 = arith.constant dense<0.000000e+00> : vector<16x2xf32>
    %425 = tpu.matmul %363, %424, %cst_133 {dimension_numbers = #tpu.dot_dimension_numbers<[1], [0], [0], [1], [0, 0, 1, 1], [], []>} : vector<16x16xf32>, vector<16x2xf32>, vector<16x2xf32> -> vector<16x2xf32>
    %cst_134 = arith.constant dense<0.000000e+00> : vector<16x2xf32>
    %426 = tpu.matmul %369, %422, %cst_134 {dimension_numbers = #tpu.dot_dimension_numbers<[1], [0], [0], [1], [0, 0, 1, 1], [], []>} : vector<16x16xf32>, vector<16x2xf32>, vector<16x2xf32> -> vector<16x2xf32>
    %427 = arith.addf %425, %426 : vector<16x2xf32>
    %428 = vector.broadcast %375 : vector<16x1xf32> to vector<16x2xf32>
    %429 = arith.addf %427, %428 : vector<16x2xf32>
    %430 = arith.negf %429 : vector<16x2xf32>
    %431 = math.exp %430 : vector<16x2xf32>
    %cst_135 = arith.constant 1.000000e+00 : f32
    %432 = vector.broadcast %cst_135 : f32 to vector<16x2xf32>
    %433 = arith.addf %432, %431 : vector<16x2xf32>
    %434 = arith.divf %432, %433 : vector<16x2xf32>
    %cst_136 = arith.constant dense<0.000000e+00> : vector<16x2xf32>
    %435 = tpu.matmul %365, %424, %cst_136 {dimension_numbers = #tpu.dot_dimension_numbers<[1], [0], [0], [1], [0, 0, 1, 1], [], []>} : vector<16x16xf32>, vector<16x2xf32>, vector<16x2xf32> -> vector<16x2xf32>
    %cst_137 = arith.constant dense<0.000000e+00> : vector<16x2xf32>
    %436 = tpu.matmul %371, %422, %cst_137 {dimension_numbers = #tpu.dot_dimension_numbers<[1], [0], [0], [1], [0, 0, 1, 1], [], []>} : vector<16x16xf32>, vector<16x2xf32>, vector<16x2xf32> -> vector<16x2xf32>
    %437 = arith.addf %435, %436 : vector<16x2xf32>
    %438 = vector.broadcast %377 : vector<16x1xf32> to vector<16x2xf32>
    %439 = arith.addf %437, %438 : vector<16x2xf32>
    %440 = arith.negf %439 : vector<16x2xf32>
    %441 = math.exp %440 : vector<16x2xf32>
    %cst_138 = arith.constant 1.000000e+00 : f32
    %442 = vector.broadcast %cst_138 : f32 to vector<16x2xf32>
    %443 = arith.addf %442, %441 : vector<16x2xf32>
    %444 = arith.divf %442, %443 : vector<16x2xf32>
    %cst_139 = arith.constant dense<0.000000e+00> : vector<16x2xf32>
    %445 = tpu.matmul %367, %424, %cst_139 {dimension_numbers = #tpu.dot_dimension_numbers<[1], [0], [0], [1], [0, 0, 1, 1], [], []>} : vector<16x16xf32>, vector<16x2xf32>, vector<16x2xf32> -> vector<16x2xf32>
    %446 = vector.broadcast %379 : vector<16x1xf32> to vector<16x2xf32>
    %447 = arith.addf %445, %446 : vector<16x2xf32>
    %cst_140 = arith.constant dense<0.000000e+00> : vector<16x2xf32>
    %448 = tpu.matmul %373, %422, %cst_140 {dimension_numbers = #tpu.dot_dimension_numbers<[1], [0], [0], [1], [0, 0, 1, 1], [], []>} : vector<16x16xf32>, vector<16x2xf32>, vector<16x2xf32> -> vector<16x2xf32>
    %449 = vector.broadcast %381 : vector<16x1xf32> to vector<16x2xf32>
    %450 = arith.addf %448, %449 : vector<16x2xf32>
    %451 = arith.mulf %434, %450 : vector<16x2xf32>
    %452 = arith.addf %447, %451 : vector<16x2xf32>
    %453 = math.tanh %452 : vector<16x2xf32>
    %454 = vector.extract_strided_slice %358 {offsets = [1, 0, 0], sizes = [1, 1, 2], strides = [1, 1, 1]} : vector<8x1x2xf32> to vector<1x1x2xf32>
    %455 = vector.shape_cast %454 : vector<1x1x2xf32> to vector<1x2xf32>
    %456 = vector.broadcast %455 : vector<1x2xf32> to vector<16x2xf32>
    %457 = arith.mulf %456, %444 : vector<16x2xf32>
    %cst_141 = arith.constant 1.000000e+00 : f32
    %458 = vector.broadcast %cst_141 : f32 to vector<16x2xf32>
    %459 = arith.subf %458, %457 : vector<16x2xf32>
    %460 = arith.mulf %459, %422 : vector<16x2xf32>
    %461 = arith.mulf %457, %453 : vector<16x2xf32>
    %462 = arith.addf %460, %461 : vector<16x2xf32>
    %463 = vector.extract_strided_slice %341 {offsets = [2, 0, 0], sizes = [1, 16, 2], strides = [1, 1, 1]} : vector<8x16x2xf32> to vector<1x16x2xf32>
    %464 = vector.shape_cast %463 : vector<1x16x2xf32> to vector<16x2xf32>
    %cst_142 = arith.constant dense<0.000000e+00> : vector<16x2xf32>
    %465 = tpu.matmul %363, %464, %cst_142 {dimension_numbers = #tpu.dot_dimension_numbers<[1], [0], [0], [1], [0, 0, 1, 1], [], []>} : vector<16x16xf32>, vector<16x2xf32>, vector<16x2xf32> -> vector<16x2xf32>
    %cst_143 = arith.constant dense<0.000000e+00> : vector<16x2xf32>
    %466 = tpu.matmul %369, %462, %cst_143 {dimension_numbers = #tpu.dot_dimension_numbers<[1], [0], [0], [1], [0, 0, 1, 1], [], []>} : vector<16x16xf32>, vector<16x2xf32>, vector<16x2xf32> -> vector<16x2xf32>
    %467 = arith.addf %465, %466 : vector<16x2xf32>
    %468 = vector.broadcast %375 : vector<16x1xf32> to vector<16x2xf32>
    %469 = arith.addf %467, %468 : vector<16x2xf32>
    %470 = arith.negf %469 : vector<16x2xf32>
    %471 = math.exp %470 : vector<16x2xf32>
    %cst_144 = arith.constant 1.000000e+00 : f32
    %472 = vector.broadcast %cst_144 : f32 to vector<16x2xf32>
    %473 = arith.addf %472, %471 : vector<16x2xf32>
    %474 = arith.divf %472, %473 : vector<16x2xf32>
    %cst_145 = arith.constant dense<0.000000e+00> : vector<16x2xf32>
    %475 = tpu.matmul %365, %464, %cst_145 {dimension_numbers = #tpu.dot_dimension_numbers<[1], [0], [0], [1], [0, 0, 1, 1], [], []>} : vector<16x16xf32>, vector<16x2xf32>, vector<16x2xf32> -> vector<16x2xf32>
    %cst_146 = arith.constant dense<0.000000e+00> : vector<16x2xf32>
    %476 = tpu.matmul %371, %462, %cst_146 {dimension_numbers = #tpu.dot_dimension_numbers<[1], [0], [0], [1], [0, 0, 1, 1], [], []>} : vector<16x16xf32>, vector<16x2xf32>, vector<16x2xf32> -> vector<16x2xf32>
    %477 = arith.addf %475, %476 : vector<16x2xf32>
    %478 = vector.broadcast %377 : vector<16x1xf32> to vector<16x2xf32>
    %479 = arith.addf %477, %478 : vector<16x2xf32>
    %480 = arith.negf %479 : vector<16x2xf32>
    %481 = math.exp %480 : vector<16x2xf32>
    %cst_147 = arith.constant 1.000000e+00 : f32
    %482 = vector.broadcast %cst_147 : f32 to vector<16x2xf32>
    %483 = arith.addf %482, %481 : vector<16x2xf32>
    %484 = arith.divf %482, %483 : vector<16x2xf32>
    %cst_148 = arith.constant dense<0.000000e+00> : vector<16x2xf32>
    %485 = tpu.matmul %367, %464, %cst_148 {dimension_numbers = #tpu.dot_dimension_numbers<[1], [0], [0], [1], [0, 0, 1, 1], [], []>} : vector<16x16xf32>, vector<16x2xf32>, vector<16x2xf32> -> vector<16x2xf32>
    %486 = vector.broadcast %379 : vector<16x1xf32> to vector<16x2xf32>
    %487 = arith.addf %485, %486 : vector<16x2xf32>
    %cst_149 = arith.constant dense<0.000000e+00> : vector<16x2xf32>
    %488 = tpu.matmul %373, %462, %cst_149 {dimension_numbers = #tpu.dot_dimension_numbers<[1], [0], [0], [1], [0, 0, 1, 1], [], []>} : vector<16x16xf32>, vector<16x2xf32>, vector<16x2xf32> -> vector<16x2xf32>
    %489 = vector.broadcast %381 : vector<16x1xf32> to vector<16x2xf32>
    %490 = arith.addf %488, %489 : vector<16x2xf32>
    %491 = arith.mulf %474, %490 : vector<16x2xf32>
    %492 = arith.addf %487, %491 : vector<16x2xf32>
    %493 = math.tanh %492 : vector<16x2xf32>
    %494 = vector.extract_strided_slice %358 {offsets = [2, 0, 0], sizes = [1, 1, 2], strides = [1, 1, 1]} : vector<8x1x2xf32> to vector<1x1x2xf32>
    %495 = vector.shape_cast %494 : vector<1x1x2xf32> to vector<1x2xf32>
    %496 = vector.broadcast %495 : vector<1x2xf32> to vector<16x2xf32>
    %497 = arith.mulf %496, %484 : vector<16x2xf32>
    %cst_150 = arith.constant 1.000000e+00 : f32
    %498 = vector.broadcast %cst_150 : f32 to vector<16x2xf32>
    %499 = arith.subf %498, %497 : vector<16x2xf32>
    %500 = arith.mulf %499, %462 : vector<16x2xf32>
    %501 = arith.mulf %497, %493 : vector<16x2xf32>
    %502 = arith.addf %500, %501 : vector<16x2xf32>
    %503 = vector.extract_strided_slice %341 {offsets = [3, 0, 0], sizes = [1, 16, 2], strides = [1, 1, 1]} : vector<8x16x2xf32> to vector<1x16x2xf32>
    %504 = vector.shape_cast %503 : vector<1x16x2xf32> to vector<16x2xf32>
    %cst_151 = arith.constant dense<0.000000e+00> : vector<16x2xf32>
    %505 = tpu.matmul %363, %504, %cst_151 {dimension_numbers = #tpu.dot_dimension_numbers<[1], [0], [0], [1], [0, 0, 1, 1], [], []>} : vector<16x16xf32>, vector<16x2xf32>, vector<16x2xf32> -> vector<16x2xf32>
    %cst_152 = arith.constant dense<0.000000e+00> : vector<16x2xf32>
    %506 = tpu.matmul %369, %502, %cst_152 {dimension_numbers = #tpu.dot_dimension_numbers<[1], [0], [0], [1], [0, 0, 1, 1], [], []>} : vector<16x16xf32>, vector<16x2xf32>, vector<16x2xf32> -> vector<16x2xf32>
    %507 = arith.addf %505, %506 : vector<16x2xf32>
    %508 = vector.broadcast %375 : vector<16x1xf32> to vector<16x2xf32>
    %509 = arith.addf %507, %508 : vector<16x2xf32>
    %510 = arith.negf %509 : vector<16x2xf32>
    %511 = math.exp %510 : vector<16x2xf32>
    %cst_153 = arith.constant 1.000000e+00 : f32
    %512 = vector.broadcast %cst_153 : f32 to vector<16x2xf32>
    %513 = arith.addf %512, %511 : vector<16x2xf32>
    %514 = arith.divf %512, %513 : vector<16x2xf32>
    %cst_154 = arith.constant dense<0.000000e+00> : vector<16x2xf32>
    %515 = tpu.matmul %365, %504, %cst_154 {dimension_numbers = #tpu.dot_dimension_numbers<[1], [0], [0], [1], [0, 0, 1, 1], [], []>} : vector<16x16xf32>, vector<16x2xf32>, vector<16x2xf32> -> vector<16x2xf32>
    %cst_155 = arith.constant dense<0.000000e+00> : vector<16x2xf32>
    %516 = tpu.matmul %371, %502, %cst_155 {dimension_numbers = #tpu.dot_dimension_numbers<[1], [0], [0], [1], [0, 0, 1, 1], [], []>} : vector<16x16xf32>, vector<16x2xf32>, vector<16x2xf32> -> vector<16x2xf32>
    %517 = arith.addf %515, %516 : vector<16x2xf32>
    %518 = vector.broadcast %377 : vector<16x1xf32> to vector<16x2xf32>
    %519 = arith.addf %517, %518 : vector<16x2xf32>
    %520 = arith.negf %519 : vector<16x2xf32>
    %521 = math.exp %520 : vector<16x2xf32>
    %cst_156 = arith.constant 1.000000e+00 : f32
    %522 = vector.broadcast %cst_156 : f32 to vector<16x2xf32>
    %523 = arith.addf %522, %521 : vector<16x2xf32>
    %524 = arith.divf %522, %523 : vector<16x2xf32>
    %cst_157 = arith.constant dense<0.000000e+00> : vector<16x2xf32>
    %525 = tpu.matmul %367, %504, %cst_157 {dimension_numbers = #tpu.dot_dimension_numbers<[1], [0], [0], [1], [0, 0, 1, 1], [], []>} : vector<16x16xf32>, vector<16x2xf32>, vector<16x2xf32> -> vector<16x2xf32>
    %526 = vector.broadcast %379 : vector<16x1xf32> to vector<16x2xf32>
    %527 = arith.addf %525, %526 : vector<16x2xf32>
    %cst_158 = arith.constant dense<0.000000e+00> : vector<16x2xf32>
    %528 = tpu.matmul %373, %502, %cst_158 {dimension_numbers = #tpu.dot_dimension_numbers<[1], [0], [0], [1], [0, 0, 1, 1], [], []>} : vector<16x16xf32>, vector<16x2xf32>, vector<16x2xf32> -> vector<16x2xf32>
    %529 = vector.broadcast %381 : vector<16x1xf32> to vector<16x2xf32>
    %530 = arith.addf %528, %529 : vector<16x2xf32>
    %531 = arith.mulf %514, %530 : vector<16x2xf32>
    %532 = arith.addf %527, %531 : vector<16x2xf32>
    %533 = math.tanh %532 : vector<16x2xf32>
    %534 = vector.extract_strided_slice %358 {offsets = [3, 0, 0], sizes = [1, 1, 2], strides = [1, 1, 1]} : vector<8x1x2xf32> to vector<1x1x2xf32>
    %535 = vector.shape_cast %534 : vector<1x1x2xf32> to vector<1x2xf32>
    %536 = vector.broadcast %535 : vector<1x2xf32> to vector<16x2xf32>
    %537 = arith.mulf %536, %524 : vector<16x2xf32>
    %cst_159 = arith.constant 1.000000e+00 : f32
    %538 = vector.broadcast %cst_159 : f32 to vector<16x2xf32>
    %539 = arith.subf %538, %537 : vector<16x2xf32>
    %540 = arith.mulf %539, %502 : vector<16x2xf32>
    %541 = arith.mulf %537, %533 : vector<16x2xf32>
    %542 = arith.addf %540, %541 : vector<16x2xf32>
    %543 = vector.extract_strided_slice %341 {offsets = [4, 0, 0], sizes = [1, 16, 2], strides = [1, 1, 1]} : vector<8x16x2xf32> to vector<1x16x2xf32>
    %544 = vector.shape_cast %543 : vector<1x16x2xf32> to vector<16x2xf32>
    %cst_160 = arith.constant dense<0.000000e+00> : vector<16x2xf32>
    %545 = tpu.matmul %363, %544, %cst_160 {dimension_numbers = #tpu.dot_dimension_numbers<[1], [0], [0], [1], [0, 0, 1, 1], [], []>} : vector<16x16xf32>, vector<16x2xf32>, vector<16x2xf32> -> vector<16x2xf32>
    %cst_161 = arith.constant dense<0.000000e+00> : vector<16x2xf32>
    %546 = tpu.matmul %369, %542, %cst_161 {dimension_numbers = #tpu.dot_dimension_numbers<[1], [0], [0], [1], [0, 0, 1, 1], [], []>} : vector<16x16xf32>, vector<16x2xf32>, vector<16x2xf32> -> vector<16x2xf32>
    %547 = arith.addf %545, %546 : vector<16x2xf32>
    %548 = vector.broadcast %375 : vector<16x1xf32> to vector<16x2xf32>
    %549 = arith.addf %547, %548 : vector<16x2xf32>
    %550 = arith.negf %549 : vector<16x2xf32>
    %551 = math.exp %550 : vector<16x2xf32>
    %cst_162 = arith.constant 1.000000e+00 : f32
    %552 = vector.broadcast %cst_162 : f32 to vector<16x2xf32>
    %553 = arith.addf %552, %551 : vector<16x2xf32>
    %554 = arith.divf %552, %553 : vector<16x2xf32>
    %cst_163 = arith.constant dense<0.000000e+00> : vector<16x2xf32>
    %555 = tpu.matmul %365, %544, %cst_163 {dimension_numbers = #tpu.dot_dimension_numbers<[1], [0], [0], [1], [0, 0, 1, 1], [], []>} : vector<16x16xf32>, vector<16x2xf32>, vector<16x2xf32> -> vector<16x2xf32>
    %cst_164 = arith.constant dense<0.000000e+00> : vector<16x2xf32>
    %556 = tpu.matmul %371, %542, %cst_164 {dimension_numbers = #tpu.dot_dimension_numbers<[1], [0], [0], [1], [0, 0, 1, 1], [], []>} : vector<16x16xf32>, vector<16x2xf32>, vector<16x2xf32> -> vector<16x2xf32>
    %557 = arith.addf %555, %556 : vector<16x2xf32>
    %558 = vector.broadcast %377 : vector<16x1xf32> to vector<16x2xf32>
    %559 = arith.addf %557, %558 : vector<16x2xf32>
    %560 = arith.negf %559 : vector<16x2xf32>
    %561 = math.exp %560 : vector<16x2xf32>
    %cst_165 = arith.constant 1.000000e+00 : f32
    %562 = vector.broadcast %cst_165 : f32 to vector<16x2xf32>
    %563 = arith.addf %562, %561 : vector<16x2xf32>
    %564 = arith.divf %562, %563 : vector<16x2xf32>
    %cst_166 = arith.constant dense<0.000000e+00> : vector<16x2xf32>
    %565 = tpu.matmul %367, %544, %cst_166 {dimension_numbers = #tpu.dot_dimension_numbers<[1], [0], [0], [1], [0, 0, 1, 1], [], []>} : vector<16x16xf32>, vector<16x2xf32>, vector<16x2xf32> -> vector<16x2xf32>
    %566 = vector.broadcast %379 : vector<16x1xf32> to vector<16x2xf32>
    %567 = arith.addf %565, %566 : vector<16x2xf32>
    %cst_167 = arith.constant dense<0.000000e+00> : vector<16x2xf32>
    %568 = tpu.matmul %373, %542, %cst_167 {dimension_numbers = #tpu.dot_dimension_numbers<[1], [0], [0], [1], [0, 0, 1, 1], [], []>} : vector<16x16xf32>, vector<16x2xf32>, vector<16x2xf32> -> vector<16x2xf32>
    %569 = vector.broadcast %381 : vector<16x1xf32> to vector<16x2xf32>
    %570 = arith.addf %568, %569 : vector<16x2xf32>
    %571 = arith.mulf %554, %570 : vector<16x2xf32>
    %572 = arith.addf %567, %571 : vector<16x2xf32>
    %573 = math.tanh %572 : vector<16x2xf32>
    %574 = vector.extract_strided_slice %358 {offsets = [4, 0, 0], sizes = [1, 1, 2], strides = [1, 1, 1]} : vector<8x1x2xf32> to vector<1x1x2xf32>
    %575 = vector.shape_cast %574 : vector<1x1x2xf32> to vector<1x2xf32>
    %576 = vector.broadcast %575 : vector<1x2xf32> to vector<16x2xf32>
    %577 = arith.mulf %576, %564 : vector<16x2xf32>
    %cst_168 = arith.constant 1.000000e+00 : f32
    %578 = vector.broadcast %cst_168 : f32 to vector<16x2xf32>
    %579 = arith.subf %578, %577 : vector<16x2xf32>
    %580 = arith.mulf %579, %542 : vector<16x2xf32>
    %581 = arith.mulf %577, %573 : vector<16x2xf32>
    %582 = arith.addf %580, %581 : vector<16x2xf32>
    %583 = vector.extract_strided_slice %341 {offsets = [5, 0, 0], sizes = [1, 16, 2], strides = [1, 1, 1]} : vector<8x16x2xf32> to vector<1x16x2xf32>
    %584 = vector.shape_cast %583 : vector<1x16x2xf32> to vector<16x2xf32>
    %cst_169 = arith.constant dense<0.000000e+00> : vector<16x2xf32>
    %585 = tpu.matmul %363, %584, %cst_169 {dimension_numbers = #tpu.dot_dimension_numbers<[1], [0], [0], [1], [0, 0, 1, 1], [], []>} : vector<16x16xf32>, vector<16x2xf32>, vector<16x2xf32> -> vector<16x2xf32>
    %cst_170 = arith.constant dense<0.000000e+00> : vector<16x2xf32>
    %586 = tpu.matmul %369, %582, %cst_170 {dimension_numbers = #tpu.dot_dimension_numbers<[1], [0], [0], [1], [0, 0, 1, 1], [], []>} : vector<16x16xf32>, vector<16x2xf32>, vector<16x2xf32> -> vector<16x2xf32>
    %587 = arith.addf %585, %586 : vector<16x2xf32>
    %588 = vector.broadcast %375 : vector<16x1xf32> to vector<16x2xf32>
    %589 = arith.addf %587, %588 : vector<16x2xf32>
    %590 = arith.negf %589 : vector<16x2xf32>
    %591 = math.exp %590 : vector<16x2xf32>
    %cst_171 = arith.constant 1.000000e+00 : f32
    %592 = vector.broadcast %cst_171 : f32 to vector<16x2xf32>
    %593 = arith.addf %592, %591 : vector<16x2xf32>
    %594 = arith.divf %592, %593 : vector<16x2xf32>
    %cst_172 = arith.constant dense<0.000000e+00> : vector<16x2xf32>
    %595 = tpu.matmul %365, %584, %cst_172 {dimension_numbers = #tpu.dot_dimension_numbers<[1], [0], [0], [1], [0, 0, 1, 1], [], []>} : vector<16x16xf32>, vector<16x2xf32>, vector<16x2xf32> -> vector<16x2xf32>
    %cst_173 = arith.constant dense<0.000000e+00> : vector<16x2xf32>
    %596 = tpu.matmul %371, %582, %cst_173 {dimension_numbers = #tpu.dot_dimension_numbers<[1], [0], [0], [1], [0, 0, 1, 1], [], []>} : vector<16x16xf32>, vector<16x2xf32>, vector<16x2xf32> -> vector<16x2xf32>
    %597 = arith.addf %595, %596 : vector<16x2xf32>
    %598 = vector.broadcast %377 : vector<16x1xf32> to vector<16x2xf32>
    %599 = arith.addf %597, %598 : vector<16x2xf32>
    %600 = arith.negf %599 : vector<16x2xf32>
    %601 = math.exp %600 : vector<16x2xf32>
    %cst_174 = arith.constant 1.000000e+00 : f32
    %602 = vector.broadcast %cst_174 : f32 to vector<16x2xf32>
    %603 = arith.addf %602, %601 : vector<16x2xf32>
    %604 = arith.divf %602, %603 : vector<16x2xf32>
    %cst_175 = arith.constant dense<0.000000e+00> : vector<16x2xf32>
    %605 = tpu.matmul %367, %584, %cst_175 {dimension_numbers = #tpu.dot_dimension_numbers<[1], [0], [0], [1], [0, 0, 1, 1], [], []>} : vector<16x16xf32>, vector<16x2xf32>, vector<16x2xf32> -> vector<16x2xf32>
    %606 = vector.broadcast %379 : vector<16x1xf32> to vector<16x2xf32>
    %607 = arith.addf %605, %606 : vector<16x2xf32>
    %cst_176 = arith.constant dense<0.000000e+00> : vector<16x2xf32>
    %608 = tpu.matmul %373, %582, %cst_176 {dimension_numbers = #tpu.dot_dimension_numbers<[1], [0], [0], [1], [0, 0, 1, 1], [], []>} : vector<16x16xf32>, vector<16x2xf32>, vector<16x2xf32> -> vector<16x2xf32>
    %609 = vector.broadcast %381 : vector<16x1xf32> to vector<16x2xf32>
    %610 = arith.addf %608, %609 : vector<16x2xf32>
    %611 = arith.mulf %594, %610 : vector<16x2xf32>
    %612 = arith.addf %607, %611 : vector<16x2xf32>
    %613 = math.tanh %612 : vector<16x2xf32>
    %614 = vector.extract_strided_slice %358 {offsets = [5, 0, 0], sizes = [1, 1, 2], strides = [1, 1, 1]} : vector<8x1x2xf32> to vector<1x1x2xf32>
    %615 = vector.shape_cast %614 : vector<1x1x2xf32> to vector<1x2xf32>
    %616 = vector.broadcast %615 : vector<1x2xf32> to vector<16x2xf32>
    %617 = arith.mulf %616, %604 : vector<16x2xf32>
    %cst_177 = arith.constant 1.000000e+00 : f32
    %618 = vector.broadcast %cst_177 : f32 to vector<16x2xf32>
    %619 = arith.subf %618, %617 : vector<16x2xf32>
    %620 = arith.mulf %619, %582 : vector<16x2xf32>
    %621 = arith.mulf %617, %613 : vector<16x2xf32>
    %622 = arith.addf %620, %621 : vector<16x2xf32>
    %623 = vector.extract_strided_slice %341 {offsets = [6, 0, 0], sizes = [1, 16, 2], strides = [1, 1, 1]} : vector<8x16x2xf32> to vector<1x16x2xf32>
    %624 = vector.shape_cast %623 : vector<1x16x2xf32> to vector<16x2xf32>
    %cst_178 = arith.constant dense<0.000000e+00> : vector<16x2xf32>
    %625 = tpu.matmul %363, %624, %cst_178 {dimension_numbers = #tpu.dot_dimension_numbers<[1], [0], [0], [1], [0, 0, 1, 1], [], []>} : vector<16x16xf32>, vector<16x2xf32>, vector<16x2xf32> -> vector<16x2xf32>
    %cst_179 = arith.constant dense<0.000000e+00> : vector<16x2xf32>
    %626 = tpu.matmul %369, %622, %cst_179 {dimension_numbers = #tpu.dot_dimension_numbers<[1], [0], [0], [1], [0, 0, 1, 1], [], []>} : vector<16x16xf32>, vector<16x2xf32>, vector<16x2xf32> -> vector<16x2xf32>
    %627 = arith.addf %625, %626 : vector<16x2xf32>
    %628 = vector.broadcast %375 : vector<16x1xf32> to vector<16x2xf32>
    %629 = arith.addf %627, %628 : vector<16x2xf32>
    %630 = arith.negf %629 : vector<16x2xf32>
    %631 = math.exp %630 : vector<16x2xf32>
    %cst_180 = arith.constant 1.000000e+00 : f32
    %632 = vector.broadcast %cst_180 : f32 to vector<16x2xf32>
    %633 = arith.addf %632, %631 : vector<16x2xf32>
    %634 = arith.divf %632, %633 : vector<16x2xf32>
    %cst_181 = arith.constant dense<0.000000e+00> : vector<16x2xf32>
    %635 = tpu.matmul %365, %624, %cst_181 {dimension_numbers = #tpu.dot_dimension_numbers<[1], [0], [0], [1], [0, 0, 1, 1], [], []>} : vector<16x16xf32>, vector<16x2xf32>, vector<16x2xf32> -> vector<16x2xf32>
    %cst_182 = arith.constant dense<0.000000e+00> : vector<16x2xf32>
    %636 = tpu.matmul %371, %622, %cst_182 {dimension_numbers = #tpu.dot_dimension_numbers<[1], [0], [0], [1], [0, 0, 1, 1], [], []>} : vector<16x16xf32>, vector<16x2xf32>, vector<16x2xf32> -> vector<16x2xf32>
    %637 = arith.addf %635, %636 : vector<16x2xf32>
    %638 = vector.broadcast %377 : vector<16x1xf32> to vector<16x2xf32>
    %639 = arith.addf %637, %638 : vector<16x2xf32>
    %640 = arith.negf %639 : vector<16x2xf32>
    %641 = math.exp %640 : vector<16x2xf32>
    %cst_183 = arith.constant 1.000000e+00 : f32
    %642 = vector.broadcast %cst_183 : f32 to vector<16x2xf32>
    %643 = arith.addf %642, %641 : vector<16x2xf32>
    %644 = arith.divf %642, %643 : vector<16x2xf32>
    %cst_184 = arith.constant dense<0.000000e+00> : vector<16x2xf32>
    %645 = tpu.matmul %367, %624, %cst_184 {dimension_numbers = #tpu.dot_dimension_numbers<[1], [0], [0], [1], [0, 0, 1, 1], [], []>} : vector<16x16xf32>, vector<16x2xf32>, vector<16x2xf32> -> vector<16x2xf32>
    %646 = vector.broadcast %379 : vector<16x1xf32> to vector<16x2xf32>
    %647 = arith.addf %645, %646 : vector<16x2xf32>
    %cst_185 = arith.constant dense<0.000000e+00> : vector<16x2xf32>
    %648 = tpu.matmul %373, %622, %cst_185 {dimension_numbers = #tpu.dot_dimension_numbers<[1], [0], [0], [1], [0, 0, 1, 1], [], []>} : vector<16x16xf32>, vector<16x2xf32>, vector<16x2xf32> -> vector<16x2xf32>
    %649 = vector.broadcast %381 : vector<16x1xf32> to vector<16x2xf32>
    %650 = arith.addf %648, %649 : vector<16x2xf32>
    %651 = arith.mulf %634, %650 : vector<16x2xf32>
    %652 = arith.addf %647, %651 : vector<16x2xf32>
    %653 = math.tanh %652 : vector<16x2xf32>
    %654 = vector.extract_strided_slice %358 {offsets = [6, 0, 0], sizes = [1, 1, 2], strides = [1, 1, 1]} : vector<8x1x2xf32> to vector<1x1x2xf32>
    %655 = vector.shape_cast %654 : vector<1x1x2xf32> to vector<1x2xf32>
    %656 = vector.broadcast %655 : vector<1x2xf32> to vector<16x2xf32>
    %657 = arith.mulf %656, %644 : vector<16x2xf32>
    %cst_186 = arith.constant 1.000000e+00 : f32
    %658 = vector.broadcast %cst_186 : f32 to vector<16x2xf32>
    %659 = arith.subf %658, %657 : vector<16x2xf32>
    %660 = arith.mulf %659, %622 : vector<16x2xf32>
    %661 = arith.mulf %657, %653 : vector<16x2xf32>
    %662 = arith.addf %660, %661 : vector<16x2xf32>
    %663 = vector.extract_strided_slice %341 {offsets = [7, 0, 0], sizes = [1, 16, 2], strides = [1, 1, 1]} : vector<8x16x2xf32> to vector<1x16x2xf32>
    %664 = vector.shape_cast %663 : vector<1x16x2xf32> to vector<16x2xf32>
    %cst_187 = arith.constant dense<0.000000e+00> : vector<16x2xf32>
    %665 = tpu.matmul %363, %664, %cst_187 {dimension_numbers = #tpu.dot_dimension_numbers<[1], [0], [0], [1], [0, 0, 1, 1], [], []>} : vector<16x16xf32>, vector<16x2xf32>, vector<16x2xf32> -> vector<16x2xf32>
    %cst_188 = arith.constant dense<0.000000e+00> : vector<16x2xf32>
    %666 = tpu.matmul %369, %662, %cst_188 {dimension_numbers = #tpu.dot_dimension_numbers<[1], [0], [0], [1], [0, 0, 1, 1], [], []>} : vector<16x16xf32>, vector<16x2xf32>, vector<16x2xf32> -> vector<16x2xf32>
    %667 = arith.addf %665, %666 : vector<16x2xf32>
    %668 = vector.broadcast %375 : vector<16x1xf32> to vector<16x2xf32>
    %669 = arith.addf %667, %668 : vector<16x2xf32>
    %670 = arith.negf %669 : vector<16x2xf32>
    %671 = math.exp %670 : vector<16x2xf32>
    %cst_189 = arith.constant 1.000000e+00 : f32
    %672 = vector.broadcast %cst_189 : f32 to vector<16x2xf32>
    %673 = arith.addf %672, %671 : vector<16x2xf32>
    %674 = arith.divf %672, %673 : vector<16x2xf32>
    %cst_190 = arith.constant dense<0.000000e+00> : vector<16x2xf32>
    %675 = tpu.matmul %365, %664, %cst_190 {dimension_numbers = #tpu.dot_dimension_numbers<[1], [0], [0], [1], [0, 0, 1, 1], [], []>} : vector<16x16xf32>, vector<16x2xf32>, vector<16x2xf32> -> vector<16x2xf32>
    %cst_191 = arith.constant dense<0.000000e+00> : vector<16x2xf32>
    %676 = tpu.matmul %371, %662, %cst_191 {dimension_numbers = #tpu.dot_dimension_numbers<[1], [0], [0], [1], [0, 0, 1, 1], [], []>} : vector<16x16xf32>, vector<16x2xf32>, vector<16x2xf32> -> vector<16x2xf32>
    %677 = arith.addf %675, %676 : vector<16x2xf32>
    %678 = vector.broadcast %377 : vector<16x1xf32> to vector<16x2xf32>
    %679 = arith.addf %677, %678 : vector<16x2xf32>
    %680 = arith.negf %679 : vector<16x2xf32>
    %681 = math.exp %680 : vector<16x2xf32>
    %cst_192 = arith.constant 1.000000e+00 : f32
    %682 = vector.broadcast %cst_192 : f32 to vector<16x2xf32>
    %683 = arith.addf %682, %681 : vector<16x2xf32>
    %684 = arith.divf %682, %683 : vector<16x2xf32>
    %cst_193 = arith.constant dense<0.000000e+00> : vector<16x2xf32>
    %685 = tpu.matmul %367, %664, %cst_193 {dimension_numbers = #tpu.dot_dimension_numbers<[1], [0], [0], [1], [0, 0, 1, 1], [], []>} : vector<16x16xf32>, vector<16x2xf32>, vector<16x2xf32> -> vector<16x2xf32>
    %686 = vector.broadcast %379 : vector<16x1xf32> to vector<16x2xf32>
    %687 = arith.addf %685, %686 : vector<16x2xf32>
    %cst_194 = arith.constant dense<0.000000e+00> : vector<16x2xf32>
    %688 = tpu.matmul %373, %662, %cst_194 {dimension_numbers = #tpu.dot_dimension_numbers<[1], [0], [0], [1], [0, 0, 1, 1], [], []>} : vector<16x16xf32>, vector<16x2xf32>, vector<16x2xf32> -> vector<16x2xf32>
    %689 = vector.broadcast %381 : vector<16x1xf32> to vector<16x2xf32>
    %690 = arith.addf %688, %689 : vector<16x2xf32>
    %691 = arith.mulf %674, %690 : vector<16x2xf32>
    %692 = arith.addf %687, %691 : vector<16x2xf32>
    %693 = math.tanh %692 : vector<16x2xf32>
    %694 = vector.extract_strided_slice %358 {offsets = [7, 0, 0], sizes = [1, 1, 2], strides = [1, 1, 1]} : vector<8x1x2xf32> to vector<1x1x2xf32>
    %695 = vector.shape_cast %694 : vector<1x1x2xf32> to vector<1x2xf32>
    %696 = vector.broadcast %695 : vector<1x2xf32> to vector<16x2xf32>
    %697 = arith.mulf %696, %684 : vector<16x2xf32>
    %cst_195 = arith.constant 1.000000e+00 : f32
    %698 = vector.broadcast %cst_195 : f32 to vector<16x2xf32>
    %699 = arith.subf %698, %697 : vector<16x2xf32>
    %700 = arith.mulf %699, %662 : vector<16x2xf32>
    %701 = arith.mulf %697, %693 : vector<16x2xf32>
    %702 = arith.addf %700, %701 : vector<16x2xf32>
    %c0_196 = arith.constant 0 : index
    %c0_197 = arith.constant 0 : index
    %c0_198 = arith.constant 0 : index
    %703 = vector.load %arg4[%c0_196, %c0_197, %c0_198] : memref<3x16x8xf32, #tpu.memory_space<vmem>>, vector<3x16x8xf32>
    %704 = vector.extract_strided_slice %703 {offsets = [0, 0, 0], sizes = [1, 16, 8], strides = [1, 1, 1]} : vector<3x16x8xf32> to vector<1x16x8xf32>
    %705 = vector.shape_cast %704 : vector<1x16x8xf32> to vector<16x8xf32>
    %706 = vector.extract_strided_slice %703 {offsets = [1, 0, 0], sizes = [1, 16, 8], strides = [1, 1, 1]} : vector<3x16x8xf32> to vector<1x16x8xf32>
    %707 = vector.shape_cast %706 : vector<1x16x8xf32> to vector<16x8xf32>
    %708 = vector.extract_strided_slice %703 {offsets = [2, 0, 0], sizes = [1, 16, 8], strides = [1, 1, 1]} : vector<3x16x8xf32> to vector<1x16x8xf32>
    %709 = vector.shape_cast %708 : vector<1x16x8xf32> to vector<16x8xf32>
    %c0_199 = arith.constant 0 : index
    %c0_200 = arith.constant 0 : index
    %710 = vector.load %arg5[%c0_199, %c0_200] : memref<16x1xf32, #tpu.memory_space<vmem>>, vector<16x1xf32>
    %c0_201 = arith.constant 0 : index
    %c0_202 = arith.constant 0 : index
    %711 = vector.load %arg6[%c0_201, %c0_202] : memref<1x16xf32, #tpu.memory_space<vmem>>, vector<1x16xf32>
    %c0_203 = arith.constant 0 : index
    %c0_204 = arith.constant 0 : index
    %712 = vector.load %arg7[%c0_203, %c0_204] : memref<1x1xf32, #tpu.memory_space<vmem>>, vector<1x1xf32>
    %cst_205 = arith.constant dense<0.000000e+00> : vector<16x2xf32>
    %713 = tpu.matmul %709, %1, %cst_205 {dimension_numbers = #tpu.dot_dimension_numbers<[1], [0], [0], [1], [0, 0, 1, 1], [], []>} : vector<16x8xf32>, vector<8x2xf32>, vector<16x2xf32> -> vector<16x2xf32>
    %714 = vector.broadcast %710 : vector<16x1xf32> to vector<16x2xf32>
    %715 = arith.addf %713, %714 : vector<16x2xf32>
    %cst_206 = arith.constant 0.000000e+00 : f32
    %716 = vector.broadcast %cst_206 : f32 to vector<8x2xf32>
    %717 = vector.extract_strided_slice %3 {offsets = [0, 0, 0], sizes = [1, 8, 2], strides = [1, 1, 1]} : vector<8x8x2xf32> to vector<1x8x2xf32>
    %718 = vector.shape_cast %717 : vector<1x8x2xf32> to vector<8x2xf32>
    %cst_207 = arith.constant dense<0.000000e+00> : vector<16x2xf32>
    %719 = tpu.matmul %705, %718, %cst_207 {dimension_numbers = #tpu.dot_dimension_numbers<[1], [0], [0], [1], [0, 0, 1, 1], [], []>} : vector<16x8xf32>, vector<8x2xf32>, vector<16x2xf32> -> vector<16x2xf32>
    %720 = arith.mulf %718, %1 : vector<8x2xf32>
    %cst_208 = arith.constant dense<0.000000e+00> : vector<16x2xf32>
    %721 = tpu.matmul %707, %720, %cst_208 {dimension_numbers = #tpu.dot_dimension_numbers<[1], [0], [0], [1], [0, 0, 1, 1], [], []>} : vector<16x8xf32>, vector<8x2xf32>, vector<16x2xf32> -> vector<16x2xf32>
    %722 = arith.addf %719, %721 : vector<16x2xf32>
    %723 = arith.addf %722, %715 : vector<16x2xf32>
    %cst_209 = arith.constant 0.000000e+00 : f32
    %724 = vector.broadcast %cst_209 : f32 to vector<16x2xf32>
    %725 = arith.maximumf %723, %724 : vector<16x2xf32>
    %cst_210 = arith.constant dense<0.000000e+00> : vector<1x2xf32>
    %726 = tpu.matmul %711, %725, %cst_210 {dimension_numbers = #tpu.dot_dimension_numbers<[1], [0], [0], [1], [0, 0, 1, 1], [], []>} : vector<1x16xf32>, vector<16x2xf32>, vector<1x2xf32> -> vector<1x2xf32>
    %727 = vector.broadcast %712 : vector<1x1xf32> to vector<1x2xf32>
    %728 = arith.addf %726, %727 : vector<1x2xf32>
    %c0_211 = arith.constant 0 : index
    %c0_212 = arith.constant 0 : index
    %c0_213 = arith.constant 0 : index
    %729 = vector.load %arg26[%c0_211, %c0_212, %c0_213] : memref<8x1x2xf32, #tpu.memory_space<vmem>>, vector<1x1x2xf32>
    %730 = vector.shape_cast %729 : vector<1x1x2xf32> to vector<1x2xf32>
    %731 = vector.shape_cast %728 : vector<1x2xf32> to vector<1x1x2xf32>
    tpu.vector_store %arg26[%c0_211, %c0_212, %c0_213], %731 {strides = array<i32>} : memref<8x1x2xf32, #tpu.memory_space<vmem>>, vector<1x1x2xf32>,
    %732 = vector.extract_strided_slice %3 {offsets = [0, 0, 0], sizes = [1, 8, 2], strides = [1, 1, 1]} : vector<8x8x2xf32> to vector<1x8x2xf32>
    %733 = vector.shape_cast %732 : vector<1x8x2xf32> to vector<8x2xf32>
    %734 = vector.broadcast %728 : vector<1x2xf32> to vector<8x2xf32>
    %735 = arith.mulf %734, %733 : vector<8x2xf32>
    %736 = arith.addf %716, %735 : vector<8x2xf32>
    %737 = vector.extract_strided_slice %3 {offsets = [1, 0, 0], sizes = [1, 8, 2], strides = [1, 1, 1]} : vector<8x8x2xf32> to vector<1x8x2xf32>
    %738 = vector.shape_cast %737 : vector<1x8x2xf32> to vector<8x2xf32>
    %cst_214 = arith.constant dense<0.000000e+00> : vector<16x2xf32>
    %739 = tpu.matmul %705, %738, %cst_214 {dimension_numbers = #tpu.dot_dimension_numbers<[1], [0], [0], [1], [0, 0, 1, 1], [], []>} : vector<16x8xf32>, vector<8x2xf32>, vector<16x2xf32> -> vector<16x2xf32>
    %740 = arith.mulf %738, %1 : vector<8x2xf32>
    %cst_215 = arith.constant dense<0.000000e+00> : vector<16x2xf32>
    %741 = tpu.matmul %707, %740, %cst_215 {dimension_numbers = #tpu.dot_dimension_numbers<[1], [0], [0], [1], [0, 0, 1, 1], [], []>} : vector<16x8xf32>, vector<8x2xf32>, vector<16x2xf32> -> vector<16x2xf32>
    %742 = arith.addf %739, %741 : vector<16x2xf32>
    %743 = arith.addf %742, %715 : vector<16x2xf32>
    %cst_216 = arith.constant 0.000000e+00 : f32
    %744 = vector.broadcast %cst_216 : f32 to vector<16x2xf32>
    %745 = arith.maximumf %743, %744 : vector<16x2xf32>
    %cst_217 = arith.constant dense<0.000000e+00> : vector<1x2xf32>
    %746 = tpu.matmul %711, %745, %cst_217 {dimension_numbers = #tpu.dot_dimension_numbers<[1], [0], [0], [1], [0, 0, 1, 1], [], []>} : vector<1x16xf32>, vector<16x2xf32>, vector<1x2xf32> -> vector<1x2xf32>
    %747 = vector.broadcast %712 : vector<1x1xf32> to vector<1x2xf32>
    %748 = arith.addf %746, %747 : vector<1x2xf32>
    %c1_218 = arith.constant 1 : index
    %c0_219 = arith.constant 0 : index
    %c0_220 = arith.constant 0 : index
    %749 = vector.load %arg26[%c1_218, %c0_219, %c0_220] : memref<8x1x2xf32, #tpu.memory_space<vmem>>, vector<1x1x2xf32>
    %750 = vector.shape_cast %749 : vector<1x1x2xf32> to vector<1x2xf32>
    %751 = vector.shape_cast %748 : vector<1x2xf32> to vector<1x1x2xf32>
    tpu.vector_store %arg26[%c1_218, %c0_219, %c0_220], %751 {strides = array<i32>} : memref<8x1x2xf32, #tpu.memory_space<vmem>>, vector<1x1x2xf32>,
    %752 = vector.extract_strided_slice %3 {offsets = [1, 0, 0], sizes = [1, 8, 2], strides = [1, 1, 1]} : vector<8x8x2xf32> to vector<1x8x2xf32>
    %753 = vector.shape_cast %752 : vector<1x8x2xf32> to vector<8x2xf32>
    %754 = vector.broadcast %748 : vector<1x2xf32> to vector<8x2xf32>
    %755 = arith.mulf %754, %753 : vector<8x2xf32>
    %756 = arith.addf %736, %755 : vector<8x2xf32>
    %757 = vector.extract_strided_slice %3 {offsets = [2, 0, 0], sizes = [1, 8, 2], strides = [1, 1, 1]} : vector<8x8x2xf32> to vector<1x8x2xf32>
    %758 = vector.shape_cast %757 : vector<1x8x2xf32> to vector<8x2xf32>
    %cst_221 = arith.constant dense<0.000000e+00> : vector<16x2xf32>
    %759 = tpu.matmul %705, %758, %cst_221 {dimension_numbers = #tpu.dot_dimension_numbers<[1], [0], [0], [1], [0, 0, 1, 1], [], []>} : vector<16x8xf32>, vector<8x2xf32>, vector<16x2xf32> -> vector<16x2xf32>
    %760 = arith.mulf %758, %1 : vector<8x2xf32>
    %cst_222 = arith.constant dense<0.000000e+00> : vector<16x2xf32>
    %761 = tpu.matmul %707, %760, %cst_222 {dimension_numbers = #tpu.dot_dimension_numbers<[1], [0], [0], [1], [0, 0, 1, 1], [], []>} : vector<16x8xf32>, vector<8x2xf32>, vector<16x2xf32> -> vector<16x2xf32>
    %762 = arith.addf %759, %761 : vector<16x2xf32>
    %763 = arith.addf %762, %715 : vector<16x2xf32>
    %cst_223 = arith.constant 0.000000e+00 : f32
    %764 = vector.broadcast %cst_223 : f32 to vector<16x2xf32>
    %765 = arith.maximumf %763, %764 : vector<16x2xf32>
    %cst_224 = arith.constant dense<0.000000e+00> : vector<1x2xf32>
    %766 = tpu.matmul %711, %765, %cst_224 {dimension_numbers = #tpu.dot_dimension_numbers<[1], [0], [0], [1], [0, 0, 1, 1], [], []>} : vector<1x16xf32>, vector<16x2xf32>, vector<1x2xf32> -> vector<1x2xf32>
    %767 = vector.broadcast %712 : vector<1x1xf32> to vector<1x2xf32>
    %768 = arith.addf %766, %767 : vector<1x2xf32>
    %c2_225 = arith.constant 2 : index
    %c0_226 = arith.constant 0 : index
    %c0_227 = arith.constant 0 : index
    %769 = vector.load %arg26[%c2_225, %c0_226, %c0_227] : memref<8x1x2xf32, #tpu.memory_space<vmem>>, vector<1x1x2xf32>
    %770 = vector.shape_cast %769 : vector<1x1x2xf32> to vector<1x2xf32>
    %771 = vector.shape_cast %768 : vector<1x2xf32> to vector<1x1x2xf32>
    tpu.vector_store %arg26[%c2_225, %c0_226, %c0_227], %771 {strides = array<i32>} : memref<8x1x2xf32, #tpu.memory_space<vmem>>, vector<1x1x2xf32>,
    %772 = vector.extract_strided_slice %3 {offsets = [2, 0, 0], sizes = [1, 8, 2], strides = [1, 1, 1]} : vector<8x8x2xf32> to vector<1x8x2xf32>
    %773 = vector.shape_cast %772 : vector<1x8x2xf32> to vector<8x2xf32>
    %774 = vector.broadcast %768 : vector<1x2xf32> to vector<8x2xf32>
    %775 = arith.mulf %774, %773 : vector<8x2xf32>
    %776 = arith.addf %756, %775 : vector<8x2xf32>
    %777 = vector.extract_strided_slice %3 {offsets = [3, 0, 0], sizes = [1, 8, 2], strides = [1, 1, 1]} : vector<8x8x2xf32> to vector<1x8x2xf32>
    %778 = vector.shape_cast %777 : vector<1x8x2xf32> to vector<8x2xf32>
    %cst_228 = arith.constant dense<0.000000e+00> : vector<16x2xf32>
    %779 = tpu.matmul %705, %778, %cst_228 {dimension_numbers = #tpu.dot_dimension_numbers<[1], [0], [0], [1], [0, 0, 1, 1], [], []>} : vector<16x8xf32>, vector<8x2xf32>, vector<16x2xf32> -> vector<16x2xf32>
    %780 = arith.mulf %778, %1 : vector<8x2xf32>
    %cst_229 = arith.constant dense<0.000000e+00> : vector<16x2xf32>
    %781 = tpu.matmul %707, %780, %cst_229 {dimension_numbers = #tpu.dot_dimension_numbers<[1], [0], [0], [1], [0, 0, 1, 1], [], []>} : vector<16x8xf32>, vector<8x2xf32>, vector<16x2xf32> -> vector<16x2xf32>
    %782 = arith.addf %779, %781 : vector<16x2xf32>
    %783 = arith.addf %782, %715 : vector<16x2xf32>
    %cst_230 = arith.constant 0.000000e+00 : f32
    %784 = vector.broadcast %cst_230 : f32 to vector<16x2xf32>
    %785 = arith.maximumf %783, %784 : vector<16x2xf32>
    %cst_231 = arith.constant dense<0.000000e+00> : vector<1x2xf32>
    %786 = tpu.matmul %711, %785, %cst_231 {dimension_numbers = #tpu.dot_dimension_numbers<[1], [0], [0], [1], [0, 0, 1, 1], [], []>} : vector<1x16xf32>, vector<16x2xf32>, vector<1x2xf32> -> vector<1x2xf32>
    %787 = vector.broadcast %712 : vector<1x1xf32> to vector<1x2xf32>
    %788 = arith.addf %786, %787 : vector<1x2xf32>
    %c3_232 = arith.constant 3 : index
    %c0_233 = arith.constant 0 : index
    %c0_234 = arith.constant 0 : index
    %789 = vector.load %arg26[%c3_232, %c0_233, %c0_234] : memref<8x1x2xf32, #tpu.memory_space<vmem>>, vector<1x1x2xf32>
    %790 = vector.shape_cast %789 : vector<1x1x2xf32> to vector<1x2xf32>
    %791 = vector.shape_cast %788 : vector<1x2xf32> to vector<1x1x2xf32>
    tpu.vector_store %arg26[%c3_232, %c0_233, %c0_234], %791 {strides = array<i32>} : memref<8x1x2xf32, #tpu.memory_space<vmem>>, vector<1x1x2xf32>,
    %792 = vector.extract_strided_slice %3 {offsets = [3, 0, 0], sizes = [1, 8, 2], strides = [1, 1, 1]} : vector<8x8x2xf32> to vector<1x8x2xf32>
    %793 = vector.shape_cast %792 : vector<1x8x2xf32> to vector<8x2xf32>
    %794 = vector.broadcast %788 : vector<1x2xf32> to vector<8x2xf32>
    %795 = arith.mulf %794, %793 : vector<8x2xf32>
    %796 = arith.addf %776, %795 : vector<8x2xf32>
    %797 = vector.extract_strided_slice %3 {offsets = [4, 0, 0], sizes = [1, 8, 2], strides = [1, 1, 1]} : vector<8x8x2xf32> to vector<1x8x2xf32>
    %798 = vector.shape_cast %797 : vector<1x8x2xf32> to vector<8x2xf32>
    %cst_235 = arith.constant dense<0.000000e+00> : vector<16x2xf32>
    %799 = tpu.matmul %705, %798, %cst_235 {dimension_numbers = #tpu.dot_dimension_numbers<[1], [0], [0], [1], [0, 0, 1, 1], [], []>} : vector<16x8xf32>, vector<8x2xf32>, vector<16x2xf32> -> vector<16x2xf32>
    %800 = arith.mulf %798, %1 : vector<8x2xf32>
    %cst_236 = arith.constant dense<0.000000e+00> : vector<16x2xf32>
    %801 = tpu.matmul %707, %800, %cst_236 {dimension_numbers = #tpu.dot_dimension_numbers<[1], [0], [0], [1], [0, 0, 1, 1], [], []>} : vector<16x8xf32>, vector<8x2xf32>, vector<16x2xf32> -> vector<16x2xf32>
    %802 = arith.addf %799, %801 : vector<16x2xf32>
    %803 = arith.addf %802, %715 : vector<16x2xf32>
    %cst_237 = arith.constant 0.000000e+00 : f32
    %804 = vector.broadcast %cst_237 : f32 to vector<16x2xf32>
    %805 = arith.maximumf %803, %804 : vector<16x2xf32>
    %cst_238 = arith.constant dense<0.000000e+00> : vector<1x2xf32>
    %806 = tpu.matmul %711, %805, %cst_238 {dimension_numbers = #tpu.dot_dimension_numbers<[1], [0], [0], [1], [0, 0, 1, 1], [], []>} : vector<1x16xf32>, vector<16x2xf32>, vector<1x2xf32> -> vector<1x2xf32>
    %807 = vector.broadcast %712 : vector<1x1xf32> to vector<1x2xf32>
    %808 = arith.addf %806, %807 : vector<1x2xf32>
    %c4_239 = arith.constant 4 : index
    %c0_240 = arith.constant 0 : index
    %c0_241 = arith.constant 0 : index
    %809 = vector.load %arg26[%c4_239, %c0_240, %c0_241] : memref<8x1x2xf32, #tpu.memory_space<vmem>>, vector<1x1x2xf32>
    %810 = vector.shape_cast %809 : vector<1x1x2xf32> to vector<1x2xf32>
    %811 = vector.shape_cast %808 : vector<1x2xf32> to vector<1x1x2xf32>
    tpu.vector_store %arg26[%c4_239, %c0_240, %c0_241], %811 {strides = array<i32>} : memref<8x1x2xf32, #tpu.memory_space<vmem>>, vector<1x1x2xf32>,
    %812 = vector.extract_strided_slice %3 {offsets = [4, 0, 0], sizes = [1, 8, 2], strides = [1, 1, 1]} : vector<8x8x2xf32> to vector<1x8x2xf32>
    %813 = vector.shape_cast %812 : vector<1x8x2xf32> to vector<8x2xf32>
    %814 = vector.broadcast %808 : vector<1x2xf32> to vector<8x2xf32>
    %815 = arith.mulf %814, %813 : vector<8x2xf32>
    %816 = arith.addf %796, %815 : vector<8x2xf32>
    %817 = vector.extract_strided_slice %3 {offsets = [5, 0, 0], sizes = [1, 8, 2], strides = [1, 1, 1]} : vector<8x8x2xf32> to vector<1x8x2xf32>
    %818 = vector.shape_cast %817 : vector<1x8x2xf32> to vector<8x2xf32>
    %cst_242 = arith.constant dense<0.000000e+00> : vector<16x2xf32>
    %819 = tpu.matmul %705, %818, %cst_242 {dimension_numbers = #tpu.dot_dimension_numbers<[1], [0], [0], [1], [0, 0, 1, 1], [], []>} : vector<16x8xf32>, vector<8x2xf32>, vector<16x2xf32> -> vector<16x2xf32>
    %820 = arith.mulf %818, %1 : vector<8x2xf32>
    %cst_243 = arith.constant dense<0.000000e+00> : vector<16x2xf32>
    %821 = tpu.matmul %707, %820, %cst_243 {dimension_numbers = #tpu.dot_dimension_numbers<[1], [0], [0], [1], [0, 0, 1, 1], [], []>} : vector<16x8xf32>, vector<8x2xf32>, vector<16x2xf32> -> vector<16x2xf32>
    %822 = arith.addf %819, %821 : vector<16x2xf32>
    %823 = arith.addf %822, %715 : vector<16x2xf32>
    %cst_244 = arith.constant 0.000000e+00 : f32
    %824 = vector.broadcast %cst_244 : f32 to vector<16x2xf32>
    %825 = arith.maximumf %823, %824 : vector<16x2xf32>
    %cst_245 = arith.constant dense<0.000000e+00> : vector<1x2xf32>
    %826 = tpu.matmul %711, %825, %cst_245 {dimension_numbers = #tpu.dot_dimension_numbers<[1], [0], [0], [1], [0, 0, 1, 1], [], []>} : vector<1x16xf32>, vector<16x2xf32>, vector<1x2xf32> -> vector<1x2xf32>
    %827 = vector.broadcast %712 : vector<1x1xf32> to vector<1x2xf32>
    %828 = arith.addf %826, %827 : vector<1x2xf32>
    %c5_246 = arith.constant 5 : index
    %c0_247 = arith.constant 0 : index
    %c0_248 = arith.constant 0 : index
    %829 = vector.load %arg26[%c5_246, %c0_247, %c0_248] : memref<8x1x2xf32, #tpu.memory_space<vmem>>, vector<1x1x2xf32>
    %830 = vector.shape_cast %829 : vector<1x1x2xf32> to vector<1x2xf32>
    %831 = vector.shape_cast %828 : vector<1x2xf32> to vector<1x1x2xf32>
    tpu.vector_store %arg26[%c5_246, %c0_247, %c0_248], %831 {strides = array<i32>} : memref<8x1x2xf32, #tpu.memory_space<vmem>>, vector<1x1x2xf32>,
    %832 = vector.extract_strided_slice %3 {offsets = [5, 0, 0], sizes = [1, 8, 2], strides = [1, 1, 1]} : vector<8x8x2xf32> to vector<1x8x2xf32>
    %833 = vector.shape_cast %832 : vector<1x8x2xf32> to vector<8x2xf32>
    %834 = vector.broadcast %828 : vector<1x2xf32> to vector<8x2xf32>
    %835 = arith.mulf %834, %833 : vector<8x2xf32>
    %836 = arith.addf %816, %835 : vector<8x2xf32>
    %837 = vector.extract_strided_slice %3 {offsets = [6, 0, 0], sizes = [1, 8, 2], strides = [1, 1, 1]} : vector<8x8x2xf32> to vector<1x8x2xf32>
    %838 = vector.shape_cast %837 : vector<1x8x2xf32> to vector<8x2xf32>
    %cst_249 = arith.constant dense<0.000000e+00> : vector<16x2xf32>
    %839 = tpu.matmul %705, %838, %cst_249 {dimension_numbers = #tpu.dot_dimension_numbers<[1], [0], [0], [1], [0, 0, 1, 1], [], []>} : vector<16x8xf32>, vector<8x2xf32>, vector<16x2xf32> -> vector<16x2xf32>
    %840 = arith.mulf %838, %1 : vector<8x2xf32>
    %cst_250 = arith.constant dense<0.000000e+00> : vector<16x2xf32>
    %841 = tpu.matmul %707, %840, %cst_250 {dimension_numbers = #tpu.dot_dimension_numbers<[1], [0], [0], [1], [0, 0, 1, 1], [], []>} : vector<16x8xf32>, vector<8x2xf32>, vector<16x2xf32> -> vector<16x2xf32>
    %842 = arith.addf %839, %841 : vector<16x2xf32>
    %843 = arith.addf %842, %715 : vector<16x2xf32>
    %cst_251 = arith.constant 0.000000e+00 : f32
    %844 = vector.broadcast %cst_251 : f32 to vector<16x2xf32>
    %845 = arith.maximumf %843, %844 : vector<16x2xf32>
    %cst_252 = arith.constant dense<0.000000e+00> : vector<1x2xf32>
    %846 = tpu.matmul %711, %845, %cst_252 {dimension_numbers = #tpu.dot_dimension_numbers<[1], [0], [0], [1], [0, 0, 1, 1], [], []>} : vector<1x16xf32>, vector<16x2xf32>, vector<1x2xf32> -> vector<1x2xf32>
    %847 = vector.broadcast %712 : vector<1x1xf32> to vector<1x2xf32>
    %848 = arith.addf %846, %847 : vector<1x2xf32>
    %c6_253 = arith.constant 6 : index
    %c0_254 = arith.constant 0 : index
    %c0_255 = arith.constant 0 : index
    %849 = vector.load %arg26[%c6_253, %c0_254, %c0_255] : memref<8x1x2xf32, #tpu.memory_space<vmem>>, vector<1x1x2xf32>
    %850 = vector.shape_cast %849 : vector<1x1x2xf32> to vector<1x2xf32>
    %851 = vector.shape_cast %848 : vector<1x2xf32> to vector<1x1x2xf32>
    tpu.vector_store %arg26[%c6_253, %c0_254, %c0_255], %851 {strides = array<i32>} : memref<8x1x2xf32, #tpu.memory_space<vmem>>, vector<1x1x2xf32>,
    %852 = vector.extract_strided_slice %3 {offsets = [6, 0, 0], sizes = [1, 8, 2], strides = [1, 1, 1]} : vector<8x8x2xf32> to vector<1x8x2xf32>
    %853 = vector.shape_cast %852 : vector<1x8x2xf32> to vector<8x2xf32>
    %854 = vector.broadcast %848 : vector<1x2xf32> to vector<8x2xf32>
    %855 = arith.mulf %854, %853 : vector<8x2xf32>
    %856 = arith.addf %836, %855 : vector<8x2xf32>
    %857 = vector.extract_strided_slice %3 {offsets = [7, 0, 0], sizes = [1, 8, 2], strides = [1, 1, 1]} : vector<8x8x2xf32> to vector<1x8x2xf32>
    %858 = vector.shape_cast %857 : vector<1x8x2xf32> to vector<8x2xf32>
    %cst_256 = arith.constant dense<0.000000e+00> : vector<16x2xf32>
    %859 = tpu.matmul %705, %858, %cst_256 {dimension_numbers = #tpu.dot_dimension_numbers<[1], [0], [0], [1], [0, 0, 1, 1], [], []>} : vector<16x8xf32>, vector<8x2xf32>, vector<16x2xf32> -> vector<16x2xf32>
    %860 = arith.mulf %858, %1 : vector<8x2xf32>
    %cst_257 = arith.constant dense<0.000000e+00> : vector<16x2xf32>
    %861 = tpu.matmul %707, %860, %cst_257 {dimension_numbers = #tpu.dot_dimension_numbers<[1], [0], [0], [1], [0, 0, 1, 1], [], []>} : vector<16x8xf32>, vector<8x2xf32>, vector<16x2xf32> -> vector<16x2xf32>
    %862 = arith.addf %859, %861 : vector<16x2xf32>
    %863 = arith.addf %862, %715 : vector<16x2xf32>
    %cst_258 = arith.constant 0.000000e+00 : f32
    %864 = vector.broadcast %cst_258 : f32 to vector<16x2xf32>
    %865 = arith.maximumf %863, %864 : vector<16x2xf32>
    %cst_259 = arith.constant dense<0.000000e+00> : vector<1x2xf32>
    %866 = tpu.matmul %711, %865, %cst_259 {dimension_numbers = #tpu.dot_dimension_numbers<[1], [0], [0], [1], [0, 0, 1, 1], [], []>} : vector<1x16xf32>, vector<16x2xf32>, vector<1x2xf32> -> vector<1x2xf32>
    %867 = vector.broadcast %712 : vector<1x1xf32> to vector<1x2xf32>
    %868 = arith.addf %866, %867 : vector<1x2xf32>
    %c7_260 = arith.constant 7 : index
    %c0_261 = arith.constant 0 : index
    %c0_262 = arith.constant 0 : index
    %869 = vector.load %arg26[%c7_260, %c0_261, %c0_262] : memref<8x1x2xf32, #tpu.memory_space<vmem>>, vector<1x1x2xf32>
    %870 = vector.shape_cast %869 : vector<1x1x2xf32> to vector<1x2xf32>
    %871 = vector.shape_cast %868 : vector<1x2xf32> to vector<1x1x2xf32>
    tpu.vector_store %arg26[%c7_260, %c0_261, %c0_262], %871 {strides = array<i32>} : memref<8x1x2xf32, #tpu.memory_space<vmem>>, vector<1x1x2xf32>,
    %872 = vector.extract_strided_slice %3 {offsets = [7, 0, 0], sizes = [1, 8, 2], strides = [1, 1, 1]} : vector<8x8x2xf32> to vector<1x8x2xf32>
    %873 = vector.shape_cast %872 : vector<1x8x2xf32> to vector<8x2xf32>
    %874 = vector.broadcast %868 : vector<1x2xf32> to vector<8x2xf32>
    %875 = arith.mulf %874, %873 : vector<8x2xf32>
    %876 = arith.addf %856, %875 : vector<8x2xf32>
    %c0_263 = arith.constant 0 : index
    %c0_264 = arith.constant 0 : index
    %c0_265 = arith.constant 0 : index
    %877 = vector.load %arg26[%c0_263, %c0_264, %c0_265] : memref<8x1x2xf32, #tpu.memory_space<vmem>>, vector<8x1x2xf32>
    %cst_266 = arith.constant 0.000000e+00 : f32
    %878 = vector.broadcast %cst_266 : f32 to vector<8x2xf32>
    %c0_i32 = arith.constant 0 : i32
    %879 = vector.broadcast %c0_i32 : i32 to vector<8x1x2xi32>
    %880 = arith.cmpi eq, %4, %879 : vector<8x1x2xi32>
    %cst_267 = arith.constant -1.000000e+09 : f32
    %881 = vector.broadcast %cst_267 : f32 to vector<8x1x2xf32>
    %882 = arith.select %880, %877, %881 : vector<8x1x2xi1>, vector<8x1x2xf32>
    %cst_268 = arith.constant dense<0xFF800000> : vector<1x2xf32>
    %883 = vector.multi_reduction <maximumf>, %882, %cst_268 [0] : vector<8x1x2xf32> to vector<1x2xf32>
    %884 = vector.shape_cast %883 : vector<1x2xf32> to vector<1x1x2xf32>
    %885 = vector.broadcast %884 : vector<1x1x2xf32> to vector<8x1x2xf32>
    %886 = arith.subf %882, %885 : vector<8x1x2xf32>
    %887 = math.exp %886 : vector<8x1x2xf32>
    %cst_269 = arith.constant dense<0.000000e+00> : vector<1x2xf32>
    %888 = vector.multi_reduction <add>, %887, %cst_269 [0] : vector<8x1x2xf32> to vector<1x2xf32>
    %889 = vector.shape_cast %888 : vector<1x2xf32> to vector<1x1x2xf32>
    %890 = tpu.reciprocal %889 {approx = true} : vector<1x1x2xf32> -> vector<1x1x2xf32>
    %891 = vector.broadcast %890 : vector<1x1x2xf32> to vector<8x1x2xf32>
    %892 = arith.mulf %887, %891 : vector<8x1x2xf32>
    %cst_270 = arith.constant 0.000000e+00 : f32
    %893 = vector.broadcast %cst_270 : f32 to vector<8x1x2xf32>
    %894 = arith.select %880, %892, %893 : vector<8x1x2xi1>, vector<8x1x2xf32>
    %895 = vector.broadcast %894 : vector<8x1x2xf32> to vector<8x8x2xf32>
    %896 = arith.mulf %3, %895 : vector<8x8x2xf32>
    %cst_271 = arith.constant dense<0.000000e+00> : vector<8x2xf32>
    %897 = vector.multi_reduction <add>, %896, %cst_271 [0] : vector<8x8x2xf32> to vector<8x2xf32>
    %cst_272 = arith.constant dense<0.000000e+00> : vector<16x2xf32>
    %898 = tpu.matmul %705, %897, %cst_272 {dimension_numbers = #tpu.dot_dimension_numbers<[1], [0], [0], [1], [0, 0, 1, 1], [], []>} : vector<16x8xf32>, vector<8x2xf32>, vector<16x2xf32> -> vector<16x2xf32>
    %899 = arith.mulf %897, %1 : vector<8x2xf32>
    %cst_273 = arith.constant dense<0.000000e+00> : vector<16x2xf32>
    %900 = tpu.matmul %707, %899, %cst_273 {dimension_numbers = #tpu.dot_dimension_numbers<[1], [0], [0], [1], [0, 0, 1, 1], [], []>} : vector<16x8xf32>, vector<8x2xf32>, vector<16x2xf32> -> vector<16x2xf32>
    %901 = arith.addf %898, %900 : vector<16x2xf32>
    %902 = arith.addf %901, %715 : vector<16x2xf32>
    %cst_274 = arith.constant 0.000000e+00 : f32
    %903 = vector.broadcast %cst_274 : f32 to vector<16x2xf32>
    %904 = arith.maximumf %902, %903 : vector<16x2xf32>
    %cst_275 = arith.constant dense<0.000000e+00> : vector<1x2xf32>
    %905 = tpu.matmul %711, %904, %cst_275 {dimension_numbers = #tpu.dot_dimension_numbers<[1], [0], [0], [1], [0, 0, 1, 1], [], []>} : vector<1x16xf32>, vector<16x2xf32>, vector<1x2xf32> -> vector<1x2xf32>
    %906 = vector.broadcast %712 : vector<1x1xf32> to vector<1x2xf32>
    %907 = arith.addf %905, %906 : vector<1x2xf32>
    %908 = vector.broadcast %907 : vector<1x2xf32> to vector<8x2xf32>
    %909 = arith.mulf %908, %897 : vector<8x2xf32>
    %910 = arith.addf %878, %909 : vector<8x2xf32>
    %c1_i32 = arith.constant 1 : i32
    %911 = vector.broadcast %c1_i32 : i32 to vector<8x1x2xi32>
    %912 = arith.cmpi eq, %4, %911 : vector<8x1x2xi32>
    %cst_276 = arith.constant -1.000000e+09 : f32
    %913 = vector.broadcast %cst_276 : f32 to vector<8x1x2xf32>
    %914 = arith.select %912, %877, %913 : vector<8x1x2xi1>, vector<8x1x2xf32>
    %cst_277 = arith.constant dense<0xFF800000> : vector<1x2xf32>
    %915 = vector.multi_reduction <maximumf>, %914, %cst_277 [0] : vector<8x1x2xf32> to vector<1x2xf32>
    %916 = vector.shape_cast %915 : vector<1x2xf32> to vector<1x1x2xf32>
    %917 = vector.broadcast %916 : vector<1x1x2xf32> to vector<8x1x2xf32>
    %918 = arith.subf %914, %917 : vector<8x1x2xf32>
    %919 = math.exp %918 : vector<8x1x2xf32>
    %cst_278 = arith.constant dense<0.000000e+00> : vector<1x2xf32>
    %920 = vector.multi_reduction <add>, %919, %cst_278 [0] : vector<8x1x2xf32> to vector<1x2xf32>
    %921 = vector.shape_cast %920 : vector<1x2xf32> to vector<1x1x2xf32>
    %922 = tpu.reciprocal %921 {approx = true} : vector<1x1x2xf32> -> vector<1x1x2xf32>
    %923 = vector.broadcast %922 : vector<1x1x2xf32> to vector<8x1x2xf32>
    %924 = arith.mulf %919, %923 : vector<8x1x2xf32>
    %cst_279 = arith.constant 0.000000e+00 : f32
    %925 = vector.broadcast %cst_279 : f32 to vector<8x1x2xf32>
    %926 = arith.select %912, %924, %925 : vector<8x1x2xi1>, vector<8x1x2xf32>
    %927 = vector.broadcast %926 : vector<8x1x2xf32> to vector<8x8x2xf32>
    %928 = arith.mulf %3, %927 : vector<8x8x2xf32>
    %cst_280 = arith.constant dense<0.000000e+00> : vector<8x2xf32>
    %929 = vector.multi_reduction <add>, %928, %cst_280 [0] : vector<8x8x2xf32> to vector<8x2xf32>
    %cst_281 = arith.constant dense<0.000000e+00> : vector<16x2xf32>
    %930 = tpu.matmul %705, %929, %cst_281 {dimension_numbers = #tpu.dot_dimension_numbers<[1], [0], [0], [1], [0, 0, 1, 1], [], []>} : vector<16x8xf32>, vector<8x2xf32>, vector<16x2xf32> -> vector<16x2xf32>
    %931 = arith.mulf %929, %1 : vector<8x2xf32>
    %cst_282 = arith.constant dense<0.000000e+00> : vector<16x2xf32>
    %932 = tpu.matmul %707, %931, %cst_282 {dimension_numbers = #tpu.dot_dimension_numbers<[1], [0], [0], [1], [0, 0, 1, 1], [], []>} : vector<16x8xf32>, vector<8x2xf32>, vector<16x2xf32> -> vector<16x2xf32>
    %933 = arith.addf %930, %932 : vector<16x2xf32>
    %934 = arith.addf %933, %715 : vector<16x2xf32>
    %cst_283 = arith.constant 0.000000e+00 : f32
    %935 = vector.broadcast %cst_283 : f32 to vector<16x2xf32>
    %936 = arith.maximumf %934, %935 : vector<16x2xf32>
    %cst_284 = arith.constant dense<0.000000e+00> : vector<1x2xf32>
    %937 = tpu.matmul %711, %936, %cst_284 {dimension_numbers = #tpu.dot_dimension_numbers<[1], [0], [0], [1], [0, 0, 1, 1], [], []>} : vector<1x16xf32>, vector<16x2xf32>, vector<1x2xf32> -> vector<1x2xf32>
    %938 = vector.broadcast %712 : vector<1x1xf32> to vector<1x2xf32>
    %939 = arith.addf %937, %938 : vector<1x2xf32>
    %940 = vector.broadcast %939 : vector<1x2xf32> to vector<8x2xf32>
    %941 = arith.mulf %940, %929 : vector<8x2xf32>
    %942 = arith.addf %910, %941 : vector<8x2xf32>
    %c2_i32 = arith.constant 2 : i32
    %943 = vector.broadcast %c2_i32 : i32 to vector<8x1x2xi32>
    %944 = arith.cmpi eq, %4, %943 : vector<8x1x2xi32>
    %cst_285 = arith.constant -1.000000e+09 : f32
    %945 = vector.broadcast %cst_285 : f32 to vector<8x1x2xf32>
    %946 = arith.select %944, %877, %945 : vector<8x1x2xi1>, vector<8x1x2xf32>
    %cst_286 = arith.constant dense<0xFF800000> : vector<1x2xf32>
    %947 = vector.multi_reduction <maximumf>, %946, %cst_286 [0] : vector<8x1x2xf32> to vector<1x2xf32>
    %948 = vector.shape_cast %947 : vector<1x2xf32> to vector<1x1x2xf32>
    %949 = vector.broadcast %948 : vector<1x1x2xf32> to vector<8x1x2xf32>
    %950 = arith.subf %946, %949 : vector<8x1x2xf32>
    %951 = math.exp %950 : vector<8x1x2xf32>
    %cst_287 = arith.constant dense<0.000000e+00> : vector<1x2xf32>
    %952 = vector.multi_reduction <add>, %951, %cst_287 [0] : vector<8x1x2xf32> to vector<1x2xf32>
    %953 = vector.shape_cast %952 : vector<1x2xf32> to vector<1x1x2xf32>
    %954 = tpu.reciprocal %953 {approx = true} : vector<1x1x2xf32> -> vector<1x1x2xf32>
    %955 = vector.broadcast %954 : vector<1x1x2xf32> to vector<8x1x2xf32>
    %956 = arith.mulf %951, %955 : vector<8x1x2xf32>
    %cst_288 = arith.constant 0.000000e+00 : f32
    %957 = vector.broadcast %cst_288 : f32 to vector<8x1x2xf32>
    %958 = arith.select %944, %956, %957 : vector<8x1x2xi1>, vector<8x1x2xf32>
    %959 = vector.broadcast %958 : vector<8x1x2xf32> to vector<8x8x2xf32>
    %960 = arith.mulf %3, %959 : vector<8x8x2xf32>
    %cst_289 = arith.constant dense<0.000000e+00> : vector<8x2xf32>
    %961 = vector.multi_reduction <add>, %960, %cst_289 [0] : vector<8x8x2xf32> to vector<8x2xf32>
    %cst_290 = arith.constant dense<0.000000e+00> : vector<16x2xf32>
    %962 = tpu.matmul %705, %961, %cst_290 {dimension_numbers = #tpu.dot_dimension_numbers<[1], [0], [0], [1], [0, 0, 1, 1], [], []>} : vector<16x8xf32>, vector<8x2xf32>, vector<16x2xf32> -> vector<16x2xf32>
    %963 = arith.mulf %961, %1 : vector<8x2xf32>
    %cst_291 = arith.constant dense<0.000000e+00> : vector<16x2xf32>
    %964 = tpu.matmul %707, %963, %cst_291 {dimension_numbers = #tpu.dot_dimension_numbers<[1], [0], [0], [1], [0, 0, 1, 1], [], []>} : vector<16x8xf32>, vector<8x2xf32>, vector<16x2xf32> -> vector<16x2xf32>
    %965 = arith.addf %962, %964 : vector<16x2xf32>
    %966 = arith.addf %965, %715 : vector<16x2xf32>
    %cst_292 = arith.constant 0.000000e+00 : f32
    %967 = vector.broadcast %cst_292 : f32 to vector<16x2xf32>
    %968 = arith.maximumf %966, %967 : vector<16x2xf32>
    %cst_293 = arith.constant dense<0.000000e+00> : vector<1x2xf32>
    %969 = tpu.matmul %711, %968, %cst_293 {dimension_numbers = #tpu.dot_dimension_numbers<[1], [0], [0], [1], [0, 0, 1, 1], [], []>} : vector<1x16xf32>, vector<16x2xf32>, vector<1x2xf32> -> vector<1x2xf32>
    %970 = vector.broadcast %712 : vector<1x1xf32> to vector<1x2xf32>
    %971 = arith.addf %969, %970 : vector<1x2xf32>
    %972 = vector.broadcast %971 : vector<1x2xf32> to vector<8x2xf32>
    %973 = arith.mulf %972, %961 : vector<8x2xf32>
    %974 = arith.addf %942, %973 : vector<8x2xf32>
    %c0_294 = arith.constant 0 : index
    %c0_295 = arith.constant 0 : index
    %975 = vector.load %arg15[%c0_294, %c0_295] : memref<32x8xf32, #tpu.memory_space<vmem>>, vector<32x8xf32>
    %cst_296 = arith.constant dense<0.000000e+00> : vector<32x2xf32>
    %976 = tpu.matmul %975, %876, %cst_296 {dimension_numbers = #tpu.dot_dimension_numbers<[1], [0], [0], [1], [0, 0, 1, 1], [], []>} : vector<32x8xf32>, vector<8x2xf32>, vector<32x2xf32> -> vector<32x2xf32>
    %c0_297 = arith.constant 0 : index
    %c0_298 = arith.constant 0 : index
    %977 = vector.load %arg16[%c0_297, %c0_298] : memref<32x8xf32, #tpu.memory_space<vmem>>, vector<32x8xf32>
    %cst_299 = arith.constant dense<0.000000e+00> : vector<32x2xf32>
    %978 = tpu.matmul %977, %974, %cst_299 {dimension_numbers = #tpu.dot_dimension_numbers<[1], [0], [0], [1], [0, 0, 1, 1], [], []>} : vector<32x8xf32>, vector<8x2xf32>, vector<32x2xf32> -> vector<32x2xf32>
    %979 = arith.addf %976, %978 : vector<32x2xf32>
    %c0_300 = arith.constant 0 : index
    %c0_301 = arith.constant 0 : index
    %980 = vector.load %arg17[%c0_300, %c0_301] : memref<32x16xf32, #tpu.memory_space<vmem>>, vector<32x16xf32>
    %cst_302 = arith.constant dense<0.000000e+00> : vector<32x2xf32>
    %981 = tpu.matmul %980, %702, %cst_302 {dimension_numbers = #tpu.dot_dimension_numbers<[1], [0], [0], [1], [0, 0, 1, 1], [], []>} : vector<32x16xf32>, vector<16x2xf32>, vector<32x2xf32> -> vector<32x2xf32>
    %982 = arith.addf %979, %981 : vector<32x2xf32>
    %c0_303 = arith.constant 0 : index
    %c0_304 = arith.constant 0 : index
    %983 = vector.load %arg18[%c0_303, %c0_304] : memref<32x8xf32, #tpu.memory_space<vmem>>, vector<32x8xf32>
    %cst_305 = arith.constant dense<0.000000e+00> : vector<32x2xf32>
    %984 = tpu.matmul %983, %1, %cst_305 {dimension_numbers = #tpu.dot_dimension_numbers<[1], [0], [0], [1], [0, 0, 1, 1], [], []>} : vector<32x8xf32>, vector<8x2xf32>, vector<32x2xf32> -> vector<32x2xf32>
    %985 = arith.addf %982, %984 : vector<32x2xf32>
    %c0_306 = arith.constant 0 : index
    %c0_307 = arith.constant 0 : index
    %986 = vector.load %arg19[%c0_306, %c0_307] : memref<32x1xf32, #tpu.memory_space<vmem>>, vector<32x1xf32>
    %987 = vector.broadcast %986 : vector<32x1xf32> to vector<32x2xf32>
    %988 = arith.addf %985, %987 : vector<32x2xf32>
    %cst_308 = arith.constant 0.000000e+00 : f32
    %989 = vector.broadcast %cst_308 : f32 to vector<32x2xf32>
    %990 = arith.maximumf %988, %989 : vector<32x2xf32>
    %c0_309 = arith.constant 0 : index
    %c0_310 = arith.constant 0 : index
    %991 = vector.load %arg20[%c0_309, %c0_310] : memref<16x32xf32, #tpu.memory_space<vmem>>, vector<16x32xf32>
    %c0_311 = arith.constant 0 : index
    %c0_312 = arith.constant 0 : index
    %992 = vector.load %arg21[%c0_311, %c0_312] : memref<16x1xf32, #tpu.memory_space<vmem>>, vector<16x1xf32>
    %cst_313 = arith.constant dense<0.000000e+00> : vector<16x2xf32>
    %993 = tpu.matmul %991, %990, %cst_313 {dimension_numbers = #tpu.dot_dimension_numbers<[1], [0], [0], [1], [0, 0, 1, 1], [], []>} : vector<16x32xf32>, vector<32x2xf32>, vector<16x2xf32> -> vector<16x2xf32>
    %994 = vector.broadcast %992 : vector<16x1xf32> to vector<16x2xf32>
    %995 = arith.addf %993, %994 : vector<16x2xf32>
    %cst_314 = arith.constant 0.000000e+00 : f32
    %996 = vector.broadcast %cst_314 : f32 to vector<16x2xf32>
    %997 = arith.maximumf %995, %996 : vector<16x2xf32>
    %c0_315 = arith.constant 0 : index
    %c0_316 = arith.constant 0 : index
    %998 = vector.load %arg22[%c0_315, %c0_316] : memref<1x16xf32, #tpu.memory_space<vmem>>, vector<1x16xf32>
    %c0_317 = arith.constant 0 : index
    %c0_318 = arith.constant 0 : index
    %999 = vector.load %arg23[%c0_317, %c0_318] : memref<1x1xf32, #tpu.memory_space<vmem>>, vector<1x1xf32>
    %cst_319 = arith.constant dense<0.000000e+00> : vector<1x2xf32>
    %1000 = tpu.matmul %998, %997, %cst_319 {dimension_numbers = #tpu.dot_dimension_numbers<[1], [0], [0], [1], [0, 0, 1, 1], [], []>} : vector<1x16xf32>, vector<16x2xf32>, vector<1x2xf32> -> vector<1x2xf32>
    %1001 = vector.broadcast %999 : vector<1x1xf32> to vector<1x2xf32>
    %1002 = arith.addf %1000, %1001 : vector<1x2xf32>
    %1003 = arith.negf %1002 : vector<1x2xf32>
    %1004 = math.exp %1003 : vector<1x2xf32>
    %cst_320 = arith.constant 1.000000e+00 : f32
    %1005 = vector.broadcast %cst_320 : f32 to vector<1x2xf32>
    %1006 = arith.addf %1005, %1004 : vector<1x2xf32>
    %1007 = arith.divf %1005, %1006 : vector<1x2xf32>
    %c0_321 = arith.constant 0 : index
    %c0_322 = arith.constant 0 : index
    %1008 = vector.load %arg24[%c0_321, %c0_322] : memref<1x2xf32, #tpu.memory_space<vmem>>, vector<1x2xf32>
    tpu.vector_store %arg24[%c0_321, %c0_322], %1007 {strides = array<i32>} : memref<1x2xf32, #tpu.memory_space<vmem>>, vector<1x2xf32>,
    return
  }
  func.func @transform_0(%arg0: i32) -> (i32, i32) {
    %c0_i32 = arith.constant 0 : i32
    %c0_i32_0 = arith.constant 0 : i32
    return %c0_i32, %arg0 : i32, i32
  }
  func.func @transform_1(%arg0: i32) -> (i32, i32, i32) {
    %c0_i32 = arith.constant 0 : i32
    %c0_i32_0 = arith.constant 0 : i32
    %c0_i32_1 = arith.constant 0 : i32
    return %c0_i32, %c0_i32_0, %arg0 : i32, i32, i32
  }
  func.func @transform_2(%arg0: i32) -> (i32, i32, i32) {
    %c0_i32 = arith.constant 0 : i32
    %c0_i32_0 = arith.constant 0 : i32
    %c0_i32_1 = arith.constant 0 : i32
    return %c0_i32, %c0_i32_0, %arg0 : i32, i32, i32
  }
  func.func @transform_3(%arg0: i32) -> (i32, i32, i32) {
    %c0_i32 = arith.constant 0 : i32
    %c0_i32_0 = arith.constant 0 : i32
    %c0_i32_1 = arith.constant 0 : i32
    %c0_i32_2 = arith.constant 0 : i32
    return %c0_i32, %c0_i32_0, %c0_i32_1 : i32, i32, i32
  }
  func.func @transform_4(%arg0: i32) -> (i32, i32) {
    %c0_i32 = arith.constant 0 : i32
    %c0_i32_0 = arith.constant 0 : i32
    %c0_i32_1 = arith.constant 0 : i32
    return %c0_i32, %c0_i32_0 : i32, i32
  }
  func.func @transform_5(%arg0: i32) -> (i32, i32) {
    %c0_i32 = arith.constant 0 : i32
    %c0_i32_0 = arith.constant 0 : i32
    %c0_i32_1 = arith.constant 0 : i32
    return %c0_i32, %c0_i32_0 : i32, i32
  }
  func.func @transform_6(%arg0: i32) -> (i32, i32) {
    %c0_i32 = arith.constant 0 : i32
    %c0_i32_0 = arith.constant 0 : i32
    %c0_i32_1 = arith.constant 0 : i32
    return %c0_i32, %c0_i32_0 : i32, i32
  }
  func.func @transform_7(%arg0: i32) -> (i32, i32, i32) {
    %c0_i32 = arith.constant 0 : i32
    %c0_i32_0 = arith.constant 0 : i32
    %c0_i32_1 = arith.constant 0 : i32
    %c0_i32_2 = arith.constant 0 : i32
    return %c0_i32, %c0_i32_0, %c0_i32_1 : i32, i32, i32
  }
  func.func @transform_8(%arg0: i32) -> (i32, i32, i32) {
    %c0_i32 = arith.constant 0 : i32
    %c0_i32_0 = arith.constant 0 : i32
    %c0_i32_1 = arith.constant 0 : i32
    %c0_i32_2 = arith.constant 0 : i32
    return %c0_i32, %c0_i32_0, %c0_i32_1 : i32, i32, i32
  }
  func.func @transform_9(%arg0: i32) -> (i32, i32, i32) {
    %c0_i32 = arith.constant 0 : i32
    %c0_i32_0 = arith.constant 0 : i32
    %c0_i32_1 = arith.constant 0 : i32
    %c0_i32_2 = arith.constant 0 : i32
    return %c0_i32, %c0_i32_0, %c0_i32_1 : i32, i32, i32
  }
  func.func @transform_10(%arg0: i32) -> (i32, i32) {
    %c0_i32 = arith.constant 0 : i32
    %c0_i32_0 = arith.constant 0 : i32
    %c0_i32_1 = arith.constant 0 : i32
    return %c0_i32, %c0_i32_0 : i32, i32
  }
  func.func @transform_11(%arg0: i32) -> (i32, i32, i32) {
    %c0_i32 = arith.constant 0 : i32
    %c0_i32_0 = arith.constant 0 : i32
    %c0_i32_1 = arith.constant 0 : i32
    %c0_i32_2 = arith.constant 0 : i32
    return %c0_i32, %c0_i32_0, %c0_i32_1 : i32, i32, i32
  }
  func.func @transform_12(%arg0: i32) -> (i32, i32, i32) {
    %c0_i32 = arith.constant 0 : i32
    %c0_i32_0 = arith.constant 0 : i32
    %c0_i32_1 = arith.constant 0 : i32
    %c0_i32_2 = arith.constant 0 : i32
    return %c0_i32, %c0_i32_0, %c0_i32_1 : i32, i32, i32
  }
  func.func @transform_13(%arg0: i32) -> (i32, i32, i32) {
    %c0_i32 = arith.constant 0 : i32
    %c0_i32_0 = arith.constant 0 : i32
    %c0_i32_1 = arith.constant 0 : i32
    %c0_i32_2 = arith.constant 0 : i32
    return %c0_i32, %c0_i32_0, %c0_i32_1 : i32, i32, i32
  }
  func.func @transform_14(%arg0: i32) -> (i32, i32) {
    %c0_i32 = arith.constant 0 : i32
    %c0_i32_0 = arith.constant 0 : i32
    %c0_i32_1 = arith.constant 0 : i32
    return %c0_i32, %c0_i32_0 : i32, i32
  }
  func.func @transform_15(%arg0: i32) -> (i32, i32) {
    %c0_i32 = arith.constant 0 : i32
    %c0_i32_0 = arith.constant 0 : i32
    %c0_i32_1 = arith.constant 0 : i32
    return %c0_i32, %c0_i32_0 : i32, i32
  }
  func.func @transform_16(%arg0: i32) -> (i32, i32) {
    %c0_i32 = arith.constant 0 : i32
    %c0_i32_0 = arith.constant 0 : i32
    %c0_i32_1 = arith.constant 0 : i32
    return %c0_i32, %c0_i32_0 : i32, i32
  }
  func.func @transform_17(%arg0: i32) -> (i32, i32) {
    %c0_i32 = arith.constant 0 : i32
    %c0_i32_0 = arith.constant 0 : i32
    %c0_i32_1 = arith.constant 0 : i32
    return %c0_i32, %c0_i32_0 : i32, i32
  }
  func.func @transform_18(%arg0: i32) -> (i32, i32) {
    %c0_i32 = arith.constant 0 : i32
    %c0_i32_0 = arith.constant 0 : i32
    %c0_i32_1 = arith.constant 0 : i32
    return %c0_i32, %c0_i32_0 : i32, i32
  }
  func.func @transform_19(%arg0: i32) -> (i32, i32) {
    %c0_i32 = arith.constant 0 : i32
    %c0_i32_0 = arith.constant 0 : i32
    %c0_i32_1 = arith.constant 0 : i32
    return %c0_i32, %c0_i32_0 : i32, i32
  }
  func.func @transform_20(%arg0: i32) -> (i32, i32) {
    %c0_i32 = arith.constant 0 : i32
    %c0_i32_0 = arith.constant 0 : i32
    %c0_i32_1 = arith.constant 0 : i32
    return %c0_i32, %c0_i32_0 : i32, i32
  }
  func.func @transform_21(%arg0: i32) -> (i32, i32) {
    %c0_i32 = arith.constant 0 : i32
    %c0_i32_0 = arith.constant 0 : i32
    %c0_i32_1 = arith.constant 0 : i32
    return %c0_i32, %c0_i32_0 : i32, i32
  }
  func.func @transform_22(%arg0: i32) -> (i32, i32) {
    %c0_i32 = arith.constant 0 : i32
    %c0_i32_0 = arith.constant 0 : i32
    %c0_i32_1 = arith.constant 0 : i32
    return %c0_i32, %c0_i32_0 : i32, i32
  }
  func.func @transform_23(%arg0: i32) -> (i32, i32) {
    %c0_i32 = arith.constant 0 : i32
    %c0_i32_0 = arith.constant 0 : i32
    return %c0_i32, %arg0 : i32, i32
  }
}

</mosaic_0001>

<bundles_post_ra>
// kernel: tpu_custom_call.1
= control target key start
LH: loop header
LB: loop body
LE: loop exit
PB: predicated region body
PF: predicated region fallthrough
CT: control target
= control target key end

     0   :  { %s17242_s0 = inlined_call_operand.vmem [shape: bf16[8,2], index: 0, kind: input, shape index: {}]   ;;  %s17243_s1 = inlined_call_operand.vmem [shape: bf16[8,8,2], index: 1, kind: input, shape index: {}]   ;;  %s17244_s2 = inlined_call_operand.vmem [shape: s32[8,1,2], index: 2, kind: input, shape index: {}]   ;;  %s17245_s3 = inlined_call_operand.vmem [shape: f32[3,16,8], index: 3, kind: input, shape index: {}]   ;;  %s17246_s4 = inlined_call_operand.vmem [shape: f32[16,1], index: 4, kind: input, shape index: {}]   ;;  %s17247_s5 = inlined_call_operand.vmem [shape: f32[1,16], index: 5, kind: input, shape index: {}]   ;;  %s17248_s6 = inlined_call_operand.<no memory space> [shape: f32[1,1], index: 6, kind: input, shape index: {}]   ;;  %s17249_s7 = inlined_call_operand.vmem [shape: f32[3,16,8], index: 7, kind: input, shape index: {}]   ;;  %s17250_s8 = inlined_call_operand.vmem [shape: f32[3,16,16], index: 8, kind: input, shape index: {}]   ;;  %s17251_s9 = inlined_call_operand.vmem [shape: f32[4,16,1], index: 9, kind: input, shape index: {}]   ;;  %s17252_s10 = inlined_call_operand.vmem [shape: f32[16,8], index: 10, kind: input, shape index: {}]   ;;  %s17253_s11 = inlined_call_operand.vmem [shape: f32[3,16,16], index: 11, kind: input, shape index: {}]   ;;  %s17254_s12 = inlined_call_operand.vmem [shape: f32[3,16,16], index: 12, kind: input, shape index: {}]   ;;  %s17255_s13 = inlined_call_operand.vmem [shape: f32[4,16,1], index: 13, kind: input, shape index: {}]   ;;  %s17256_s14 = inlined_call_operand.vmem [shape: f32[32,8], index: 14, kind: input, shape index: {}]   ;;  %s17257_s15 = inlined_call_operand.vmem [shape: f32[32,8], index: 15, kind: input, shape index: {}]   ;;  %s17258_s16 = inlined_call_operand.vmem [shape: f32[32,16], index: 16, kind: input, shape index: {}]   ;;  %s17259_s17 = inlined_call_operand.vmem [shape: f32[32,8], index: 17, kind: input, shape index: {}]   ;;  %s17260_s18 = inlined_call_operand.vmem [shape: f32[32,1], index: 18, kind: input, shape index: {}]   ;;  %s17261_s19 = inlined_call_operand.vmem [shape: f32[16,32], index: 19, kind: input, shape index: {}]   ;;  %s17262_s20 = inlined_call_operand.vmem [shape: f32[16,1], index: 20, kind: input, shape index: {}]   ;;  %s17263_s21 = inlined_call_operand.vmem [shape: f32[1,16], index: 21, kind: input, shape index: {}]   ;;  %s17264_s23 = inlined_call_operand.hbm [shape: f32[1,2], index: 23, kind: output, shape index: {}]   ;;  %s17265_s22 = inlined_call_operand.<no memory space> [shape: f32[1,1], index: 22, kind: input, shape index: {}]  }
   0x1   :  { %17330 = sst [smem:[#allocation23_spill]] %s17242_s0  ;;  %v30_v1 = vstv %s17265_s22 }
   0x2   :  { %17331 = sst [smem:[#allocation24_spill]] %s17243_s1  ;;  %31 = vst [vmem:[#allocation5] sm:$0x1] %v30_v1 }
   0x3   :  { %17332 = sst [smem:[#allocation25_spill]] %s17244_s2 }
   0x4   :  { %17333 = sst [smem:[#allocation26_spill]] %s17245_s3 }
   0x5   :  { %17334 = sst [smem:[#allocation27_spill]] %s17246_s4 }
   0x6   :  { %17335 = sst [smem:[#allocation28_spill]] %s17247_s5 }
   0x7   :  { %17336 = sst [smem:[#allocation29_spill]] %s17248_s6 }
   0x8   :  { %17337 = sst [smem:[#allocation30_spill]] %s17249_s7  ;;  %s17338_s24 = sld [smem:[#allocation29_spill]] }
   0xe   :  { %v28_v0 = vstv %s17338_s24 }
   0xf   :  { %29 = vst [vmem:[#allocation4] sm:$0x1] %v28_v0 }
  0x10   :  { %v14986_v2 = vld [vmem:[%s17250_s8] sm:$0xff]  ;;  %vm17309_vm0 = vcmask 130048   ;;  %v14991_v3 = vld [vmem:[%s17250_s8 + $0x10] sm:$0xff]  ;;  %v17272_v4 = vmov 0.0   ;;  %v14998_v5 = vld [vmem:[%s17250_s8 + $0x8] sm:$0xff]  ;;  %s17339_s0 = sld [smem:[#allocation24_spill]] }
  0x11   :  { %13119 = vmatprep.subr.mxu0 %v17272_v4  ;;  %13129 = vmatprep.subr.mxu1 %v17272_v4  ;;  %v15003_v6 = vld [vmem:[%s17250_s8 + $0x18] sm:$0xff]  ;;  %s17341_s24 = sld [smem:[#allocation30_spill]]  ;;  %vm17310_vm1 = vcmask 64512   ;;  %v117_v11 = vld [vmem:[%s17251_s9] sm:$0xff]  ;;  %v119_v12 = vld [vmem:[%s17251_s9 + $0x10] sm:$0xff]  ;;  %v14853_v15 = vmov 0  }
  0x12   :  { %13120 = vmatpush3.msra.mxu0 %v17272_v4  ;;  %13121 = vmatprep.mubr.msk.f32.mxu0 %vm17309_vm0, %v14986_v2  ;;  %v15067_v17 = vld [vmem:[%s17250_s8 + $0x20] sm:$0xff]  ;;  %v118_v18 = vld [vmem:[%s17251_s9 + $0x8] sm:$0xff]  ;;  %v120_v19 = vld [vmem:[%s17251_s9 + $0x18] sm:$0xff] }
  0x13   :  { %13130 = vmatpush3.msra.mxu1 %v17272_v4  ;;  %13131 = vmatprep.mubr.msk.f32.mxu1 %vm17309_vm0, %v14991_v3  ;;  %v15090_v21 = vld [vmem:[%s17250_s8 + $0x28] sm:$0xff] }
  0x14   :  { %13122 = vmatmul.mubr.msk.f32.vlgmr.msra.gmra.mrb[0].mxu0 %vm17309_vm0, %v14998_v5  ;;  %13132 = vmatmul.mubr.msk.f32.vlgmr.msra.gmra.mrb[0].mxu1 %vm17309_vm0, %v15003_v6 }
  0x15   :  { %14395 = vset.pattern.permute.xlu0 %v14853_v15  ;;  %14396 = vset.pattern.permute.xlu1 %v14853_v15 }
  0x16   :  { %v15008_v7 = vld [vmem:[%s17339_s0] sm:$0xff]   ;;  %291 = vperm.xlu0 %14395, %v117_v11   ;;  %477 = vperm.xlu1 %14396, %v119_v12  }
  0x17   :  { %v15014_v8 = vunpack.c.l.bf16 %v15008_v7  ;;  %v15022_v9 = vld [vmem:[%s17341_s24] sm:$0xff]  ;;  %v15031_v10 = vld [vmem:[%s17341_s24 + $0x10] sm:$0xff]  ;;  %v15052_v13 = vld [vmem:[%s17341_s24 + $0x8] sm:$0xff] }
  0x18   :  { %13126 = vmatprep.mubr.msk.f32.mxu0 %vm17310_vm1, %v15022_v9  ;;  %13136 = vmatprep.mubr.msk.f32.mxu1 %vm17310_vm1, %v15031_v10  ;;  %v15057_v14 = vld [vmem:[%s17341_s24 + $0x18] sm:$0xff]  ;;  %v15062_v16 = vld [vmem:[%s17341_s24 + $0x20] sm:$0xff]  ;;  %v15085_v20 = vld [vmem:[%s17341_s24 + $0x28] sm:$0xff] }
  0x19   :  { %17340 = vst [vmem:[#allocation9_spill] sm:$0xff] %v15014_v8  ;;  %13124 = vmatprep.subr.mxu0 %v15014_v8  ;;  %13134 = vmatprep.subr.mxu1 %v15014_v8 }
  0x1a   :  { %13125 = vmatpush3.msra.mxu0 %v15014_v8  ;;  %13135 = vmatpush3.msra.mxu1 %v15014_v8 }
  0x1b   :  { %13139 = vmatprep.subr.mxu0 %v15014_v8  ;;  %13144 = vmatprep.subr.mxu1 %v17272_v4 }
  0x1c   :  { %13127 = vmatmul.mubr.msk.f32.vlgmr.msra.gmra.mrb[0].mxu0 %vm17310_vm1, %v15052_v13  ;;  %13137 = vmatmul.mubr.msk.f32.vlgmr.msra.gmra.mrb[0].mxu1 %vm17310_vm1, %v15057_v14 }
  0x1d   :  { %13140 = vmatpush3.msra.mxu0 %v15014_v8  ;;  %13141 = vmatprep.mubr.msk.f32.mxu0 %vm17310_vm1, %v15062_v16 }
  0x1e   :  { %32 = vsyncpa [#allocation7], 0  ;;  %13145 = vmatpush3.msra.mxu1 %v17272_v4  ;;  %13146 = vmatprep.mubr.msk.f32.mxu1 %vm17309_vm0, %v15067_v17  ;;  %v123_v22 = vld [vmem:[%s17251_s9 + $0x30] sm:$0xff]  ;;  %v124_v23 = vld [vmem:[%s17251_s9 + $0x38] sm:$0xff]  ;;  %s17342_s6 = sld [smem:[#allocation27_spill]]  ;;  %vm695_vm2 = vcmask 15360  }
  0x1f   :  { %296 = vperm.xlu0 %14395, %v118_v18   ;;  %482 = vperm.xlu1 %14396, %v120_v19   ;;  %v121_v24 = vld [vmem:[%s17251_s9 + $0x20] sm:$0xff]  ;;  %v122_v25 = vld [vmem:[%s17251_s9 + $0x28] sm:$0xff]  ;;  %v4427_v28 = vld [vmem:[%s17255_s13 + $0x10] sm:$0xff]  ;;  %s17350_s29 = sld [smem:[#allocation23_spill]]  ;;  %vm17307_vm3 = vmmov 0   ;;  %vm8811_vm4 = vcmask 8192  }
  0x20   :  { %13142 = vmatmul.mubr.msk.f32.vlgmr.msra.gmra.mrb[2].mxu0 %vm17310_vm1, %v15085_v20  ;;  %13147 = vmatmul.mubr.msk.f32.vlgmr.msra.gmra.mrb[2].mxu1 %vm17309_vm0, %v15090_v21  ;;  %v4425_v26 = vld [vmem:[%s17255_s13] sm:$0xff]  ;;  %v4426_v27 = vld [vmem:[%s17255_s13 + $0x8] sm:$0xff]  ;;  %v4428_v29 = vld [vmem:[%s17255_s13 + $0x18] sm:$0xff]  ;;  %s17368_s30 = sld [smem:[#allocation25_spill]] }
  0x21   :  { %13153 = vmatprep.mubr.msk.f32.mxu0 %vm17309_vm0, %v14986_v2  ;;  %13165 = vmatprep.mubr.msk.f32.mxu1 %vm17309_vm0, %v14991_v3  ;;  %v4431_v30 = vld [vmem:[%s17255_s13 + $0x30] sm:$0xff]  ;;  %v4432_v31 = vld [vmem:[%s17255_s13 + $0x38] sm:$0xff]  ;;  %v4429_v32 = vld [vmem:[%s17255_s13 + $0x20] sm:$0xff] }
  0x22   :  { %v4430_v33 = vld [vmem:[%s17255_s13 + $0x28] sm:$0xff]  ;;  %v12041_v37 = vld [vmem:[%s17260_s18] sm:$0xff]  ;;  %v12043_v39 = vld [vmem:[%s17260_s18 + $0x10] sm:$0xff] }
  0x23   :  { %592 = vperm.xlu0 %14395, %v123_v22   ;;  %597 = vperm.xlu1 %14396, %v124_v23   ;;  %v8470_v36 = vld [vmem:[#allocation4] sm:$0x1]  ;;  %v12044_v40 = vld [vmem:[%s17260_s18 + $0x18] sm:$0xff]  ;;  %v12075_v41 = vld [vmem:[%s17262_s20] sm:$0xff] }
  0x24   :  { %v8467_v34 = vld [vmem:[%s17342_s6] sm:$0xff]  ;;  %v8468_v35 = vld [vmem:[%s17342_s6 + $0x8] sm:$0xff] }
  0x25   :  { %v12042_v38 = vld [vmem:[%s17260_s18 + $0x8] sm:$0xff] }
  0x26   :  { %v12076_v42 = vld [vmem:[%s17262_s20 + $0x8] sm:$0xff]  ;;  %s17360_s20 = sld [smem:[#allocation26_spill]] }
  0x27   :  { %501 = vperm.xlu0 %14395, %v121_v24   ;;  %506 = vperm.xlu1 %14396, %v122_v25   ;;  %v12172_v43 = vld [vmem:[#allocation5] sm:$0x1] }
  0x2b   :  { %4597 = vperm.xlu0 %14395, %v4425_v26   ;;  %4602 = vperm.xlu1 %14396, %v4426_v27  }
  0x2f   :  { %4783 = vperm.xlu0 %14395, %v4427_v28   ;;  %4788 = vperm.xlu1 %14396, %v4428_v29  }
  0x33   :  { %4898 = vperm.xlu0 %14395, %v4431_v30   ;;  %4903 = vperm.xlu1 %14396, %v4432_v31  }
  0x37   :  { %4807 = vperm.xlu0 %14395, %v4429_v32   ;;  %4812 = vperm.xlu1 %14396, %v4430_v33  }
  0x3b   :  { %8473 = vperm.xlu0 %14395, %v8467_v34   ;;  %8478 = vperm.xlu1 %14396, %v8468_v35  }
  0x3f   :  { %8731 = vperm.xlu0 %14395, %v8470_v36   ;;  %12047 = vperm.xlu1 %14396, %v12041_v37  }
  0x43   :  { %12052 = vperm.xlu0 %14395, %v12042_v38   ;;  %12057 = vperm.xlu1 %14396, %v12043_v39  }
  0x47   :  { %12062 = vperm.xlu0 %14395, %v12044_v40   ;;  %12079 = vperm.xlu1 %14396, %v12075_v41  }
  0x4b   :  { %12084 = vperm.xlu0 %14395, %v12076_v42   ;;  %12175 = vperm.xlu1 %14396, %v12172_v43  }
  0x95   :  { %v15163_v44 = vpop.permute.xlu0 %291  ;;  %v15165_v45 = vpop.permute.xlu1 %477 }
  0x9e   :  { %v15167_v46 = vpop.permute.xlu0 %296  ;;  %v15171_v53 = vpop.permute.xlu1 %482 }
  0xa2   :  { %v15175_v18 = vpop.permute.xlu1 %597  ;;  %v15177_v22 = vpop.permute.xlu0 %592 }
  0xa6   :  { %v15180_v27 = vpop.permute.xlu1 %506  ;;  %v15183_v30 = vpop.permute.xlu0 %501 }
  0xef   :  { %v13128_v47 = vpop.f32.mrb[0].mxu0  ;;  %v13138_v48 = vpop.f32.mrb[0].mxu1 }
  0xf0   :  { %v300_v49 = vadd.f32 %v13128_v47, %v15167_v46  ;;  %v280_v50 = vpop.f32.mrb[1].mxu0  ;;  %v466_v51 = vpop.f32.mrb[1].mxu1  ;;  %v486_v56 = vadd.f32 %v13138_v48, %v15171_v53 }
  0xf1   :  { %v299_v52 = vadd.f32 %v15163_v44, %v280_v50  ;;  %v485_v59 = vadd.f32 %v15165_v45, %v466_v51 }
  0xf2   :  { %v12281_v54 = vmul.f32 -1.442695, %v300_v49  ;;  %v12287_v62 = vmul.f32 -1.442695, %v486_v56 }
  0xf3   :  { %v12280_v55 = vmul.f32 -1.442695, %v299_v52  ;;  %v13143_v57 = vpop.f32.mrb[2].mxu0  ;;  %v13148_v58 = vpop.f32.mrb[2].mxu1  ;;  %v12286_v63 = vmul.f32 -1.442695, %v485_v59 }
  0xf4   :  { %14397 = vpow2.f32 %v12281_v54  ;;  %v581_v60 = vpop.f32.mrb[3].mxu0  ;;  %v672_v61 = vpop.f32.mrb[3].mxu1  ;;  %v678_v25 = vadd.f32 %v13148_v58, %v15175_v18  ;;  %v587_v31 = vadd.f32 %v13143_v57, %v15180_v27  ;;  %v15198_v54 = vunpack.c.h.bf16 %v15008_v7 }
  0xf5   :  { %14399 = vpow2.f32 %v12280_v55  ;;  %v673_v28 = vadd.f32 %v672_v61, %v15177_v22  ;;  %v582_v33 = vadd.f32 %v581_v60, %v15183_v30 }
  0xf6   :  { %14401 = vpow2.f32 %v12287_v62  ;;  %17343 = vst [vmem:[#allocation10_spill] sm:$0xff] %v15198_v54 }
  0xf7   :  { %14403 = vpow2.f32 %v12286_v63 }
  0xfe   :  { %v14398_v0 = vpop.eup %14397 }
  0xff   :  { %v14400_v1 = vpop.eup %14399  ;;  %v308_v11 = vadd.f32 1.0, %v14398_v0 }
 0x100   :  { %v307_v12 = vadd.f32 1.0, %v14400_v1  ;;  %v14402_v15 = vpop.eup %14401 }
 0x101   :  { %14405 = vrcp.f32 %v308_v11  ;;  %v14404_v19 = vpop.eup %14403  ;;  %v494_v23 = vadd.f32 1.0, %v14402_v15 }
 0x102   :  { %14407 = vrcp.f32 %v307_v12  ;;  %v493_v24 = vadd.f32 1.0, %v14404_v19 }
 0x103   :  { %14409 = vrcp.f32 %v494_v23 }
 0x104   :  { %14411 = vrcp.f32 %v493_v24 }
 0x10b   :  { %v14406_v26 = vpop.eup %14405 }
 0x10c   :  { %v14408_v29 = vpop.eup %14407  ;;  %v682_v32 = vmul.f32 %v14406_v26, %v678_v25 }
 0x10d   :  { %v681_v34 = vmul.f32 %v14408_v29, %v673_v28  ;;  %v14410_v37 = vpop.eup %14409 }
 0x10e   :  { %v684_v35 = vadd.f32 %v682_v32, %v587_v31  ;;  %v14412_v38 = vpop.eup %14411  ;;  %v688_v39 = vsub.f32 1.0, %v14410_v37  ;;  %v692_v43 = vmul.f32 0.0, %v14410_v37 }
 0x10f   :  { %v683_v36 = vadd.f32 %v681_v34, %v582_v33  ;;  %v687_v41 = vsub.f32 1.0, %v14412_v38  ;;  %v691_v48 = vmul.f32 0.0, %v14412_v38 }
 0x110   :  { %14413 = vtanh.f32 %v684_v35 }
 0x111   :  { %14415 = vtanh.f32 %v683_v36 }
 0x11a   :  { %v14414_v40 = vpop.eup %14413 }
 0x11b   :  { %v14416_v42 = vpop.eup %14415  ;;  %v690_v47 = vmul.f32 %v14414_v40, %v688_v39 }
 0x11c   :  { %v689_v49 = vmul.f32 %v14416_v42, %v687_v41 }
 0x11d   :  { %v15187_v50 = vadd.f32 %v692_v43, %v690_v47 }
 0x11e   :  { %v15189_v51 = vadd.f32 %v691_v48, %v689_v49 }
 0x11f   :  { %697 = vst.msk [vmem:[#allocation2 + $0x8] sm:$0xff] %vm695_vm2, %v15187_v50 }
 0x120   :  { %696 = vst.msk [vmem:[#allocation2] sm:$0xff] %vm695_vm2, %v15189_v51  ;;  %v13980_v52 = vpack.c.bf16 %v15187_v50, %v15189_v51 }
 0x122   :  { %13981 = vmatprep.subr.bf16.mxu0 %v13980_v52  ;;  %13985 = vmatprep.subr.bf16.mxu1 %v13980_v52 }
 0x123   :  { %13983 = vmatpush3.bf16.msra.mxu0 %v13980_v52  ;;  %13987 = vmatpush3.bf16.msra.mxu1 %v13980_v52 }
 0x124   :  { %13168 = vmatprep.subr.mxu1 %v15198_v54  ;;  %13156 = vmatprep.subr.mxu0 %v15198_v54 }
 0x126   :  { %13154 = vmatmul.mubr.msk.f32.vlgmr.msra.gmra.mrb[4].mxu0 %vm17309_vm0, %v14998_v5  ;;  %13166 = vmatmul.mubr.msk.f32.vlgmr.msra.gmra.mrb[4].mxu1 %vm17309_vm0, %v15003_v6 }
 0x127   :  { %13169 = vmatpush3.msra.mxu1 %v15198_v54  ;;  %13157 = vmatpush3.msra.mxu0 %v15198_v54 }
 0x128   :  { %13989 = vmatprep.subr.bf16.mxu1 %v13980_v52  ;;  %13158 = vmatprep.mubr.msk.f32.mxu0 %vm17310_vm1, %v15022_v9 }
 0x129   :  { %13170 = vmatprep.mubr.msk.f32.mxu1 %vm17310_vm1, %v15031_v10  ;;  %13173 = vmatprep.subr.mxu0 %v15198_v54 }
 0x12e   :  { %13159 = vmatmul.mubr.msk.f32.vlgmr.msra.gmra.mrb[4].mxu0 %vm17310_vm1, %v15052_v13  ;;  %13171 = vmatmul.mubr.msk.f32.vlgmr.msra.gmra.mrb[4].mxu1 %vm17310_vm1, %v15057_v14 }
 0x12f   :  { %13991 = vmatpush3.bf16.msra.mxu1 %v13980_v52  ;;  %13174 = vmatpush3.msra.mxu0 %v15198_v54 }
 0x130   :  { %13175 = vmatprep.mubr.msk.f32.mxu0 %vm17310_vm1, %v15062_v16  ;;  %13182 = vmatprep.mubr.msk.f32.mxu1 %vm17309_vm0, %v15067_v17 }
 0x132   :  { %13176 = vmatmul.mubr.msk.f32.vlgmr.msra.gmra.mrb[6].mxu0 %vm17310_vm1, %v15085_v20  ;;  %13183 = vmatmul.mubr.msk.f32.vlgmr.msra.gmra.mrb[6].mxu1 %vm17309_vm0, %v15090_v21 }
 0x133   :  { %13189 = vmatprep.mubr.msk.f32.mxu0 %vm17309_vm0, %v14986_v2  ;;  %13201 = vmatprep.mubr.msk.f32.mxu1 %vm17309_vm0, %v14991_v3 }
 0x201   :  { %v13160_v7 = vpop.f32.mrb[4].mxu0  ;;  %v13172_v55 = vpop.f32.mrb[4].mxu1 }
 0x202   :  { %v849_v56 = vadd.f32 %v13160_v7, %v15167_v46  ;;  %v839_v57 = vpop.f32.mrb[5].mxu0  ;;  %v1003_v58 = vpop.f32.mrb[5].mxu1  ;;  %v1013_v61 = vadd.f32 %v13172_v55, %v15171_v53 }
 0x203   :  { %v848_v59 = vadd.f32 %v839_v57, %v15163_v44  ;;  %v1012_v12 = vadd.f32 %v1003_v58, %v15165_v45 }
 0x204   :  { %v12297_v60 = vmul.f32 -1.442695, %v849_v56  ;;  %v12303_v15 = vmul.f32 -1.442695, %v1013_v61 }
 0x205   :  { %v12296_v62 = vmul.f32 -1.442695, %v848_v59  ;;  %v13177_v63 = vpop.f32.mrb[6].mxu0  ;;  %v13184_v0 = vpop.f32.mrb[6].mxu1  ;;  %v12302_v19 = vmul.f32 -1.442695, %v1012_v12 }
 0x206   :  { %14417 = vpow2.f32 %v12297_v60  ;;  %v1092_v1 = vpop.f32.mrb[7].mxu0  ;;  %v1167_v11 = vpop.f32.mrb[7].mxu1  ;;  %v1173_v33 = vadd.f32 %v13184_v0, %v15175_v18  ;;  %v1098_v35 = vadd.f32 %v13177_v63, %v15180_v27  ;;  %v15245_v60 = vld [vmem:[%s17339_s0 + $0x8] sm:$0xff]  }
 0x207   :  { %14419 = vpow2.f32 %v12296_v62  ;;  %v1168_v37 = vadd.f32 %v1167_v11, %v15177_v22  ;;  %v1093_v40 = vadd.f32 %v1092_v1, %v15183_v30 }
 0x208   :  { %14421 = vpow2.f32 %v12303_v15 }
 0x209   :  { %14423 = vpow2.f32 %v12302_v19 }
 0x210   :  { %v14418_v23 = vpop.eup %14417 }
 0x211   :  { %v857_v24 = vadd.f32 1.0, %v14418_v23  ;;  %v14420_v25 = vpop.eup %14419 }
 0x212   :  { %v856_v26 = vadd.f32 1.0, %v14420_v25  ;;  %v14422_v28 = vpop.eup %14421 }
 0x213   :  { %14425 = vrcp.f32 %v857_v24  ;;  %v14424_v29 = vpop.eup %14423  ;;  %v1021_v31 = vadd.f32 1.0, %v14422_v28 }
 0x214   :  { %14427 = vrcp.f32 %v856_v26  ;;  %v1020_v32 = vadd.f32 1.0, %v14424_v29 }
 0x215   :  { %14429 = vrcp.f32 %v1021_v31 }
 0x216   :  { %14431 = vrcp.f32 %v1020_v32 }
 0x21d   :  { %v14426_v34 = vpop.eup %14425 }
 0x21e   :  { %v1177_v36 = vmul.f32 %v14426_v34, %v1173_v33  ;;  %v14428_v38 = vpop.eup %14427 }
 0x21f   :  { %v1176_v41 = vmul.f32 %v14428_v38, %v1168_v37  ;;  %v14430_v43 = vpop.eup %14429 }
 0x220   :  { %v1179_v39 = vadd.f32 %v1177_v36, %v1098_v35  ;;  %v14432_v47 = vpop.eup %14431  ;;  %v1183_v48 = vsub.f32 1.0, %v14430_v43  ;;  %v1187_v52 = vmul.f32 %v14430_v43, %v15187_v50 }
 0x221   :  { %v1178_v42 = vadd.f32 %v1176_v41, %v1093_v40  ;;  %v1182_v7 = vsub.f32 1.0, %v14432_v47  ;;  %v1186_v57 = vmul.f32 %v14432_v47, %v15189_v51  ;;  %v15256_v51 = vunpack.c.l.bf16 %v15245_v60 }
 0x222   :  { %14433 = vtanh.f32 %v1179_v39 }
 0x223   :  { %14435 = vtanh.f32 %v1178_v42  ;;  %17344 = vst [vmem:[#allocation11_spill] sm:$0xff] %v15256_v51 }
 0x22c   :  { %v14434_v49 = vpop.eup %14433 }
 0x22d   :  { %v1185_v55 = vmul.f32 %v14434_v49, %v1183_v48  ;;  %v14436_v56 = vpop.eup %14435 }
 0x22e   :  { %v1184_v59 = vmul.f32 %v14436_v56, %v1182_v7 }
 0x22f   :  { %v15240_v58 = vadd.f32 %v1187_v52, %v1185_v55 }
 0x230   :  { %v15249_v61 = vadd.f32 %v1186_v57, %v1184_v59 }
 0x231   :  { %1192 = vst.msk [vmem:[#allocation2 + $0x18] sm:$0xff] %vm695_vm2, %v15240_v58 }
 0x232   :  { %1191 = vst.msk [vmem:[#allocation2 + $0x10] sm:$0xff] %vm695_vm2, %v15249_v61  ;;  %v13992_v50 = vpack.c.bf16 %v15240_v58, %v15249_v61 }
 0x234   :  { %13993 = vmatprep.subr.bf16.mxu0 %v13992_v50  ;;  %13997 = vmatprep.subr.bf16.mxu1 %v13992_v50 }
 0x235   :  { %13995 = vmatpush3.bf16.msra.mxu0 %v13992_v50  ;;  %13999 = vmatpush3.bf16.msra.mxu1 %v13992_v50 }
 0x236   :  { %13204 = vmatprep.subr.mxu1 %v15256_v51  ;;  %13192 = vmatprep.subr.mxu0 %v15256_v51 }
 0x238   :  { %13190 = vmatmul.mubr.msk.f32.vlgmr.msra.gmra.mrb[8].mxu0 %vm17309_vm0, %v14998_v5  ;;  %13202 = vmatmul.mubr.msk.f32.vlgmr.msra.gmra.mrb[8].mxu1 %vm17309_vm0, %v15003_v6 }
 0x239   :  { %13205 = vmatpush3.msra.mxu1 %v15256_v51  ;;  %13193 = vmatpush3.msra.mxu0 %v15256_v51 }
 0x23a   :  { %14001 = vmatprep.subr.bf16.mxu1 %v13992_v50  ;;  %13194 = vmatprep.mubr.msk.f32.mxu0 %vm17310_vm1, %v15022_v9 }
 0x23b   :  { %13206 = vmatprep.mubr.msk.f32.mxu1 %vm17310_vm1, %v15031_v10  ;;  %13209 = vmatprep.subr.mxu0 %v15256_v51 }
 0x240   :  { %13195 = vmatmul.mubr.msk.f32.vlgmr.msra.gmra.mrb[8].mxu0 %vm17310_vm1, %v15052_v13  ;;  %13207 = vmatmul.mubr.msk.f32.vlgmr.msra.gmra.mrb[8].mxu1 %vm17310_vm1, %v15057_v14 }
 0x241   :  { %14003 = vmatpush3.bf16.msra.mxu1 %v13992_v50  ;;  %13210 = vmatpush3.msra.mxu0 %v15256_v51 }
 0x242   :  { %13211 = vmatprep.mubr.msk.f32.mxu0 %vm17310_vm1, %v15062_v16  ;;  %13218 = vmatprep.mubr.msk.f32.mxu1 %vm17309_vm0, %v15067_v17 }
 0x244   :  { %13212 = vmatmul.mubr.msk.f32.vlgmr.msra.gmra.mrb[10].mxu0 %vm17310_vm1, %v15085_v20  ;;  %13219 = vmatmul.mubr.msk.f32.vlgmr.msra.gmra.mrb[10].mxu1 %vm17309_vm0, %v15090_v21 }
 0x245   :  { %13225 = vmatprep.mubr.msk.f32.mxu0 %vm17309_vm0, %v14986_v2  ;;  %13237 = vmatprep.mubr.msk.f32.mxu1 %vm17309_vm0, %v14991_v3 }
 0x313   :  { %v13196_v62 = vpop.f32.mrb[8].mxu0  ;;  %v13208_v63 = vpop.f32.mrb[8].mxu1 }
 0x314   :  { %v1344_v0 = vadd.f32 %v13196_v62, %v15167_v46  ;;  %v1334_v1 = vpop.f32.mrb[9].mxu0  ;;  %v1498_v11 = vpop.f32.mrb[9].mxu1  ;;  %v1508_v19 = vadd.f32 %v13208_v63, %v15171_v53 }
 0x315   :  { %v1343_v12 = vadd.f32 %v1334_v1, %v15163_v44  ;;  %v1507_v29 = vadd.f32 %v1498_v11, %v15165_v45 }
 0x316   :  { %v12313_v15 = vmul.f32 -1.442695, %v1344_v0  ;;  %v12319_v31 = vmul.f32 -1.442695, %v1508_v19 }
 0x317   :  { %v12312_v23 = vmul.f32 -1.442695, %v1343_v12  ;;  %v13213_v24 = vpop.f32.mrb[10].mxu0  ;;  %v13220_v25 = vpop.f32.mrb[10].mxu1  ;;  %v12318_v32 = vmul.f32 -1.442695, %v1507_v29 }
 0x318   :  { %14437 = vpow2.f32 %v12313_v15  ;;  %v1587_v26 = vpop.f32.mrb[11].mxu0  ;;  %v1662_v28 = vpop.f32.mrb[11].mxu1  ;;  %v1668_v41 = vadd.f32 %v13220_v25, %v15175_v18  ;;  %v1593_v43 = vadd.f32 %v13213_v24, %v15180_v27 }
 0x319   :  { %14439 = vpow2.f32 %v12312_v23  ;;  %v1663_v48 = vadd.f32 %v1662_v28, %v15177_v22  ;;  %v1588_v7 = vadd.f32 %v1587_v26, %v15183_v30 }
 0x31a   :  { %14441 = vpow2.f32 %v12319_v31 }
 0x31b   :  { %14443 = vpow2.f32 %v12318_v32 }
 0x322   :  { %v14438_v33 = vpop.eup %14437 }
 0x323   :  { %v1352_v34 = vadd.f32 1.0, %v14438_v33  ;;  %v14440_v35 = vpop.eup %14439 }
 0x324   :  { %v1351_v36 = vadd.f32 1.0, %v14440_v35  ;;  %v14442_v37 = vpop.eup %14441 }
 0x325   :  { %14445 = vrcp.f32 %v1352_v34  ;;  %v14444_v38 = vpop.eup %14443  ;;  %v1516_v39 = vadd.f32 1.0, %v14442_v37 }
 0x326   :  { %14447 = vrcp.f32 %v1351_v36  ;;  %v1515_v40 = vadd.f32 1.0, %v14444_v38 }
 0x327   :  { %14449 = vrcp.f32 %v1516_v39 }
 0x328   :  { %14451 = vrcp.f32 %v1515_v40 }
 0x32f   :  { %v14446_v42 = vpop.eup %14445 }
 0x330   :  { %v1672_v47 = vmul.f32 %v14446_v42, %v1668_v41  ;;  %v14448_v49 = vpop.eup %14447 }
 0x331   :  { %v1671_v55 = vmul.f32 %v14448_v49, %v1663_v48  ;;  %v14450_v57 = vpop.eup %14449 }
 0x332   :  { %v1674_v52 = vadd.f32 %v1672_v47, %v1593_v43  ;;  %v14452_v59 = vpop.eup %14451  ;;  %v1678_v50 = vsub.f32 1.0, %v14450_v57  ;;  %v1682_v63 = vmul.f32 %v14450_v57, %v15240_v58  ;;  %v15309_v58 = vunpack.c.h.bf16 %v15245_v60 }
 0x333   :  { %v1673_v56 = vadd.f32 %v1671_v55, %v1588_v7  ;;  %v1677_v0 = vsub.f32 1.0, %v14452_v59  ;;  %v1681_v12 = vmul.f32 %v14452_v59, %v15249_v61 }
 0x334   :  { %14453 = vtanh.f32 %v1674_v52  ;;  %17345 = vst [vmem:[#allocation12_spill] sm:$0xff] %v15309_v58 }
 0x335   :  { %14455 = vtanh.f32 %v1673_v56 }
 0x33e   :  { %v14454_v62 = vpop.eup %14453 }
 0x33f   :  { %v1680_v1 = vmul.f32 %v14454_v62, %v1678_v50  ;;  %v14456_v11 = vpop.eup %14455 }
 0x340   :  { %v1679_v19 = vmul.f32 %v14456_v11, %v1677_v0 }
 0x341   :  { %v15298_v15 = vadd.f32 %v1682_v63, %v1680_v1 }
 0x342   :  { %v15302_v23 = vadd.f32 %v1681_v12, %v1679_v19 }
 0x343   :  { %1687 = vst.msk [vmem:[#allocation2 + $0x28] sm:$0xff] %vm695_vm2, %v15298_v15 }
 0x344   :  { %1686 = vst.msk [vmem:[#allocation2 + $0x20] sm:$0xff] %vm695_vm2, %v15302_v23  ;;  %v14004_v24 = vpack.c.bf16 %v15298_v15, %v15302_v23 }
 0x346   :  { %14005 = vmatprep.subr.bf16.mxu0 %v14004_v24  ;;  %14009 = vmatprep.subr.bf16.mxu1 %v14004_v24 }
 0x347   :  { %14007 = vmatpush3.bf16.msra.mxu0 %v14004_v24  ;;  %14011 = vmatpush3.bf16.msra.mxu1 %v14004_v24 }
 0x348   :  { %13240 = vmatprep.subr.mxu1 %v15309_v58  ;;  %13228 = vmatprep.subr.mxu0 %v15309_v58 }
 0x34a   :  { %13226 = vmatmul.mubr.msk.f32.vlgmr.msra.gmra.mrb[12].mxu0 %vm17309_vm0, %v14998_v5  ;;  %13238 = vmatmul.mubr.msk.f32.vlgmr.msra.gmra.mrb[12].mxu1 %vm17309_vm0, %v15003_v6 }
 0x34b   :  { %13241 = vmatpush3.msra.mxu1 %v15309_v58  ;;  %13229 = vmatpush3.msra.mxu0 %v15309_v58 }
 0x34c   :  { %14013 = vmatprep.subr.bf16.mxu1 %v14004_v24  ;;  %13230 = vmatprep.mubr.msk.f32.mxu0 %vm17310_vm1, %v15022_v9 }
 0x34d   :  { %13242 = vmatprep.mubr.msk.f32.mxu1 %vm17310_vm1, %v15031_v10  ;;  %13245 = vmatprep.subr.mxu0 %v15309_v58 }
 0x352   :  { %13231 = vmatmul.mubr.msk.f32.vlgmr.msra.gmra.mrb[12].mxu0 %vm17310_vm1, %v15052_v13  ;;  %13243 = vmatmul.mubr.msk.f32.vlgmr.msra.gmra.mrb[12].mxu1 %vm17310_vm1, %v15057_v14 }
 0x353   :  { %14015 = vmatpush3.bf16.msra.mxu1 %v14004_v24  ;;  %13246 = vmatpush3.msra.mxu0 %v15309_v58 }
 0x354   :  { %13247 = vmatprep.mubr.msk.f32.mxu0 %vm17310_vm1, %v15062_v16  ;;  %13254 = vmatprep.mubr.msk.f32.mxu1 %vm17309_vm0, %v15067_v17 }
 0x356   :  { %13248 = vmatmul.mubr.msk.f32.vlgmr.msra.gmra.mrb[14].mxu0 %vm17310_vm1, %v15085_v20  ;;  %13255 = vmatmul.mubr.msk.f32.vlgmr.msra.gmra.mrb[14].mxu1 %vm17309_vm0, %v15090_v21 }
 0x357   :  { %13261 = vmatprep.mubr.msk.f32.mxu0 %vm17309_vm0, %v14986_v2  ;;  %13273 = vmatprep.mubr.msk.f32.mxu1 %vm17309_vm0, %v14991_v3 }
 0x425   :  { %v13232_v60 = vpop.f32.mrb[12].mxu0  ;;  %v13244_v61 = vpop.f32.mrb[12].mxu1 }
 0x426   :  { %v1839_v25 = vadd.f32 %v13232_v60, %v15167_v46  ;;  %v1829_v26 = vpop.f32.mrb[13].mxu0  ;;  %v1993_v28 = vpop.f32.mrb[13].mxu1  ;;  %v2003_v32 = vadd.f32 %v13244_v61, %v15171_v53 }
 0x427   :  { %v1838_v29 = vadd.f32 %v1829_v26, %v15163_v44  ;;  %v2002_v38 = vadd.f32 %v1993_v28, %v15165_v45 }
 0x428   :  { %v12329_v31 = vmul.f32 -1.442695, %v1839_v25  ;;  %v12335_v39 = vmul.f32 -1.442695, %v2003_v32 }
 0x429   :  { %v12328_v33 = vmul.f32 -1.442695, %v1838_v29  ;;  %v13249_v34 = vpop.f32.mrb[14].mxu0  ;;  %v13256_v35 = vpop.f32.mrb[14].mxu1  ;;  %v12334_v40 = vmul.f32 -1.442695, %v2002_v38 }
 0x42a   :  { %14457 = vpow2.f32 %v12329_v31  ;;  %v2082_v36 = vpop.f32.mrb[15].mxu0  ;;  %v2157_v37 = vpop.f32.mrb[15].mxu1  ;;  %v2163_v55 = vadd.f32 %v13256_v35, %v15175_v18  ;;  %v2088_v57 = vadd.f32 %v13249_v34, %v15180_v27 }
 0x42b   :  { %14459 = vpow2.f32 %v12328_v33  ;;  %v2158_v50 = vadd.f32 %v2157_v37, %v15177_v22  ;;  %v2083_v0 = vadd.f32 %v2082_v36, %v15183_v30  ;;  %v15356_v33 = vld [vmem:[%s17339_s0 + $0x10] sm:$0xff]  }
 0x42c   :  { %14461 = vpow2.f32 %v12335_v39 }
 0x42d   :  { %14463 = vpow2.f32 %v12334_v40 }
 0x434   :  { %v14458_v41 = vpop.eup %14457 }
 0x435   :  { %v1847_v42 = vadd.f32 1.0, %v14458_v41  ;;  %v14460_v43 = vpop.eup %14459 }
 0x436   :  { %v1846_v47 = vadd.f32 1.0, %v14460_v43  ;;  %v14462_v48 = vpop.eup %14461 }
 0x437   :  { %14465 = vrcp.f32 %v1847_v42  ;;  %v14464_v49 = vpop.eup %14463  ;;  %v2011_v52 = vadd.f32 1.0, %v14462_v48 }
 0x438   :  { %14467 = vrcp.f32 %v1846_v47  ;;  %v2010_v7 = vadd.f32 1.0, %v14464_v49 }
 0x439   :  { %14469 = vrcp.f32 %v2011_v52 }
 0x43a   :  { %14471 = vrcp.f32 %v2010_v7 }
 0x441   :  { %v14466_v56 = vpop.eup %14465 }
 0x442   :  { %v2167_v59 = vmul.f32 %v14466_v56, %v2163_v55  ;;  %v14468_v62 = vpop.eup %14467 }
 0x443   :  { %v2166_v1 = vmul.f32 %v14468_v62, %v2158_v50  ;;  %v14470_v12 = vpop.eup %14469 }
 0x444   :  { %v2169_v63 = vadd.f32 %v2167_v59, %v2088_v57  ;;  %v14472_v19 = vpop.eup %14471  ;;  %v2173_v24 = vsub.f32 1.0, %v14470_v12  ;;  %v2177_v61 = vmul.f32 %v14470_v12, %v15298_v15 }
 0x445   :  { %v2168_v11 = vadd.f32 %v2166_v1, %v2083_v0  ;;  %v2172_v25 = vsub.f32 1.0, %v14472_v19  ;;  %v2176_v29 = vmul.f32 %v14472_v19, %v15302_v23  ;;  %v15367_v23 = vunpack.c.l.bf16 %v15356_v33 }
 0x446   :  { %14473 = vtanh.f32 %v2169_v63 }
 0x447   :  { %14475 = vtanh.f32 %v2168_v11  ;;  %17346 = vst [vmem:[#allocation13_spill] sm:$0xff] %v15367_v23 }
 0x450   :  { %v14474_v60 = vpop.eup %14473 }
 0x451   :  { %v2175_v26 = vmul.f32 %v14474_v60, %v2173_v24  ;;  %v14476_v28 = vpop.eup %14475 }
 0x452   :  { %v2174_v32 = vmul.f32 %v14476_v28, %v2172_v25 }
 0x453   :  { %v15351_v31 = vadd.f32 %v2177_v61, %v2175_v26 }
 0x454   :  { %v15360_v34 = vadd.f32 %v2176_v29, %v2174_v32 }
 0x455   :  { %2182 = vst.msk [vmem:[#allocation2 + $0x38] sm:$0xff] %vm695_vm2, %v15351_v31 }
 0x456   :  { %2181 = vst.msk [vmem:[#allocation2 + $0x30] sm:$0xff] %vm695_vm2, %v15360_v34  ;;  %v14016_v15 = vpack.c.bf16 %v15351_v31, %v15360_v34 }
 0x458   :  { %14017 = vmatprep.subr.bf16.mxu0 %v14016_v15  ;;  %14021 = vmatprep.subr.bf16.mxu1 %v14016_v15 }
 0x459   :  { %14019 = vmatpush3.bf16.msra.mxu0 %v14016_v15  ;;  %14023 = vmatpush3.bf16.msra.mxu1 %v14016_v15 }
 0x45a   :  { %13276 = vmatprep.subr.mxu1 %v15367_v23  ;;  %13264 = vmatprep.subr.mxu0 %v15367_v23 }
 0x45c   :  { %13262 = vmatmul.mubr.msk.f32.vlgmr.msra.gmra.mrb[16].mxu0 %vm17309_vm0, %v14998_v5  ;;  %13274 = vmatmul.mubr.msk.f32.vlgmr.msra.gmra.mrb[16].mxu1 %vm17309_vm0, %v15003_v6 }
 0x45d   :  { %13277 = vmatpush3.msra.mxu1 %v15367_v23  ;;  %13265 = vmatpush3.msra.mxu0 %v15367_v23 }
 0x45e   :  { %14025 = vmatprep.subr.bf16.mxu1 %v14016_v15  ;;  %13266 = vmatprep.mubr.msk.f32.mxu0 %vm17310_vm1, %v15022_v9 }
 0x45f   :  { %13278 = vmatprep.mubr.msk.f32.mxu1 %vm17310_vm1, %v15031_v10  ;;  %13281 = vmatprep.subr.mxu0 %v15367_v23 }
 0x464   :  { %13267 = vmatmul.mubr.msk.f32.vlgmr.msra.gmra.mrb[16].mxu0 %vm17310_vm1, %v15052_v13  ;;  %13279 = vmatmul.mubr.msk.f32.vlgmr.msra.gmra.mrb[16].mxu1 %vm17310_vm1, %v15057_v14 }
 0x465   :  { %14027 = vmatpush3.bf16.msra.mxu1 %v14016_v15  ;;  %13282 = vmatpush3.msra.mxu0 %v15367_v23 }
 0x466   :  { %13283 = vmatprep.mubr.msk.f32.mxu0 %vm17310_vm1, %v15062_v16  ;;  %13290 = vmatprep.mubr.msk.f32.mxu1 %vm17309_vm0, %v15067_v17 }
 0x468   :  { %13284 = vmatmul.mubr.msk.f32.vlgmr.msra.gmra.mrb[18].mxu0 %vm17310_vm1, %v15085_v20  ;;  %13291 = vmatmul.mubr.msk.f32.vlgmr.msra.gmra.mrb[18].mxu1 %vm17309_vm0, %v15090_v21 }
 0x469   :  { %13297 = vmatprep.mubr.msk.f32.mxu0 %vm17309_vm0, %v14986_v2  ;;  %13309 = vmatprep.mubr.msk.f32.mxu1 %vm17309_vm0, %v14991_v3 }
 0x537   :  { %v13268_v35 = vpop.f32.mrb[16].mxu0  ;;  %v13280_v36 = vpop.f32.mrb[16].mxu1 }
 0x538   :  { %v2334_v37 = vadd.f32 %v13268_v35, %v15167_v46  ;;  %v2324_v38 = vpop.f32.mrb[17].mxu0  ;;  %v2488_v39 = vpop.f32.mrb[17].mxu1  ;;  %v2498_v42 = vadd.f32 %v13280_v36, %v15171_v53 }
 0x539   :  { %v2333_v40 = vadd.f32 %v2324_v38, %v15163_v44  ;;  %v2497_v52 = vadd.f32 %v2488_v39, %v15165_v45 }
 0x53a   :  { %v12345_v41 = vmul.f32 -1.442695, %v2334_v37  ;;  %v12351_v3 = vmul.f32 -1.442695, %v2498_v42 }
 0x53b   :  { %v12344_v43 = vmul.f32 -1.442695, %v2333_v40  ;;  %v13285_v47 = vpop.f32.mrb[18].mxu0  ;;  %v13292_v48 = vpop.f32.mrb[18].mxu1  ;;  %v12350_v7 = vmul.f32 -1.442695, %v2497_v52 }
 0x53c   :  { %14477 = vpow2.f32 %v12345_v41  ;;  %v2577_v49 = vpop.f32.mrb[19].mxu0  ;;  %v2652_v2 = vpop.f32.mrb[19].mxu1  ;;  %v2658_v1 = vadd.f32 %v13292_v48, %v15175_v18  ;;  %v2583_v12 = vadd.f32 %v13285_v47, %v15180_v27 }
 0x53d   :  { %14479 = vpow2.f32 %v12344_v43  ;;  %v2653_v24 = vadd.f32 %v2652_v2, %v15177_v22  ;;  %v2578_v25 = vadd.f32 %v2577_v49, %v15183_v30 }
 0x53e   :  { %14481 = vpow2.f32 %v12351_v3 }
 0x53f   :  { %14483 = vpow2.f32 %v12350_v7 }
 0x546   :  { %v14478_v55 = vpop.eup %14477 }
 0x547   :  { %v2342_v56 = vadd.f32 1.0, %v14478_v55  ;;  %v14480_v57 = vpop.eup %14479 }
 0x548   :  { %v2341_v59 = vadd.f32 1.0, %v14480_v57  ;;  %v14482_v50 = vpop.eup %14481 }
 0x549   :  { %14485 = vrcp.f32 %v2342_v56  ;;  %v14484_v62 = vpop.eup %14483  ;;  %v2506_v63 = vadd.f32 1.0, %v14482_v50 }
 0x54a   :  { %14487 = vrcp.f32 %v2341_v59  ;;  %v2505_v0 = vadd.f32 1.0, %v14484_v62 }
 0x54b   :  { %14489 = vrcp.f32 %v2506_v63 }
 0x54c   :  { %14491 = vrcp.f32 %v2505_v0 }
 0x553   :  { %v14486_v11 = vpop.eup %14485 }
 0x554   :  { %v2662_v19 = vmul.f32 %v14486_v11, %v2658_v1  ;;  %v14488_v60 = vpop.eup %14487 }
 0x555   :  { %v2661_v26 = vmul.f32 %v14488_v60, %v2653_v24  ;;  %v14490_v29 = vpop.eup %14489 }
 0x556   :  { %v2664_v61 = vadd.f32 %v2662_v19, %v2583_v12  ;;  %v14492_v32 = vpop.eup %14491  ;;  %v2668_v15 = vsub.f32 1.0, %v14490_v29  ;;  %v2672_v36 = vmul.f32 %v14490_v29, %v15351_v31  ;;  %v15420_v31 = vunpack.c.h.bf16 %v15356_v33 }
 0x557   :  { %v2663_v28 = vadd.f32 %v2661_v26, %v2578_v25  ;;  %v2667_v37 = vsub.f32 1.0, %v14492_v32  ;;  %v2671_v40 = vmul.f32 %v14492_v32, %v15360_v34 }
 0x558   :  { %14493 = vtanh.f32 %v2664_v61  ;;  %17347 = vst [vmem:[#allocation14_spill] sm:$0xff] %v15420_v31 }
 0x559   :  { %14495 = vtanh.f32 %v2663_v28 }
 0x562   :  { %v14494_v35 = vpop.eup %14493 }
 0x563   :  { %v2670_v38 = vmul.f32 %v14494_v35, %v2668_v15  ;;  %v14496_v39 = vpop.eup %14495 }
 0x564   :  { %v2669_v42 = vmul.f32 %v14496_v39, %v2667_v37 }
 0x565   :  { %v15409_v41 = vadd.f32 %v2672_v36, %v2670_v38 }
 0x566   :  { %v15413_v43 = vadd.f32 %v2671_v40, %v2669_v42 }
 0x567   :  { %2677 = vst.msk [vmem:[#allocation2 + $0x48] sm:$0xff] %vm695_vm2, %v15409_v41 }
 0x568   :  { %2676 = vst.msk [vmem:[#allocation2 + $0x40] sm:$0xff] %vm695_vm2, %v15413_v43  ;;  %v14028_v47 = vpack.c.bf16 %v15409_v41, %v15413_v43 }
 0x56a   :  { %14029 = vmatprep.subr.bf16.mxu0 %v14028_v47  ;;  %14033 = vmatprep.subr.bf16.mxu1 %v14028_v47 }
 0x56b   :  { %14031 = vmatpush3.bf16.msra.mxu0 %v14028_v47  ;;  %14035 = vmatpush3.bf16.msra.mxu1 %v14028_v47 }
 0x56c   :  { %13312 = vmatprep.subr.mxu1 %v15420_v31  ;;  %13300 = vmatprep.subr.mxu0 %v15420_v31 }
 0x56e   :  { %13298 = vmatmul.mubr.msk.f32.vlgmr.msra.gmra.mrb[20].mxu0 %vm17309_vm0, %v14998_v5  ;;  %13310 = vmatmul.mubr.msk.f32.vlgmr.msra.gmra.mrb[20].mxu1 %vm17309_vm0, %v15003_v6  ;;  %v15451_v5 = vld [vmem:[%s17250_s8] sm:$0xff]  ;;  %v15458_v6 = vld [vmem:[%s17250_s8 + $0x10] sm:$0xff] }
 0x56f   :  { %13313 = vmatpush3.msra.mxu1 %v15420_v31  ;;  %13301 = vmatpush3.msra.mxu0 %v15420_v31 }
 0x570   :  { %14037 = vmatprep.subr.bf16.mxu1 %v14028_v47  ;;  %13302 = vmatprep.mubr.msk.f32.mxu0 %vm17310_vm1, %v15022_v9 }
 0x571   :  { %13314 = vmatprep.mubr.msk.f32.mxu1 %vm17310_vm1, %v15031_v10  ;;  %13317 = vmatprep.subr.mxu0 %v15420_v31 }
 0x576   :  { %13303 = vmatmul.mubr.msk.f32.vlgmr.msra.gmra.mrb[20].mxu0 %vm17310_vm1, %v15052_v13  ;;  %13315 = vmatmul.mubr.msk.f32.vlgmr.msra.gmra.mrb[20].mxu1 %vm17310_vm1, %v15057_v14 }
 0x577   :  { %14039 = vmatpush3.bf16.msra.mxu1 %v14028_v47  ;;  %13318 = vmatpush3.msra.mxu0 %v15420_v31 }
 0x578   :  { %13319 = vmatprep.mubr.msk.f32.mxu0 %vm17310_vm1, %v15062_v16  ;;  %13326 = vmatprep.mubr.msk.f32.mxu1 %vm17309_vm0, %v15067_v17 }
 0x57a   :  { %13320 = vmatmul.mubr.msk.f32.vlgmr.msra.gmra.mrb[22].mxu0 %vm17310_vm1, %v15085_v20  ;;  %13327 = vmatmul.mubr.msk.f32.vlgmr.msra.gmra.mrb[22].mxu1 %vm17309_vm0, %v15090_v21 }
 0x57b   :  { %13333 = vmatprep.mubr.msk.f32.mxu0 %vm17309_vm0, %v15451_v5  ;;  %13345 = vmatprep.mubr.msk.f32.mxu1 %vm17309_vm0, %v15458_v6 }
 0x649   :  { %v13304_v9 = vpop.f32.mrb[20].mxu0  ;;  %v13316_v10 = vpop.f32.mrb[20].mxu1 }
 0x64a   :  { %v2829_v13 = vadd.f32 %v13304_v9, %v15167_v46  ;;  %v2819_v14 = vpop.f32.mrb[21].mxu0  ;;  %v2983_v16 = vpop.f32.mrb[21].mxu1  ;;  %v2993_v21 = vadd.f32 %v13316_v10, %v15171_v53  ;;  %v15477_v9 = vld [vmem:[%s17339_s0 + $0x18] sm:$0xff]  }
 0x64b   :  { %v2828_v17 = vadd.f32 %v2819_v14, %v15163_v44  ;;  %v2992_v52 = vadd.f32 %v2983_v16, %v15165_v45  ;;  %v15502_v14 = vld [vmem:[%s17250_s8 + $0x18] sm:$0xff]  ;;  %v15511_v16 = vld [vmem:[%s17341_s24] sm:$0xff] }
 0x64c   :  { %v12361_v20 = vmul.f32 -1.442695, %v2829_v13  ;;  %v12367_v3 = vmul.f32 -1.442695, %v2993_v21  ;;  %v15495_v13 = vld [vmem:[%s17250_s8 + $0x8] sm:$0xff]  ;;  %v15533_v21 = vld [vmem:[%s17341_s24 + $0x18] sm:$0xff] }
 0x64d   :  { %v12360_v33 = vmul.f32 -1.442695, %v2828_v17  ;;  %v13321_v34 = vpop.f32.mrb[22].mxu0  ;;  %v13328_v48 = vpop.f32.mrb[22].mxu1  ;;  %v12366_v7 = vmul.f32 -1.442695, %v2992_v52 }
 0x64e   :  { %14497 = vpow2.f32 %v12361_v20  ;;  %v3072_v49 = vpop.f32.mrb[23].mxu0  ;;  %v3147_v2 = vpop.f32.mrb[23].mxu1  ;;  %v3153_v1 = vadd.f32 %v13328_v48, %v15175_v18  ;;  %v3078_v12 = vadd.f32 %v13321_v34, %v15180_v27  ;;  %v15518_v17 = vld [vmem:[%s17341_s24 + $0x10] sm:$0xff]  ;;  %v15526_v20 = vld [vmem:[%s17341_s24 + $0x8] sm:$0xff]  ;;  %v15548_v34 = vld [vmem:[%s17250_s8 + $0x20] sm:$0xff] }
 0x64f   :  { %14499 = vpow2.f32 %v12360_v33  ;;  %v3148_v24 = vadd.f32 %v3147_v2, %v15177_v22  ;;  %v3073_v25 = vadd.f32 %v3072_v49, %v15183_v30  ;;  %v15541_v33 = vld [vmem:[%s17341_s24 + $0x20] sm:$0xff]  ;;  %v15555_v48 = vld [vmem:[%s17341_s24 + $0x28] sm:$0xff] }
 0x650   :  { %14501 = vpow2.f32 %v12367_v3  ;;  %v15562_v49 = vld [vmem:[%s17250_s8 + $0x28] sm:$0xff] }
 0x651   :  { %14503 = vpow2.f32 %v12366_v7 }
 0x658   :  { %v14498_v55 = vpop.eup %14497 }
 0x659   :  { %v2837_v56 = vadd.f32 1.0, %v14498_v55  ;;  %v14500_v57 = vpop.eup %14499 }
 0x65a   :  { %v2836_v59 = vadd.f32 1.0, %v14500_v57  ;;  %v14502_v50 = vpop.eup %14501 }
 0x65b   :  { %14505 = vrcp.f32 %v2837_v56  ;;  %v14504_v62 = vpop.eup %14503  ;;  %v3001_v63 = vadd.f32 1.0, %v14502_v50 }
 0x65c   :  { %14507 = vrcp.f32 %v2836_v59  ;;  %v3000_v0 = vadd.f32 1.0, %v14504_v62 }
 0x65d   :  { %14509 = vrcp.f32 %v3001_v63 }
 0x65e   :  { %14511 = vrcp.f32 %v3000_v0 }
 0x665   :  { %v14506_v11 = vpop.eup %14505 }
 0x666   :  { %v3157_v19 = vmul.f32 %v14506_v11, %v3153_v1  ;;  %v14508_v60 = vpop.eup %14507 }
 0x667   :  { %v3156_v26 = vmul.f32 %v14508_v60, %v3148_v24  ;;  %v14510_v29 = vpop.eup %14509 }
 0x668   :  { %v3159_v61 = vadd.f32 %v3157_v19, %v3078_v12  ;;  %v14512_v32 = vpop.eup %14511  ;;  %v3163_v15 = vsub.f32 1.0, %v14510_v29  ;;  %v3167_v36 = vmul.f32 %v14510_v29, %v15409_v41 }
 0x669   :  { %v3158_v28 = vadd.f32 %v3156_v26, %v3073_v25  ;;  %v3162_v37 = vsub.f32 1.0, %v14512_v32  ;;  %v3166_v40 = vmul.f32 %v14512_v32, %v15413_v43  ;;  %v15488_v43 = vunpack.c.l.bf16 %v15477_v9 }
 0x66a   :  { %14513 = vtanh.f32 %v3159_v61 }
 0x66b   :  { %14515 = vtanh.f32 %v3158_v28  ;;  %17348 = vst [vmem:[#allocation15_spill] sm:$0xff] %v15488_v43 }
 0x674   :  { %v14514_v35 = vpop.eup %14513 }
 0x675   :  { %v3165_v38 = vmul.f32 %v14514_v35, %v3163_v15  ;;  %v14516_v39 = vpop.eup %14515 }
 0x676   :  { %v3164_v47 = vmul.f32 %v14516_v39, %v3162_v37 }
 0x677   :  { %v15472_v42 = vadd.f32 %v3167_v36, %v3165_v38 }
 0x678   :  { %v15481_v10 = vadd.f32 %v3166_v40, %v3164_v47 }
 0x679   :  { %3172 = vst.msk [vmem:[#allocation2 + $0x58] sm:$0xff] %vm695_vm2, %v15472_v42 }
 0x67a   :  { %3171 = vst.msk [vmem:[#allocation2 + $0x50] sm:$0xff] %vm695_vm2, %v15481_v10  ;;  %v14040_v41 = vpack.c.bf16 %v15472_v42, %v15481_v10 }
 0x67c   :  { %14041 = vmatprep.subr.bf16.mxu0 %v14040_v41  ;;  %14045 = vmatprep.subr.bf16.mxu1 %v14040_v41 }
 0x67d   :  { %14043 = vmatpush3.bf16.msra.mxu0 %v14040_v41  ;;  %14047 = vmatpush3.bf16.msra.mxu1 %v14040_v41 }
 0x67e   :  { %13348 = vmatprep.subr.mxu1 %v15488_v43  ;;  %13336 = vmatprep.subr.mxu0 %v15488_v43 }
 0x680   :  { %13334 = vmatmul.mubr.msk.f32.vlgmr.msra.gmra.mrb[24].mxu0 %vm17309_vm0, %v15495_v13  ;;  %13346 = vmatmul.mubr.msk.f32.vlgmr.msra.gmra.mrb[24].mxu1 %vm17309_vm0, %v15502_v14 }
 0x681   :  { %13349 = vmatpush3.msra.mxu1 %v15488_v43  ;;  %13337 = vmatpush3.msra.mxu0 %v15488_v43 }
 0x682   :  { %14049 = vmatprep.subr.bf16.mxu1 %v14040_v41  ;;  %13338 = vmatprep.mubr.msk.f32.mxu0 %vm17310_vm1, %v15511_v16 }
 0x683   :  { %13350 = vmatprep.mubr.msk.f32.mxu1 %vm17310_vm1, %v15518_v17  ;;  %13353 = vmatprep.subr.mxu0 %v15488_v43 }
 0x688   :  { %13339 = vmatmul.mubr.msk.f32.vlgmr.msra.gmra.mrb[24].mxu0 %vm17310_vm1, %v15526_v20  ;;  %13351 = vmatmul.mubr.msk.f32.vlgmr.msra.gmra.mrb[24].mxu1 %vm17310_vm1, %v15533_v21 }
 0x689   :  { %14051 = vmatpush3.bf16.msra.mxu1 %v14040_v41  ;;  %13354 = vmatpush3.msra.mxu0 %v15488_v43 }
 0x68a   :  { %13355 = vmatprep.mubr.msk.f32.mxu0 %vm17310_vm1, %v15541_v33  ;;  %13362 = vmatprep.mubr.msk.f32.mxu1 %vm17309_vm0, %v15548_v34 }
 0x68c   :  { %13356 = vmatmul.mubr.msk.f32.vlgmr.msra.gmra.mrb[26].mxu0 %vm17310_vm1, %v15555_v48  ;;  %13363 = vmatmul.mubr.msk.f32.vlgmr.msra.gmra.mrb[26].mxu1 %vm17309_vm0, %v15562_v49 }
 0x68d   :  { %13369 = vmatprep.mubr.msk.f32.mxu0 %vm17309_vm0, %v15451_v5  ;;  %13381 = vmatprep.mubr.msk.f32.mxu1 %vm17309_vm0, %v15458_v6 }
 0x75b   :  { %v13340_v2 = vpop.f32.mrb[24].mxu0  ;;  %v13352_v52 = vpop.f32.mrb[24].mxu1 }
 0x75c   :  { %v3324_v3 = vadd.f32 %v13340_v2, %v15167_v46  ;;  %v3314_v7 = vpop.f32.mrb[25].mxu0  ;;  %v3478_v55 = vpop.f32.mrb[25].mxu1  ;;  %v3488_v59 = vadd.f32 %v13352_v52, %v15171_v53 }
 0x75d   :  { %v3323_v56 = vadd.f32 %v3314_v7, %v15163_v44  ;;  %v3487_v1 = vadd.f32 %v3478_v55, %v15165_v45 }
 0x75e   :  { %v12377_v57 = vmul.f32 -1.442695, %v3324_v3  ;;  %v12383_v6 = vmul.f32 -1.442695, %v3488_v59 }
 0x75f   :  { %v12376_v50 = vmul.f32 -1.442695, %v3323_v56  ;;  %v13357_v62 = vpop.f32.mrb[26].mxu0  ;;  %v13364_v63 = vpop.f32.mrb[26].mxu1  ;;  %v12382_v11 = vmul.f32 -1.442695, %v3487_v1 }
 0x760   :  { %14517 = vpow2.f32 %v12377_v57  ;;  %v3567_v0 = vpop.f32.mrb[27].mxu0  ;;  %v3642_v5 = vpop.f32.mrb[27].mxu1  ;;  %v3648_v29 = vadd.f32 %v13364_v63, %v15175_v18  ;;  %v3573_v15 = vadd.f32 %v13357_v62, %v15180_v27  ;;  %v15687_v1 = vld [vmem:[%s17253_s11 + $0x8] sm:$0xff] }
 0x761   :  { %14519 = vpow2.f32 %v12376_v50  ;;  %v3643_v36 = vadd.f32 %v3642_v5, %v15177_v22  ;;  %v3568_v39 = vadd.f32 %v3567_v0, %v15183_v30  ;;  %v15676_v5 = vld [vmem:[%s17253_s11 + $0x10] sm:$0xff] }
 0x762   :  { %14521 = vpow2.f32 %v12383_v6  ;;  %v15694_v6 = vld [vmem:[%s17253_s11 + $0x20] sm:$0xff] }
 0x763   :  { %14523 = vpow2.f32 %v12382_v11  ;;  %v15704_v11 = vld [vmem:[%s17253_s11 + $0x18] sm:$0xff] }
 0x76a   :  { %v14518_v12 = vpop.eup %14517 }
 0x76b   :  { %v3332_v19 = vadd.f32 1.0, %v14518_v12  ;;  %v14520_v24 = vpop.eup %14519  ;;  %v15709_v12 = vld [vmem:[%s17253_s11 + $0x28] sm:$0xff] }
 0x76c   :  { %v3331_v60 = vadd.f32 1.0, %v14520_v24  ;;  %v14522_v61 = vpop.eup %14521  ;;  %v15726_v24 = vld [vmem:[%s17254_s12 + $0x28] sm:$0xff] }
 0x76d   :  { %14525 = vrcp.f32 %v3332_v19  ;;  %v14524_v25 = vpop.eup %14523  ;;  %v3496_v26 = vadd.f32 1.0, %v14522_v61  ;;  %v15714_v19 = vld [vmem:[%s17254_s12 + $0x20] sm:$0xff] }
 0x76e   :  { %14527 = vrcp.f32 %v3331_v60  ;;  %v3495_v28 = vadd.f32 1.0, %v14524_v25 }
 0x76f   :  { %14529 = vrcp.f32 %v3496_v26 }
 0x770   :  { %14531 = vrcp.f32 %v3495_v28 }
 0x777   :  { %v14526_v32 = vpop.eup %14525 }
 0x778   :  { %v3652_v35 = vmul.f32 %v14526_v32, %v3648_v29  ;;  %v14528_v37 = vpop.eup %14527 }
 0x779   :  { %v3651_v40 = vmul.f32 %v14528_v37, %v3643_v36  ;;  %v14530_v41 = vpop.eup %14529 }
 0x77a   :  { %v3654_v38 = vadd.f32 %v3652_v35, %v3573_v15  ;;  %v14532_v2 = vpop.eup %14531  ;;  %v3658_v52 = vsub.f32 1.0, %v14530_v41  ;;  %v3662_v7 = vmul.f32 %v14530_v41, %v15472_v42  ;;  %v15591_v42 = vunpack.c.h.bf16 %v15477_v9  ;;  %v79_v9 = vld [vmem:[%s17350_s29] sm:$0xf]  ;;  %v15746_v41 = vld [vmem:[#allocation2 + $0x18] sm:$0xff]  ;;  %s17365_s29 = sld [smem:[#allocation28_spill]] }
 0x77b   :  { %v3653_v47 = vadd.f32 %v3651_v40, %v3568_v39  ;;  %v3657_v55 = vsub.f32 1.0, %v14532_v2  ;;  %v3661_v59 = vmul.f32 %v14532_v2, %v15481_v10  ;;  %v15609_v10 = vunpack.c.l.bf16 %v79_v9  ;;  %v4172_v2 = vld [vmem:[#allocation2 + $0x48] sm:$0xff] }
 0x77c   :  { %14533 = vtanh.f32 %v3654_v38  ;;  %17349 = vst [vmem:[#allocation16_spill] sm:$0xff] %v15591_v42 }
 0x77d   :  { %14535 = vtanh.f32 %v3653_v47  ;;  %17351 = vst [vmem:[#allocation17_spill] sm:$0xff] %v15609_v10 }
 0x786   :  { %v14534_v3 = vpop.eup %14533 }
 0x787   :  { %v3660_v56 = vmul.f32 %v14534_v3, %v3658_v52  ;;  %v14536_v57 = vpop.eup %14535 }
 0x788   :  { %v3659_v62 = vmul.f32 %v14536_v57, %v3657_v55 }
 0x789   :  { %v15580_v50 = vadd.f32 %v3662_v7, %v3660_v56 }
 0x78a   :  { %v15584_v63 = vadd.f32 %v3661_v59, %v3659_v62  ;;  %v15767_v62 = vld [vmem:[#allocation2 + $0x10] sm:$0xff] }
 0x78b   :  { %3667 = vst.msk [vmem:[#allocation2 + $0x68] sm:$0xff] %vm695_vm2, %v15580_v50 }
 0x78c   :  { %3666 = vst.msk [vmem:[#allocation2 + $0x60] sm:$0xff] %vm695_vm2, %v15584_v63  ;;  %v14052_v0 = vpack.c.bf16 %v15580_v50, %v15584_v63 }
 0x78e   :  { %14053 = vmatprep.subr.bf16.mxu0 %v14052_v0  ;;  %14057 = vmatprep.subr.bf16.mxu1 %v14052_v0 }
 0x78f   :  { %14055 = vmatpush3.bf16.msra.mxu0 %v14052_v0  ;;  %14059 = vmatpush3.bf16.msra.mxu1 %v14052_v0 }
 0x790   :  { %13384 = vmatprep.subr.mxu1 %v15591_v42  ;;  %13372 = vmatprep.subr.mxu0 %v15591_v42 }
 0x792   :  { %13370 = vmatmul.mubr.msk.f32.vlgmr.msra.gmra.mrb[28].mxu0 %vm17309_vm0, %v15495_v13  ;;  %13382 = vmatmul.mubr.msk.f32.vlgmr.msra.gmra.mrb[28].mxu1 %vm17309_vm0, %v15502_v14  ;;  %v15616_v13 = vld [vmem:[#allocation2] sm:$0xff]  ;;  %v15618_v14 = vld [vmem:[#allocation2 + $0x8] sm:$0xff] }
 0x793   :  { %13385 = vmatpush3.msra.mxu1 %v15591_v42  ;;  %13373 = vmatpush3.msra.mxu0 %v15591_v42 }
 0x794   :  { %14061 = vmatprep.subr.bf16.mxu1 %v14052_v0  ;;  %13374 = vmatprep.mubr.msk.f32.mxu0 %vm17310_vm1, %v15511_v16  ;;  %v4179_v16 = vld [vmem:[%s17252_s10] sm:$0xff] }
 0x795   :  { %13386 = vmatprep.mubr.msk.f32.mxu1 %vm17310_vm1, %v15518_v17  ;;  %13389 = vmatprep.subr.mxu0 %v15591_v42  ;;  %v14064_v17 = vpack.c.bf16 %v15618_v14, %v15616_v13 }
 0x79a   :  { %13375 = vmatmul.mubr.msk.f32.vlgmr.msra.gmra.mrb[28].mxu0 %vm17310_vm1, %v15526_v20  ;;  %13387 = vmatmul.mubr.msk.f32.vlgmr.msra.gmra.mrb[28].mxu1 %vm17310_vm1, %v15533_v21  ;;  %v15638_v20 = vld [vmem:[%s17254_s12] sm:$0xff]  ;;  %v4180_v21 = vld [vmem:[%s17252_s10 + $0x8] sm:$0xff] }
 0x79b   :  { %14063 = vmatpush3.bf16.msra.mxu1 %v14052_v0  ;;  %13390 = vmatpush3.msra.mxu0 %v15591_v42  ;;  %v4176_v42 = vld [vmem:[#allocation2 + $0x68] sm:$0xff] }
 0x79c   :  { %13391 = vmatprep.mubr.msk.f32.mxu0 %vm17310_vm1, %v15541_v33  ;;  %13398 = vmatprep.mubr.msk.f32.mxu1 %vm17309_vm0, %v15548_v34  ;;  %v15648_v33 = vld [vmem:[%s17254_s12 + $0x8] sm:$0xff]  ;;  %v15660_v34 = vld [vmem:[%s17254_s12 + $0x10] sm:$0xff] }
 0x79d   :  { %13406 = vmatprep.subr.mxu1 %v17272_v4  ;;  %13401 = vmatprep.subr.mxu0 %v15609_v10 }
 0x79e   :  { %13392 = vmatmul.mubr.msk.f32.vlgmr.msra.gmra.mrb[30].mxu0 %vm17310_vm1, %v15555_v48  ;;  %13399 = vmatmul.mubr.msk.f32.vlgmr.msra.gmra.mrb[30].mxu1 %vm17309_vm0, %v15562_v49  ;;  %v15665_v48 = vld [vmem:[%s17253_s11] sm:$0xff]  ;;  %v15671_v49 = vld [vmem:[%s17254_s12 + $0x18] sm:$0xff] }
 0x79f   :  { %13407 = vmatpush3.msra.mxu1 %v17272_v4  ;;  %13402 = vmatpush3.msra.mxu0 %v15609_v10 }
 0x7a0   :  { %14065 = vmatprep.subr.bf16.mxu1 %v14064_v17  ;;  %13403 = vmatprep.mubr.msk.f32.mxu0 %vm17310_vm1, %v4179_v16  ;;  %v15772_v16 = vld [vmem:[#allocation2 + $0x20] sm:$0xff] }
 0x7a1   :  { %13408 = vmatprep.mubr.msk.f32.mxu1 %vm17309_vm0, %v15638_v20  ;;  %13418 = vmatprep.subr.mxu0 %v17272_v4 }
 0x7a2   :  { %13404 = vmatmul.mubr.msk.f32.vlgmr.msra.gmra.mrb[32].mxu0 %vm17310_vm1, %v4180_v21  ;;  %13409 = vmatmul.mubr.msk.f32.vlgmr.msra.gmra.mrb[32].mxu1 %vm17309_vm0, %v15648_v33  ;;  %v4171_v21 = vld [vmem:[#allocation2 + $0x40] sm:$0xff] }
 0x7a3   :  { %14067 = vmatpush3.bf16.msra.mxu1 %v14064_v17  ;;  %13419 = vmatpush3.msra.mxu0 %v17272_v4 }
 0x7a4   :  { %14069 = vmatprep.subr.bf16.mxu0 %v14064_v17  ;;  %14073 = vmatprep.subr.bf16.mxu1 %v14064_v17 }
 0x7a5   :  { %13420 = vmatprep.mubr.msk.f32.mxu0 %vm17309_vm0, %v15660_v34  ;;  %13415 = vmatprep.mubr.msk.f32.mxu1 %vm17309_vm0, %v15665_v48 }
 0x7a6   :  { %13421 = vmatmul.mubr.msk.f32.vlgmr.msra.gmra.mrb[34].mxu0 %vm17309_vm0, %v15671_v49 }
 0x7a7   :  { %14071 = vmatpush3.bf16.msra.mxu0 %v14064_v17  ;;  %13427 = vmatprep.mubr.msk.f32.mxu0 %vm17309_vm0, %v15676_v5 }
 0x7a8   :  { %13437 = vmatprep.subr.mxu0 %v17272_v4 }
 0x7aa   :  { %13416 = vmatmul.mubr.msk.f32.vlgmr.msra.gmra.mrb[32].mxu1 %vm17309_vm0, %v15687_v1 }
 0x7ab   :  { %14075 = vmatpush3.bf16.msra.mxu1 %v14064_v17  ;;  %13434 = vmatprep.mubr.msk.f32.mxu1 %vm17309_vm0, %v15694_v6  ;;  %v15774_v17 = vld [vmem:[#allocation2 + $0x30] sm:$0xff] }
 0x7ac   :  { %17354 = vst [vmem:[#allocation20_spill] sm:$0xff] %v15774_v17 }
 0x7ae   :  { %13428 = vmatmul.mubr.msk.f32.vlgmr.msra.gmra.mrb[34].mxu0 %vm17309_vm0, %v15704_v11  ;;  %13435 = vmatmul.mubr.msk.f32.vlgmr.msra.gmra.mrb[34].mxu1 %vm17309_vm0, %v15709_v12 }
 0x7af   :  { %13438 = vmatpush3.msra.mxu0 %v17272_v4  ;;  %13439 = vmatprep.mubr.msk.f32.mxu0 %vm17309_vm0, %v15714_v19 }
 0x7b0   :  { %13446 = vmatprep.mubr.msk.f32.mxu1 %vm17309_vm0, %v15638_v20 }
 0x7b2   :  { %13440 = vmatmul.mubr.msk.f32.vlgmr.msra.gmra.mrb[36].mxu0 %vm17309_vm0, %v15726_v24 }
 0x7b3   :  { %13460 = vmatprep.mubr.msk.f32.mxu0 %vm17309_vm0, %v15660_v34 }
 0x86d   :  { %v13376_v60 = vpop.f32.mrb[28].mxu0  ;;  %v13388_v61 = vpop.f32.mrb[28].mxu1 }
 0x86e   :  { %v3819_v25 = vadd.f32 %v13376_v60, %v15167_v46  ;;  %v3809_v26 = vpop.f32.mrb[29].mxu0  ;;  %v3973_v28 = vpop.f32.mrb[29].mxu1  ;;  %v3983_v29 = vadd.f32 %v13388_v61, %v15171_v53  ;;  %v15748_v53 = vld [vmem:[#allocation2 + $0x28] sm:$0xff]  ;;  %v4174_v61 = vld [vmem:[#allocation2 + $0x58] sm:$0xff] }
 0x86f   :  { %v3818_v32 = vadd.f32 %v3809_v26, %v15163_v44  ;;  %v3982_v35 = vadd.f32 %v3973_v28, %v15165_v45  ;;  %17352 = vst [vmem:[#allocation18_spill] sm:$0xff] %v15748_v53  ;;  %v15750_v44 = vld [vmem:[#allocation2 + $0x38] sm:$0xff] }
 0x870   :  { %v12393_v15 = vmul.f32 -1.442695, %v3819_v25  ;;  %v12399_v46 = vmul.f32 -1.442695, %v3983_v29  ;;  %17353 = vst [vmem:[#allocation19_spill] sm:$0xff] %v15750_v44 }
 0x871   :  { %v12392_v36 = vmul.f32 -1.442695, %v3818_v32  ;;  %v15738_v37 = vpop.f32.mrb[30].mxu0  ;;  %v15740_v38 = vpop.f32.mrb[30].mxu1  ;;  %v12398_v47 = vmul.f32 -1.442695, %v3982_v35 }
 0x872   :  { %14537 = vpow2.f32 %v12393_v15  ;;  %v15742_v39 = vpop.f32.mrb[31].mxu0  ;;  %v15744_v40 = vpop.f32.mrb[31].mxu1 }
 0x873   :  { %14539 = vpow2.f32 %v12392_v36 }
 0x874   :  { %14541 = vpow2.f32 %v12399_v46 }
 0x875   :  { %v15752_v45 = vpop.f32.mrb[32].mxu0  ;;  %14543 = vpow2.f32 %v12398_v47 }
 0x876   :  { %v4263_v52 = vmul.f32 %v15752_v45, %v15618_v14  ;;  %v4265_v3 = vmul.f32 %v15752_v45, %v15746_v41  ;;  %v4267_v7 = vmul.f32 %v15752_v45, %v15748_v53  ;;  %v4269_v55 = vmul.f32 %v15752_v45, %v15750_v44  ;;  %v15762_v56 = vpop.f32.mrb[33].mxu0 }
 0x877   :  { %v4271_v57 = vmul.f32 %v15752_v45, %v4172_v2  ;;  %v4262_v59 = vmul.f32 %v15762_v56, %v15616_v13  ;;  %v4264_v60 = vmul.f32 %v15762_v56, %v15767_v62  ;;  %v4266_v25 = vmul.f32 %v15762_v56, %v15772_v16 }
 0x878   :  { %v4279_v0 = vsel %vm695_vm2, %v4263_v52, 0.0  ;;  %v4288_v9 = vsel %vm695_vm2, %v4265_v3, 0.0  ;;  %v4297_v14 = vsel %vm695_vm2, %v4267_v7, 0.0  ;;  %v4306_v13 = vsel %vm695_vm2, %v4269_v55, 0.0  ;;  %v4173_v7 = vld [vmem:[#allocation2 + $0x50] sm:$0xff] }
 0x879   :  { %v4268_v26 = vmul.f32 %v15762_v56, %v15774_v17  ;;  %v4270_v28 = vmul.f32 %v15762_v56, %v4171_v21  ;;  %v4273_v29 = vmul.f32 %v15752_v45, %v4174_v61  ;;  %v4315_v32 = vsel %vm695_vm2, %v4271_v57, 0.0 }
 0x87a   :  { %v4278_v15 = vsel %vm695_vm2, %v4262_v59, 0.0  ;;  %v4287_v35 = vsel %vm695_vm2, %v4264_v60, 0.0  ;;  %v4296_v2 = vsel %vm695_vm2, %v4266_v25, 0.0  ;;  %v4272_v59 = vmul.f32 %v15762_v56, %v4173_v7 }
 0x87b   :  { %v4280_v46 = vadd.f32 %v4279_v0, %v4278_v15  ;;  %v4289_v47 = vadd.f32 %v4288_v9, %v4287_v35  ;;  %v4305_v52 = vsel %vm695_vm2, %v4268_v26, 0.0  ;;  %v4298_v55 = vadd.f32 %v4297_v14, %v4296_v2  ;;  %v4175_v15 = vld [vmem:[#allocation2 + $0x60] sm:$0xff] }
 0x87c   :  { %v14538_v36 = vpop.eup %14537  ;;  %v15790_v4 = vadd.f32 %v4306_v13, %v4305_v52  ;;  %v4314_v21 = vsel %vm695_vm2, %v4270_v28, 0.0  ;;  %v4275_v26 = vmul.f32 %v15752_v45, %v4176_v42  ;;  %v4324_v13 = vsel %vm695_vm2, %v4273_v29, 0.0 }
 0x87d   :  { %v3827_v3 = vadd.f32 1.0, %v14538_v36  ;;  %v13417_v61 = vpop.f32.mrb[32].mxu1  ;;  %v14540_v57 = vpop.eup %14539  ;;  %v4281_v60 = vrot.slane %v4280_v46, 4  ;;  %v4290_v43 = vrot.slane %v4289_v47, 4  ;;  %v4316_v0 = vadd.f32 %v4315_v32, %v4314_v21 }
 0x87e   :  { %v15794_v9 = vpop.f32.mrb[33].mxu1  ;;  %v3826_v25 = vadd.f32 1.0, %v14540_v57  ;;  %v4299_v14 = vrot.slane %v4298_v55, 4  ;;  %v4274_v28 = vmul.f32 %v15762_v56, %v4175_v15  ;;  %v14542_v2 = vpop.eup %14541  ;;  %v4323_v42 = vsel %vm695_vm2, %v4272_v59, 0.0 }
 0x87f   :  { %14545 = vrcp.f32 %v3827_v3  ;;  %v4282_v35 = vadd.f32 %v4281_v60, %v4280_v46  ;;  %v4291_v36 = vadd.f32 %v4290_v43, %v4289_v47  ;;  %v4317_v7 = vrot.slane %v4316_v0, 4  ;;  %v14544_v3 = vpop.eup %14543  ;;  %v15808_v15 = vpop.permute.xlu1 %4602 }
 0x880   :  { %14547 = vrcp.f32 %v3826_v25  ;;  %v4300_v52 = vadd.f32 %v4299_v14, %v4298_v55  ;;  %v4333_v43 = vsel %vm695_vm2, %v4275_v26, 0.0  ;;  %v4325_v55 = vadd.f32 %v4324_v13, %v4323_v42 }
 0x881   :  { %v15799_v31 = vpop.f32.mrb[34].mxu0  ;;  %v15801_v32 = vpop.f32.mrb[34].mxu1  ;;  %v4283_v21 = vrot.slane %v4282_v35, 2  ;;  %v4292_v57 = vrot.slane %v4291_v36, 2  ;;  %v4318_v47 = vadd.f32 %v4317_v7, %v4316_v0  ;;  %v4332_v14 = vsel %vm695_vm2, %v4274_v28, 0.0 }
 0x882   :  { %v15804_v23 = vpop.f32.mrb[35].mxu0  ;;  %v15806_v29 = vpop.f32.mrb[35].mxu1  ;;  %v4301_v46 = vrot.slane %v4300_v52, 2  ;;  %v4606_v58 = vadd.f32 %v13417_v61, %v15808_v15  ;;  %v4068_v59 = vadd.f32 %v15738_v37, %v15180_v27  ;;  %v4326_v8 = vrot.slane %v4325_v55, 4 }
 0x883   :  { %v4284_v60 = vadd.f32 %v4283_v21, %v4282_v35  ;;  %v4293_v25 = vadd.f32 %v4292_v57, %v4291_v36  ;;  %v4319_v54 = vrot.slane %v4318_v47, 2  ;;  %v3991_v44 = vadd.f32 1.0, %v14542_v2 }
 0x884   :  { %v4302_v51 = vadd.f32 %v4301_v46, %v4300_v52  ;;  %v4334_v26 = vadd.f32 %v4333_v43, %v4332_v14  ;;  %v12411_v53 = vmul.f32 -1.442695, %v4606_v58  ;;  %v3990_v13 = vadd.f32 1.0, %v14544_v3  ;;  %v15835_v46 = vpop.permute.xlu0 %4597 }
 0x885   :  { %v15815_v10 = vpop.f32.mrb[36].mxu0  ;;  %v4285_v17 = vrot.slane %v4284_v60, 1  ;;  %v4294_v35 = vrot.slane %v4293_v25, 1  ;;  %v4320_v36 = vadd.f32 %v4319_v54, %v4318_v47  ;;  %v4327_v28 = vadd.f32 %v4326_v8, %v4325_v55 }
 0x886   :  { %v15817_v0 = vpop.f32.mrb[37].mxu0  ;;  %v4143_v61 = vadd.f32 %v15740_v38, %v15175_v18  ;;  %v4335_v27 = vrot.slane %v4334_v26, 4  ;;  %14549 = vpow2.f32 %v12411_v53  ;;  %v4063_v2 = vadd.f32 %v15742_v39, %v15183_v30 }
 0x887   :  { %v15821_v7 = vadd.f32 %v4285_v17, %v4284_v60  ;;  %v4303_v52 = vrot.slane %v4302_v51, 1  ;;  %v4321_v21 = vrot.slane %v4320_v36, 1  ;;  %v4328_v58 = vrot.slane %v4327_v28, 2 }
 0x888   :  { %14551 = vrcp.f32 %v3991_v44  ;;  %v4138_v54 = vadd.f32 %v15744_v40, %v15177_v22  ;;  %v4336_v8 = vadd.f32 %v4335_v27, %v4334_v26  ;;  %v15827_v18 = vadd.f32 %v4294_v35, %v4293_v25 }
 0x889   :  { %v14546_v37 = vpop.eup %14545  ;;  %14553 = vrcp.f32 %v3990_v13  ;;  %v15829_v38 = vadd.f32 %v4321_v21, %v4320_v36  ;;  %v4329_v53 = vadd.f32 %v4328_v58, %v4327_v28  ;;  %v4350_v30 = vsel %vm695_vm2, %v15821_v7, -inf }
 0x88a   :  { %v4147_v57 = vmul.f32 %v14546_v37, %v4143_v61  ;;  %v14548_v3 = vpop.eup %14547  ;;  %v4337_v43 = vrot.slane %v4336_v8, 2  ;;  %v15833_v39 = vadd.f32 %v4303_v52, %v4302_v51  ;;  %v4351_v60 = vsel %vm695_vm2, %v15827_v18, -inf  ;;  %v15853_v61 = vpop.permute.xlu1 %4788 }
 0x88b   :  { %v4146_v42 = vmul.f32 %v14548_v3, %v4138_v54  ;;  %v4330_v44 = vrot.slane %v4329_v53, 1  ;;  %v4354_v47 = vsel %vm695_vm2, %v15829_v38, -inf  ;;  %v4605_v14 = vadd.f32 %v15835_v46, %v15794_v9 }
 0x88c   :  { %v4149_v17 = vadd.f32 %v4147_v57, %v4068_v59  ;;  %v4338_v40 = vadd.f32 %v4337_v43, %v4336_v8  ;;  %v4355_v25 = vmax.f32 %v4350_v30, %v4354_v47  ;;  %v15851_v36 = vsel %vm695_vm2, %v15833_v39, -inf }
 0x88d   :  { %v4148_v22 = vadd.f32 %v4146_v42, %v4063_v2  ;;  %v15839_v55 = vadd.f32 %v4330_v44, %v4329_v53  ;;  %v12410_v26 = vmul.f32 -1.442695, %v4605_v14 }
 0x88e   :  { %14555 = vtanh.f32 %v4149_v17  ;;  %v4339_v51 = vrot.slane %v4338_v40, 1  ;;  %v15858_v54 = vpop.permute.xlu1 %4903 }
 0x88f   :  { %14557 = vtanh.f32 %v4148_v22  ;;  %v4356_v59 = vsel %vm695_vm2, %v15839_v55, -inf }
 0x890   :  { %v14550_v13 = vpop.eup %14549  ;;  %v15847_v35 = vadd.f32 %v4339_v51, %v4338_v40  ;;  %v4357_v28 = vmax.f32 %v4351_v60, %v4356_v59  ;;  %14559 = vpow2.f32 %v12410_v26  ;;  %v15863_v40 = vpop.permute.xlu0 %4783  ;;  %v4984_v60 = vadd.f32 %v15815_v10, %v15858_v54 }
 0x891   :  { %v4614_v27 = vadd.f32 1.0, %v14550_v13 }
 0x892   :  { %v14552_v37 = vpop.eup %14551  ;;  %v4358_v9 = vsel %vm695_vm2, %v15847_v35, -inf  ;;  %v4362_v2 = vmax.f32 %v4355_v25, %v4357_v28  ;;  %v15867_v14 = vpop.permute.xlu1 %4812 }
 0x893   :  { %v14554_v52 = vpop.eup %14553  ;;  %v4359_v21 = vmax.f32 %v15851_v36, %v4358_v9  ;;  %14561 = vrcp.f32 %v4614_v27  ;;  %v4153_v58 = vsub.f32 1.0, %v14552_v37  ;;  %v4157_v8 = vmul.f32 %v14552_v37, %v15580_v50 }
 0x894   :  { %v4152_v3 = vsub.f32 1.0, %v14554_v52  ;;  %v4156_v42 = vmul.f32 %v14554_v52, %v15584_v63  ;;  %v4308_v50 = vrot.slane %v15790_v4, 4  ;;  %v4893_v63 = vadd.f32 %v15801_v32, %v15867_v14  ;;  %v15875_v26 = vpop.permute.xlu0 %4898 }
 0x896   :  { %v4309_v36 = vadd.f32 %v4308_v50, %v15790_v4 }
 0x898   :  { %v14556_v57 = vpop.eup %14555  ;;  %v4310_v52 = vrot.slane %v4309_v36, 2 }
 0x899   :  { %v4155_v53 = vmul.f32 %v14556_v57, %v4153_v58  ;;  %v14558_v17 = vpop.eup %14557  ;;  %v4979_v58 = vadd.f32 %v15817_v0, %v15875_v26 }
 0x89a   :  { %v4154_v30 = vmul.f32 %v14558_v17, %v4152_v3  ;;  %v14560_v44 = vpop.eup %14559 }
 0x89b   :  { %v4159_v43 = vadd.f32 %v4157_v8, %v4155_v53  ;;  %v4613_v47 = vadd.f32 1.0, %v14560_v44  ;;  %v15886_v8 = vpop.permute.xlu0 %4807  ;;  %v4311_v53 = vadd.f32 %v4310_v52, %v4309_v36 }
 0x89c   :  { %v4158_v22 = vadd.f32 %v4156_v42, %v4154_v30  ;;  %v4888_v4 = vadd.f32 %v15806_v29, %v15886_v8 }
 0x89d   :  { %4162 = vst.msk [vmem:[#allocation2 + $0x78] sm:$0xff] %vm695_vm2, %v4159_v43  ;;  %v14562_v25 = vpop.eup %14561  ;;  %14563 = vrcp.f32 %v4613_v47  ;;  %v4312_v43 = vrot.slane %v4311_v53, 1 }
 0x89e   :  { %4161 = vst.msk [vmem:[#allocation2 + $0x70] sm:$0xff] %vm695_vm2, %v4158_v22  ;;  %v4988_v51 = vmul.f32 %v14562_v25, %v4984_v60 }
 0x89f   :  { %v4313_v22 = vadd.f32 %v4312_v43, %v4311_v53 }
 0x8a0   :  { %v15873_v59 = vadd.f32 %v4988_v51, %v4893_v63 }
 0x8a1   :  { %v4353_v0 = vsel %vm695_vm2, %v4313_v22, -inf }
 0x8a4   :  { %v4178_v13 = vld [vmem:[#allocation2 + $0x78] sm:$0xff] }
 0x8a5   :  { %v4277_v10 = vmul.f32 %v15752_v45, %v4178_v13  ;;  %v4177_v28 = vld [vmem:[#allocation2 + $0x70] sm:$0xff] }
 0x8a6   :  { %v4276_v37 = vmul.f32 %v15762_v56, %v4177_v28  ;;  %v15881_v9 = vpack.c.bf16 %v4178_v13, %v4177_v28 }
 0x8a7   :  { %v4342_v27 = vsel %vm695_vm2, %v4277_v10, 0.0  ;;  %v14564_v57 = vpop.eup %14563 }
 0x8a8   :  { %v4341_v32 = vsel %vm695_vm2, %v4276_v37, 0.0  ;;  %v4987_v45 = vmul.f32 %v14564_v57, %v4979_v58 }
 0x8a9   :  { %v4343_v3 = vadd.f32 %v4342_v27, %v4341_v32 }
 0x8aa   :  { %v15890_v42 = vadd.f32 %v4987_v45, %v4888_v4 }
 0x8ab   :  { %v4344_v17 = vrot.slane %v4343_v3, 4 }
 0x8ad   :  { %v4345_v56 = vadd.f32 %v4344_v17, %v4343_v3 }
 0x8af   :  { %v4346_v30 = vrot.slane %v4345_v56, 2 }
 0x8b1   :  { %v4347_v44 = vadd.f32 %v4346_v30, %v4345_v56 }
 0x8b3   :  { %v4348_v47 = vrot.slane %v4347_v44, 1 }
 0x8b5   :  { %v4349_v60 = vadd.f32 %v4348_v47, %v4347_v44 }
 0x8b7   :  { %v4360_v25 = vsel %vm695_vm2, %v4349_v60, -inf }
 0x8b8   :  { %v4361_v50 = vmax.f32 %v4353_v0, %v4360_v25 }
 0x8ba   :  { %v4363_v63 = vmax.f32 %v4359_v21, %v4361_v50 }
 0x8bc   :  { %v4364_v51 = vmax.f32 %v4362_v2, %v4363_v63 }
 0x8be   :  { %v4366_v29 = vsub.f32 %v15827_v18, %v4364_v51  ;;  %v4367_v13 = vsub.f32 %v15833_v39, %v4364_v51  ;;  %v4368_v36 = vsub.f32 %v4313_v22, %v4364_v51  ;;  %v4369_v10 = vsub.f32 %v15829_v38, %v4364_v51 }
 0x8bf   :  { %v4370_v28 = vsub.f32 %v15839_v55, %v4364_v51  ;;  %v4371_v27 = vsub.f32 %v15847_v35, %v4364_v51  ;;  %v4372_v37 = vsub.f32 %v4349_v60, %v4364_v51  ;;  %v4365_v52 = vsub.f32 %v15821_v7, %v4364_v51 }
 0x8c0   :  { %v4375_v32 = vmul.f32 1.442695, %v4366_v29  ;;  %v4377_v58 = vmul.f32 1.442695, %v4367_v13  ;;  %v4379_v21 = vmul.f32 1.442695, %v4368_v36  ;;  %v4792_v18 = vadd.f32 %v15799_v31, %v15853_v61 }
 0x8c1   :  { %v4373_v57 = vmul.f32 1.442695, %v4365_v52  ;;  %v4381_v2 = vmul.f32 1.442695, %v4369_v10  ;;  %v4383_v38 = vmul.f32 1.442695, %v4370_v28  ;;  %v4791_v39 = vadd.f32 %v15863_v40, %v15804_v23 }
 0x8c2   :  { %14565 = vpow2.f32 %v4375_v32  ;;  %v4385_v55 = vmul.f32 1.442695, %v4371_v27  ;;  %v12417_v35 = vmul.f32 -1.442695, %v4792_v18  ;;  %v4387_v3 = vmul.f32 1.442695, %v4372_v37 }
 0x8c3   :  { %14567 = vpow2.f32 %v4377_v58  ;;  %v12416_v4 = vmul.f32 -1.442695, %v4791_v39 }
 0x8c4   :  { %14569 = vpow2.f32 %v4373_v57 }
 0x8c5   :  { %14571 = vpow2.f32 %v4379_v21 }
 0x8c6   :  { %14573 = vpow2.f32 %v4381_v2 }
 0x8c7   :  { %14575 = vpow2.f32 %v4383_v38 }
 0x8c8   :  { %14577 = vpow2.f32 %v4385_v55 }
 0x8c9   :  { %14579 = vpow2.f32 %v12417_v35 }
 0x8ca   :  { %14581 = vpow2.f32 %v4387_v3 }
 0x8cb   :  { %14583 = vpow2.f32 %v12416_v4 }
 0x8cc   :  { %v14566_v7 = vpop.eup %14565 }
 0x8cd   :  { %v14568_v45 = vpop.eup %14567  ;;  %v4390_v53 = vsel %vm695_vm2, %v14566_v7, 0.0 }
 0x8ce   :  { %v14570_v17 = vpop.eup %14569  ;;  %v4392_v23 = vsel %vm695_vm2, %v14568_v45, 0.0 }
 0x8cf   :  { %v4389_v31 = vsel %vm695_vm2, %v14570_v17, 0.0  ;;  %v14572_v56 = vpop.eup %14571 }
 0x8d0   :  { %v4391_v43 = vadd.f32 %v4390_v53, %v4389_v31  ;;  %v14574_v30 = vpop.eup %14573  ;;  %v4394_v22 = vsel %vm695_vm2, %v14572_v56, 0.0 }
 0x8d1   :  { %v14576_v47 = vpop.eup %14575  ;;  %v4396_v0 = vsel %vm695_vm2, %v14574_v30, 0.0 }
 0x8d2   :  { %v4393_v44 = vadd.f32 %v4392_v23, %v4391_v43  ;;  %v14578_v25 = vpop.eup %14577  ;;  %v4398_v51 = vsel %vm695_vm2, %v14576_v47, 0.0 }
 0x8d3   :  { %v14580_v63 = vpop.eup %14579  ;;  %v4400_v10 = vsel %vm695_vm2, %v14578_v25, 0.0 }
 0x8d4   :  { %v4395_v60 = vadd.f32 %v4394_v22, %v4393_v44  ;;  %v14582_v29 = vpop.eup %14581  ;;  %v4800_v37 = vadd.f32 1.0, %v14580_v63 }
 0x8d5   :  { %v14584_v36 = vpop.eup %14583  ;;  %v4402_v27 = vsel %vm695_vm2, %v14582_v29, 0.0 }
 0x8d6   :  { %v4397_v50 = vadd.f32 %v4396_v0, %v4395_v60  ;;  %v4799_v32 = vadd.f32 1.0, %v14584_v36 }
 0x8d8   :  { %v4399_v13 = vadd.f32 %v4398_v51, %v4397_v50 }
 0x8da   :  { %v4401_v28 = vadd.f32 %v4400_v10, %v4399_v13 }
 0x8dc   :  { %v4403_v52 = vadd.f32 %v4402_v27, %v4401_v28 }
 0x8de   :  { %14585 = vrcp.f32 %v4403_v52 }
 0x8df   :  { %14587 = vrcp.f32 %v4800_v37 }
 0x8e0   :  { %14589 = vrcp.f32 %v4799_v32 }
 0x8e1   :  { %14591 = vtanh.f32 %v15873_v59 }
 0x8e2   :  { %14593 = vtanh.f32 %v15890_v42 }
 0x8e8   :  { %v14586_v58 = vpop.eup %14585 }
 0x8e9   :  { %v14588_v57 = vpop.eup %14587  ;;  %v4405_v21 = vmul.f32 %v14586_v58, %v14570_v17  ;;  %v15914_v2 = vmul.f32 %v14586_v58, %v14566_v7  ;;  %v15916_v18 = vmul.f32 %v14586_v58, %v14568_v45  ;;  %v15918_v38 = vmul.f32 %v14586_v58, %v14572_v56 }
 0x8ea   :  { %v14590_v39 = vpop.eup %14589  ;;  %v15920_v55 = vmul.f32 %v14586_v58, %v14574_v30  ;;  %v15922_v35 = vmul.f32 %v14586_v58, %v14576_v47  ;;  %v15924_v3 = vmul.f32 %v14586_v58, %v14578_v25  ;;  %v15926_v4 = vmul.f32 %v14586_v58, %v14582_v29 }
 0x8eb   :  { %v14592_v59 = vpop.eup %14591  ;;  %v4994_v42 = vmul.f32 %v14588_v57, %v4405_v21  ;;  %v4993_v53 = vmul.f32 %v14590_v39, %v4405_v21  ;;  %v14080_v47 = vpack.c.bf16 %v15746_v41, %v15767_v62 }
 0x8ec   :  { %v14594_v31 = vpop.eup %14593 }
 0x8ed   :  { %v4996_v17 = vsub.f32 1.0, %v4994_v42  ;;  %v4995_v7 = vsub.f32 1.0, %v4993_v53  ;;  %v5000_v43 = vmul.f32 %v14592_v59, %v4994_v42  ;;  %v4999_v45 = vmul.f32 %v14594_v31, %v4993_v53 }
 0x8ef   :  { %v4998_v23 = vmul.f32 0.0, %v4996_v17  ;;  %v4997_v56 = vmul.f32 0.0, %v4995_v7 }
 0x8f1   :  { %v15928_v44 = vadd.f32 %v5000_v43, %v4998_v23  ;;  %v15930_v30 = vadd.f32 %v4999_v45, %v4997_v56 }
 0x8f3   :  { %v14076_v22 = vpack.c.bf16 %v15928_v44, %v15930_v30 }
 0x8f5   :  { %14077 = vmatprep.subr.bf16.mxu1 %v14076_v22  ;;  %14085 = vmatprep.subr.bf16.mxu0 %v14076_v22 }
 0x8f6   :  { %14079 = vmatpush3.bf16.msra.mxu1 %v14076_v22  ;;  %14087 = vmatpush3.bf16.msra.mxu0 %v14076_v22 }
 0x8f7   :  { %14081 = vmatprep.subr.bf16.mxu1 %v14080_v47  ;;  %14089 = vmatprep.subr.bf16.mxu0 %v14080_v47 }
 0x8f9   :  { %13447 = vmatmul.mubr.msk.f32.vlgmr.msra.gmra.mrb[36].mxu1 %vm17309_vm0, %v15648_v33  ;;  %13461 = vmatmul.mubr.msk.f32.vlgmr.msra.gmra.mrb[38].mxu0 %vm17309_vm0, %v15671_v49 }
 0x8fa   :  { %14083 = vmatpush3.bf16.msra.mxu1 %v14080_v47  ;;  %14091 = vmatpush3.bf16.msra.mxu0 %v14080_v47 }
 0x8fb   :  { %14093 = vmatprep.subr.bf16.mxu1 %v14080_v47  ;;  %14097 = vmatprep.subr.bf16.mxu0 %v14076_v22 }
 0x8fc   :  { %13453 = vmatprep.mubr.msk.f32.mxu1 %vm17309_vm0, %v15665_v48  ;;  %13467 = vmatprep.mubr.msk.f32.mxu0 %vm17309_vm0, %v15676_v5 }
 0x901   :  { %13454 = vmatmul.mubr.msk.f32.vlgmr.msra.gmra.mrb[36].mxu1 %vm17309_vm0, %v15687_v1  ;;  %13468 = vmatmul.mubr.msk.f32.vlgmr.msra.gmra.mrb[38].mxu0 %vm17309_vm0, %v15704_v11 }
 0x902   :  { %14095 = vmatpush3.bf16.msra.mxu1 %v14080_v47  ;;  %14099 = vmatpush3.bf16.msra.mxu0 %v14076_v22 }
 0x903   :  { %13474 = vmatprep.mubr.msk.f32.mxu1 %vm17309_vm0, %v15694_v6  ;;  %13481 = vmatprep.mubr.msk.f32.mxu0 %vm17309_vm0, %v15714_v19 }
 0x905   :  { %13475 = vmatmul.mubr.msk.f32.vlgmr.msra.gmra.mrb[38].mxu1 %vm17309_vm0, %v15709_v12  ;;  %13482 = vmatmul.mubr.msk.f32.vlgmr.msra.gmra.mrb[40].mxu0 %vm17309_vm0, %v15726_v24 }
 0x906   :  { %13488 = vmatprep.mubr.msk.f32.mxu1 %vm17309_vm0, %v15638_v20  ;;  %13502 = vmatprep.mubr.msk.f32.mxu0 %vm17309_vm0, %v15660_v34 }
 0x9d4   :  { %v13455_v41 = vpop.f32.mrb[36].mxu1  ;;  %v13469_v62 = vpop.f32.mrb[38].mxu0 }
 0x9d5   :  { %v5154_v60 = vadd.f32 %v13455_v41, %v15808_v15  ;;  %v5318_v0 = vadd.f32 %v13469_v62, %v15853_v61  ;;  %v5144_v25 = vpop.f32.mrb[37].mxu1  ;;  %v5308_v50 = vpop.f32.mrb[39].mxu0 }
 0x9d6   :  { %v5153_v63 = vadd.f32 %v5144_v25, %v15835_v46  ;;  %v5317_v51 = vadd.f32 %v5308_v50, %v15863_v40 }
 0x9d7   :  { %v12427_v29 = vmul.f32 -1.442695, %v5154_v60  ;;  %v12433_v13 = vmul.f32 -1.442695, %v5318_v0 }
 0x9d8   :  { %v12426_v36 = vmul.f32 -1.442695, %v5153_v63  ;;  %v12432_v10 = vmul.f32 -1.442695, %v5317_v51  ;;  %v13476_v28 = vpop.f32.mrb[38].mxu1  ;;  %v13483_v27 = vpop.f32.mrb[40].mxu0 }
 0x9d9   :  { %14595 = vpow2.f32 %v12427_v29  ;;  %v5397_v37 = vpop.f32.mrb[39].mxu1  ;;  %v5472_v52 = vpop.f32.mrb[41].mxu0  ;;  %v5478_v31 = vadd.f32 %v13483_v27, %v15858_v54  ;;  %v5403_v43 = vadd.f32 %v13476_v28, %v15867_v14 }
 0x9da   :  { %14597 = vpow2.f32 %v12433_v13  ;;  %v5473_v23 = vadd.f32 %v5472_v52, %v15875_v26  ;;  %v5398_v62 = vadd.f32 %v5397_v37, %v15886_v8  ;;  %v17355_v37 = vld [vmem:[#allocation18_spill] sm:$0xff] }
 0x9db   :  { %14599 = vpow2.f32 %v12426_v36 }
 0x9dc   :  { %14601 = vpow2.f32 %v12432_v10 }
 0x9e3   :  { %v14596_v32 = vpop.eup %14595 }
 0x9e4   :  { %v14598_v58 = vpop.eup %14597  ;;  %v5162_v57 = vadd.f32 1.0, %v14596_v32  ;;  %v14104_v32 = vpack.c.bf16 %v17355_v37, %v15772_v16 }
 0x9e5   :  { %v14600_v21 = vpop.eup %14599  ;;  %v5326_v39 = vadd.f32 1.0, %v14598_v58 }
 0x9e6   :  { %v14602_v59 = vpop.eup %14601  ;;  %14603 = vrcp.f32 %v5162_v57  ;;  %v5161_v42 = vadd.f32 1.0, %v14600_v21 }
 0x9e7   :  { %14605 = vrcp.f32 %v5326_v39  ;;  %v5325_v53 = vadd.f32 1.0, %v14602_v59 }
 0x9e8   :  { %14607 = vrcp.f32 %v5161_v42 }
 0x9e9   :  { %14609 = vrcp.f32 %v5325_v53 }
 0x9f0   :  { %v14604_v17 = vpop.eup %14603 }
 0x9f1   :  { %v14606_v7 = vpop.eup %14605  ;;  %v5482_v45 = vmul.f32 %v14604_v17, %v5478_v31 }
 0x9f2   :  { %v14608_v56 = vpop.eup %14607  ;;  %v5488_v22 = vmul.f32 %v14606_v7, %v15914_v2 }
 0x9f3   :  { %v14610_v47 = vpop.eup %14609  ;;  %v5484_v41 = vadd.f32 %v5482_v45, %v5403_v43  ;;  %v5481_v60 = vmul.f32 %v14608_v56, %v5473_v23 }
 0x9f4   :  { %v5487_v0 = vmul.f32 %v14610_v47, %v15914_v2  ;;  %v5490_v50 = vsub.f32 1.0, %v5488_v22 }
 0x9f5   :  { %14611 = vtanh.f32 %v5484_v41  ;;  %v5483_v25 = vadd.f32 %v5481_v60, %v5398_v62 }
 0x9f6   :  { %v5489_v63 = vsub.f32 1.0, %v5487_v0  ;;  %v5492_v29 = vmul.f32 %v5490_v50, %v15928_v44 }
 0x9f7   :  { %14613 = vtanh.f32 %v5483_v25 }
 0x9f8   :  { %v5491_v10 = vmul.f32 %v5489_v63, %v15930_v30 }
 0x9ff   :  { %v14612_v51 = vpop.eup %14611 }
 0xa00   :  { %v5494_v13 = vmul.f32 %v14612_v51, %v5488_v22 }
 0xa01   :  { %v14614_v36 = vpop.eup %14613 }
 0xa02   :  { %v15972_v28 = vadd.f32 %v5494_v13, %v5492_v29  ;;  %v5493_v27 = vmul.f32 %v14614_v36, %v5487_v0 }
 0xa04   :  { %v15974_v52 = vadd.f32 %v5493_v27, %v5491_v10 }
 0xa06   :  { %v14100_v2 = vpack.c.bf16 %v15972_v28, %v15974_v52 }
 0xa08   :  { %14101 = vmatprep.subr.bf16.mxu1 %v14100_v2  ;;  %14109 = vmatprep.subr.bf16.mxu0 %v14100_v2 }
 0xa09   :  { %14103 = vmatpush3.bf16.msra.mxu1 %v14100_v2  ;;  %14111 = vmatpush3.bf16.msra.mxu0 %v14100_v2 }
 0xa0a   :  { %14105 = vmatprep.subr.bf16.mxu1 %v14104_v32  ;;  %14113 = vmatprep.subr.bf16.mxu0 %v14104_v32 }
 0xa0c   :  { %13489 = vmatmul.mubr.msk.f32.vlgmr.msra.gmra.mrb[40].mxu1 %vm17309_vm0, %v15648_v33  ;;  %13503 = vmatmul.mubr.msk.f32.vlgmr.msra.gmra.mrb[42].mxu0 %vm17309_vm0, %v15671_v49 }
 0xa0d   :  { %14107 = vmatpush3.bf16.msra.mxu1 %v14104_v32  ;;  %14115 = vmatpush3.bf16.msra.mxu0 %v14104_v32 }
 0xa0e   :  { %14117 = vmatprep.subr.bf16.mxu1 %v14104_v32  ;;  %14121 = vmatprep.subr.bf16.mxu0 %v14100_v2 }
 0xa0f   :  { %13495 = vmatprep.mubr.msk.f32.mxu1 %vm17309_vm0, %v15665_v48  ;;  %13509 = vmatprep.mubr.msk.f32.mxu0 %vm17309_vm0, %v15676_v5 }
 0xa14   :  { %13496 = vmatmul.mubr.msk.f32.vlgmr.msra.gmra.mrb[40].mxu1 %vm17309_vm0, %v15687_v1  ;;  %13510 = vmatmul.mubr.msk.f32.vlgmr.msra.gmra.mrb[42].mxu0 %vm17309_vm0, %v15704_v11 }
 0xa15   :  { %14119 = vmatpush3.bf16.msra.mxu1 %v14104_v32  ;;  %14123 = vmatpush3.bf16.msra.mxu0 %v14100_v2 }
 0xa16   :  { %13516 = vmatprep.mubr.msk.f32.mxu1 %vm17309_vm0, %v15694_v6  ;;  %13523 = vmatprep.mubr.msk.f32.mxu0 %vm17309_vm0, %v15714_v19 }
 0xa18   :  { %13517 = vmatmul.mubr.msk.f32.vlgmr.msra.gmra.mrb[42].mxu1 %vm17309_vm0, %v15709_v12  ;;  %13524 = vmatmul.mubr.msk.f32.vlgmr.msra.gmra.mrb[44].mxu0 %vm17309_vm0, %v15726_v24 }
 0xa19   :  { %13530 = vmatprep.mubr.msk.f32.mxu1 %vm17309_vm0, %v15638_v20  ;;  %13544 = vmatprep.mubr.msk.f32.mxu0 %vm17309_vm0, %v15660_v34 }
 0xae7   :  { %v13497_v33 = vpop.f32.mrb[40].mxu1  ;;  %v13511_v48 = vpop.f32.mrb[42].mxu0 }
 0xae8   :  { %v5648_v16 = vadd.f32 %v13497_v33, %v15808_v15  ;;  %v5812_v44 = vadd.f32 %v13511_v48, %v15853_v61  ;;  %v5638_v30 = vpop.f32.mrb[41].mxu1  ;;  %v5802_v58 = vpop.f32.mrb[43].mxu0 }
 0xae9   :  { %v5647_v57 = vadd.f32 %v5638_v30, %v15835_v46  ;;  %v5811_v21 = vadd.f32 %v5802_v58, %v15863_v40 }
 0xaea   :  { %v12443_v39 = vmul.f32 -1.442695, %v5648_v16  ;;  %v12449_v59 = vmul.f32 -1.442695, %v5812_v44 }
 0xaeb   :  { %v12442_v42 = vmul.f32 -1.442695, %v5647_v57  ;;  %v12448_v53 = vmul.f32 -1.442695, %v5811_v21  ;;  %v13518_v20 = vpop.f32.mrb[42].mxu1  ;;  %v13525_v31 = vpop.f32.mrb[44].mxu0 }
 0xaec   :  { %14615 = vpow2.f32 %v12443_v39  ;;  %v5891_v34 = vpop.f32.mrb[43].mxu1  ;;  %v5966_v17 = vpop.f32.mrb[45].mxu0  ;;  %v5972_v62 = vadd.f32 %v13525_v31, %v15858_v54  ;;  %v5897_v25 = vadd.f32 %v13518_v20, %v15867_v14 }
 0xaed   :  { %14617 = vpow2.f32 %v12449_v59  ;;  %v5967_v63 = vadd.f32 %v5966_v17, %v15875_v26  ;;  %v5892_v10 = vadd.f32 %v5891_v34, %v15886_v8  ;;  %v17356_v59 = vld [vmem:[#allocation20_spill] sm:$0xff] }
 0xaee   :  { %14619 = vpow2.f32 %v12442_v42  ;;  %v17357_v42 = vld [vmem:[#allocation19_spill] sm:$0xff] }
 0xaef   :  { %14621 = vpow2.f32 %v12448_v53  ;;  %v14128_v53 = vpack.c.bf16 %v17357_v42, %v17356_v59 }
 0xaf6   :  { %v14616_v7 = vpop.eup %14615 }
 0xaf7   :  { %v14618_v43 = vpop.eup %14617  ;;  %v5656_v45 = vadd.f32 1.0, %v14616_v7 }
 0xaf8   :  { %v14620_v23 = vpop.eup %14619  ;;  %v5820_v56 = vadd.f32 1.0, %v14618_v43 }
 0xaf9   :  { %v14622_v22 = vpop.eup %14621  ;;  %14623 = vrcp.f32 %v5656_v45  ;;  %v5655_v47 = vadd.f32 1.0, %v14620_v23 }
 0xafa   :  { %14625 = vrcp.f32 %v5820_v56  ;;  %v5819_v41 = vadd.f32 1.0, %v14622_v22 }
 0xafb   :  { %14627 = vrcp.f32 %v5655_v47 }
 0xafc   :  { %14629 = vrcp.f32 %v5819_v41 }
 0xb03   :  { %v14624_v60 = vpop.eup %14623 }
 0xb04   :  { %v14626_v0 = vpop.eup %14625  ;;  %v5976_v50 = vmul.f32 %v14624_v60, %v5972_v62 }
 0xb05   :  { %v14628_v51 = vpop.eup %14627  ;;  %v5982_v29 = vmul.f32 %v14626_v0, %v15916_v18 }
 0xb06   :  { %v14630_v13 = vpop.eup %14629  ;;  %v5978_v36 = vadd.f32 %v5976_v50, %v5897_v25  ;;  %v5975_v27 = vmul.f32 %v14628_v51, %v5967_v63 }
 0xb07   :  { %v5981_v2 = vmul.f32 %v14630_v13, %v15916_v18  ;;  %v5984_v32 = vsub.f32 1.0, %v5982_v29 }
 0xb08   :  { %14631 = vtanh.f32 %v5978_v36  ;;  %v5977_v37 = vadd.f32 %v5975_v27, %v5892_v10 }
 0xb09   :  { %v5983_v33 = vsub.f32 1.0, %v5981_v2  ;;  %v5986_v16 = vmul.f32 %v5984_v32, %v15972_v28  ;;  %v16027_v28 = vld [vmem:[%s17254_s12 + $0x8] sm:$0xff] }
 0xb0a   :  { %14633 = vtanh.f32 %v5977_v37 }
 0xb0b   :  { %v5985_v58 = vmul.f32 %v5983_v33, %v15974_v52  ;;  %v16036_v52 = vld [vmem:[%s17253_s11] sm:$0xff] }
 0xb12   :  { %v14632_v48 = vpop.eup %14631 }
 0xb13   :  { %v5988_v44 = vmul.f32 %v14632_v48, %v5982_v29 }
 0xb14   :  { %v14634_v30 = vpop.eup %14633 }
 0xb15   :  { %v16016_v57 = vadd.f32 %v5988_v44, %v5986_v16  ;;  %v5987_v21 = vmul.f32 %v14634_v30, %v5981_v2 }
 0xb17   :  { %v16018_v39 = vadd.f32 %v5987_v21, %v5985_v58 }
 0xb19   :  { %v14124_v18 = vpack.c.bf16 %v16016_v57, %v16018_v39 }
 0xb1b   :  { %14125 = vmatprep.subr.bf16.mxu1 %v14124_v18  ;;  %14133 = vmatprep.subr.bf16.mxu0 %v14124_v18 }
 0xb1c   :  { %14127 = vmatpush3.bf16.msra.mxu1 %v14124_v18  ;;  %14135 = vmatpush3.bf16.msra.mxu0 %v14124_v18 }
 0xb1d   :  { %14129 = vmatprep.subr.bf16.mxu1 %v14128_v53  ;;  %14137 = vmatprep.subr.bf16.mxu0 %v14128_v53 }
 0xb1f   :  { %13531 = vmatmul.mubr.msk.f32.vlgmr.msra.gmra.mrb[44].mxu1 %vm17309_vm0, %v16027_v28  ;;  %13545 = vmatmul.mubr.msk.f32.vlgmr.msra.gmra.mrb[46].mxu0 %vm17309_vm0, %v15671_v49  ;;  %v16057_v49 = vld [vmem:[%s17254_s12] sm:$0xff] }
 0xb20   :  { %14131 = vmatpush3.bf16.msra.mxu1 %v14128_v53  ;;  %14139 = vmatpush3.bf16.msra.mxu0 %v14128_v53 }
 0xb21   :  { %14141 = vmatprep.subr.bf16.mxu1 %v14128_v53  ;;  %14145 = vmatprep.subr.bf16.mxu0 %v14124_v18 }
 0xb22   :  { %13537 = vmatprep.mubr.msk.f32.mxu1 %vm17309_vm0, %v16036_v52  ;;  %13551 = vmatprep.mubr.msk.f32.mxu0 %vm17309_vm0, %v15676_v5  ;;  %v16064_v5 = vld [vmem:[%s17254_s12 + $0x10] sm:$0xff] }
 0xb27   :  { %13538 = vmatmul.mubr.msk.f32.vlgmr.msra.gmra.mrb[44].mxu1 %vm17309_vm0, %v15687_v1  ;;  %13552 = vmatmul.mubr.msk.f32.vlgmr.msra.gmra.mrb[46].mxu0 %vm17309_vm0, %v15704_v11 }
 0xb28   :  { %14143 = vmatpush3.bf16.msra.mxu1 %v14128_v53  ;;  %14147 = vmatpush3.bf16.msra.mxu0 %v14124_v18 }
 0xb29   :  { %13558 = vmatprep.mubr.msk.f32.mxu1 %vm17309_vm0, %v15694_v6  ;;  %13565 = vmatprep.mubr.msk.f32.mxu0 %vm17309_vm0, %v15714_v19 }
 0xb2b   :  { %13559 = vmatmul.mubr.msk.f32.vlgmr.msra.gmra.mrb[46].mxu1 %vm17309_vm0, %v15709_v12  ;;  %13566 = vmatmul.mubr.msk.f32.vlgmr.msra.gmra.mrb[48].mxu0 %vm17309_vm0, %v15726_v24 }
 0xb2c   :  { %13572 = vmatprep.mubr.msk.f32.mxu1 %vm17309_vm0, %v16057_v49  ;;  %13586 = vmatprep.mubr.msk.f32.mxu0 %vm17309_vm0, %v16064_v5 }
 0xbfa   :  { %v13539_v1 = vpop.f32.mrb[44].mxu1  ;;  %v13553_v6 = vpop.f32.mrb[46].mxu0 }
 0xbfb   :  { %v6142_v11 = vadd.f32 %v13539_v1, %v15808_v15  ;;  %v6306_v12 = vadd.f32 %v13553_v6, %v15853_v61  ;;  %v6132_v19 = vpop.f32.mrb[45].mxu1  ;;  %v6296_v24 = vpop.f32.mrb[47].mxu0 }
 0xbfc   :  { %v6141_v20 = vadd.f32 %v6132_v19, %v15835_v46  ;;  %v6305_v31 = vadd.f32 %v6296_v24, %v15863_v40  ;;  %v14809_v19 = vld [vmem:[#allocation2 + $0x48] sm:$0xff]  ;;  %v14810_v24 = vld [vmem:[#allocation2 + $0x40] sm:$0xff] }
 0xbfd   :  { %v12459_v34 = vmul.f32 -1.442695, %v6142_v11  ;;  %v12465_v17 = vmul.f32 -1.442695, %v6306_v12 }
 0xbfe   :  { %v12458_v7 = vmul.f32 -1.442695, %v6141_v20  ;;  %v12464_v43 = vmul.f32 -1.442695, %v6305_v31  ;;  %v13560_v45 = vpop.f32.mrb[46].mxu1  ;;  %v13567_v23 = vpop.f32.mrb[48].mxu0  ;;  %v14152_v20 = vpack.c.bf16 %v14809_v19, %v14810_v24 }
 0xbff   :  { %14635 = vpow2.f32 %v12459_v34  ;;  %v6385_v56 = vpop.f32.mrb[47].mxu1  ;;  %v6460_v22 = vpop.f32.mrb[49].mxu0  ;;  %v6466_v51 = vadd.f32 %v13567_v23, %v15858_v54  ;;  %v6391_v36 = vadd.f32 %v13560_v45, %v15867_v14  ;;  %v16107_v31 = vld [vmem:[%s17253_s11 + $0x8] sm:$0xff]  ;;  %v16114_v34 = vld [vmem:[%s17253_s11 + $0x18] sm:$0xff] }
 0xc00   :  { %14637 = vpow2.f32 %v12465_v17  ;;  %v6461_v27 = vadd.f32 %v6460_v22, %v15875_v26  ;;  %v6386_v48 = vadd.f32 %v6385_v56, %v15886_v8  ;;  %v16121_v17 = vld [vmem:[%s17253_s11 + $0x20] sm:$0xff]  ;;  %v16142_v45 = vld [vmem:[%s17254_s12 + $0x28] sm:$0xff] }
 0xc01   :  { %14639 = vpow2.f32 %v12458_v7  ;;  %v16128_v7 = vld [vmem:[%s17254_s12 + $0x20] sm:$0xff] }
 0xc02   :  { %14641 = vpow2.f32 %v12464_v43  ;;  %v16135_v43 = vld [vmem:[%s17253_s11 + $0x28] sm:$0xff] }
 0xc09   :  { %v14636_v47 = vpop.eup %14635 }
 0xc0a   :  { %v14638_v41 = vpop.eup %14637  ;;  %v6150_v62 = vadd.f32 1.0, %v14636_v47 }
 0xc0b   :  { %v14640_v60 = vpop.eup %14639  ;;  %v6314_v0 = vadd.f32 1.0, %v14638_v41 }
 0xc0c   :  { %v14642_v25 = vpop.eup %14641  ;;  %14643 = vrcp.f32 %v6150_v62  ;;  %v6149_v50 = vadd.f32 1.0, %v14640_v60 }
 0xc0d   :  { %14645 = vrcp.f32 %v6314_v0  ;;  %v6313_v63 = vadd.f32 1.0, %v14642_v25 }
 0xc0e   :  { %14647 = vrcp.f32 %v6149_v50 }
 0xc0f   :  { %14649 = vrcp.f32 %v6313_v63 }
 0xc16   :  { %v14644_v29 = vpop.eup %14643 }
 0xc17   :  { %v14646_v13 = vpop.eup %14645  ;;  %v6470_v10 = vmul.f32 %v14644_v29, %v6466_v51 }
 0xc18   :  { %v14648_v2 = vpop.eup %14647  ;;  %v6476_v37 = vmul.f32 %v14646_v13, %v15918_v38 }
 0xc19   :  { %v14650_v32 = vpop.eup %14649  ;;  %v6472_v33 = vadd.f32 %v6470_v10, %v6391_v36  ;;  %v6469_v16 = vmul.f32 %v14648_v2, %v6461_v27 }
 0xc1a   :  { %v6475_v44 = vmul.f32 %v14650_v32, %v15918_v38  ;;  %v6478_v58 = vsub.f32 1.0, %v6476_v37 }
 0xc1b   :  { %14651 = vtanh.f32 %v6472_v33  ;;  %v6471_v30 = vadd.f32 %v6469_v16, %v6386_v48 }
 0xc1c   :  { %v6477_v21 = vsub.f32 1.0, %v6475_v44  ;;  %v6480_v59 = vmul.f32 %v6478_v58, %v16016_v57  ;;  %v16091_v57 = vld [vmem:[%s17254_s12 + $0x18] sm:$0xff] }
 0xc1d   :  { %14653 = vtanh.f32 %v6471_v30 }
 0xc1e   :  { %v6479_v1 = vmul.f32 %v6477_v21, %v16018_v39  ;;  %v16100_v39 = vld [vmem:[%s17253_s11 + $0x10] sm:$0xff] }
 0xc25   :  { %v14652_v18 = vpop.eup %14651 }
 0xc26   :  { %v6482_v42 = vmul.f32 %v14652_v18, %v6476_v37 }
 0xc27   :  { %v14654_v53 = vpop.eup %14653 }
 0xc28   :  { %v16080_v6 = vadd.f32 %v6482_v42, %v6480_v59  ;;  %v6481_v11 = vmul.f32 %v14654_v53, %v6475_v44 }
 0xc2a   :  { %v16082_v12 = vadd.f32 %v6481_v11, %v6479_v1 }
 0xc2c   :  { %v14148_v38 = vpack.c.bf16 %v16080_v6, %v16082_v12 }
 0xc2e   :  { %14149 = vmatprep.subr.bf16.mxu1 %v14148_v38  ;;  %14157 = vmatprep.subr.bf16.mxu0 %v14148_v38 }
 0xc2f   :  { %14151 = vmatpush3.bf16.msra.mxu1 %v14148_v38  ;;  %14159 = vmatpush3.bf16.msra.mxu0 %v14148_v38 }
 0xc30   :  { %14153 = vmatprep.subr.bf16.mxu1 %v14152_v20  ;;  %14161 = vmatprep.subr.bf16.mxu0 %v14152_v20 }
 0xc32   :  { %13573 = vmatmul.mubr.msk.f32.vlgmr.msra.gmra.mrb[48].mxu1 %vm17309_vm0, %v16027_v28  ;;  %13587 = vmatmul.mubr.msk.f32.vlgmr.msra.gmra.mrb[50].mxu0 %vm17309_vm0, %v16091_v57 }
 0xc33   :  { %14155 = vmatpush3.bf16.msra.mxu1 %v14152_v20  ;;  %14163 = vmatpush3.bf16.msra.mxu0 %v14152_v20 }
 0xc34   :  { %14165 = vmatprep.subr.bf16.mxu1 %v14152_v20  ;;  %14169 = vmatprep.subr.bf16.mxu0 %v14148_v38 }
 0xc35   :  { %13579 = vmatprep.mubr.msk.f32.mxu1 %vm17309_vm0, %v16036_v52  ;;  %13593 = vmatprep.mubr.msk.f32.mxu0 %vm17309_vm0, %v16100_v39 }
 0xc3a   :  { %13580 = vmatmul.mubr.msk.f32.vlgmr.msra.gmra.mrb[48].mxu1 %vm17309_vm0, %v16107_v31  ;;  %13594 = vmatmul.mubr.msk.f32.vlgmr.msra.gmra.mrb[50].mxu0 %vm17309_vm0, %v16114_v34 }
 0xc3b   :  { %14167 = vmatpush3.bf16.msra.mxu1 %v14152_v20  ;;  %14171 = vmatpush3.bf16.msra.mxu0 %v14148_v38 }
 0xc3c   :  { %13600 = vmatprep.mubr.msk.f32.mxu1 %vm17309_vm0, %v16121_v17  ;;  %13607 = vmatprep.mubr.msk.f32.mxu0 %vm17309_vm0, %v16128_v7 }
 0xc3e   :  { %13601 = vmatmul.mubr.msk.f32.vlgmr.msra.gmra.mrb[50].mxu1 %vm17309_vm0, %v16135_v43  ;;  %13608 = vmatmul.mubr.msk.f32.vlgmr.msra.gmra.mrb[52].mxu0 %vm17309_vm0, %v16142_v45 }
 0xc3f   :  { %13614 = vmatprep.mubr.msk.f32.mxu1 %vm17309_vm0, %v16057_v49  ;;  %13628 = vmatprep.mubr.msk.f32.mxu0 %vm17309_vm0, %v16064_v5 }
 0xd0d   :  { %v13581_v23 = vpop.f32.mrb[48].mxu1  ;;  %v13595_v56 = vpop.f32.mrb[50].mxu0 }
 0xd0e   :  { %v6636_v22 = vadd.f32 %v13581_v23, %v15808_v15  ;;  %v6800_v47 = vadd.f32 %v13595_v56, %v15853_v61  ;;  %v6626_v41 = vpop.f32.mrb[49].mxu1  ;;  %v6790_v62 = vpop.f32.mrb[51].mxu0 }
 0xd0f   :  { %v6635_v60 = vadd.f32 %v6626_v41, %v15835_v46  ;;  %v6799_v0 = vadd.f32 %v6790_v62, %v15863_v40 }
 0xd10   :  { %v12475_v25 = vmul.f32 -1.442695, %v6636_v22  ;;  %v12481_v50 = vmul.f32 -1.442695, %v6800_v47 }
 0xd11   :  { %v12474_v63 = vmul.f32 -1.442695, %v6635_v60  ;;  %v12480_v51 = vmul.f32 -1.442695, %v6799_v0  ;;  %v13602_v29 = vpop.f32.mrb[50].mxu1  ;;  %v13609_v13 = vpop.f32.mrb[52].mxu0 }
 0xd12   :  { %14655 = vpow2.f32 %v12475_v25  ;;  %v6879_v36 = vpop.f32.mrb[51].mxu1  ;;  %v6954_v10 = vpop.f32.mrb[53].mxu0  ;;  %v6960_v30 = vadd.f32 %v13609_v13, %v15858_v54  ;;  %v6885_v18 = vadd.f32 %v13602_v29, %v15867_v14  ;;  %v14820_v29 = vld [vmem:[#allocation2 + $0x50] sm:$0xff] }
 0xd13   :  { %14657 = vpow2.f32 %v12481_v50  ;;  %v6955_v42 = vadd.f32 %v6954_v10, %v15875_v26  ;;  %v6880_v19 = vadd.f32 %v6879_v36, %v15886_v8 }
 0xd14   :  { %14659 = vpow2.f32 %v12474_v63 }
 0xd15   :  { %14661 = vpow2.f32 %v12480_v51  ;;  %v14819_v51 = vld [vmem:[#allocation2 + $0x58] sm:$0xff] }
 0xd16   :  { %v14176_v13 = vpack.c.bf16 %v14819_v51, %v14820_v29 }
 0xd1c   :  { %v14656_v27 = vpop.eup %14655 }
 0xd1d   :  { %v14658_v2 = vpop.eup %14657  ;;  %v6644_v37 = vadd.f32 1.0, %v14656_v27 }
 0xd1e   :  { %v14660_v32 = vpop.eup %14659  ;;  %v6808_v33 = vadd.f32 1.0, %v14658_v2 }
 0xd1f   :  { %v14662_v48 = vpop.eup %14661  ;;  %14663 = vrcp.f32 %v6644_v37  ;;  %v6643_v16 = vadd.f32 1.0, %v14660_v32 }
 0xd20   :  { %14665 = vrcp.f32 %v6808_v33  ;;  %v6807_v44 = vadd.f32 1.0, %v14662_v48 }
 0xd21   :  { %14667 = vrcp.f32 %v6643_v16 }
 0xd22   :  { %14669 = vrcp.f32 %v6807_v44 }
 0xd29   :  { %v14664_v58 = vpop.eup %14663 }
 0xd2a   :  { %v14666_v21 = vpop.eup %14665  ;;  %v6964_v59 = vmul.f32 %v14664_v58, %v6960_v30 }
 0xd2b   :  { %v14668_v53 = vpop.eup %14667  ;;  %v6970_v1 = vmul.f32 %v14666_v21, %v15920_v55 }
 0xd2c   :  { %v14670_v11 = vpop.eup %14669  ;;  %v6966_v38 = vadd.f32 %v6964_v59, %v6885_v18  ;;  %v6963_v24 = vmul.f32 %v14668_v53, %v6955_v42 }
 0xd2d   :  { %v6969_v20 = vmul.f32 %v14670_v11, %v15920_v55  ;;  %v6972_v56 = vsub.f32 1.0, %v6970_v1 }
 0xd2e   :  { %14671 = vtanh.f32 %v6966_v38  ;;  %v6965_v23 = vadd.f32 %v6963_v24, %v6880_v19 }
 0xd2f   :  { %v6971_v22 = vsub.f32 1.0, %v6969_v20  ;;  %v6974_v41 = vmul.f32 %v6972_v56, %v16080_v6 }
 0xd30   :  { %14673 = vtanh.f32 %v6965_v23 }
 0xd31   :  { %v6973_v0 = vmul.f32 %v6971_v22, %v16082_v12 }
 0xd38   :  { %v14672_v47 = vpop.eup %14671 }
 0xd39   :  { %v6976_v62 = vmul.f32 %v14672_v47, %v6970_v1 }
 0xd3a   :  { %v14674_v60 = vpop.eup %14673 }
 0xd3b   :  { %v16162_v25 = vadd.f32 %v6976_v62, %v6974_v41  ;;  %v6975_v50 = vmul.f32 %v14674_v60, %v6969_v20 }
 0xd3d   :  { %v16164_v63 = vadd.f32 %v6975_v50, %v6973_v0 }
 0xd3f   :  { %v14172_v55 = vpack.c.bf16 %v16162_v25, %v16164_v63 }
 0xd41   :  { %14173 = vmatprep.subr.bf16.mxu1 %v14172_v55  ;;  %14181 = vmatprep.subr.bf16.mxu0 %v14172_v55 }
 0xd42   :  { %14175 = vmatpush3.bf16.msra.mxu1 %v14172_v55  ;;  %14183 = vmatpush3.bf16.msra.mxu0 %v14172_v55 }
 0xd43   :  { %14177 = vmatprep.subr.bf16.mxu1 %v14176_v13  ;;  %14185 = vmatprep.subr.bf16.mxu0 %v14176_v13 }
 0xd45   :  { %13615 = vmatmul.mubr.msk.f32.vlgmr.msra.gmra.mrb[52].mxu1 %vm17309_vm0, %v16027_v28  ;;  %13629 = vmatmul.mubr.msk.f32.vlgmr.msra.gmra.mrb[54].mxu0 %vm17309_vm0, %v16091_v57 }
 0xd46   :  { %14179 = vmatpush3.bf16.msra.mxu1 %v14176_v13  ;;  %14187 = vmatpush3.bf16.msra.mxu0 %v14176_v13 }
 0xd47   :  { %14189 = vmatprep.subr.bf16.mxu1 %v14176_v13  ;;  %14193 = vmatprep.subr.bf16.mxu0 %v14172_v55 }
 0xd48   :  { %13621 = vmatprep.mubr.msk.f32.mxu1 %vm17309_vm0, %v16036_v52  ;;  %13635 = vmatprep.mubr.msk.f32.mxu0 %vm17309_vm0, %v16100_v39 }
 0xd4d   :  { %13622 = vmatmul.mubr.msk.f32.vlgmr.msra.gmra.mrb[52].mxu1 %vm17309_vm0, %v16107_v31  ;;  %13636 = vmatmul.mubr.msk.f32.vlgmr.msra.gmra.mrb[54].mxu0 %vm17309_vm0, %v16114_v34 }
 0xd4e   :  { %14191 = vmatpush3.bf16.msra.mxu1 %v14176_v13  ;;  %14195 = vmatpush3.bf16.msra.mxu0 %v14172_v55 }
 0xd4f   :  { %13642 = vmatprep.mubr.msk.f32.mxu1 %vm17309_vm0, %v16121_v17  ;;  %13649 = vmatprep.mubr.msk.f32.mxu0 %vm17309_vm0, %v16128_v7 }
 0xd51   :  { %13643 = vmatmul.mubr.msk.f32.vlgmr.msra.gmra.mrb[54].mxu1 %vm17309_vm0, %v16135_v43  ;;  %13650 = vmatmul.mubr.msk.f32.vlgmr.msra.gmra.mrb[56].mxu0 %vm17309_vm0, %v16142_v45 }
 0xd52   :  { %13656 = vmatprep.mubr.msk.f32.mxu1 %vm17309_vm0, %v16057_v49  ;;  %13670 = vmatprep.mubr.msk.f32.mxu0 %vm17309_vm0, %v16064_v5 }
 0xe20   :  { %v13623_v6 = vpop.f32.mrb[52].mxu1  ;;  %v13637_v12 = vpop.f32.mrb[54].mxu0 }
 0xe21   :  { %v7130_v36 = vadd.f32 %v13623_v6, %v15808_v15  ;;  %v7294_v10 = vadd.f32 %v13637_v12, %v15853_v61  ;;  %v7120_v27 = vpop.f32.mrb[53].mxu1  ;;  %v7284_v2 = vpop.f32.mrb[55].mxu0 }
 0xe22   :  { %v7129_v37 = vadd.f32 %v7120_v27, %v15835_v46  ;;  %v7293_v32 = vadd.f32 %v7284_v2, %v15863_v40 }
 0xe23   :  { %v12491_v33 = vmul.f32 -1.442695, %v7130_v36  ;;  %v12497_v48 = vmul.f32 -1.442695, %v7294_v10 }
 0xe24   :  { %v12490_v16 = vmul.f32 -1.442695, %v7129_v37  ;;  %v12496_v44 = vmul.f32 -1.442695, %v7293_v32  ;;  %v13644_v30 = vpop.f32.mrb[54].mxu1  ;;  %v13651_v58 = vpop.f32.mrb[56].mxu0 }
 0xe25   :  { %14675 = vpow2.f32 %v12491_v33  ;;  %v7373_v21 = vpop.f32.mrb[55].mxu1  ;;  %v7448_v18 = vpop.f32.mrb[57].mxu0  ;;  %v7454_v20 = vadd.f32 %v13651_v58, %v15858_v54  ;;  %v7379_v22 = vadd.f32 %v13644_v30, %v15867_v14 }
 0xe26   :  { %14677 = vpow2.f32 %v12497_v48  ;;  %v7449_v41 = vadd.f32 %v7448_v18, %v15875_v26  ;;  %v7374_v55 = vadd.f32 %v7373_v21, %v15886_v8 }
 0xe27   :  { %14679 = vpow2.f32 %v12490_v16  ;;  %v14821_v16 = vld [vmem:[#allocation2 + $0x68] sm:$0xff] }
 0xe28   :  { %14681 = vpow2.f32 %v12496_v44  ;;  %v14822_v44 = vld [vmem:[#allocation2 + $0x60] sm:$0xff] }
 0xe29   :  { %v14200_v30 = vpack.c.bf16 %v14821_v16, %v14822_v44 }
 0xe2f   :  { %v14676_v59 = vpop.eup %14675 }
 0xe30   :  { %v14678_v42 = vpop.eup %14677  ;;  %v7138_v53 = vadd.f32 1.0, %v14676_v59 }
 0xe31   :  { %v14680_v1 = vpop.eup %14679  ;;  %v7302_v11 = vadd.f32 1.0, %v14678_v42 }
 0xe32   :  { %v14682_v38 = vpop.eup %14681  ;;  %14683 = vrcp.f32 %v7138_v53  ;;  %v7137_v19 = vadd.f32 1.0, %v14680_v1 }
 0xe33   :  { %14685 = vrcp.f32 %v7302_v11  ;;  %v7301_v24 = vadd.f32 1.0, %v14682_v38 }
 0xe34   :  { %14687 = vrcp.f32 %v7137_v19 }
 0xe35   :  { %14689 = vrcp.f32 %v7301_v24 }
 0xe3c   :  { %v14684_v23 = vpop.eup %14683 }
 0xe3d   :  { %v14686_v56 = vpop.eup %14685  ;;  %v7458_v47 = vmul.f32 %v14684_v23, %v7454_v20 }
 0xe3e   :  { %v14688_v62 = vpop.eup %14687  ;;  %v7464_v60 = vmul.f32 %v14686_v56, %v15922_v35 }
 0xe3f   :  { %v14690_v0 = vpop.eup %14689  ;;  %v7460_v50 = vadd.f32 %v7458_v47, %v7379_v22  ;;  %v7457_v51 = vmul.f32 %v14688_v62, %v7449_v41 }
 0xe40   :  { %v7463_v29 = vmul.f32 %v14690_v0, %v15922_v35  ;;  %v7466_v6 = vsub.f32 1.0, %v7464_v60 }
 0xe41   :  { %14691 = vtanh.f32 %v7460_v50  ;;  %v7459_v13 = vadd.f32 %v7457_v51, %v7374_v55 }
 0xe42   :  { %v7465_v12 = vsub.f32 1.0, %v7463_v29  ;;  %v7468_v10 = vmul.f32 %v7466_v6, %v16162_v25 }
 0xe43   :  { %14693 = vtanh.f32 %v7459_v13 }
 0xe44   :  { %v7467_v37 = vmul.f32 %v7465_v12, %v16164_v63 }
 0xe4b   :  { %v14692_v36 = vpop.eup %14691 }
 0xe4c   :  { %v7470_v27 = vmul.f32 %v14692_v36, %v7464_v60 }
 0xe4d   :  { %v14694_v2 = vpop.eup %14693 }
 0xe4e   :  { %v16204_v32 = vadd.f32 %v7470_v27, %v7468_v10  ;;  %v7469_v33 = vmul.f32 %v14694_v2, %v7463_v29 }
 0xe50   :  { %v16206_v48 = vadd.f32 %v7469_v33, %v7467_v37 }
 0xe52   :  { %v14196_v35 = vpack.c.bf16 %v16204_v32, %v16206_v48 }
 0xe54   :  { %14197 = vmatprep.subr.bf16.mxu1 %v14196_v35  ;;  %14205 = vmatprep.subr.bf16.mxu0 %v14196_v35 }
 0xe55   :  { %14199 = vmatpush3.bf16.msra.mxu1 %v14196_v35  ;;  %14207 = vmatpush3.bf16.msra.mxu0 %v14196_v35 }
 0xe56   :  { %14201 = vmatprep.subr.bf16.mxu1 %v14200_v30  ;;  %14209 = vmatprep.subr.bf16.mxu0 %v14200_v30 }
 0xe58   :  { %13657 = vmatmul.mubr.msk.f32.vlgmr.msra.gmra.mrb[56].mxu1 %vm17309_vm0, %v16027_v28  ;;  %13671 = vmatmul.mubr.msk.f32.vlgmr.msra.gmra.mrb[58].mxu0 %vm17309_vm0, %v16091_v57 }
 0xe59   :  { %14203 = vmatpush3.bf16.msra.mxu1 %v14200_v30  ;;  %14211 = vmatpush3.bf16.msra.mxu0 %v14200_v30 }
 0xe5a   :  { %14213 = vmatprep.subr.bf16.mxu1 %v14200_v30  ;;  %14217 = vmatprep.subr.bf16.mxu0 %v14196_v35 }
 0xe5b   :  { %13663 = vmatprep.mubr.msk.f32.mxu1 %vm17309_vm0, %v16036_v52  ;;  %13677 = vmatprep.mubr.msk.f32.mxu0 %vm17309_vm0, %v16100_v39 }
 0xe60   :  { %13664 = vmatmul.mubr.msk.f32.vlgmr.msra.gmra.mrb[56].mxu1 %vm17309_vm0, %v16107_v31  ;;  %13678 = vmatmul.mubr.msk.f32.vlgmr.msra.gmra.mrb[58].mxu0 %vm17309_vm0, %v16114_v34 }
 0xe61   :  { %14215 = vmatpush3.bf16.msra.mxu1 %v14200_v30  ;;  %14219 = vmatpush3.bf16.msra.mxu0 %v14196_v35 }
 0xe62   :  { %13684 = vmatprep.mubr.msk.f32.mxu1 %vm17309_vm0, %v16121_v17  ;;  %13691 = vmatprep.mubr.msk.f32.mxu0 %vm17309_vm0, %v16128_v7 }
 0xe64   :  { %13685 = vmatmul.mubr.msk.f32.vlgmr.msra.gmra.mrb[58].mxu1 %vm17309_vm0, %v16135_v43  ;;  %13692 = vmatmul.mubr.msk.f32.vlgmr.msra.gmra.mrb[60].mxu0 %vm17309_vm0, %v16142_v45 }
 0xe65   :  { %13698 = vmatprep.mubr.msk.f32.mxu1 %vm17309_vm0, %v16057_v49  ;;  %13712 = vmatprep.mubr.msk.f32.mxu0 %vm17309_vm0, %v16064_v5 }
 0xf33   :  { %v13665_v25 = vpop.f32.mrb[56].mxu1  ;;  %v13679_v63 = vpop.f32.mrb[58].mxu0 }
 0xf34   :  { %v7624_v58 = vadd.f32 %v13665_v25, %v15808_v15  ;;  %v7788_v21 = vadd.f32 %v13679_v63, %v15853_v61  ;;  %v7614_v18 = vpop.f32.mrb[57].mxu1  ;;  %v7778_v59 = vpop.f32.mrb[59].mxu0 }
 0xf35   :  { %v7623_v42 = vadd.f32 %v7614_v18, %v15835_v46  ;;  %v7787_v53 = vadd.f32 %v7778_v59, %v15863_v40 }
 0xf36   :  { %v12507_v1 = vmul.f32 -1.442695, %v7624_v58  ;;  %v12513_v11 = vmul.f32 -1.442695, %v7788_v21 }
 0xf37   :  { %v12506_v38 = vmul.f32 -1.442695, %v7623_v42  ;;  %v12512_v19 = vmul.f32 -1.442695, %v7787_v53  ;;  %v13686_v49 = vpop.f32.mrb[58].mxu1  ;;  %v13693_v24 = vpop.f32.mrb[60].mxu0 }
 0xf38   :  { %14695 = vpow2.f32 %v12507_v1  ;;  %v7867_v5 = vpop.f32.mrb[59].mxu1  ;;  %v7942_v20 = vpop.f32.mrb[61].mxu0  ;;  %v7948_v50 = vadd.f32 %v13693_v24, %v15858_v54  ;;  %v7873_v29 = vadd.f32 %v13686_v49, %v15867_v14 }
 0xf39   :  { %14697 = vpow2.f32 %v12513_v11  ;;  %v7943_v6 = vadd.f32 %v7942_v20, %v15875_v26  ;;  %v7868_v2 = vadd.f32 %v7867_v5, %v15886_v8 }
 0xf3a   :  { %14699 = vpow2.f32 %v12506_v38 }
 0xf3b   :  { %14701 = vpow2.f32 %v12512_v19 }
 0xf42   :  { %v14696_v23 = vpop.eup %14695 }
 0xf43   :  { %v14698_v56 = vpop.eup %14697  ;;  %v7632_v22 = vadd.f32 1.0, %v14696_v23 }
 0xf44   :  { %v14700_v47 = vpop.eup %14699  ;;  %v7796_v41 = vadd.f32 1.0, %v14698_v56 }
 0xf45   :  { %v14702_v62 = vpop.eup %14701  ;;  %14703 = vrcp.f32 %v7632_v22  ;;  %v7631_v60 = vadd.f32 1.0, %v14700_v47 }
 0xf46   :  { %14705 = vrcp.f32 %v7796_v41  ;;  %v7795_v0 = vadd.f32 1.0, %v14702_v62  ;;  %v8479_v62 = vpop.permute.xlu1 %8478 }
 0xf47   :  { %14707 = vrcp.f32 %v7631_v60 }
 0xf48   :  { %14709 = vrcp.f32 %v7795_v0  ;;  %v8474_v0 = vpop.permute.xlu0 %8473 }
 0xf4f   :  { %v14704_v55 = vpop.eup %14703 }
 0xf50   :  { %v14706_v51 = vpop.eup %14705  ;;  %v7952_v13 = vmul.f32 %v14704_v55, %v7948_v50 }
 0xf51   :  { %v14708_v12 = vpop.eup %14707  ;;  %v7958_v36 = vmul.f32 %v14706_v51, %v15924_v3 }
 0xf52   :  { %v14710_v10 = vpop.eup %14709  ;;  %v7954_v27 = vadd.f32 %v7952_v13, %v7873_v29  ;;  %v7951_v37 = vmul.f32 %v14708_v12, %v7943_v6 }
 0xf53   :  { %v7957_v33 = vmul.f32 %v14710_v10, %v15924_v3  ;;  %v7960_v16 = vsub.f32 1.0, %v7958_v36 }
 0xf54   :  { %14711 = vtanh.f32 %v7954_v27  ;;  %v7953_v35 = vadd.f32 %v7951_v37, %v7868_v2 }
 0xf55   :  { %v7959_v44 = vsub.f32 1.0, %v7957_v33  ;;  %v7962_v25 = vmul.f32 %v7960_v16, %v16204_v32  ;;  %v17358_v32 = vld [vmem:[#allocation17_spill] sm:$0xff] }
 0xf56   :  { %14713 = vtanh.f32 %v7953_v35  ;;  %v17364_v35 = vld [vmem:[#allocation10_spill] sm:$0xff] }
 0xf57   :  { %v7961_v21 = vmul.f32 %v7959_v44, %v16206_v48  ;;  %v17359_v48 = vld [vmem:[#allocation9_spill] sm:$0xff]  ;;  %v8819_v16 = vmul.f32 %v17364_v35, %v17358_v32 }
 0xf58   :  { %v8562_v53 = vmul.f32 %v17359_v48, %v17358_v32 }
 0xf5e   :  { %v14712_v30 = vpop.eup %14711 }
 0xf5f   :  { %v7964_v63 = vmul.f32 %v14712_v30, %v7958_v36  ;;  %v16341_v30 = vld [vmem:[%s17365_s29] sm:$0x1] }
 0xf60   :  { %v14714_v58 = vpop.eup %14713 }
 0xf61   :  { %v16246_v18 = vadd.f32 %v7964_v63, %v7962_v25  ;;  %v7963_v59 = vmul.f32 %v14714_v58, %v7957_v33 }
 0xf63   :  { %v16248_v42 = vadd.f32 %v7963_v59, %v7961_v21 }
 0xf65   :  { %v14220_v3 = vpack.c.bf16 %v16246_v18, %v16248_v42 }
 0xf67   :  { %14221 = vmatprep.subr.bf16.mxu1 %v14220_v3  ;;  %14229 = vmatprep.subr.bf16.mxu0 %v14220_v3 }
 0xf68   :  { %14223 = vmatpush3.bf16.msra.mxu1 %v14220_v3  ;;  %14231 = vmatpush3.bf16.msra.mxu0 %v14220_v3 }
 0xf69   :  { %14225 = vmatprep.subr.bf16.mxu1 %v15881_v9  ;;  %14233 = vmatprep.subr.bf16.mxu0 %v15881_v9 }
 0xf6b   :  { %13699 = vmatmul.mubr.msk.f32.vlgmr.msra.gmra.mrb[60].mxu1 %vm17309_vm0, %v16027_v28  ;;  %13713 = vmatmul.mubr.msk.f32.vlgmr.msra.gmra.mrb[62].mxu0 %vm17309_vm0, %v16091_v57  ;;  %v8465_v28 = vld [vmem:[%s17360_s20 + $0x20] sm:$0xff]  ;;  %v16297_v57 = vld [vmem:[%s17360_s20 + $0x18] sm:$0xff] }
 0xf6c   :  { %14227 = vmatpush3.bf16.msra.mxu1 %v15881_v9  ;;  %14235 = vmatpush3.bf16.msra.mxu0 %v15881_v9 }
 0xf6d   :  { %14237 = vmatprep.subr.bf16.mxu1 %v15881_v9  ;;  %14241 = vmatprep.subr.bf16.mxu0 %v14220_v3 }
 0xf6e   :  { %13705 = vmatprep.mubr.msk.f32.mxu1 %vm17309_vm0, %v16036_v52  ;;  %13719 = vmatprep.mubr.msk.f32.mxu0 %vm17309_vm0, %v16100_v39  ;;  %v16283_v52 = vld [vmem:[%s17360_s20 + $0x10] sm:$0xff]  ;;  %v16304_v39 = vld [vmem:[%s17360_s20] sm:$0xff] }
 0xf73   :  { %13706 = vmatmul.mubr.msk.f32.vlgmr.msra.gmra.mrb[60].mxu1 %vm17309_vm0, %v16107_v31  ;;  %13720 = vmatmul.mubr.msk.f32.vlgmr.msra.gmra.mrb[62].mxu0 %vm17309_vm0, %v16114_v34  ;;  %v16316_v31 = vld [vmem:[%s17360_s20 + $0x8] sm:$0xff]  ;;  %v17297_v34 = vmov 0.0|0.0  }
 0xf74   :  { %14239 = vmatpush3.bf16.msra.mxu1 %v15881_v9  ;;  %14243 = vmatpush3.bf16.msra.mxu0 %v14220_v3  ;;  %v8466_v9 = vld [vmem:[%s17360_s20 + $0x28] sm:$0xff] }
 0xf75   :  { %13726 = vmatprep.mubr.msk.f32.mxu1 %vm17309_vm0, %v16121_v17  ;;  %13733 = vmatprep.mubr.msk.f32.mxu0 %vm17309_vm0, %v16128_v7  ;;  %v17361_v17 = vmov 0.0  }
 0xf76   :  { %13736 = vmatprep.subr.mxu1 %v17358_v32  ;;  %13741 = vmatprep.subr.mxu0 %v8562_v53 }
 0xf77   :  { %13727 = vmatmul.mubr.msk.f32.vlgmr.msra.gmra.mrb[62].mxu1 %vm17309_vm0, %v16135_v43  ;;  %13734 = vmatmul.mubr.msk.f32.vlgmr.msra.gmra.mrb[64].mxu0 %vm17309_vm0, %v16142_v45 }
 0xf78   :  { %13737 = vmatpush3.msra.mxu1 %v17358_v32  ;;  %13738 = vmatprep.mubr.msk.f32.mxu1 %vm17310_vm1, %v8465_v28 }
 0xf79   :  { %13742 = vmatpush3.msra.mxu0 %v8562_v53  ;;  %13743 = vmatprep.mubr.msk.f32.mxu0 %vm17310_vm1, %v16283_v52 }
 0xf7a   :  { %13746 = vmatprep.subr.mxu0 %v17359_v48  ;;  %14244 = vmatprep.subr.bf16.mxu1 %v17297_v34 }
 0xf7b   :  { %13739 = vmatmul.mubr.msk.f32.vlgmr.msra.gmra.mrb[64].mxu1 %vm17310_vm1, %v8466_v9  ;;  %13744 = vmatmul.mubr.msk.f32.vlgmr.msra.gmra.mrb[66].mxu0 %vm17310_vm1, %v16297_v57 }
 0xf7c   :  { %13747 = vmatpush3.msra.mxu0 %v17359_v48  ;;  %13748 = vmatprep.mubr.msk.f32.mxu0 %vm17310_vm1, %v16304_v39 }
 0xf7d   :  { %14247 = vmatprep.subr.bf16.mxu0 %v17297_v34  ;;  %13755 = vmatprep.mubr.msk.f32.mxu1 %vm17307_vm3, %v17361_v17 }
 0xf83   :  { %13749 = vmatmul.mubr.msk.f32.vlgmr.msra.gmra.mrb[66].mxu0 %vm17310_vm1, %v16316_v31 }
 0xf84   :  { %13772 = vmatprep.mubr.msk.f32.mxu0 %vm17307_vm3, %v17361_v17 }
0x1046   :  { %v13707_v7 = vpop.f32.mrb[60].mxu1  ;;  %v13721_v43 = vpop.f32.mrb[62].mxu0 }
0x1047   :  { %v8118_v45 = vadd.f32 %v13707_v7, %v15808_v15  ;;  %v8282_v1 = vadd.f32 %v13721_v43, %v15853_v61  ;;  %v8108_v11 = vpop.f32.mrb[61].mxu1  ;;  %v8272_v38 = vpop.f32.mrb[63].mxu0 }
0x1048   :  { %v8117_v19 = vadd.f32 %v8108_v11, %v15835_v46  ;;  %v8281_v49 = vadd.f32 %v8272_v38, %v15863_v40 }
0x1049   :  { %v12523_v24 = vmul.f32 -1.442695, %v8118_v45  ;;  %v12529_v5 = vmul.f32 -1.442695, %v8282_v1 }
0x104a   :  { %v12522_v20 = vmul.f32 -1.442695, %v8117_v19  ;;  %v12528_v23 = vmul.f32 -1.442695, %v8281_v49  ;;  %v13728_v56 = vpop.f32.mrb[62].mxu1  ;;  %v13735_v22 = vpop.f32.mrb[64].mxu0 }
0x104b   :  { %14715 = vpow2.f32 %v12523_v24  ;;  %v8361_v47 = vpop.f32.mrb[63].mxu1  ;;  %v8436_v41 = vpop.f32.mrb[65].mxu0  ;;  %v8442_v25 = vadd.f32 %v13735_v22, %v15858_v54  ;;  %v8367_v21 = vadd.f32 %v13728_v56, %v15867_v14 }
0x104c   :  { %14717 = vpow2.f32 %v12529_v5  ;;  %v8437_v3 = vadd.f32 %v8436_v41, %v15875_v26  ;;  %v8362_v7 = vadd.f32 %v8361_v47, %v15886_v8  ;;  %v8732_v47 = vpop.permute.xlu0 %8731 }
0x104d   :  { %14719 = vpow2.f32 %v12522_v20 }
0x104e   :  { %14721 = vpow2.f32 %v12528_v23  ;;  %v13740_v15 = vpop.f32.mrb[64].mxu1  ;;  %v8734_v23 = vlaneseq }
0x104f   :  { %v8553_v61 = vpop.f32.mrb[65].mxu1  ;;  %v16330_v46 = vadd.f32 %v13740_v15, %v8479_v62 }
0x1050   :  { %v16332_v55 = vadd.f32 %v8553_v61, %v8474_v0  ;;  %v8735_v56 = vshrl.u32 %v8734_v23, 7  ;;  %vm16554_vm15 = vcmp.lt.s32.totalorder %v8734_v23, 2 }
0x1051   :  { %17362 = vst [vmem:[#allocation18_spill] sm:$0xff] %v16330_v46 }
0x1052   :  { %17363 = vst [vmem:[#allocation20_spill] sm:$0xff] %v16332_v55  ;;  %v16369_v22 = vsub.s32 0, %v8735_v56 }
0x1054   :  { %v16372_v41 = vrot.slane %v8732_v47, %v16369_v22 }
0x1055   :  { %v14716_v60 = vpop.eup %14715 }
0x1056   :  { %v14718_v40 = vpop.eup %14717  ;;  %v8126_v50 = vadd.f32 1.0, %v14716_v60  ;;  %v13750_v51 = vpop.f32.mrb[66].mxu0  ;;  %17367 = vst [vmem:[#allocation21_spill] sm:$0xff] %v16372_v41 }
0x1057   :  { %v14720_v29 = vpop.eup %14719  ;;  %v8290_v13 = vadd.f32 1.0, %v14718_v40  ;;  %v8726_v6 = vadd.f32 %v13750_v51, %v16330_v46  ;;  %v8716_v12 = vpop.f32.mrb[67].mxu0 }
0x1058   :  { %v14722_v36 = vpop.eup %14721  ;;  %14723 = vrcp.f32 %v8126_v50  ;;  %v8125_v10 = vadd.f32 1.0, %v14720_v29  ;;  %v8725_v27 = vadd.f32 %v8716_v12, %v16332_v55  ;;  %v17369_v12 = vld [vmem:[#allocation11_spill] sm:$0xff] }
0x1059   :  { %14725 = vrcp.f32 %v8290_v13  ;;  %v8289_v2 = vadd.f32 1.0, %v14722_v36  ;;  %v8728_v37 = vmax.f32 %v8726_v6, 0.0  ;;  %v9052_v36 = vmul.f32 %v17369_v12, %v17358_v32 }
0x105a   :  { %14727 = vrcp.f32 %v8125_v10  ;;  %v8727_v33 = vmax.f32 %v8725_v27, 0.0 }
0x105b   :  { %14729 = vrcp.f32 %v8289_v2 }
0x105c   :  { %v14245_v44 = vpack.c.bf16 %v8728_v37, %v8727_v33 }
0x105e   :  { %14246 = vmatpush3.bf16.msra.mxu1 %v14245_v44 }
0x105f   :  { %13758 = vmatprep.subr.mxu1 %v8819_v16 }
0x1061   :  { %13756 = vmatmul.mubr.msk.f32.vlgmr.msra.gmra.mrb[66].mxu1 %vm17309_vm0, %v16341_v30 }
0x1062   :  { %v14724_v63 = vpop.eup %14723  ;;  %13759 = vmatpush3.msra.mxu1 %v8819_v16  ;;  %13760 = vmatprep.mubr.msk.f32.mxu1 %vm17310_vm1, %v16283_v52 }
0x1063   :  { %v14726_v58 = vpop.eup %14725  ;;  %v8446_v59 = vmul.f32 %v14724_v63, %v8442_v25  ;;  %13763 = vmatprep.subr.mxu1 %v17364_v35  ;;  %v16423_v63 = vld [vmem:[%s17368_s30 + $0x1] sm:$0x1] }
0x1064   :  { %v14728_v53 = vpop.eup %14727  ;;  %v8452_v28 = vmul.f32 %v14726_v58, %v15926_v4  ;;  %vm10852_vm7 = vcmp.eq.s32.totalorder %v16423_v63, 1  ;;  %vm17305_vm8 = vcmp.eq.s32.totalorder %v16423_v63, 2 }
0x1065   :  { %v14730_v54 = vpop.eup %14729  ;;  %v8448_v9 = vadd.f32 %v8446_v59, %v8367_v21  ;;  %v8445_v43 = vmul.f32 %v14728_v53, %v8437_v3  ;;  %13761 = vmatmul.mubr.msk.f32.vlgmr.msra.gmra.mrb[68].mxu1 %vm17310_vm1, %v16297_v57 }
0x1066   :  { %13764 = vmatpush3.msra.mxu1 %v17364_v35  ;;  %13765 = vmatprep.mubr.msk.f32.mxu1 %vm17310_vm1, %v16304_v39  ;;  %v8451_v14 = vmul.f32 %v14730_v54, %v15926_v4  ;;  %v8454_v8 = vsub.f32 1.0, %v8452_v28 }
0x1067   :  { %14731 = vtanh.f32 %v8448_v9  ;;  %v8447_v26 = vadd.f32 %v8445_v43, %v8362_v7  ;;  %14250 = vmatprep.subr.bf16.mxu1 %v17297_v34 }
0x1068   :  { %v8453_v45 = vsub.f32 1.0, %v8451_v14  ;;  %v8456_v11 = vmul.f32 %v8454_v8, %v16246_v18 }
0x1069   :  { %14733 = vtanh.f32 %v8447_v26 }
0x106a   :  { %v8455_v4 = vmul.f32 %v8453_v45, %v16248_v42  ;;  %v16379_v42 = vld [vmem:[%s17368_s30] sm:$0x1] }
0x106b   :  { %vm10851_vm5 = vcmp.eq.s32.totalorder %v16379_v42, 1  ;;  %vm17306_vm6 = vcmp.eq.s32.totalorder %v16379_v42, 2 }
0x106d   :  { %13766 = vmatmul.mubr.msk.f32.vlgmr.msra.gmra.mrb[68].mxu1 %vm17310_vm1, %v16316_v31 }
0x106e   :  { %13789 = vmatprep.mubr.msk.f32.mxu1 %vm17307_vm3, %v17361_v17 }
0x1071   :  { %v14732_v1 = vpop.eup %14731 }
0x1072   :  { %v8458_v38 = vmul.f32 %v14732_v1, %v8452_v28 }
0x1073   :  { %v14734_v19 = vpop.eup %14733 }
0x1074   :  { %v8457_v49 = vmul.f32 %v14734_v19, %v8451_v14  ;;  %v8460_v24 = vadd.f32 %v8458_v38, %v8456_v11  ;;  %v17370_v14 = vld [vmem:[#allocation12_spill] sm:$0xff] }
0x1075   :  { %v9285_v26 = vmul.f32 %v17370_v14, %v17358_v32 }
0x1076   :  { %v8459_v5 = vadd.f32 %v8457_v49, %v8455_v4  ;;  %v16465_v4 = vld [vmem:[%s17368_s30 + $0x2] sm:$0x1] }
0x1077   :  { %vm10853_vm9 = vcmp.eq.s32.totalorder %v16465_v4, 1  ;;  %vm17300_vm10 = vcmp.eq.s32.totalorder %v16465_v4, 2 }
0x1078   :  { %v16366_v20 = vpack.c.bf16 %v8460_v24, %v8459_v5 }
0x107a   :  { %17366 = vst [vmem:[#allocation19_spill] sm:$0xff] %v16366_v20 }
0x1134   :  { %v8807_v15 = vpop.f32.mrb[66].mxu1 }
0x1135   :  { %v8808_v18 = vadd.f32 %v8807_v15, %v16372_v41  ;;  %v13757_v61 = vpop.f32.mrb[67].mxu1 }
0x1137   :  { %8812 = vst.msk [vmem:[#allocation3] sm:$0x1] %vm8811_vm4, %v8808_v18  ;;  %v8816_v2 = vrot.slane %v8808_v18, %v16369_v22 }
0x1139   :  { %v8817_v44 = vmul.f32 %v17359_v48, %v8816_v2 }
0x113e   :  { %v16383_v62 = vld [vmem:[#allocation3] sm:$0x1] }
0x113f   :  { %v16388_v60 = vsel %vm10851_vm5, %v16383_v62, -1e+09  ;;  %v16393_v0 = vsel %vm17306_vm6, %v16383_v62, -1e+09  ;;  %vm10459_vm6 = vcmp.eq.s32.totalorder %v16423_v63, 0 }
0x1140   :  { %v13767_v40 = vpop.f32.mrb[68].mxu1  ;;  %v10867_v23 = vsel %vm16554_vm15, %v16388_v60, -inf }
0x1141   :  { %v8971_v50 = vadd.f32 %v13767_v40, %v16330_v46  ;;  %v8961_v51 = vpop.f32.mrb[69].mxu1 }
0x1142   :  { %v8970_v29 = vadd.f32 %v8961_v51, %v16332_v55  ;;  %v17371_v51 = vld [vmem:[#allocation13_spill] sm:$0xff] }
0x1143   :  { %v8973_v13 = vmax.f32 %v8971_v50, 0.0 }
0x1144   :  { %v8972_v6 = vmax.f32 %v8970_v29, 0.0  ;;  %v9518_v29 = vmul.f32 %v17371_v51, %v17358_v32 }
0x1146   :  { %v14248_v10 = vpack.c.bf16 %v8973_v13, %v8972_v6 }
0x1148   :  { %14249 = vmatpush3.bf16.msra.mxu0 %v14248_v10 }
0x1149   :  { %13775 = vmatprep.subr.mxu0 %v9052_v36 }
0x114b   :  { %13773 = vmatmul.mubr.msk.f32.vlgmr.msra.gmra.mrb[68].mxu0 %vm17309_vm0, %v16341_v30 }
0x114c   :  { %13776 = vmatpush3.msra.mxu0 %v9052_v36  ;;  %13777 = vmatprep.mubr.msk.f32.mxu0 %vm17310_vm1, %v16283_v52 }
0x114d   :  { %13780 = vmatprep.subr.mxu0 %v17369_v12 }
0x114f   :  { %13778 = vmatmul.mubr.msk.f32.vlgmr.msra.gmra.mrb[70].mxu0 %vm17310_vm1, %v16297_v57 }
0x1150   :  { %13781 = vmatpush3.msra.mxu0 %v17369_v12  ;;  %13782 = vmatprep.mubr.msk.f32.mxu0 %vm17310_vm1, %v16304_v39 }
0x1151   :  { %14253 = vmatprep.subr.bf16.mxu0 %v17297_v34 }
0x1157   :  { %13783 = vmatmul.mubr.msk.f32.vlgmr.msra.gmra.mrb[70].mxu0 %vm17310_vm1, %v16316_v31 }
0x1158   :  { %13806 = vmatprep.mubr.msk.f32.mxu0 %vm17307_vm3, %v17361_v17 }
0x121e   :  { %v9040_v27 = vpop.f32.mrb[68].mxu0 }
0x121f   :  { %v9041_v37 = vadd.f32 %v9040_v27, %v16372_v41  ;;  %v13774_v33 = vpop.f32.mrb[69].mxu0 }
0x1221   :  { %9045 = vst.msk [vmem:[#allocation3 + $0x1] sm:$0x1] %vm8811_vm4, %v9041_v37  ;;  %v9049_v16 = vrot.slane %v9041_v37, %v16369_v22  ;;  %v16507_v37 = vld [vmem:[%s17368_s30 + $0x3] sm:$0x1] }
0x1222   :  { %vm17314_vm11 = vcmp.eq.s32.totalorder %v16507_v37, 1  ;;  %vm17296_vm12 = vcmp.eq.s32.totalorder %v16507_v37, 2 }
0x1223   :  { %v9050_v25 = vmul.f32 %v17364_v35, %v9049_v16 }
0x1225   :  { %v9051_v58 = vadd.f32 %v9050_v25, %v8817_v44 }
0x1228   :  { %v16427_v21 = vld [vmem:[#allocation3 + $0x1] sm:$0x1] }
0x1229   :  { %v16432_v59 = vsel %vm10852_vm7, %v16427_v21, -1e+09  ;;  %v16437_v3 = vsel %vm17305_vm8, %v16427_v21, -1e+09 }
0x122a   :  { %v13784_v53 = vpop.f32.mrb[70].mxu0 }
0x122b   :  { %v9204_v28 = vadd.f32 %v13784_v53, %v16330_v46  ;;  %v9194_v54 = vpop.f32.mrb[71].mxu0 }
0x122c   :  { %v9203_v9 = vadd.f32 %v9194_v54, %v16332_v55 }
0x122d   :  { %v9206_v7 = vmax.f32 %v9204_v28, 0.0 }
0x122e   :  { %v9205_v43 = vmax.f32 %v9203_v9, 0.0 }
0x1230   :  { %v14251_v8 = vpack.c.bf16 %v9206_v7, %v9205_v43  ;;  %v17372_v43 = vld [vmem:[#allocation14_spill] sm:$0xff] }
0x1232   :  { %14252 = vmatpush3.bf16.msra.mxu1 %v14251_v8 }
0x1233   :  { %13792 = vmatprep.subr.mxu1 %v9285_v26 }
0x1235   :  { %13790 = vmatmul.mubr.msk.f32.vlgmr.msra.gmra.mrb[70].mxu1 %vm17309_vm0, %v16341_v30 }
0x1236   :  { %13793 = vmatpush3.msra.mxu1 %v9285_v26  ;;  %13794 = vmatprep.mubr.msk.f32.mxu1 %vm17310_vm1, %v16283_v52  ;;  %v9751_v26 = vmul.f32 %v17372_v43, %v17358_v32 }
0x1237   :  { %13797 = vmatprep.subr.mxu1 %v17370_v14 }
0x1239   :  { %13795 = vmatmul.mubr.msk.f32.vlgmr.msra.gmra.mrb[72].mxu1 %vm17310_vm1, %v16297_v57 }
0x123a   :  { %13798 = vmatpush3.msra.mxu1 %v17370_v14  ;;  %13799 = vmatprep.mubr.msk.f32.mxu1 %vm17310_vm1, %v16304_v39 }
0x123b   :  { %14256 = vmatprep.subr.bf16.mxu1 %v17297_v34 }
0x1241   :  { %13800 = vmatmul.mubr.msk.f32.vlgmr.msra.gmra.mrb[72].mxu1 %vm17310_vm1, %v16316_v31 }
0x1242   :  { %13823 = vmatprep.mubr.msk.f32.mxu1 %vm17307_vm3, %v17361_v17 }
0x1308   :  { %v9273_v45 = vpop.f32.mrb[70].mxu1 }
0x1309   :  { %v9274_v1 = vadd.f32 %v9273_v45, %v16372_v41  ;;  %v13791_v11 = vpop.f32.mrb[71].mxu1 }
0x130b   :  { %9278 = vst.msk [vmem:[#allocation3 + $0x2] sm:$0x1] %vm8811_vm4, %v9274_v1  ;;  %v9282_v38 = vrot.slane %v9274_v1, %v16369_v22 }
0x130d   :  { %v9283_v19 = vmul.f32 %v17369_v12, %v9282_v38 }
0x130f   :  { %v9284_v49 = vadd.f32 %v9283_v19, %v9051_v58 }
0x1312   :  { %v16469_v24 = vld [vmem:[#allocation3 + $0x2] sm:$0x1] }
0x1313   :  { %v16474_v5 = vsel %vm10853_vm9, %v16469_v24, -1e+09  ;;  %v16479_v56 = vsel %vm17300_vm10, %v16469_v24, -1e+09 }
0x1314   :  { %v13801_v47 = vpop.f32.mrb[72].mxu1 }
0x1315   :  { %v9437_v15 = vadd.f32 %v13801_v47, %v16330_v46  ;;  %v9427_v18 = vpop.f32.mrb[73].mxu1 }
0x1316   :  { %v9436_v61 = vadd.f32 %v9427_v18, %v16332_v55 }
0x1317   :  { %v9439_v40 = vmax.f32 %v9437_v15, 0.0 }
0x1318   :  { %v9438_v50 = vmax.f32 %v9436_v61, 0.0 }
0x131a   :  { %v14254_v13 = vpack.c.bf16 %v9439_v40, %v9438_v50 }
0x131c   :  { %14255 = vmatpush3.bf16.msra.mxu0 %v14254_v13  ;;  %v11256_v13 = vsel %vm16554_vm15, %v16393_v0, -inf }
0x131d   :  { %13809 = vmatprep.subr.mxu0 %v9518_v29 }
0x131f   :  { %13807 = vmatmul.mubr.msk.f32.vlgmr.msra.gmra.mrb[72].mxu0 %vm17309_vm0, %v16341_v30 }
0x1320   :  { %13810 = vmatpush3.msra.mxu0 %v9518_v29  ;;  %13811 = vmatprep.mubr.msk.f32.mxu0 %vm17310_vm1, %v16283_v52 }
0x1321   :  { %13814 = vmatprep.subr.mxu0 %v17371_v51 }
0x1323   :  { %13812 = vmatmul.mubr.msk.f32.vlgmr.msra.gmra.mrb[74].mxu0 %vm17310_vm1, %v16297_v57 }
0x1324   :  { %13815 = vmatpush3.msra.mxu0 %v17371_v51  ;;  %13816 = vmatprep.mubr.msk.f32.mxu0 %vm17310_vm1, %v16304_v39 }
0x1325   :  { %14259 = vmatprep.subr.bf16.mxu0 %v17297_v34 }
0x132b   :  { %13817 = vmatmul.mubr.msk.f32.vlgmr.msra.gmra.mrb[74].mxu0 %vm17310_vm1, %v16316_v31 }
0x132c   :  { %13840 = vmatprep.mubr.msk.f32.mxu0 %vm17307_vm3, %v17361_v17 }
0x13f2   :  { %v9506_v6 = vpop.f32.mrb[72].mxu0 }
0x13f3   :  { %v9507_v36 = vadd.f32 %v9506_v6, %v16372_v41  ;;  %v13808_v10 = vpop.f32.mrb[73].mxu0 }
0x13f5   :  { %9511 = vst.msk [vmem:[#allocation3 + $0x3] sm:$0x1] %vm8811_vm4, %v9507_v36  ;;  %v9515_v27 = vrot.slane %v9507_v36, %v16369_v22 }
0x13f7   :  { %v9516_v2 = vmul.f32 %v17370_v14, %v9515_v27 }
0x13f9   :  { %v9517_v33 = vadd.f32 %v9516_v2, %v9284_v49  ;;  %v16549_v49 = vld [vmem:[%s17368_s30 + $0x4] sm:$0x1] }
0x13fa   :  { %vm17313_vm13 = vcmp.eq.s32.totalorder %v16549_v49, 1  ;;  %vm17295_vm14 = vcmp.eq.s32.totalorder %v16549_v49, 2 }
0x13fc   :  { %v16511_v16 = vld [vmem:[#allocation3 + $0x3] sm:$0x1] }
0x13fd   :  { %v16516_v44 = vsel %vm17314_vm11, %v16511_v16, -1e+09  ;;  %v16521_v25 = vsel %vm17296_vm12, %v16511_v16, -1e+09 }
0x13fe   :  { %v13818_v58 = vpop.f32.mrb[74].mxu0 }
0x13ff   :  { %v9670_v53 = vadd.f32 %v13818_v58, %v16330_v46  ;;  %v9660_v28 = vpop.f32.mrb[75].mxu0 }
0x1400   :  { %v9669_v54 = vadd.f32 %v9660_v28, %v16332_v55  ;;  %v17375_v28 = vld [vmem:[#allocation15_spill] sm:$0xff] }
0x1401   :  { %v9672_v9 = vmax.f32 %v9670_v53, 0.0 }
0x1402   :  { %v9671_v7 = vmax.f32 %v9669_v54, 0.0  ;;  %v9984_v54 = vmul.f32 %v17375_v28, %v17358_v32 }
0x1404   :  { %v14257_v8 = vpack.c.bf16 %v9672_v9, %v9671_v7 }
0x1406   :  { %14258 = vmatpush3.bf16.msra.mxu1 %v14257_v8 }
0x1407   :  { %13826 = vmatprep.subr.mxu1 %v9751_v26 }
0x1409   :  { %13824 = vmatmul.mubr.msk.f32.vlgmr.msra.gmra.mrb[74].mxu1 %vm17309_vm0, %v16341_v30 }
0x140a   :  { %13827 = vmatpush3.msra.mxu1 %v9751_v26  ;;  %13828 = vmatprep.mubr.msk.f32.mxu1 %vm17310_vm1, %v16283_v52 }
0x140b   :  { %13831 = vmatprep.subr.mxu1 %v17372_v43 }
0x140d   :  { %13829 = vmatmul.mubr.msk.f32.vlgmr.msra.gmra.mrb[76].mxu1 %vm17310_vm1, %v16297_v57 }
0x140e   :  { %13832 = vmatpush3.msra.mxu1 %v17372_v43  ;;  %13833 = vmatprep.mubr.msk.f32.mxu1 %vm17310_vm1, %v16304_v39 }
0x140f   :  { %14262 = vmatprep.subr.bf16.mxu1 %v17297_v34 }
0x1415   :  { %13834 = vmatmul.mubr.msk.f32.vlgmr.msra.gmra.mrb[76].mxu1 %vm17310_vm1, %v16316_v31 }
0x1416   :  { %13857 = vmatprep.mubr.msk.f32.mxu1 %vm17307_vm3, %v17361_v17 }
0x14dc   :  { %v9739_v45 = vpop.f32.mrb[74].mxu1 }
0x14dd   :  { %v9740_v1 = vadd.f32 %v9739_v45, %v16372_v41  ;;  %v13825_v11 = vpop.f32.mrb[75].mxu1 }
0x14de   :  { %v16612_v11 = vld [vmem:[%s17368_s30 + $0x5] sm:$0x1] }
0x14df   :  { %9744 = vst.msk [vmem:[#allocation3 + $0x4] sm:$0x1] %vm8811_vm4, %v9740_v1  ;;  %v9748_v38 = vrot.slane %v9740_v1, %v16369_v22  ;;  %vm17299_vm12 = vcmp.eq.s32.totalorder %v16612_v11, 2  ;;  %vm10463_vm8 = vcmp.eq.s32.totalorder %v16612_v11, 0 }
0x14e1   :  { %v9749_v19 = vmul.f32 %v17371_v51, %v9748_v38 }
0x14e3   :  { %v9750_v47 = vadd.f32 %v9749_v19, %v9517_v33 }
0x14e6   :  { %v16558_v18 = vld [vmem:[#allocation3 + $0x4] sm:$0x1] }
0x14e7   :  { %v16563_v61 = vsel %vm17313_vm13, %v16558_v18, -1e+09  ;;  %v16568_v40 = vsel %vm17295_vm14, %v16558_v18, -1e+09  ;;  %vm17312_vm14 = vcmp.eq.s32.totalorder %v16612_v11, 1 }
0x14e8   :  { %v13835_v50 = vpop.f32.mrb[76].mxu1  ;;  %v10871_v29 = vsel %vm16554_vm15, %v16563_v61, -inf  ;;  %v11260_v6 = vsel %vm16554_vm15, %v16568_v40, -inf }
0x14e9   :  { %v9903_v36 = vadd.f32 %v13835_v50, %v16330_v46  ;;  %v9893_v10 = vpop.f32.mrb[77].mxu1  ;;  %v16583_v27 = vmax.f32 %v10867_v23, %v10871_v29  ;;  %v16585_v2 = vmax.f32 %v11256_v13, %v11260_v6  ;;  %v11257_v6 = vsel %vm16554_vm15, %v16437_v3, -inf }
0x14ea   :  { %v9902_v33 = vadd.f32 %v9893_v10, %v16332_v55 }
0x14eb   :  { %v9905_v58 = vmax.f32 %v9903_v36, 0.0 }
0x14ec   :  { %v9904_v53 = vmax.f32 %v9902_v33, 0.0 }
0x14ee   :  { %v14260_v9 = vpack.c.bf16 %v9905_v58, %v9904_v53 }
0x14f0   :  { %14261 = vmatpush3.bf16.msra.mxu0 %v14260_v9 }
0x14f1   :  { %13843 = vmatprep.subr.mxu0 %v9984_v54 }
0x14f3   :  { %13841 = vmatmul.mubr.msk.f32.vlgmr.msra.gmra.mrb[76].mxu0 %vm17309_vm0, %v16341_v30 }
0x14f4   :  { %13844 = vmatpush3.msra.mxu0 %v9984_v54  ;;  %13845 = vmatprep.mubr.msk.f32.mxu0 %vm17310_vm1, %v16283_v52 }
0x14f5   :  { %13848 = vmatprep.subr.mxu0 %v17375_v28 }
0x14f7   :  { %13846 = vmatmul.mubr.msk.f32.vlgmr.msra.gmra.mrb[78].mxu0 %vm17310_vm1, %v16297_v57 }
0x14f8   :  { %13849 = vmatpush3.msra.mxu0 %v17375_v28  ;;  %13850 = vmatprep.mubr.msk.f32.mxu0 %vm17310_vm1, %v16304_v39 }
0x14f9   :  { %14265 = vmatprep.subr.bf16.mxu0 %v17297_v34 }
0x14ff   :  { %13851 = vmatmul.mubr.msk.f32.vlgmr.msra.gmra.mrb[78].mxu0 %vm17310_vm1, %v16316_v31 }
0x1500   :  { %13874 = vmatprep.mubr.msk.f32.mxu0 %vm17307_vm3, %v17361_v17 }
0x15c6   :  { %v9972_v7 = vpop.f32.mrb[76].mxu0 }
0x15c7   :  { %v9973_v26 = vadd.f32 %v9972_v7, %v16372_v41  ;;  %v13842_v8 = vpop.f32.mrb[77].mxu0 }
0x15c9   :  { %9977 = vst.msk [vmem:[#allocation3 + $0x5] sm:$0x1] %vm8811_vm4, %v9973_v26  ;;  %v9981_v45 = vrot.slane %v9973_v26, %v16369_v22 }
0x15cb   :  { %v9982_v1 = vmul.f32 %v17372_v43, %v9981_v45  ;;  %v17376_v45 = vld [vmem:[#allocation16_spill] sm:$0xff] }
0x15cd   :  { %v9983_v38 = vadd.f32 %v9982_v1, %v9750_v47  ;;  %v10868_v47 = vsel %vm16554_vm15, %v16432_v59, -inf  ;;  %v10217_v1 = vmul.f32 %v17376_v45, %v17358_v32 }
0x15d0   :  { %v16616_v19 = vld [vmem:[#allocation3 + $0x5] sm:$0x1] }
0x15d1   :  { %v16621_v50 = vsel %vm17312_vm14, %v16616_v19, -1e+09  ;;  %v16626_v23 = vsel %vm17299_vm12, %v16616_v19, -1e+09 }
0x15d2   :  { %v13852_v29 = vpop.f32.mrb[78].mxu0  ;;  %v10873_v13 = vsel %vm16554_vm15, %v16621_v50, -inf  ;;  %v11262_v36 = vsel %vm16554_vm15, %v16626_v23, -inf }
0x15d3   :  { %v10136_v10 = vadd.f32 %v13852_v29, %v16330_v46  ;;  %v10126_v33 = vpop.f32.mrb[79].mxu0  ;;  %v16641_v58 = vmax.f32 %v10868_v47, %v10873_v13  ;;  %v16643_v53 = vmax.f32 %v11257_v6, %v11262_v36  ;;  %v17377_v29 = vmov 0.0|0.0  }
0x15d4   :  { %v10135_v54 = vadd.f32 %v10126_v33, %v16332_v55 }
0x15d5   :  { %v10138_v9 = vmax.f32 %v10136_v10, 0.0  ;;  %v17380_v12 = vmax.f32 %v16585_v2, %v16643_v53 }
0x15d6   :  { %v10137_v8 = vmax.f32 %v10135_v54, 0.0 }
0x15d8   :  { %v14263_v34 = vpack.c.bf16 %v10138_v9, %v10137_v8  ;;  %v10869_v9 = vsel %vm16554_vm15, %v16474_v5, -inf  ;;  %v11258_v8 = vsel %vm16554_vm15, %v16479_v56, -inf }
0x15da   :  { %14264 = vmatpush3.bf16.msra.mxu1 %v14263_v34 }
0x15db   :  { %13860 = vmatprep.subr.mxu1 %v10217_v1 }
0x15dd   :  { %13858 = vmatmul.mubr.msk.f32.vlgmr.msra.gmra.mrb[78].mxu1 %vm17309_vm0, %v16341_v30 }
0x15de   :  { %13861 = vmatpush3.msra.mxu1 %v10217_v1  ;;  %13862 = vmatprep.mubr.msk.f32.mxu1 %vm17310_vm1, %v16283_v52 }
0x15df   :  { %13865 = vmatprep.subr.mxu1 %v17376_v45 }
0x15e1   :  { %13863 = vmatmul.mubr.msk.f32.vlgmr.msra.gmra.mrb[80].mxu1 %vm17310_vm1, %v16297_v57 }
0x15e2   :  { %13866 = vmatpush3.msra.mxu1 %v17376_v45  ;;  %13867 = vmatprep.mubr.msk.f32.mxu1 %vm17310_vm1, %v16304_v39  ;;  %v16674_v39 = vld [vmem:[%s17368_s30 + $0x6] sm:$0x1] }
0x15e3   :  { %14268 = vmatprep.subr.bf16.mxu1 %v17377_v29  ;;  %vm17311_vm12 = vcmp.eq.s32.totalorder %v16674_v39, 1  ;;  %vm17304_vm10 = vcmp.eq.s32.totalorder %v16674_v39, 2 }
0x15e9   :  { %13868 = vmatmul.mubr.msk.f32.vlgmr.msra.gmra.mrb[80].mxu1 %vm17310_vm1, %v16316_v31 }
0x15ea   :  { %13891 = vmatprep.mubr.msk.f32.mxu1 %vm17307_vm3, %v17361_v17  ;;  %vm10460_vm3 = vcmp.eq.s32.totalorder %v16465_v4, 0 }
0x16b0   :  { %v10205_v34 = vpop.f32.mrb[78].mxu1 }
0x16b1   :  { %v10206_v47 = vadd.f32 %v10205_v34, %v16372_v41  ;;  %v13859_v13 = vpop.f32.mrb[79].mxu1 }
0x16b3   :  { %10210 = vst.msk [vmem:[#allocation3 + $0x6] sm:$0x1] %vm8811_vm4, %v10206_v47  ;;  %v10214_v57 = vrot.slane %v10206_v47, %v16369_v22 }
0x16b5   :  { %v10215_v6 = vmul.f32 %v17375_v28, %v10214_v57 }
0x16b7   :  { %v10216_v36 = vadd.f32 %v10215_v6, %v9983_v38 }
0x16ba   :  { %v10456_v31 = vld [vmem:[#allocation3 + $0x6] sm:$0x1] }
0x16bb   :  { %v16680_v10 = vsel %vm17311_vm12, %v10456_v31, -1e+09  ;;  %v16684_v33 = vsel %vm17304_vm10, %v10456_v31, -1e+09  ;;  %vm10458_vm10 = vcmp.eq.s32.totalorder %v16379_v42, 0  ;;  %vm10464_vm12 = vcmp.eq.s32.totalorder %v16674_v39, 0 }
0x16bc   :  { %v13869_v54 = vpop.f32.mrb[80].mxu1  ;;  %v10875_v38 = vsel %vm16554_vm15, %v16680_v10, -inf  ;;  %v11264_v1 = vsel %vm16554_vm15, %v16684_v33, -inf }
0x16bd   :  { %v10369_v34 = vadd.f32 %v13869_v54, %v16330_v46  ;;  %v10359_v47 = vpop.f32.mrb[81].mxu1  ;;  %v10876_v13 = vmax.f32 %v10869_v9, %v10875_v38  ;;  %v11265_v57 = vmax.f32 %v11258_v8, %v11264_v1  ;;  %v10870_v8 = vsel %vm16554_vm15, %v16516_v44, -inf }
0x16be   :  { %v10368_v6 = vadd.f32 %v10359_v47, %v16332_v55  ;;  %v11259_v1 = vsel %vm16554_vm15, %v16521_v25, -inf }
0x16bf   :  { %v10371_v26 = vmax.f32 %v10369_v34, 0.0 }
0x16c0   :  { %v10370_v7 = vmax.f32 %v10368_v6, 0.0 }
0x16c2   :  { %v14266_v20 = vpack.c.bf16 %v10371_v26, %v10370_v7  ;;  %v10468_v7 = vsel %vm10460_vm3, %v16469_v24, -1e+09 }
0x16c4   :  { %14267 = vmatpush3.bf16.msra.mxu0 %v14266_v20  ;;  %v10467_v20 = vsel %vm10459_vm6, %v16427_v21, -1e+09 }
0x16c7   :  { %13875 = vmatmul.mubr.msk.f32.vlgmr.msra.gmra.mrb[80].mxu0 %vm17309_vm0, %v16341_v30  ;;  %vm10462_vm0 = vcmp.eq.s32.totalorder %v16549_v49, 0  ;;  %v10471_v30 = vsel %vm10463_vm8, %v16616_v19, -1e+09 }
0x16c8   :  { %13879 = vmatprep.mubr.msk.f32.mxu0 %vm17310_vm1, %v16283_v52  ;;  %vm10461_vm1 = vcmp.eq.s32.totalorder %v16507_v37, 0  ;;  %v16718_v52 = vld [vmem:[%s17368_s30 + $0x7] sm:$0x1]  ;;  %v10470_v26 = vsel %vm10462_vm0, %v16558_v18, -1e+09  ;;  %v10484_v21 = vsel %vm16554_vm15, %v10471_v30, -inf }
0x16c9   :  { %vm10465_vm14 = vcmp.eq.s32.totalorder %v16718_v52, 0  ;;  %vm10858_vm13 = vcmp.eq.s32.totalorder %v16718_v52, 1  ;;  %vm11247_vm11 = vcmp.eq.s32.totalorder %v16718_v52, 2  ;;  %v10480_v18 = vsel %vm16554_vm15, %v10468_v7, -inf }
0x179a   :  { %v10438_v17 = vpop.f32.mrb[80].mxu0 }
0x179b   :  { %v10439_v29 = vadd.f32 %v10438_v17, %v16372_v41  ;;  %v13876_v32 = vpop.f32.mrb[81].mxu0  ;;  %v10466_v17 = vsel %vm10458_vm10, %v16383_v62, -1e+09  ;;  %v10469_v62 = vsel %vm10461_vm1, %v16511_v16, -1e+09  ;;  %v10479_v16 = vsel %vm16554_vm15, %v10467_v20, -inf }
0x179c   :  { %v10478_v24 = vsel %vm16554_vm15, %v10466_v17, -inf  ;;  %v10481_v9 = vsel %vm16554_vm15, %v10469_v62, -inf  ;;  %v10485_v47 = vmax.f32 %v10479_v16, %v10484_v21 }
0x179d   :  { %10443 = vst.msk [vmem:[#allocation3 + $0x7] sm:$0x1] %vm8811_vm4, %v10439_v29  ;;  %v10447_v54 = vrot.slane %v10439_v29, %v16369_v22  ;;  %v10472_v29 = vsel %vm10464_vm12, %v10456_v31, -1e+09 }
0x179e   :  { %v10486_v38 = vsel %vm16554_vm15, %v10472_v29, -inf }
0x179f   :  { %v10448_v32 = vmul.f32 %v17376_v45, %v10447_v54  ;;  %v10487_v16 = vmax.f32 %v10480_v18, %v10486_v38 }
0x17a1   :  { %v16740_v19 = vadd.f32 %v10448_v32, %v10216_v36  ;;  %v10482_v36 = vsel %vm16554_vm15, %v10470_v26, -inf }
0x17a2   :  { %v10483_v32 = vmax.f32 %v10478_v24, %v10482_v36  ;;  %v17379_v36 = vmax.f32 %v16583_v27, %v16641_v58 }
0x17a3   :  { %17378 = vst [vmem:[#allocation22_spill] sm:$0xff] %v16740_v19 }
0x17a4   :  { %v10457_v31 = vld [vmem:[#allocation3 + $0x7] sm:$0x1]  ;;  %v10490_v28 = vmax.f32 %v10483_v32, %v10485_v47 }
0x17a5   :  { %v10473_v34 = vsel %vm10465_vm14, %v10457_v31, -1e+09  ;;  %v16769_v6 = vsel %vm10858_vm13, %v10457_v31, -1e+09  ;;  %v16773_v54 = vsel %vm11247_vm11, %v10457_v31, -1e+09 }
0x17a6   :  { %v10488_v19 = vsel %vm16554_vm15, %v10473_v34, -inf  ;;  %v10877_v41 = vsel %vm16554_vm15, %v16769_v6, -inf  ;;  %v11266_v21 = vsel %vm16554_vm15, %v16773_v54, -inf  ;;  %vm17404_vm15 = vcmp.eq.s32.totalorder %v16549_v49, 2 }
0x17a7   :  { %v10489_v55 = vmax.f32 %v10481_v9, %v10488_v19  ;;  %v10878_v46 = vmax.f32 %v10870_v8, %v10877_v41  ;;  %v11267_v45 = vmax.f32 %v11259_v1, %v11266_v21 }
0x17a9   :  { %v10491_v43 = vmax.f32 %v10487_v16, %v10489_v55  ;;  %v10880_v31 = vmax.f32 %v10876_v13, %v10878_v46  ;;  %v11269_v51 = vmax.f32 %v11265_v57, %v11267_v45 }
0x17ab   :  { %v10492_v24 = vmax.f32 %v10490_v28, %v10491_v43  ;;  %v10881_v14 = vmax.f32 %v17379_v36, %v10880_v31  ;;  %v16789_v35 = vmax.f32 %v17380_v12, %v11269_v51 }
0x17ad   :  { %v10493_v15 = vsub.f32 %v10466_v17, %v10492_v24  ;;  %v10494_v48 = vsub.f32 %v10467_v20, %v10492_v24  ;;  %v10495_v18 = vsub.f32 %v10468_v7, %v10492_v24  ;;  %v10496_v19 = vsub.f32 %v10469_v62, %v10492_v24 }
0x17ae   :  { %v10497_v41 = vsub.f32 %v10470_v26, %v10492_v24  ;;  %v10498_v9 = vsub.f32 %v10471_v30, %v10492_v24  ;;  %v10499_v38 = vsub.f32 %v10472_v29, %v10492_v24  ;;  %v10882_v43 = vsub.f32 %v16388_v60, %v10881_v14 }
0x17af   :  { %v10501_v55 = vmul.f32 1.442695, %v10493_v15  ;;  %v10503_v46 = vmul.f32 1.442695, %v10494_v48  ;;  %v10505_v45 = vmul.f32 1.442695, %v10495_v18  ;;  %v10500_v28 = vsub.f32 %v10473_v34, %v10492_v24 }
0x17b0   :  { %v10507_v27 = vmul.f32 1.442695, %v10496_v19  ;;  %v10883_v58 = vsub.f32 %v16432_v59, %v10881_v14  ;;  %v10509_v2 = vmul.f32 1.442695, %v10497_v41  ;;  %v10511_v12 = vmul.f32 1.442695, %v10498_v9 }
0x17b1   :  { %14735 = vpow2.f32 %v10501_v55  ;;  %v10884_v51 = vsub.f32 %v16474_v5, %v10881_v14  ;;  %v10885_v53 = vsub.f32 %v16516_v44, %v10881_v14  ;;  %v10886_v13 = vsub.f32 %v16563_v61, %v10881_v14 }
0x17b2   :  { %14737 = vpow2.f32 %v10503_v46  ;;  %v10887_v57 = vsub.f32 %v16621_v50, %v10881_v14  ;;  %v10513_v48 = vmul.f32 1.442695, %v10499_v38  ;;  %v10888_v60 = vsub.f32 %v16680_v10, %v10881_v14 }
0x17b3   :  { %14739 = vpow2.f32 %v10505_v45  ;;  %v10889_v17 = vsub.f32 %v16769_v6, %v10881_v14  ;;  %v10515_v59 = vmul.f32 1.442695, %v10500_v28  ;;  %v10890_v30 = vmul.f32 1.442695, %v10882_v43 }
0x17b4   :  { %14741 = vpow2.f32 %v10507_v27  ;;  %v10892_v20 = vmul.f32 1.442695, %v10883_v58  ;;  %v10894_v7 = vmul.f32 1.442695, %v10884_v51  ;;  %v10896_v5 = vmul.f32 1.442695, %v10885_v53 }
0x17b5   :  { %14743 = vpow2.f32 %v10509_v2  ;;  %v11271_v44 = vsub.f32 %v16393_v0, %v16789_v35  ;;  %v11272_v61 = vsub.f32 %v16437_v3, %v16789_v35  ;;  %v11273_v50 = vsub.f32 %v16479_v56, %v16789_v35 }
0x17b6   :  { %14745 = vpow2.f32 %v10511_v12  ;;  %v11274_v14 = vsub.f32 %v16521_v25, %v16789_v35  ;;  %v11275_v10 = vsub.f32 %v16568_v40, %v16789_v35  ;;  %v11276_v26 = vsub.f32 %v16626_v23, %v16789_v35 }
0x17b7   :  { %14747 = vpow2.f32 %v10513_v48  ;;  %v11277_v0 = vsub.f32 %v16684_v33, %v16789_v35  ;;  %v11278_v3 = vsub.f32 %v16773_v54, %v16789_v35  ;;  %v10898_v62 = vmul.f32 1.442695, %v10886_v13 }
0x17b8   :  { %14749 = vpow2.f32 %v10515_v59  ;;  %v10900_v56 = vmul.f32 1.442695, %v10887_v57  ;;  %v10902_v25 = vmul.f32 1.442695, %v10888_v60  ;;  %v10904_v23 = vmul.f32 1.442695, %v10889_v17 }
0x17b9   :  { %14751 = vpow2.f32 %v10890_v30  ;;  %v11279_v47 = vmul.f32 1.442695, %v11271_v44  ;;  %v11281_v21 = vmul.f32 1.442695, %v11272_v61  ;;  %v11283_v24 = vmul.f32 1.442695, %v11273_v50 }
0x17ba   :  { %14753 = vpow2.f32 %v10892_v20  ;;  %v11285_v18 = vmul.f32 1.442695, %v11274_v14  ;;  %v11287_v55 = vmul.f32 1.442695, %v11275_v10  ;;  %v11289_v58 = vmul.f32 1.442695, %v11276_v26 }
0x17bb   :  { %v16815_v29 = vpop.eup %14735  ;;  %14755 = vpow2.f32 %v10894_v7 }
0x17bc   :  { %v16817_v8 = vpop.eup %14737  ;;  %v10517_v40 = vsel %vm8811_vm4, %v16815_v29, 0.0  ;;  %14757 = vpow2.f32 %v10896_v5 }
0x17bd   :  { %v16821_v1 = vpop.eup %14739  ;;  %v10518_v34 = vsel %vm8811_vm4, %v16817_v8, 0.0  ;;  %14759 = vpow2.f32 %v10898_v62 }
0x17be   :  { %v16825_v6 = vpop.eup %14741  ;;  %v10519_v32 = vadd.f32 %v10518_v34, %v10517_v40  ;;  %14761 = vpow2.f32 %v10900_v56  ;;  %v10520_v31 = vsel %vm8811_vm4, %v16821_v1, 0.0 }
0x17bf   :  { %v16827_v16 = vpop.eup %14743  ;;  %14763 = vpow2.f32 %v10902_v25  ;;  %v10522_v41 = vsel %vm8811_vm4, %v16825_v6, 0.0 }
0x17c0   :  { %v16831_v36 = vpop.eup %14745  ;;  %v10521_v15 = vadd.f32 %v10520_v31, %v10519_v32  ;;  %14765 = vpow2.f32 %v10904_v23  ;;  %v10524_v45 = vsel %vm8811_vm4, %v16827_v16, 0.0 }
0x17c1   :  { %v16833_v19 = vpop.eup %14747  ;;  %14767 = vpow2.f32 %v11279_v47  ;;  %v10526_v12 = vsel %vm8811_vm4, %v16831_v36, 0.0 }
0x17c2   :  { %v16837_v9 = vpop.eup %14749  ;;  %v10523_v38 = vadd.f32 %v10522_v41, %v10521_v15  ;;  %14769 = vpow2.f32 %v11281_v21  ;;  %v10528_v60 = vsel %vm8811_vm4, %v16833_v19, 0.0 }
0x17c3   :  { %v16839_v46 = vpop.eup %14751  ;;  %14771 = vpow2.f32 %v11283_v24  ;;  %v10530_v5 = vsel %vm8811_vm4, %v16837_v9, 0.0 }
0x17c4   :  { %v16843_v43 = vpop.eup %14753  ;;  %v10525_v28 = vadd.f32 %v10524_v45, %v10523_v38  ;;  %v10906_v27 = vsel %vm8811_vm4, %v16839_v46, 0.0  ;;  %14773 = vpow2.f32 %v11285_v18 }
0x17c5   :  { %v16847_v2 = vpop.eup %14755  ;;  %v10907_v51 = vsel %vm8811_vm4, %v16843_v43, 0.0  ;;  %14775 = vpow2.f32 %v11287_v55 }
0x17c6   :  { %v16853_v53 = vpop.eup %14757  ;;  %v10527_v13 = vadd.f32 %v10526_v12, %v10525_v28  ;;  %v10908_v57 = vadd.f32 %v10907_v51, %v10906_v27  ;;  %v10909_v17 = vsel %vm8811_vm4, %v16847_v2, 0.0  ;;  %14777 = vpow2.f32 %v11289_v58 }
0x17c7   :  { %v16855_v48 = vpop.eup %14759  ;;  %v10911_v44 = vsel %vm8811_vm4, %v16853_v53, 0.0 }
0x17c8   :  { %v16861_v59 = vpop.eup %14761  ;;  %v10529_v30 = vadd.f32 %v10528_v60, %v10527_v13  ;;  %v10910_v20 = vadd.f32 %v10909_v17, %v10908_v57  ;;  %v10913_v26 = vsel %vm8811_vm4, %v16855_v48, 0.0  ;;  %v11291_v57 = vmul.f32 1.442695, %v11277_v0 }
0x17c9   :  { %v16863_v7 = vpop.eup %14763  ;;  %v10915_v23 = vsel %vm8811_vm4, %v16861_v59, 0.0  ;;  %v11293_v60 = vmul.f32 1.442695, %v11278_v3 }
0x17ca   :  { %v16869_v61 = vpop.eup %14765  ;;  %v10531_v50 = vadd.f32 %v10530_v5, %v10529_v30  ;;  %v10912_v14 = vadd.f32 %v10911_v44, %v10910_v20  ;;  %v10917_v31 = vsel %vm8811_vm4, %v16863_v7, 0.0 }
0x17cb   :  { %v16871_v10 = vpop.eup %14767  ;;  %v10919_v38 = vsel %vm8811_vm4, %v16869_v61, 0.0 }
0x17cc   :  { %v16875_v62 = vpop.eup %14769  ;;  %14779 = vrcp.f32 %v10531_v50  ;;  %v10914_v56 = vadd.f32 %v10913_v26, %v10912_v14  ;;  %v11295_v25 = vsel %vm8811_vm4, %v16871_v10, 0.0 }
0x17cd   :  { %v16879_v40 = vpop.eup %14771  ;;  %v11296_v34 = vsel %vm8811_vm4, %v16875_v62, 0.0 }
0x17ce   :  { %v16885_v47 = vpop.eup %14773  ;;  %v10916_v32 = vadd.f32 %v10915_v23, %v10914_v56  ;;  %v11297_v21 = vadd.f32 %v11296_v34, %v11295_v25  ;;  %v11298_v24 = vsel %vm8811_vm4, %v16879_v40, 0.0  ;;  %v17381_v34 = vld [vmem:[#allocation9_spill] sm:$0xff] }
0x17cf   :  { %v16891_v15 = vpop.eup %14775  ;;  %v11300_v55 = vsel %vm8811_vm4, %v16885_v47, 0.0 }
0x17d0   :  { %v10918_v18 = vadd.f32 %v10917_v31, %v10916_v32  ;;  %v11299_v41 = vadd.f32 %v11298_v24, %v11297_v21  ;;  %v16897_v45 = vpop.eup %14777  ;;  %v11302_v58 = vsel %vm8811_vm4, %v16891_v15, 0.0  ;;  %v17382_v21 = vld [vmem:[#allocation10_spill] sm:$0xff]  ;;  %v17383_v24 = vld [vmem:[#allocation11_spill] sm:$0xff] }
0x17d1   :  { %v11304_v51 = vsel %vm8811_vm4, %v16897_v45, 0.0 }
0x17d2   :  { %v10920_v28 = vadd.f32 %v10919_v38, %v10918_v18  ;;  %v11301_v27 = vadd.f32 %v11300_v55, %v11299_v41  ;;  %v17384_v41 = vld [vmem:[#allocation12_spill] sm:$0xff] }
0x17d4   :  { %14781 = vrcp.f32 %v10920_v28  ;;  %v11303_v12 = vadd.f32 %v11302_v58, %v11301_v27  ;;  %v17385_v28 = vld [vmem:[#allocation13_spill] sm:$0xff] }
0x17d5   :  { %14783 = vpow2.f32 %v11291_v57 }
0x17d6   :  { %v14780_v13 = vpop.eup %14779  ;;  %v16909_v17 = vadd.f32 %v11304_v51, %v11303_v12  ;;  %14785 = vpow2.f32 %v11293_v60  ;;  %v17386_v12 = vld [vmem:[#allocation14_spill] sm:$0xff] }
0x17d7   :  { %v10533_v30 = vmul.f32 %v14780_v13, %v16815_v29  ;;  %v10534_v20 = vmul.f32 %v14780_v13, %v16817_v8  ;;  %v10535_v5 = vmul.f32 %v14780_v13, %v16821_v1  ;;  %v10536_v44 = vmul.f32 %v14780_v13, %v16825_v6 }
0x17d8   :  { %v10537_v50 = vmul.f32 %v14780_v13, %v16827_v16  ;;  %v10538_v14 = vmul.f32 %v14780_v13, %v16831_v36  ;;  %v10539_v33 = vmul.f32 %v14780_v13, %v16833_v19  ;;  %v10540_v0 = vmul.f32 %v14780_v13, %v16837_v9 }
0x17d9   :  { %v10541_v35 = vsel %vm10458_vm10, %v10533_v30, 0.0  ;;  %v10542_v54 = vsel %vm10459_vm6, %v10534_v20, 0.0  ;;  %v10543_v3 = vsel %vm10460_vm3, %v10535_v5, 0.0  ;;  %v10544_v29 = vsel %vm10461_vm1, %v10536_v44, 0.0  ;;  %v17387_v30 = vld [vmem:[#allocation15_spill] sm:$0xff] }
0x17da   :  { %v10545_v8 = vsel %vm10462_vm0, %v10537_v50, 0.0  ;;  %v10546_v1 = vsel %vm10463_vm8, %v10538_v14, 0.0  ;;  %v10547_v6 = vsel %vm10464_vm12, %v10539_v33, 0.0  ;;  %v10560_v16 = vrot.slane %v10541_v35, %v16369_v22 }
0x17db   :  { %v10564_v36 = vrot.slane %v10542_v54, %v16369_v22  ;;  %v10568_v19 = vrot.slane %v10543_v3, %v16369_v22  ;;  %v10572_v9 = vrot.slane %v10544_v29, %v16369_v22  ;;  %v10548_v26 = vsel %vm10465_vm14, %v10540_v0, 0.0 }
0x17dc   :  { %v10576_v56 = vrot.slane %v10545_v8, %v16369_v22  ;;  %v10580_v25 = vrot.slane %v10546_v1, %v16369_v22  ;;  %v10584_v23 = vrot.slane %v10547_v6, %v16369_v22  ;;  %v10597_v32 = vmul.f32 %v17381_v34, %v10560_v16 }
0x17dd   :  { %v10598_v31 = vmul.f32 %v17382_v21, %v10564_v36  ;;  %v10599_v18 = vmul.f32 %v17383_v24, %v10568_v19  ;;  %v10600_v38 = vmul.f32 %v17384_v41, %v10572_v9  ;;  %v10588_v58 = vrot.slane %v10548_v26, %v16369_v22 }
0x17de   :  { %v14782_v55 = vpop.eup %14781  ;;  %v10601_v27 = vmul.f32 %v17385_v28, %v10576_v56  ;;  %v10602_v51 = vmul.f32 %v17386_v12, %v10580_v25  ;;  %v10605_v13 = vsel %vm695_vm2, %v10597_v32, 0.0  ;;  %v10603_v20 = vmul.f32 %v17387_v30, %v10584_v23  ;;  %v17392_v25 = vld [vmem:[#allocation16_spill] sm:$0xff] }
0x17df   :  { %v10606_v57 = vsel %vm695_vm2, %v10598_v31, 0.0  ;;  %v10608_v44 = vsel %vm695_vm2, %v10599_v18, 0.0  ;;  %v10610_v50 = vsel %vm695_vm2, %v10600_v38, 0.0  ;;  %v10922_v33 = vmul.f32 %v14782_v55, %v16839_v46 }
0x17e0   :  { %v10607_v5 = vadd.f32 %v10606_v57, %v10605_v13  ;;  %v10612_v14 = vsel %vm695_vm2, %v10601_v27, 0.0  ;;  %v10923_v60 = vmul.f32 %v14782_v55, %v16843_v43  ;;  %v10924_v0 = vmul.f32 %v14782_v55, %v16847_v2  ;;  %v16967_v43 = vpop.eup %14783 }
0x17e1   :  { %v10925_v54 = vmul.f32 %v14782_v55, %v16853_v53  ;;  %v10926_v3 = vmul.f32 %v14782_v55, %v16855_v48  ;;  %v10927_v29 = vmul.f32 %v14782_v55, %v16861_v59  ;;  %v10928_v8 = vmul.f32 %v14782_v55, %v16863_v7  ;;  %v14786_v18 = vpop.eup %14785 }
0x17e2   :  { %v10609_v35 = vadd.f32 %v10608_v44, %v10607_v5  ;;  %v10929_v1 = vmul.f32 %v14782_v55, %v16869_v61  ;;  %v10930_v6 = vsel %vm10851_vm5, %v10922_v33, 0.0  ;;  %v10931_v46 = vsel %vm10852_vm7, %v10923_v60, 0.0 }
0x17e3   :  { %v10932_v53 = vsel %vm10853_vm9, %v10924_v0, 0.0  ;;  %vm17388_vm0 = vcmp.eq.s32.totalorder %v16507_v37, 1  ;;  %vm17389_vm1 = vcmp.eq.s32.totalorder %v16549_v49, 1  ;;  %vm17390_vm3 = vcmp.eq.s32.totalorder %v16612_v11, 1 }
0x17e4   :  { %v10611_v2 = vadd.f32 %v10610_v50, %v10609_v35  ;;  %v10933_v48 = vsel %vm17388_vm0, %v10925_v54, 0.0  ;;  %v10934_v59 = vsel %vm17389_vm1, %v10926_v3, 0.0  ;;  %v10935_v7 = vsel %vm17390_vm3, %v10927_v29, 0.0 }
0x17e5   :  { %vm17391_vm5 = vcmp.eq.s32.totalorder %v16674_v39, 1  ;;  %v10937_v16 = vsel %vm10858_vm13, %v10929_v1, 0.0  ;;  %v10949_v36 = vrot.slane %v10930_v6, %v16369_v22  ;;  %v10953_v9 = vrot.slane %v10931_v46, %v16369_v22  ;;  %v17393_v1 = vld [vmem:[#allocation17_spill] sm:$0xff] }
0x17e6   :  { %v10936_v61 = vsel %vm17391_vm5, %v10928_v8, 0.0  ;;  %v10613_v19 = vadd.f32 %v10612_v14, %v10611_v2  ;;  %v10957_v26 = vrot.slane %v10932_v53, %v16369_v22  ;;  %v10961_v56 = vrot.slane %v10933_v48, %v16369_v22 }
0x17e7   :  { %v10604_v23 = vmul.f32 %v17392_v25, %v10588_v58  ;;  %v10614_v32 = vsel %vm695_vm2, %v10602_v51, 0.0  ;;  %v10965_v31 = vrot.slane %v10934_v59, %v16369_v22  ;;  %v10986_v55 = vmul.f32 %v17381_v34, %v10949_v36  ;;  %v17016_v36 = vld [vmem:[%s17360_s20 + $0x18] sm:$0xff] }
0x17e8   :  { %v10615_v38 = vadd.f32 %v10614_v32, %v10613_v19  ;;  %v10987_v27 = vmul.f32 %v17382_v21, %v10953_v9  ;;  %v10988_v13 = vmul.f32 %v17383_v24, %v10957_v26  ;;  %v10616_v57 = vsel %vm695_vm2, %v10603_v20, 0.0  ;;  %v17027_v9 = vld [vmem:[%s17360_s20] sm:$0xff] }
0x17e9   :  { %v10969_v5 = vrot.slane %v10935_v7, %v16369_v22  ;;  %v10989_v50 = vmul.f32 %v17384_v41, %v10961_v56  ;;  %v10994_v58 = vsel %vm695_vm2, %v10986_v55, 0.0  ;;  %v10618_v14 = vsel %vm695_vm2, %v10604_v23, 0.0  ;;  %v17039_v55 = vld [vmem:[%s17360_s20 + $0x8] sm:$0xff] }
0x17ea   :  { %v10617_v44 = vadd.f32 %v10616_v57, %v10615_v38  ;;  %v10995_v51 = vsel %vm695_vm2, %v10987_v27, 0.0  ;;  %v11306_v60 = vsel %vm8811_vm4, %v16967_v43, 0.0  ;;  %v10973_v35 = vrot.slane %v10936_v61, %v16369_v22 }
0x17eb   :  { %v10996_v33 = vadd.f32 %v10995_v51, %v10994_v58  ;;  %v10990_v20 = vmul.f32 %v17385_v28, %v10965_v31  ;;  %v10997_v54 = vsel %vm695_vm2, %v10988_v13, 0.0  ;;  %v11307_v29 = vadd.f32 %v11306_v60, %v16909_v17 }
0x17ec   :  { %v16999_v0 = vadd.f32 %v10618_v14, %v10617_v44  ;;  %v11308_v8 = vsel %vm8811_vm4, %v14786_v18, 0.0  ;;  %v10977_v46 = vrot.slane %v10937_v16, %v16369_v22  ;;  %v10991_v2 = vmul.f32 %v17386_v12, %v10969_v5 }
0x17ed   :  { %v10998_v3 = vadd.f32 %v10997_v54, %v10996_v33  ;;  %v10999_v53 = vsel %vm695_vm2, %v10989_v50, 0.0  ;;  %v11309_v59 = vadd.f32 %v11308_v8, %v11307_v29  ;;  %v10992_v7 = vmul.f32 %v17387_v30, %v10973_v35 }
0x17ee   :  { %v10620_v6 = vmul.f32 %v16999_v0, %v17393_v1  ;;  %v11001_v61 = vsel %vm695_vm2, %v10990_v20, 0.0  ;;  %vm17394_vm6 = vcmask 64512   ;;  %v10993_v16 = vmul.f32 %v17392_v25, %v10977_v46 }
0x17ef   :  { %v11000_v48 = vadd.f32 %v10999_v53, %v10998_v3  ;;  %14787 = vrcp.f32 %v11309_v59  ;;  %v11003_v19 = vsel %vm695_vm2, %v10991_v2, 0.0  ;;  %vm17395_vm7 = vmmov %vm17394_vm6  ;;  %v11005_v56 = vsel %vm695_vm2, %v10992_v7, 0.0 }
0x17f0   :  { %13877 = vmatprep.subr.mxu0 %v10620_v6  ;;  %v17396_v23 = vmov 0.0|0.0   ;;  %v11007_v31 = vsel %vm695_vm2, %v10993_v16, 0.0  ;;  %vm17397_vm8 = vmmov %vm17394_vm6  ;;  %v17398_v13 = vmov 0.0   ;;  %vm17399_vm9 = vmmov 0  }
0x17f1   :  { %13878 = vmatpush3.msra.mxu0 %v10620_v6  ;;  %v11002_v17 = vadd.f32 %v11001_v61, %v11000_v48  ;;  %vm17400_vm10 = vcmp.eq.s32.totalorder %v16379_v42, 2  ;;  %vm17401_vm12 = vcmp.eq.s32.totalorder %v16423_v63, 2  ;;  %vm17402_vm13 = vcmp.eq.s32.totalorder %v16465_v4, 2  ;;  %vm17411_vm3 = vmmov %vm17394_vm6 }
0x17f2   :  { %13880 = vmatmul.mubr.msk.f32.vlgmr.msra.gmra.mrb[82].mxu0 %vm17394_vm6, %v17016_v36  ;;  %13882 = vmatprep.subr.mxu0 %v16999_v0  ;;  %vm17403_vm14 = vcmp.eq.s32.totalorder %v16507_v37, 2  ;;  %vm17405_vm0 = vcmp.eq.s32.totalorder %v16612_v11, 2  ;;  %vm17406_vm1 = vcmp.eq.s32.totalorder %v16674_v39, 2  ;;  %vm17412_vm5 = vmmov %vm17411_vm3 }
0x17f3   :  { %13883 = vmatpush3.msra.mxu0 %v16999_v0  ;;  %13884 = vmatprep.mubr.msk.f32.mxu0 %vm17395_vm7, %v17027_v9  ;;  %v11004_v26 = vadd.f32 %v11003_v19, %v11002_v17 }
0x17f4   :  { %14271 = vmatprep.subr.bf16.mxu0 %v17396_v23 }
0x17f5   :  { %v11006_v32 = vadd.f32 %v11005_v56, %v11004_v26  ;;  %v17407_v26 = vld [vmem:[#allocation18_spill] sm:$0xff] }
0x17f7   :  { %v17034_v38 = vadd.f32 %v11007_v31, %v11006_v32 }
0x17f9   :  { %v14788_v27 = vpop.eup %14787 }
0x17fa   :  { %13885 = vmatmul.mubr.msk.f32.vlgmr.msra.gmra.mrb[82].mxu0 %vm17397_vm8, %v17039_v55  ;;  %v11311_v57 = vmul.f32 %v14788_v27, %v16871_v10  ;;  %v11312_v5 = vmul.f32 %v14788_v27, %v16875_v62  ;;  %v11313_v44 = vmul.f32 %v14788_v27, %v16879_v40  ;;  %v11314_v50 = vmul.f32 %v14788_v27, %v16885_v47  ;;  %vm17415_vm8 = vmmov %vm17411_vm3 }
0x17fb   :  { %13908 = vmatprep.mubr.msk.f32.mxu0 %vm17399_vm9, %v17398_v13  ;;  %v11315_v58 = vmul.f32 %v14788_v27, %v16891_v15  ;;  %v11316_v51 = vmul.f32 %v14788_v27, %v16897_v45  ;;  %v11317_v14 = vmul.f32 %v14788_v27, %v16967_v43  ;;  %v11318_v33 = vmul.f32 %v14788_v27, %v14786_v18 }
0x17fc   :  { %v11319_v60 = vsel %vm17400_vm10, %v11311_v57, 0.0  ;;  %v11320_v35 = vsel %vm17401_vm12, %v11312_v5, 0.0  ;;  %v11321_v10 = vsel %vm17402_vm13, %v11313_v44, 0.0  ;;  %v11322_v62 = vsel %vm17403_vm14, %v11314_v50, 0.0  ;;  %v14826_v44 = vld [vmem:[%s17365_s29] sm:$0x1]  ;;  %vm17416_vm10 = vmmov %vm17411_vm3 }
0x17fd   :  { %v11323_v40 = vsel %vm17404_vm15, %v11315_v58, 0.0  ;;  %v11324_v47 = vsel %vm17405_vm0, %v11316_v51, 0.0  ;;  %v11325_v15 = vsel %vm17406_vm1, %v11317_v14, 0.0  ;;  %v11326_v42 = vsel %vm11247_vm11, %v11318_v33, 0.0  ;;  %v14827_v50 = vld [vmem:[%s17360_s20 + $0x10] sm:$0xff]  ;;  %vm17410_vm11 = vmmov %vm17394_vm6 }
0x17fe   :  { %v11338_v63 = vrot.slane %v11319_v60, %v16369_v22  ;;  %v11342_v4 = vrot.slane %v11320_v35, %v16369_v22  ;;  %v11346_v45 = vrot.slane %v11321_v10, %v16369_v22  ;;  %v11350_v37 = vrot.slane %v11322_v62, %v16369_v22  ;;  %vm17413_vm6 = vmmov %vm17411_vm3 }
0x17ff   :  { %v11354_v49 = vrot.slane %v11323_v40, %v16369_v22  ;;  %v11358_v18 = vrot.slane %v11324_v47, %v16369_v22  ;;  %v11362_v29 = vrot.slane %v11325_v15, %v16369_v22  ;;  %vm17417_vm12 = vmmov %vm17411_vm3  ;;  %v17419_v15 = vld [vmem:[#allocation21_spill] sm:$0xff] }
0x1800   :  { %v11375_v43 = vmul.f32 %v17381_v34, %v11338_v63  ;;  %v11376_v11 = vmul.f32 %v17382_v21, %v11342_v4  ;;  %v11377_v39 = vmul.f32 %v17383_v24, %v11346_v45  ;;  %v11378_v52 = vmul.f32 %v17384_v41, %v11350_v37  ;;  %vm17418_vm13 = vmmov %vm17411_vm3 }
0x1801   :  { %v11379_v8 = vmul.f32 %v17385_v28, %v11354_v49  ;;  %v11366_v21 = vrot.slane %v11326_v42, %v16369_v22  ;;  %v11380_v24 = vmul.f32 %v17386_v12, %v11358_v18  ;;  %v11381_v41 = vmul.f32 %v17387_v30, %v11362_v29  ;;  %v17408_v30 = vld [vmem:[#allocation20_spill] sm:$0xff]  ;;  %vm17422_vm15 = vmmov %vm17411_vm3 }
0x1802   :  { %v11383_v20 = vsel %vm695_vm2, %v11375_v43, 0.0  ;;  %v11384_v54 = vsel %vm695_vm2, %v11376_v11, 0.0  ;;  %v11386_v6 = vsel %vm695_vm2, %v11377_v39, 0.0  ;;  %v11388_v46 = vsel %vm695_vm2, %v11378_v52, 0.0  ;;  %v11629_v29 = vld [vmem:[%s17256_s14] sm:$0xff]  ;;  %vm17424_vm0 = vmmov %vm17411_vm3 }
0x1803   :  { %v11385_v3 = vadd.f32 %v11384_v54, %v11383_v20  ;;  %v11390_v53 = vsel %vm695_vm2, %v11379_v8, 0.0  ;;  %v11382_v59 = vmul.f32 %v17392_v25, %v11366_v21  ;;  %v11392_v7 = vsel %vm695_vm2, %v11380_v24, 0.0  ;;  %v11631_v8 = vld [vmem:[%s17256_s14 + $0x10] sm:$0xff]  ;;  %vm17425_vm1 = vmmov %vm17424_vm0  ;;  %v11832_v21 = vld [vmem:[%s17258_s16 + $0x8] sm:$0xff] }
0x1804   :  { %v11394_v61 = vsel %vm695_vm2, %v11381_v41, 0.0  ;;  %v11009_v25 = vmul.f32 %v17034_v38, %v17393_v1  ;;  %v11833_v24 = vld [vmem:[%s17258_s16 + $0x10] sm:$0xff]  ;;  %v11937_v41 = vld [vmem:[%s17259_s17 + $0x8] sm:$0xff] }
0x1805   :  { %v11387_v34 = vadd.f32 %v11386_v6, %v11385_v3  ;;  %v11396_v16 = vsel %vm695_vm2, %v11382_v59, 0.0  ;;  %vm17409_vm2 = vcmask 130048   ;;  %v17420_v3 = vld [vmem:[#allocation22_spill] sm:$0xff] }
0x1806   :  { %vm17414_vm7 = vmmov %vm17409_vm2  ;;  %v11632_v6 = vld [vmem:[%s17256_s14 + $0x18] sm:$0xff] }
0x1807   :  { %v11389_v2 = vadd.f32 %v11388_v46, %v11387_v34  ;;  %vm17421_vm14 = vmmov %vm17409_vm2  ;;  %v11831_v34 = vld [vmem:[%s17258_s16] sm:$0xff]  ;;  %v11834_v46 = vld [vmem:[%s17258_s16 + $0x18] sm:$0xff] }
0x1809   :  { %v11391_v48 = vadd.f32 %v11390_v53, %v11389_v2  ;;  %v11936_v2 = vld [vmem:[%s17259_s17] sm:$0xff]  ;;  %v11938_v53 = vld [vmem:[%s17259_s17 + $0x10] sm:$0xff] }
0x180b   :  { %v11393_v28 = vadd.f32 %v11392_v7, %v11391_v48  ;;  %v11633_v48 = vld [vmem:[%s17257_s15] sm:$0xff] }
0x180d   :  { %v11395_v17 = vadd.f32 %v11394_v61, %v11393_v28 }
0x180f   :  { %v17092_v19 = vadd.f32 %v11396_v16, %v11395_v17 }
0x1811   :  { %v11398_v47 = vmul.f32 %v17092_v19, %v17393_v1 }
0x18cd   :  { %v13886_v12 = vpop.f32.mrb[82].mxu0 }
0x18ce   :  { %v10772_v56 = vadd.f32 %v13886_v12, %v17407_v26  ;;  %v10762_v32 = vpop.f32.mrb[83].mxu0  ;;  %v11634_v12 = vld [vmem:[%s17257_s15 + $0x8] sm:$0xff] }
0x18cf   :  { %v10771_v31 = vadd.f32 %v10762_v32, %v17408_v30 }
0x18d0   :  { %v10774_v27 = vmax.f32 %v10772_v56, 0.0  ;;  %v11636_v56 = vld [vmem:[%s17257_s15 + $0x18] sm:$0xff] }
0x18d1   :  { %v10773_v57 = vmax.f32 %v10771_v31, 0.0 }
0x18d3   :  { %v14269_v5 = vpack.c.bf16 %v10774_v27, %v10773_v57  ;;  %v12073_v27 = vld [vmem:[%s17261_s19] sm:$0xff]  ;;  %v12053_v57 = vpop.permute.xlu0 %12052 }
0x18d5   :  { %14270 = vmatpush3.bf16.msra.mxu1 %v14269_v5 }
0x18d6   :  { %13894 = vmatprep.subr.mxu1 %v11009_v25 }
0x18d8   :  { %13892 = vmatmul.mubr.msk.f32.vlgmr.msra.gmra.mrb[82].mxu1 %vm17409_vm2, %v14826_v44  ;;  %vm17426_vm2 = vmmov %vm17424_vm0 }
0x18d9   :  { %13895 = vmatpush3.msra.mxu1 %v11009_v25  ;;  %13896 = vmatprep.mubr.msk.f32.mxu1 %vm17410_vm11, %v14827_v50  ;;  %vm17427_vm11 = vmmov %vm17414_vm7  ;;  %v12048_v25 = vpop.permute.xlu1 %12047 }
0x18da   :  { %13899 = vmatprep.subr.mxu1 %v17034_v38 }
0x18dc   :  { %13897 = vmatmul.mubr.msk.f32.vlgmr.msra.gmra.mrb[84].mxu1 %vm17411_vm3, %v17016_v36  ;;  %vm17428_vm3 = vmmov %vm17414_vm7 }
0x18dd   :  { %13900 = vmatpush3.msra.mxu1 %v17034_v38  ;;  %13901 = vmatprep.mubr.msk.f32.mxu1 %vm17412_vm5, %v17027_v9  ;;  %vm17429_vm5 = vmmov %vm17428_vm3 }
0x18de   :  { %14274 = vmatprep.subr.bf16.mxu1 %v17396_v23 }
0x18e4   :  { %13902 = vmatmul.mubr.msk.f32.vlgmr.msra.gmra.mrb[84].mxu1 %vm17413_vm6, %v17039_v55  ;;  %vm17430_vm6 = vmmov %vm17428_vm3 }
0x18e5   :  { %13925 = vmatprep.mubr.msk.f32.mxu1 %vm17399_vm9, %v17398_v13 }
0x19ab   :  { %v10841_v58 = vpop.f32.mrb[82].mxu1 }
0x19ac   :  { %v13893_v51 = vpop.f32.mrb[83].mxu1  ;;  %v10842_v42 = vadd.f32 %v10841_v58, %v17419_v15 }
0x19ae   :  { %v10848_v4 = vrot.slane %v10842_v42, %v16369_v22 }
0x19b7   :  { %v13903_v14 = vpop.f32.mrb[84].mxu1 }
0x19b8   :  { %v11161_v33 = vadd.f32 %v13903_v14, %v17407_v26  ;;  %v11151_v60 = vpop.f32.mrb[85].mxu1 }
0x19b9   :  { %v11160_v35 = vadd.f32 %v11151_v60, %v17408_v30 }
0x19ba   :  { %v11163_v10 = vmax.f32 %v11161_v33, 0.0 }
0x19bb   :  { %v11162_v62 = vmax.f32 %v11160_v35, 0.0 }
0x19bd   :  { %v14272_v40 = vpack.c.bf16 %v11163_v10, %v11162_v62  ;;  %v12063_v62 = vpop.permute.xlu0 %12062 }
0x19bf   :  { %14273 = vmatpush3.bf16.msra.mxu0 %v14272_v40 }
0x19c0   :  { %13911 = vmatprep.subr.mxu0 %v11398_v47 }
0x19c2   :  { %13909 = vmatmul.mubr.msk.f32.vlgmr.msra.gmra.mrb[84].mxu0 %vm17414_vm7, %v14826_v44  ;;  %vm17431_vm7 = vmmov %vm17424_vm0 }
0x19c3   :  { %13912 = vmatpush3.msra.mxu0 %v11398_v47  ;;  %13913 = vmatprep.mubr.msk.f32.mxu0 %vm17415_vm8, %v14827_v50  ;;  %vm17432_vm8 = vmmov %vm17424_vm0 }
0x19c4   :  { %13916 = vmatprep.subr.mxu0 %v17092_v19 }
0x19c6   :  { %13914 = vmatmul.mubr.msk.f32.vlgmr.msra.gmra.mrb[86].mxu0 %vm17416_vm10, %v17016_v36  ;;  %v10849_v36 = vmul.f32 %v10848_v4, %v16999_v0  ;;  %v11630_v0 = vld [vmem:[%s17256_s14 + $0x8] sm:$0xff]  ;;  %vm17433_vm10 = vmmov %vm17424_vm0 }
0x19c7   :  { %13917 = vmatpush3.msra.mxu0 %v17092_v19  ;;  %13918 = vmatprep.mubr.msk.f32.mxu0 %vm17417_vm12, %v17027_v9  ;;  %vm17434_vm12 = vmmov %vm17424_vm0 }
0x19ce   :  { %13919 = vmatmul.mubr.msk.f32.vlgmr.msra.gmra.mrb[86].mxu0 %vm17418_vm13, %v17039_v55  ;;  %vm17435_vm13 = vmmov %vm17424_vm0 }
0x19cf   :  { %13930 = vmatprep.mubr.msk.f32.mxu0 %vm17435_vm13, %v11633_v48 }
0x1a95   :  { %v11230_v63 = vpop.f32.mrb[84].mxu0 }
0x1a96   :  { %v11231_v45 = vadd.f32 %v11230_v63, %v17419_v15  ;;  %v13910_v37 = vpop.f32.mrb[85].mxu0 }
0x1a98   :  { %v11237_v49 = vrot.slane %v11231_v45, %v16369_v22 }
0x1a9a   :  { %v11238_v43 = vmul.f32 %v11237_v49, %v17034_v38  ;;  %v17423_v38 = vld [vmem:[#allocation19_spill] sm:$0xff] }
0x1a9c   :  { %v11239_v11 = vadd.f32 %v11238_v43, %v10849_v36  ;;  %v12074_v36 = vld [vmem:[%s17261_s19 + $0x8] sm:$0xff]  ;;  %v12085_v43 = vpop.permute.xlu0 %12084  ;;  %s14856_s19 = smov [#allocation6]  }
0x1a9d   :  { %s12268_s27 = sshll.u32 %s14856_s19, 4  ;;  %s12269_s27 = int_to_ptr.vmem [resolvable:$true] %s12268_s27 }
0x1a9e   :  { %s14832_s22 = scalar_lea.vmem %s12269_s27, 32  ;;  %p14833_p1 = scmp.lt.s32.totalorder %s12269_s27, %s12269_s27 }
0x1aa1   :  { %v13920_v39 = vpop.f32.mrb[86].mxu0 }
0x1aa2   :  { %v11550_v9 = vadd.f32 %v13920_v39, %v17407_v26  ;;  %v11540_v18 = vpop.f32.mrb[87].mxu0  ;;  %v11635_v26 = vld [vmem:[%s17257_s15 + $0x10] sm:$0xff] }
0x1aa3   :  { %v11549_v55 = vadd.f32 %v11540_v18, %v17408_v30 }
0x1aa4   :  { %v11552_v52 = vmax.f32 %v11550_v9, 0.0 }
0x1aa5   :  { %v11551_v20 = vmax.f32 %v11549_v55, 0.0 }
0x1aa7   :  { %v14275_v54 = vpack.c.bf16 %v11552_v52, %v11551_v20 }
0x1aa9   :  { %14276 = vmatpush3.bf16.msra.mxu1 %v14275_v54 }
0x1aaa   :  { %13936 = vmatprep.subr.mxu1 %v17420_v3 }
0x1aac   :  { %13926 = vmatmul.mubr.msk.f32.vlgmr.msra.gmra.mrb[86].mxu1 %vm17421_vm14, %v14826_v44  ;;  %vm17436_vm14 = vmmov %vm17424_vm0 }
0x1aad   :  { %13937 = vmatpush3.msra.mxu1 %v17420_v3  ;;  %13938 = vmatprep.mubr.msk.f32.mxu1 %vm17422_vm15, %v11629_v29  ;;  %vm17437_vm15 = vmmov %vm17424_vm0  ;;  %v12171_v3 = vld [vmem:[%s17263_s21] sm:$0x1]  ;;  %s14828_s21 = scalar_lea.vmem %s12269_s27, 16 }
0x1aae   :  { %14278 = vmatprep.subr.bf16.mxu1 %v17423_v38  ;;  %p14829_p0 = scmp.ne.s32.totalorder %s12269_s27, %s14828_s21  ;;  %p14834_p2 = scmp.lt.s32.totalorder %s14832_s22, %s14828_s21 }
0x1ab0   :  { %13939 = vmatmul.mubr.msk.f32.vlgmr.msra.gmra.mrb[88].mxu1 %vm17424_vm0, %v11630_v0  ;;  %p14835_p3 = por %p14834_p2, %p14833_p1 }
0x1ab1   :  { %14280 = vmatpush3.bf16.msra.mxu1 %v17423_v38  ;;  %13941 = vmatprep.mubr.msk.f32.mxu1 %vm17425_vm1, %v11631_v8  ;;  %vm12087_vm1 = vcmask 261120  }
0x1ab2   :  { %13954 = vmatprep.subr.mxu1 %v17393_v1  ;;  %p14836_p4 = pnand %p14835_p3, %p14829_p0 }
0x1ab4   :  { %13942 = vmatmul.mubr.msk.f32.gmra.mrb[90].mxu1 %vm17426_vm2, %v11632_v6  ;;  %vm17438_vm2 = vmmov %vm17428_vm3 }
0x1ab5   :  { %13948 = vmatprep.mubr.msk.f32.mxu1 %vm17427_vm11, %v11831_v34 }
0x1ab8   :  { %13949 = vmatmul.mubr.msk.f32.vlgmr.msra.gmra.mrb[88].mxu1 %vm17428_vm3, %v11832_v21 }
0x1ab9   :  { %13951 = vmatprep.mubr.msk.f32.mxu1 %vm17429_vm5, %v11833_v24  ;;  %13955 = vmatpush3.msra.mxu1 %v17393_v1  ;;  %v11939_v1 = vld [vmem:[%s17259_s17 + $0x18] sm:$0xff] }
0x1abc   :  { %13952 = vmatmul.mubr.msk.f32.gmra.mrb[90].mxu1 %vm17430_vm6, %v11834_v46 }
0x1abd   :  { %13956 = vmatprep.mubr.msk.f32.mxu1 %vm17431_vm7, %v11936_v2 }
0x1ac0   :  { %13957 = vmatmul.mubr.msk.f32.vlgmr.msra.gmra.mrb[88].mxu1 %vm17432_vm8, %v11937_v41 }
0x1ac1   :  { %13959 = vmatprep.mubr.msk.f32.mxu1 %vm17433_vm10, %v11938_v53 }
0x1ac4   :  { %13960 = vmatmul.mubr.msk.f32.gmra.mrb[90].mxu1 %vm17434_vm12, %v11939_v1 }
0x1b7f   :  { %v11619_v59 = vpop.f32.mrb[86].mxu1 }
0x1b80   :  { %v11620_v7 = vadd.f32 %v11619_v59, %v17419_v15  ;;  %v13927_v28 = vpop.f32.mrb[87].mxu1  ;;  %v12058_v15 = vpop.permute.xlu1 %12057 }
0x1b82   :  { %v11626_v61 = vrot.slane %v11620_v7, %v16369_v22 }
0x1b84   :  { %v11627_v17 = vmul.f32 %v11626_v61, %v17092_v19  ;;  %v12080_v39 = vpop.permute.xlu1 %12079 }
0x1b86   :  { %v11628_v16 = vadd.f32 %v11627_v17, %v11239_v11 }
0x1b88   :  { %13928 = vmatprep.subr.mxu0 %v11628_v16 }
0x1b89   :  { %13929 = vmatpush3.msra.mxu0 %v11628_v16 }
0x1b8a   :  { %13931 = vmatmul.mubr.msk.f32.vlgmr.msra.gmra.mrb[88].mxu0 %vm17436_vm14, %v11634_v12 }
0x1b8b   :  { %13933 = vmatprep.mubr.msk.f32.mxu0 %vm17437_vm15, %v11635_v26 }
0x1b8e   :  { %13934 = vmatmul.mubr.msk.f32.gmra.mrb[90].mxu0 %vm17424_vm0, %v11636_v56 }
0x1b8f   :  { %13970 = vmatprep.mubr.msk.f32.mxu0 %vm12087_vm1, %v12073_v27 }
0x1b93   :  { %v13958_v19 = vpop.f32.mrb[88].mxu1 }
0x1b94   :  { %v12018_v32 = vpop.f32.mrb[89].mxu1 }
0x1b97   :  { %v13961_v30 = vpop.f32.mrb[90].mxu1 }
0x1b98   :  { %v12028_v31 = vpop.f32.mrb[91].mxu1 }
0x1c5d   :  { %v13932_v5 = vpop.f32.mrb[88].mxu0 }
0x1c5e   :  { %v14292_v44 = vadd.f32 %v13958_v19, %v13932_v5  ;;  %v11715_v50 = vpop.f32.mrb[89].mxu0 }
0x1c5f   :  { %v14293_v58 = vadd.f32 %v12018_v32, %v11715_v50 }
0x1c60   :  { %v12066_v51 = vadd.f32 %v14292_v44, %v12053_v57 }
0x1c61   :  { %v12065_v14 = vadd.f32 %v14293_v58, %v12048_v25  ;;  %v13935_v33 = vpop.f32.mrb[90].mxu0 }
0x1c62   :  { %v12070_v60 = vmax.f32 %v12066_v51, 0.0  ;;  %v14294_v35 = vadd.f32 %v13961_v30, %v13935_v33  ;;  %v11725_v10 = vpop.f32.mrb[91].mxu0 }
0x1c63   :  { %v12069_v40 = vmax.f32 %v12065_v14, 0.0  ;;  %v14295_v47 = vadd.f32 %v12028_v31, %v11725_v10 }
0x1c64   :  { %v12068_v42 = vadd.f32 %v14294_v35, %v12063_v62 }
0x1c65   :  { %v12067_v63 = vadd.f32 %v14295_v47, %v12058_v15  ;;  %v14281_v4 = vpack.c.bf16 %v12070_v60, %v12069_v40 }
0x1c66   :  { %v12072_v45 = vmax.f32 %v12068_v42, 0.0 }
0x1c67   :  { %v12071_v37 = vmax.f32 %v12067_v63, 0.0  ;;  %14282 = vmatprep.subr.bf16.mxu0 %v14281_v4 }
0x1c68   :  { %14284 = vmatpush3.bf16.msra.mxu0 %v14281_v4 }
0x1c69   :  { %v14285_v49 = vpack.c.bf16 %v12072_v45, %v12071_v37 }
0x1c6b   :  { %14286 = vmatprep.subr.bf16.mxu0 %v14285_v49 }
0x1c6c   :  { %14288 = vmatpush3.bf16.msra.mxu0 %v14285_v49 }
0x1c6d   :  { %14289 = vmatprep.subr.bf16.mxu0 %v17396_v23  ;;  %v12176_v23 = vpop.permute.xlu1 %12175 }
0x1c6e   :  { %v12181_v29 = vrot.slane %v12176_v23, %v16369_v22 }
0x1c6f   :  { %13971 = vmatmul.mubr.msk.f32.vlgmr.msra.gmra.mrb[92].mxu0 %vm12087_vm1, %v12074_v36 }
0x1c70   :  { %13977 = vmatprep.mubr.msk.f32.mxu0 %vm17399_vm9, %v17398_v13 }
0x1d42   :  { %v13972_v11 = vpop.f32.mrb[92].mxu0 }
0x1d43   :  { %v12166_v9 = vadd.f32 %v13972_v11, %v12085_v43  ;;  %v12160_v18 = vpop.f32.mrb[93].mxu0 }
0x1d44   :  { %v12161_v55 = vadd.f32 %v12160_v18, %v12080_v39 }
0x1d45   :  { %v12170_v52 = vmax.f32 %v12166_v9, 0.0 }
0x1d46   :  { %v12169_v20 = vmax.f32 %v12161_v55, 0.0 }
0x1d48   :  { %v14290_v54 = vpack.c.bf16 %v12170_v52, %v12169_v20 }
0x1d4a   :  { %14291 = vmatpush3.bf16.msra.mxu0 %v14290_v54 }
0x1d4d   :  { %13978 = vmatmul.mubr.msk.f32.vlgmr.msra.gmra.mrb[94].mxu0 %vm17438_vm2, %v12171_v3 }
0x1e20   :  { %v12251_v13 = vpop.f32.mrb[94].mxu0 }
0x1e21   :  { %v12252_v0 = vadd.f32 %v12251_v13, %v12181_v29  ;;  %v13979_v38 = vpop.f32.mrb[95].mxu0 }
0x1e23   :  { %v12610_v8 = vmul.f32 -1.442695, %v12252_v0 }
0x1e25   :  { %14789 = vpow2.f32 %v12610_v8 }
0x1e2f   :  { %v14790_v6 = vpop.eup %14789 }
0x1e30   :  { %v12258_v34 = vadd.f32 1.0, %v14790_v6 }
0x1e32   :  { %14791 = vrcp.f32 %v12258_v34 }
0x1e3c   :  { %v14792_v21 = vpop.eup %14791 }
0x1e3d   :  { %12261 = vst.msk [vmem:[#allocation6] sm:$0x1] %vm8811_vm4, %v14792_v21 }
0x1e3e   :  { %14839 = shalt.err (!%p14836_p4)
}
0x1e3f   :  { %s14840_s14 = scalar_lea.hbm %s17264_s23, 16 }
0x1e40   :  { %p14841_p5 = scmp.ne.s32.totalorder %s17264_s23, %s14840_s14  ;;  %p14844_p6 = scmp.lt.u32.totalorder %s14840_s14, %s17264_s23 }
0x1e42   :  { %p14846_p7 = pnand %p14844_p6, %p14841_p5 }
0x1e44   :  { %14849 = shalt.err (!%p14846_p7)
}
0x1e45   :  { %12271 = dma.vmem_to_hbm [thread:$0]  %s12269_s27, 16, %s17264_s23, [#allocation7]  }
0x1e46   :  { %14850 = dma.done.wait [#allocation7], 16  }
0x1e47   :  { %14851 = vsyncadd [#allocation7], 4294967280 }
0x1e48   :  { %12275 = vsyncpa [#allocation7], 1 }

</bundles_post_ra>
